<compile_context>
chip_gen: v5e
topology: v5e:2x2
jax: 0.10.0
libtpu: 0.0.40
codegen_flags: <defaults>
</compile_context>

<pallas_src>
import numpy as np
import jax
import jax.numpy as jnp
from jax.experimental import pallas as pl
from jax.experimental.pallas import tpu as pltpu

F32 = jnp.float32
BF16 = jnp.bfloat16
LN_EPS = 1e-6
NC_PAD = 128        # classifier logits zero-padded to one full 128-lane row
STEM_K_PAD = 128    # stem im2col K (4*4*3 = 48) zero-padded to a lane-dense row


# ------------------------------ in-kernel math ------------------------------

def _dot(act, w_bf16):
    # MXU matmul: activation cast to bf16 in-kernel, weight pre-cast on host,
    # f32 accumulation.
    return jnp.dot(act.astype(BF16), w_bf16, preferred_element_type=F32)


def _erf(x):
    # Abramowitz & Stegun 7.1.26 (|error| < 1.5e-7 for the exact divide); the
    # divide is pushed onto the EUP via pl.reciprocal(approx=True).
    p = 0.3275911
    a1, a2, a3, a4, a5 = (0.254829592, -0.284496736, 1.421413741,
                          -1.453152027, 1.061405429)
    s = jnp.where(x >= 0.0, 1.0, -1.0)
    ax = jnp.abs(x)
    t = pl.reciprocal(1.0 + p * ax, approx=True)
    poly = ((((a5 * t + a4) * t + a3) * t + a2) * t + a1) * t
    return s * (1.0 - poly * jnp.exp(-ax * ax))


def _gelu(x):
    # Exact-erf GELU (PyTorch nn.GELU default) via the approximation above.
    return 0.5 * x * (1.0 + _erf(x * 0.7071067811865476))


def _layernorm(x, g, b):
    mu = jnp.mean(x, axis=-1, keepdims=True)
    var = jnp.mean((x - mu) * (x - mu), axis=-1, keepdims=True)
    return (x - mu) * jax.lax.rsqrt(var + LN_EPS) * g + b


# ------------------------------- fused kernel -------------------------------

def make_fused_kernel(*, depths, dims, batch, t2, vec_index):
    d1, d2 = dims
    t2_img = t2 // batch

    def kernel(patches_ref, vecs_ref, stem_w_ref,
               dwd1_ref, s1w1_ref, s1w2_ref,
               ds_wh_ref, sel_ref,
               dwd2_ref, s2w1_ref, s2w2_ref,
               fold_w_ref, o_ref):
        vecs = vecs_ref[...]                                  # (rows, 256) f32

        def vrow(name):
            r, w = vec_index[name]
            return vecs[r:r + 1, :w]                          # (1, w) static

        # ---- stem: lane-padded im2col patches @ stem_w + LN ----
        x = patches_ref[...].astype(F32)                      # (B*T1, 128)
        cur = _dot(x, stem_w_ref[...]) + vrow("stem_b")
        cur = _layernorm(cur, vrow("stem_ln_g"), vrow("stem_ln_b"))

        def convnext_block(xin, dwd, w1, w2g, pfx):
            # xin: (B*T, C).  dwd is the host-densified, batch-block-diagonal
            # depthwise 7x7 operator.  Layer-scale gamma pre-folded into
            # w2g / b2g on the host (exact algebraic fold).
            d = jnp.sum(xin[None, :, :] * dwd, axis=1) + vrow(pfx + "dw_b")
            h = _layernorm(d, vrow(pfx + "ln_g"), vrow(pfx + "ln_b"))
            h = _gelu(_dot(h, w1) + vrow(pfx + "b1"))         # (B*T, 4C)
            h = _dot(h, w2g) + vrow(pfx + "b2g")              # (B*T, C)
            return xin + h

        for i in range(depths[0]):
            cur = convnext_block(cur, dwd1_ref[i], s1w1_ref[i], s1w2_ref[i],
                                 f"s1_{i}_")                  # (B*T1, d1)

        # ---- downsample: LN + 2x2/2 conv as 2 MXU pushes ----
        #   y = xn @ hstack(tap weights)            (B*T1, 4*d2)
        #   z = tap-major vstack of lane slices     (4*B*T1, d2)
        #   out = one-hot SEL @ z + bias            (B*T2, d2)
        xn = _layernorm(cur, vrow("ds_ln_g"), vrow("ds_ln_b"))
        y = _dot(xn, ds_wh_ref[...])
        z = jnp.concatenate([y[:, t * d2:(t + 1) * d2] for t in range(4)],
                            axis=0)
        cur = jnp.dot(sel_ref[...], z.astype(BF16),
                      preferred_element_type=F32) + vrow("ds_b")

        for i in range(depths[1]):
            cur = convnext_block(cur, dwd2_ref[i], s2w1_ref[i], s2w2_ref[i],
                                 f"s2_{i}_")                  # (B*T2, d2)

        # ---- head: per-image GAP -> LN -> folded (proj @ classifier) matmul
        # TODO(synk): Dropout(p=0.0) is the identity in eval mode; nonzero
        # training-mode dropout would need pltpu.prng_seed/prng_random_bits.
        pooled = jnp.concatenate(
            [jnp.mean(cur[b * t2_img:(b + 1) * t2_img, :], axis=0,
                      keepdims=True) for b in range(batch)], axis=0)  # (B, d2)
        pooled = _layernorm(pooled, vrow("head_ln_g"), vrow("head_ln_b"))
        logits = _dot(pooled, fold_w_ref[...]) + vrow("fold_b")        # (B, 128)
        o_ref[...] = logits.astype(o_ref.dtype)

    return kernel


# --------------------------- host-side weight prep ---------------------------

class _VecSlab:
    """Packs every (1, w) vector into one lane-padded f32 slab."""

    def __init__(self, width):
        self.width = width
        self._rows = []
        self.index = {}

    def add(self, name, v):
        v = jnp.asarray(v, F32).reshape(1, -1)
        w = v.shape[1]
        assert w <= self.width, (name, w, self.width)
        self.index[name] = (len(self._rows), w)
        self._rows.append(jnp.pad(v, ((0, 0), (0, self.width - w))))

    def build(self):
        slab = jnp.concatenate(self._rows, axis=0)
        pad = (-slab.shape[0]) % 8
        if pad:
            slab = jnp.pad(slab, ((0, pad), (0, 0)))
        return slab, dict(self.index)


def _dw_dense_blockdiag(dw_w, H, W, batch):
    # Dense depthwise operator out[p,c] = sum_q x[q,c] * W_eff[p,q,c], made
    # block-diagonal over the stacked batch.  Exact only while the per-image
    # token grid fits inside the 7x7 / pad-3 window.
    assert H <= 4 and W <= 4, "dense depthwise reformulation needs H,W <= 4"
    idx = jnp.arange(H * W)
    h, w = idx // W, idx % W
    dh = h[None, :] - h[:, None] + 3            # PyTorch cross-correlation
    dwo = w[None, :] - w[:, None] + 3
    dense = dw_w[dh, dwo, :]                    # (T, T, C)
    T, C = H * W, dw_w.shape[-1]
    out = jnp.zeros((batch * T, batch * T, C), F32)
    for b in range(batch):
        out = out.at[b * T:(b + 1) * T, b * T:(b + 1) * T, :].set(dense)
    return out


def _downsample_sel_big(batch, h1, w1):
    # One-hot SEL[r, t*(B*T1) + q] = 1 where fine token q (stacked, row-major)
    # feeds tap t = 2*kh + kw of coarse stacked token r.  Columns index the
    # tap-major vstacked z matrix built inside the kernel.
    h2, w2 = h1 // 2, w1 // 2
    t1i, t2i = h1 * w1, h2 * w2
    T1, T2 = batch * t1i, batch * t2i
    sel = np.zeros((T2, 4 * T1), np.float32)
    for b in range(batch):
        for ph in range(h2):
            for pw in range(w2):
                r = b * t2i + ph * w2 + pw
                for kh in range(2):
                    for kw in range(2):
                        t = 2 * kh + kw
                        q = b * t1i + (2 * ph + kh) * w1 + (2 * pw + kw)
                        sel[r, t * T1 + q] = 1.0
    return jnp.asarray(sel, BF16)


def prepare_weights(params, *, h1, w1, batch):
    d1, d2 = params["dims"]
    nc = params["num_classes"]
    h2, w2 = h1 // 2, w1 // 2

    # ---- one slab for every bias / LN / folded layer-scale vector ----
    slab = _VecSlab(width=max(4 * d2, NC_PAD))
    slab.add("stem_b", params["stem_b"])
    slab.add("stem_ln_g", params["stem_ln_g"])
    slab.add("stem_ln_b", params["stem_ln_b"])

    def add_block_vecs(pfx, blk):
        slab.add(pfx + "dw_b", blk["dw_b"])
        slab.add(pfx + "ln_g", blk["ln_g"])
        slab.add(pfx + "ln_b", blk["ln_b"])
        slab.add(pfx + "b1", blk["b1"])
        slab.add(pfx + "b2g", blk["b2"] * blk["gamma"])    # gamma folded

    for i, blk in enumerate(params["stage1"]):
        add_block_vecs(f"s1_{i}_", blk)
    slab.add("ds_ln_g", params["ds_ln_g"])
    slab.add("ds_ln_b", params["ds_ln_b"])
    slab.add("ds_b", params["ds_b"])
    for i, blk in enumerate(params["stage2"]):
        add_block_vecs(f"s2_{i}_", blk)
    slab.add("head_ln_g", params["head_ln_g"])
    slab.add("head_ln_b", params["head_ln_b"])

    # Fold head.proj and the classifier Linear (Dropout p=0 -> exact), pad the
    # output dim to NC_PAD lanes for an unmasked lane-dense store.
    fold_w = params["proj_w"] @ params["cls_w"]                       # (d2, nc)
    fold_b = params["proj_b"] @ params["cls_w"] + params["cls_b"]
    slab.add("fold_b", jnp.pad(fold_b, ((0, 0), (0, NC_PAD - nc))))
    vec_slab, vec_index = slab.build()

    # ---- bf16 matmul weights, stacked per kind (pre-cast on host) ----
    stem_w = jnp.pad(params["stem_w"],
                     ((0, STEM_K_PAD - params["stem_w"].shape[0]), (0, 0)))
    stem_w = stem_w.astype(BF16)                                      # (128, d1)
    s1_w1 = jnp.stack([b["w1"] for b in params["stage1"]]).astype(BF16)
    s1_w2 = jnp.stack([b["w2"] * b["gamma"]
                       for b in params["stage1"]]).astype(BF16)       # gamma fold
    s2_w1 = jnp.stack([b["w1"] for b in params["stage2"]]).astype(BF16)
    s2_w2 = jnp.stack([b["w2"] * b["gamma"]
                       for b in params["stage2"]]).astype(BF16)
    ds_wh = jnp.concatenate([params["ds_w"][t * d1:(t + 1) * d1, :]
                             for t in range(4)], axis=1).astype(BF16)  # (d1, 4*d2)
    sel_big = _downsample_sel_big(batch, h1, w1)                      # (B*T2, 4*B*T1)
    dwd1 = jnp.stack([_dw_dense_blockdiag(b["dw_w"], h1, w1, batch)
                      for b in params["stage1"]])                     # (depth,B*T1,B*T1,d1)
    dwd2 = jnp.stack([_dw_dense_blockdiag(b["dw_w"], h2, w2, batch)
                      for b in params["stage2"]])
    fold_w_p = jnp.pad(fold_w, ((0, 0), (0, NC_PAD - nc))).astype(BF16)

    inputs = [vec_slab, stem_w, dwd1, s1_w1, s1_w2, ds_wh, sel_big,
              dwd2, s2_w1, s2_w2, fold_w_p]
    return inputs, vec_index


# ------------------------------ forward wrapper ------------------------------

def clip_convnext_classifier_forward(x_nchw, params, inputs, vec_index):
    dims = params["dims"]
    depths = params["depths"]
    nc = params["num_classes"]

    # NCHW -> NHWC, then im2col for the 4x4/4 stem; the whole batch is stacked
    # on the token axis and the K dim is zero-padded to 128 lanes so the only
    # per-call activation DMA is a single lane-dense block.
    x = jnp.transpose(x_nchw, (0, 2, 3, 1)).astype(F32)
    B, H, W, Cin = x.shape
    k = 4
    h1, w1 = H // k, W // k
    t1 = B * h1 * w1
    t2 = B * (h1 // 2) * (w1 // 2)
    assert inputs[2].shape[1] == t1, "weights were prepared for a different batch/shape"
    assert inputs[6].shape == (t2, 4 * t1)

    patches = x.reshape(B, h1, k, w1, k, Cin).transpose(0, 1, 3, 2, 4, 5)
    patches = patches.reshape(B * h1 * w1, k * k * Cin)
    patches = jnp.pad(patches, ((0, 0), (0, STEM_K_PAD - k * k * Cin)))

    kernel = make_fused_kernel(depths=depths, dims=dims, batch=B, t2=t2,
                               vec_index=vec_index)

    # Single invocation: the whole model (weights + activations, ~1 MB) stays
    # resident in VMEM; no per-image grid loop and no per-layer HBM traffic.
    # TODO(synk): on v7x use grid=(B,) + dimension_semantics=("parallel",) (or
    # pl.core_map) to spread the batch over both TensorCores.
    all_inputs = [patches] + list(inputs)
    in_specs = [pl.BlockSpec(a.shape, lambda i, n=a.ndim: (0,) * n)
                for a in all_inputs]

    out = pl.pallas_call(
        kernel,
        out_shape=jax.ShapeDtypeStruct((B, NC_PAD), F32),
        grid=(1,),
        in_specs=in_specs,
        out_specs=pl.BlockSpec((B, NC_PAD), lambda i: (0, 0)),
        compiler_params=pltpu.CompilerParams(
            dimension_semantics=("arbitrary",)),
    )(*all_inputs)

    return out[:, :nc]


# ------------------------------ parameter init ------------------------------

def init_params(key, *, dims=(32, 64), depths=(2, 2), embedding_dim=48,
                num_classes=10):
    keys = iter(jax.random.split(key, 64))

    def nrm(shape, scale=0.02):
        return scale * jax.random.normal(next(keys), shape, F32)

    def block_params(dim):
        return {
            "dw_w": nrm((7, 7, dim)),
            "dw_b": jnp.zeros((1, dim), F32),
            "ln_g": jnp.ones((1, dim), F32),
            "ln_b": jnp.zeros((1, dim), F32),
            "w1": nrm((dim, 4 * dim)),
            "b1": jnp.zeros((1, 4 * dim), F32),
            "w2": nrm((4 * dim, dim)),
            "b2": jnp.zeros((1, dim), F32),
            "gamma": jnp.full((1, dim), 1e-6, F32),   # ConvNeXt layer-scale
        }

    return {
        "dims": dims,
        "depths": depths,
        "num_classes": num_classes,
        "stem_w": nrm((4 * 4 * 3, dims[0])),
        "stem_b": jnp.zeros((1, dims[0]), F32),
        "stem_ln_g": jnp.ones((1, dims[0]), F32),
        "stem_ln_b": jnp.zeros((1, dims[0]), F32),
        "stage1": [block_params(dims[0]) for _ in range(depths[0])],
        "ds_ln_g": jnp.ones((1, dims[0]), F32),
        "ds_ln_b": jnp.zeros((1, dims[0]), F32),
        "ds_w": nrm((2 * 2 * dims[0], dims[1])),
        "ds_b": jnp.zeros((1, dims[1]), F32),
        "stage2": [block_params(dims[1]) for _ in range(depths[1])],
        "head_ln_g": jnp.ones((1, dims[1]), F32),
        "head_ln_b": jnp.zeros((1, dims[1]), F32),
        "proj_w": nrm((dims[1], embedding_dim)),       # backbone.head.proj
        "proj_b": jnp.zeros((1, embedding_dim), F32),
        "cls_w": nrm((embedding_dim, num_classes)),    # classifier Linear
        "cls_b": jnp.zeros((1, num_classes), F32),
    }


# ----------------------------------- main -----------------------------------

if __name__ == "__main__":
    key = jax.random.PRNGKey(0)
    kx, kp = jax.random.split(key)

    # NCHW input, as PyTorch would supply (small image: 2 x 3 x 16 x 16).
    x = jax.random.normal(kx, (2, 3, 16, 16), F32)
    params = init_params(kp, dims=(32, 64), depths=(2, 2),
                         embedding_dim=48, num_classes=10)
    inputs, vec_index = prepare_weights(params, h1=16 // 4, w1=16 // 4, batch=2)

    fwd = jax.jit(lambda inp, ws: clip_convnext_classifier_forward(
        inp, params, ws, vec_index))
    logits = fwd(x, inputs)
    jax.block_until_ready(logits)

    assert logits.shape == (2, 10), logits.shape
    assert bool(jnp.all(jnp.isfinite(logits)))
    print("KERNEL_OK")
</pallas_src>

<mosaic_0001>
module attributes {stable_mosaic.version = 11 : i64} {
  func.func @kernel(%arg0: i32, %arg1: memref<32x128xf32, #tpu.memory_space<vmem>>, %arg2: memref<32x256xf32, #tpu.memory_space<vmem>>, %arg3: memref<128x32xbf16, #tpu.memory_space<vmem>>, %arg4: memref<2x32x32x32xf32, #tpu.memory_space<vmem>>, %arg5: memref<2x32x128xbf16, #tpu.memory_space<vmem>>, %arg6: memref<2x128x32xbf16, #tpu.memory_space<vmem>>, %arg7: memref<32x256xbf16, #tpu.memory_space<vmem>>, %arg8: memref<8x128xbf16, #tpu.memory_space<vmem>>, %arg9: memref<2x8x8x64xf32, #tpu.memory_space<vmem>>, %arg10: memref<2x64x256xbf16, #tpu.memory_space<vmem>>, %arg11: memref<2x256x64xbf16, #tpu.memory_space<vmem>>, %arg12: memref<64x128xbf16, #tpu.memory_space<vmem>>, %arg13: memref<2x128xf32, #tpu.memory_space<vmem>>) attributes {dimension_semantics = [#tpu.dimension_semantics<arbitrary>], iteration_bounds = array<i64: 1>, scalar_prefetch = 0 : i64, scratch_operands = 0 : i64, tpu.core_type = #tpu.core_type<tc>, window_params = [{pipeline_mode = #tpu.pipeline_mode<synchronous>, transform_indices = @transform_0, window_bounds = array<i64: 32, 128>}, {pipeline_mode = #tpu.pipeline_mode<synchronous>, transform_indices = @transform_1, window_bounds = array<i64: 32, 256>}, {pipeline_mode = #tpu.pipeline_mode<synchronous>, transform_indices = @transform_2, window_bounds = array<i64: 128, 32>}, {pipeline_mode = #tpu.pipeline_mode<synchronous>, transform_indices = @transform_3, window_bounds = array<i64: 2, 32, 32, 32>}, {pipeline_mode = #tpu.pipeline_mode<synchronous>, transform_indices = @transform_4, window_bounds = array<i64: 2, 32, 128>}, {pipeline_mode = #tpu.pipeline_mode<synchronous>, transform_indices = @transform_5, window_bounds = array<i64: 2, 128, 32>}, {pipeline_mode = #tpu.pipeline_mode<synchronous>, transform_indices = @transform_6, window_bounds = array<i64: 32, 256>}, {pipeline_mode = #tpu.pipeline_mode<synchronous>, transform_indices = @transform_7, window_bounds = array<i64: 8, 128>}, {pipeline_mode = #tpu.pipeline_mode<synchronous>, transform_indices = @transform_8, window_bounds = array<i64: 2, 8, 8, 64>}, {pipeline_mode = #tpu.pipeline_mode<synchronous>, transform_indices = @transform_9, window_bounds = array<i64: 2, 64, 256>}, {pipeline_mode = #tpu.pipeline_mode<synchronous>, transform_indices = @transform_10, window_bounds = array<i64: 2, 256, 64>}, {pipeline_mode = #tpu.pipeline_mode<synchronous>, transform_indices = @transform_11, window_bounds = array<i64: 64, 128>}, {pipeline_mode = #tpu.pipeline_mode<synchronous>, transform_indices = @transform_12, window_bounds = array<i64: 2, 128>}]} {
    %c0 = arith.constant 0 : index
    %c0_0 = arith.constant 0 : index
    %0 = vector.load %arg2[%c0, %c0_0] : memref<32x256xf32, #tpu.memory_space<vmem>>, vector<32x256xf32>
    %c0_1 = arith.constant 0 : index
    %c0_2 = arith.constant 0 : index
    %1 = vector.load %arg1[%c0_1, %c0_2] : memref<32x128xf32, #tpu.memory_space<vmem>>, vector<32x128xf32>
    %c0_3 = arith.constant 0 : index
    %c0_4 = arith.constant 0 : index
    %2 = vector.load %arg3[%c0_3, %c0_4] : memref<128x32xbf16, #tpu.memory_space<vmem>>, vector<128x32xbf16>
    %3 = arith.truncf %1 : vector<32x128xf32> to vector<32x128xbf16>
    %cst = arith.constant dense<0.000000e+00> : vector<32x32xf32>
    %4 = tpu.matmul %3, %2, %cst {dimension_numbers = #tpu.dot_dimension_numbers<[1], [0], [0], [1], [0, 0, 1, 1], [], []>} : vector<32x128xbf16>, vector<128x32xbf16>, vector<32x32xf32> -> vector<32x32xf32>
    %5 = vector.extract_strided_slice %0 {offsets = [0, 0], sizes = [1, 32], strides = [1, 1]} : vector<32x256xf32> to vector<1x32xf32>
    %6 = vector.broadcast %5 : vector<1x32xf32> to vector<32x32xf32>
    %7 = arith.addf %4, %6 : vector<32x32xf32>
    %8 = vector.extract_strided_slice %0 {offsets = [1, 0], sizes = [1, 32], strides = [1, 1]} : vector<32x256xf32> to vector<1x32xf32>
    %9 = vector.extract_strided_slice %0 {offsets = [2, 0], sizes = [1, 32], strides = [1, 1]} : vector<32x256xf32> to vector<1x32xf32>
    %cst_5 = arith.constant dense<0.000000e+00> : vector<32xf32>
    %10 = vector.multi_reduction <add>, %7, %cst_5 [1] : vector<32x32xf32> to vector<32xf32>
    %11 = vector.shape_cast %10 : vector<32xf32> to vector<32x1xf32>
    %cst_6 = arith.constant 3.200000e+01 : f32
    %12 = vector.broadcast %cst_6 : f32 to vector<32x1xf32>
    %13 = arith.divf %11, %12 : vector<32x1xf32>
    %14 = vector.broadcast %13 : vector<32x1xf32> to vector<32x32xf32>
    %15 = arith.subf %7, %14 : vector<32x32xf32>
    %16 = vector.broadcast %13 : vector<32x1xf32> to vector<32x32xf32>
    %17 = arith.subf %7, %16 : vector<32x32xf32>
    %18 = arith.mulf %15, %17 : vector<32x32xf32>
    %cst_7 = arith.constant dense<0.000000e+00> : vector<32xf32>
    %19 = vector.multi_reduction <add>, %18, %cst_7 [1] : vector<32x32xf32> to vector<32xf32>
    %20 = vector.shape_cast %19 : vector<32xf32> to vector<32x1xf32>
    %cst_8 = arith.constant 3.200000e+01 : f32
    %21 = vector.broadcast %cst_8 : f32 to vector<32x1xf32>
    %22 = arith.divf %20, %21 : vector<32x1xf32>
    %23 = vector.broadcast %13 : vector<32x1xf32> to vector<32x32xf32>
    %24 = arith.subf %7, %23 : vector<32x32xf32>
    %cst_9 = arith.constant 9.99999997E-7 : f32
    %25 = vector.broadcast %cst_9 : f32 to vector<32x1xf32>
    %26 = arith.addf %22, %25 : vector<32x1xf32>
    %27 = math.rsqrt %26 : vector<32x1xf32>
    %28 = vector.broadcast %27 : vector<32x1xf32> to vector<32x32xf32>
    %29 = arith.mulf %24, %28 : vector<32x32xf32>
    %30 = vector.broadcast %8 : vector<1x32xf32> to vector<32x32xf32>
    %31 = arith.mulf %29, %30 : vector<32x32xf32>
    %32 = vector.broadcast %9 : vector<1x32xf32> to vector<32x32xf32>
    %33 = arith.addf %31, %32 : vector<32x32xf32>
    %c0_10 = arith.constant 0 : index
    %c0_11 = arith.constant 0 : index
    %c0_12 = arith.constant 0 : index
    %c0_13 = arith.constant 0 : index
    %34 = vector.load %arg4[%c0_10, %c0_11, %c0_12, %c0_13] : memref<2x32x32x32xf32, #tpu.memory_space<vmem>>, vector<1x32x32x32xf32>
    %35 = vector.shape_cast %34 : vector<1x32x32x32xf32> to vector<32x32x32xf32>
    %c0_14 = arith.constant 0 : index
    %c0_15 = arith.constant 0 : index
    %c0_16 = arith.constant 0 : index
    %36 = vector.load %arg5[%c0_14, %c0_15, %c0_16] : memref<2x32x128xbf16, #tpu.memory_space<vmem>>, vector<1x32x128xbf16>
    %37 = vector.shape_cast %36 : vector<1x32x128xbf16> to vector<32x128xbf16>
    %c0_17 = arith.constant 0 : index
    %c0_18 = arith.constant 0 : index
    %c0_19 = arith.constant 0 : index
    %38 = vector.load %arg6[%c0_17, %c0_18, %c0_19] : memref<2x128x32xbf16, #tpu.memory_space<vmem>>, vector<1x128x32xbf16>
    %39 = vector.shape_cast %38 : vector<1x128x32xbf16> to vector<128x32xbf16>
    %40 = vector.shape_cast %33 : vector<32x32xf32> to vector<1x32x32xf32>
    %41 = vector.broadcast %40 : vector<1x32x32xf32> to vector<32x32x32xf32>
    %42 = arith.mulf %41, %35 : vector<32x32x32xf32>
    %cst_20 = arith.constant dense<0.000000e+00> : vector<32x32xf32>
    %43 = vector.multi_reduction <add>, %42, %cst_20 [1] : vector<32x32x32xf32> to vector<32x32xf32>
    %44 = vector.extract_strided_slice %0 {offsets = [3, 0], sizes = [1, 32], strides = [1, 1]} : vector<32x256xf32> to vector<1x32xf32>
    %45 = vector.broadcast %44 : vector<1x32xf32> to vector<32x32xf32>
    %46 = arith.addf %43, %45 : vector<32x32xf32>
    %47 = vector.extract_strided_slice %0 {offsets = [4, 0], sizes = [1, 32], strides = [1, 1]} : vector<32x256xf32> to vector<1x32xf32>
    %48 = vector.extract_strided_slice %0 {offsets = [5, 0], sizes = [1, 32], strides = [1, 1]} : vector<32x256xf32> to vector<1x32xf32>
    %cst_21 = arith.constant dense<0.000000e+00> : vector<32xf32>
    %49 = vector.multi_reduction <add>, %46, %cst_21 [1] : vector<32x32xf32> to vector<32xf32>
    %50 = vector.shape_cast %49 : vector<32xf32> to vector<32x1xf32>
    %cst_22 = arith.constant 3.200000e+01 : f32
    %51 = vector.broadcast %cst_22 : f32 to vector<32x1xf32>
    %52 = arith.divf %50, %51 : vector<32x1xf32>
    %53 = vector.broadcast %52 : vector<32x1xf32> to vector<32x32xf32>
    %54 = arith.subf %46, %53 : vector<32x32xf32>
    %55 = vector.broadcast %52 : vector<32x1xf32> to vector<32x32xf32>
    %56 = arith.subf %46, %55 : vector<32x32xf32>
    %57 = arith.mulf %54, %56 : vector<32x32xf32>
    %cst_23 = arith.constant dense<0.000000e+00> : vector<32xf32>
    %58 = vector.multi_reduction <add>, %57, %cst_23 [1] : vector<32x32xf32> to vector<32xf32>
    %59 = vector.shape_cast %58 : vector<32xf32> to vector<32x1xf32>
    %cst_24 = arith.constant 3.200000e+01 : f32
    %60 = vector.broadcast %cst_24 : f32 to vector<32x1xf32>
    %61 = arith.divf %59, %60 : vector<32x1xf32>
    %62 = vector.broadcast %52 : vector<32x1xf32> to vector<32x32xf32>
    %63 = arith.subf %46, %62 : vector<32x32xf32>
    %cst_25 = arith.constant 9.99999997E-7 : f32
    %64 = vector.broadcast %cst_25 : f32 to vector<32x1xf32>
    %65 = arith.addf %61, %64 : vector<32x1xf32>
    %66 = math.rsqrt %65 : vector<32x1xf32>
    %67 = vector.broadcast %66 : vector<32x1xf32> to vector<32x32xf32>
    %68 = arith.mulf %63, %67 : vector<32x32xf32>
    %69 = vector.broadcast %47 : vector<1x32xf32> to vector<32x32xf32>
    %70 = arith.mulf %68, %69 : vector<32x32xf32>
    %71 = vector.broadcast %48 : vector<1x32xf32> to vector<32x32xf32>
    %72 = arith.addf %70, %71 : vector<32x32xf32>
    %73 = arith.truncf %72 : vector<32x32xf32> to vector<32x32xbf16>
    %cst_26 = arith.constant dense<0.000000e+00> : vector<32x128xf32>
    %74 = tpu.matmul %73, %37, %cst_26 {dimension_numbers = #tpu.dot_dimension_numbers<[1], [0], [0], [1], [0, 0, 1, 1], [], []>} : vector<32x32xbf16>, vector<32x128xbf16>, vector<32x128xf32> -> vector<32x128xf32>
    %75 = vector.extract_strided_slice %0 {offsets = [6, 0], sizes = [1, 128], strides = [1, 1]} : vector<32x256xf32> to vector<1x128xf32>
    %76 = vector.broadcast %75 : vector<1x128xf32> to vector<32x128xf32>
    %77 = arith.addf %74, %76 : vector<32x128xf32>
    %cst_27 = arith.constant 5.000000e-01 : f32
    %78 = vector.broadcast %cst_27 : f32 to vector<32x128xf32>
    %79 = arith.mulf %78, %77 : vector<32x128xf32>
    %cst_28 = arith.constant 0.707106769 : f32
    %80 = vector.broadcast %cst_28 : f32 to vector<32x128xf32>
    %81 = arith.mulf %77, %80 : vector<32x128xf32>
    %cst_29 = arith.constant 0.000000e+00 : f32
    %82 = vector.broadcast %cst_29 : f32 to vector<32x128xf32>
    %83 = arith.cmpf oge, %81, %82 : vector<32x128xf32>
    %cst_30 = arith.constant 1.000000e+00 : f32
    %cst_31 = arith.constant -1.000000e+00 : f32
    %84 = vector.broadcast %cst_30 : f32 to vector<32x128xf32>
    %85 = vector.broadcast %cst_31 : f32 to vector<32x128xf32>
    %86 = arith.select %83, %84, %85 : vector<32x128xi1>, vector<32x128xf32>
    %87 = math.absf %81 : vector<32x128xf32>
    %cst_32 = arith.constant 0.327591091 : f32
    %88 = vector.broadcast %cst_32 : f32 to vector<32x128xf32>
    %89 = arith.mulf %88, %87 : vector<32x128xf32>
    %cst_33 = arith.constant 1.000000e+00 : f32
    %90 = vector.broadcast %cst_33 : f32 to vector<32x128xf32>
    %91 = arith.addf %90, %89 : vector<32x128xf32>
    %92 = tpu.reciprocal %91 {approx = true} : vector<32x128xf32> -> vector<32x128xf32>
    %cst_34 = arith.constant 1.06140542 : f32
    %93 = vector.broadcast %cst_34 : f32 to vector<32x128xf32>
    %94 = arith.mulf %93, %92 : vector<32x128xf32>
    %cst_35 = arith.constant -1.45315206 : f32
    %95 = vector.broadcast %cst_35 : f32 to vector<32x128xf32>
    %96 = arith.addf %94, %95 : vector<32x128xf32>
    %97 = arith.mulf %96, %92 : vector<32x128xf32>
    %cst_36 = arith.constant 1.42141378 : f32
    %98 = vector.broadcast %cst_36 : f32 to vector<32x128xf32>
    %99 = arith.addf %97, %98 : vector<32x128xf32>
    %100 = arith.mulf %99, %92 : vector<32x128xf32>
    %cst_37 = arith.constant -0.284496725 : f32
    %101 = vector.broadcast %cst_37 : f32 to vector<32x128xf32>
    %102 = arith.addf %100, %101 : vector<32x128xf32>
    %103 = arith.mulf %102, %92 : vector<32x128xf32>
    %cst_38 = arith.constant 0.254829586 : f32
    %104 = vector.broadcast %cst_38 : f32 to vector<32x128xf32>
    %105 = arith.addf %103, %104 : vector<32x128xf32>
    %106 = arith.mulf %105, %92 : vector<32x128xf32>
    %cst_39 = arith.constant 0.000000e+00 : f32
    %107 = vector.broadcast %cst_39 : f32 to vector<32x128xf32>
    %108 = arith.subf %107, %87 : vector<32x128xf32>
    %109 = arith.mulf %108, %87 : vector<32x128xf32>
    %110 = math.exp %109 : vector<32x128xf32>
    %111 = arith.mulf %106, %110 : vector<32x128xf32>
    %cst_40 = arith.constant 1.000000e+00 : f32
    %112 = vector.broadcast %cst_40 : f32 to vector<32x128xf32>
    %113 = arith.subf %112, %111 : vector<32x128xf32>
    %114 = arith.mulf %86, %113 : vector<32x128xf32>
    %cst_41 = arith.constant 1.000000e+00 : f32
    %115 = vector.broadcast %cst_41 : f32 to vector<32x128xf32>
    %116 = arith.addf %115, %114 : vector<32x128xf32>
    %117 = arith.mulf %79, %116 : vector<32x128xf32>
    %118 = arith.truncf %117 : vector<32x128xf32> to vector<32x128xbf16>
    %cst_42 = arith.constant dense<0.000000e+00> : vector<32x32xf32>
    %119 = tpu.matmul %118, %39, %cst_42 {dimension_numbers = #tpu.dot_dimension_numbers<[1], [0], [0], [1], [0, 0, 1, 1], [], []>} : vector<32x128xbf16>, vector<128x32xbf16>, vector<32x32xf32> -> vector<32x32xf32>
    %120 = vector.extract_strided_slice %0 {offsets = [7, 0], sizes = [1, 32], strides = [1, 1]} : vector<32x256xf32> to vector<1x32xf32>
    %121 = vector.broadcast %120 : vector<1x32xf32> to vector<32x32xf32>
    %122 = arith.addf %119, %121 : vector<32x32xf32>
    %123 = arith.addf %33, %122 : vector<32x32xf32>
    %c1 = arith.constant 1 : index
    %c0_43 = arith.constant 0 : index
    %c0_44 = arith.constant 0 : index
    %c0_45 = arith.constant 0 : index
    %124 = vector.load %arg4[%c1, %c0_43, %c0_44, %c0_45] : memref<2x32x32x32xf32, #tpu.memory_space<vmem>>, vector<1x32x32x32xf32>
    %125 = vector.shape_cast %124 : vector<1x32x32x32xf32> to vector<32x32x32xf32>
    %c1_46 = arith.constant 1 : index
    %c0_47 = arith.constant 0 : index
    %c0_48 = arith.constant 0 : index
    %126 = vector.load %arg5[%c1_46, %c0_47, %c0_48] : memref<2x32x128xbf16, #tpu.memory_space<vmem>>, vector<1x32x128xbf16>
    %127 = vector.shape_cast %126 : vector<1x32x128xbf16> to vector<32x128xbf16>
    %c1_49 = arith.constant 1 : index
    %c0_50 = arith.constant 0 : index
    %c0_51 = arith.constant 0 : index
    %128 = vector.load %arg6[%c1_49, %c0_50, %c0_51] : memref<2x128x32xbf16, #tpu.memory_space<vmem>>, vector<1x128x32xbf16>
    %129 = vector.shape_cast %128 : vector<1x128x32xbf16> to vector<128x32xbf16>
    %130 = vector.shape_cast %123 : vector<32x32xf32> to vector<1x32x32xf32>
    %131 = vector.broadcast %130 : vector<1x32x32xf32> to vector<32x32x32xf32>
    %132 = arith.mulf %131, %125 : vector<32x32x32xf32>
    %cst_52 = arith.constant dense<0.000000e+00> : vector<32x32xf32>
    %133 = vector.multi_reduction <add>, %132, %cst_52 [1] : vector<32x32x32xf32> to vector<32x32xf32>
    %134 = vector.extract_strided_slice %0 {offsets = [8, 0], sizes = [1, 32], strides = [1, 1]} : vector<32x256xf32> to vector<1x32xf32>
    %135 = vector.broadcast %134 : vector<1x32xf32> to vector<32x32xf32>
    %136 = arith.addf %133, %135 : vector<32x32xf32>
    %137 = vector.extract_strided_slice %0 {offsets = [9, 0], sizes = [1, 32], strides = [1, 1]} : vector<32x256xf32> to vector<1x32xf32>
    %138 = vector.extract_strided_slice %0 {offsets = [10, 0], sizes = [1, 32], strides = [1, 1]} : vector<32x256xf32> to vector<1x32xf32>
    %cst_53 = arith.constant dense<0.000000e+00> : vector<32xf32>
    %139 = vector.multi_reduction <add>, %136, %cst_53 [1] : vector<32x32xf32> to vector<32xf32>
    %140 = vector.shape_cast %139 : vector<32xf32> to vector<32x1xf32>
    %cst_54 = arith.constant 3.200000e+01 : f32
    %141 = vector.broadcast %cst_54 : f32 to vector<32x1xf32>
    %142 = arith.divf %140, %141 : vector<32x1xf32>
    %143 = vector.broadcast %142 : vector<32x1xf32> to vector<32x32xf32>
    %144 = arith.subf %136, %143 : vector<32x32xf32>
    %145 = vector.broadcast %142 : vector<32x1xf32> to vector<32x32xf32>
    %146 = arith.subf %136, %145 : vector<32x32xf32>
    %147 = arith.mulf %144, %146 : vector<32x32xf32>
    %cst_55 = arith.constant dense<0.000000e+00> : vector<32xf32>
    %148 = vector.multi_reduction <add>, %147, %cst_55 [1] : vector<32x32xf32> to vector<32xf32>
    %149 = vector.shape_cast %148 : vector<32xf32> to vector<32x1xf32>
    %cst_56 = arith.constant 3.200000e+01 : f32
    %150 = vector.broadcast %cst_56 : f32 to vector<32x1xf32>
    %151 = arith.divf %149, %150 : vector<32x1xf32>
    %152 = vector.broadcast %142 : vector<32x1xf32> to vector<32x32xf32>
    %153 = arith.subf %136, %152 : vector<32x32xf32>
    %cst_57 = arith.constant 9.99999997E-7 : f32
    %154 = vector.broadcast %cst_57 : f32 to vector<32x1xf32>
    %155 = arith.addf %151, %154 : vector<32x1xf32>
    %156 = math.rsqrt %155 : vector<32x1xf32>
    %157 = vector.broadcast %156 : vector<32x1xf32> to vector<32x32xf32>
    %158 = arith.mulf %153, %157 : vector<32x32xf32>
    %159 = vector.broadcast %137 : vector<1x32xf32> to vector<32x32xf32>
    %160 = arith.mulf %158, %159 : vector<32x32xf32>
    %161 = vector.broadcast %138 : vector<1x32xf32> to vector<32x32xf32>
    %162 = arith.addf %160, %161 : vector<32x32xf32>
    %163 = arith.truncf %162 : vector<32x32xf32> to vector<32x32xbf16>
    %cst_58 = arith.constant dense<0.000000e+00> : vector<32x128xf32>
    %164 = tpu.matmul %163, %127, %cst_58 {dimension_numbers = #tpu.dot_dimension_numbers<[1], [0], [0], [1], [0, 0, 1, 1], [], []>} : vector<32x32xbf16>, vector<32x128xbf16>, vector<32x128xf32> -> vector<32x128xf32>
    %165 = vector.extract_strided_slice %0 {offsets = [11, 0], sizes = [1, 128], strides = [1, 1]} : vector<32x256xf32> to vector<1x128xf32>
    %166 = vector.broadcast %165 : vector<1x128xf32> to vector<32x128xf32>
    %167 = arith.addf %164, %166 : vector<32x128xf32>
    %cst_59 = arith.constant 5.000000e-01 : f32
    %168 = vector.broadcast %cst_59 : f32 to vector<32x128xf32>
    %169 = arith.mulf %168, %167 : vector<32x128xf32>
    %cst_60 = arith.constant 0.707106769 : f32
    %170 = vector.broadcast %cst_60 : f32 to vector<32x128xf32>
    %171 = arith.mulf %167, %170 : vector<32x128xf32>
    %cst_61 = arith.constant 0.000000e+00 : f32
    %172 = vector.broadcast %cst_61 : f32 to vector<32x128xf32>
    %173 = arith.cmpf oge, %171, %172 : vector<32x128xf32>
    %cst_62 = arith.constant 1.000000e+00 : f32
    %cst_63 = arith.constant -1.000000e+00 : f32
    %174 = vector.broadcast %cst_62 : f32 to vector<32x128xf32>
    %175 = vector.broadcast %cst_63 : f32 to vector<32x128xf32>
    %176 = arith.select %173, %174, %175 : vector<32x128xi1>, vector<32x128xf32>
    %177 = math.absf %171 : vector<32x128xf32>
    %cst_64 = arith.constant 0.327591091 : f32
    %178 = vector.broadcast %cst_64 : f32 to vector<32x128xf32>
    %179 = arith.mulf %178, %177 : vector<32x128xf32>
    %cst_65 = arith.constant 1.000000e+00 : f32
    %180 = vector.broadcast %cst_65 : f32 to vector<32x128xf32>
    %181 = arith.addf %180, %179 : vector<32x128xf32>
    %182 = tpu.reciprocal %181 {approx = true} : vector<32x128xf32> -> vector<32x128xf32>
    %cst_66 = arith.constant 1.06140542 : f32
    %183 = vector.broadcast %cst_66 : f32 to vector<32x128xf32>
    %184 = arith.mulf %183, %182 : vector<32x128xf32>
    %cst_67 = arith.constant -1.45315206 : f32
    %185 = vector.broadcast %cst_67 : f32 to vector<32x128xf32>
    %186 = arith.addf %184, %185 : vector<32x128xf32>
    %187 = arith.mulf %186, %182 : vector<32x128xf32>
    %cst_68 = arith.constant 1.42141378 : f32
    %188 = vector.broadcast %cst_68 : f32 to vector<32x128xf32>
    %189 = arith.addf %187, %188 : vector<32x128xf32>
    %190 = arith.mulf %189, %182 : vector<32x128xf32>
    %cst_69 = arith.constant -0.284496725 : f32
    %191 = vector.broadcast %cst_69 : f32 to vector<32x128xf32>
    %192 = arith.addf %190, %191 : vector<32x128xf32>
    %193 = arith.mulf %192, %182 : vector<32x128xf32>
    %cst_70 = arith.constant 0.254829586 : f32
    %194 = vector.broadcast %cst_70 : f32 to vector<32x128xf32>
    %195 = arith.addf %193, %194 : vector<32x128xf32>
    %196 = arith.mulf %195, %182 : vector<32x128xf32>
    %cst_71 = arith.constant 0.000000e+00 : f32
    %197 = vector.broadcast %cst_71 : f32 to vector<32x128xf32>
    %198 = arith.subf %197, %177 : vector<32x128xf32>
    %199 = arith.mulf %198, %177 : vector<32x128xf32>
    %200 = math.exp %199 : vector<32x128xf32>
    %201 = arith.mulf %196, %200 : vector<32x128xf32>
    %cst_72 = arith.constant 1.000000e+00 : f32
    %202 = vector.broadcast %cst_72 : f32 to vector<32x128xf32>
    %203 = arith.subf %202, %201 : vector<32x128xf32>
    %204 = arith.mulf %176, %203 : vector<32x128xf32>
    %cst_73 = arith.constant 1.000000e+00 : f32
    %205 = vector.broadcast %cst_73 : f32 to vector<32x128xf32>
    %206 = arith.addf %205, %204 : vector<32x128xf32>
    %207 = arith.mulf %169, %206 : vector<32x128xf32>
    %208 = arith.truncf %207 : vector<32x128xf32> to vector<32x128xbf16>
    %cst_74 = arith.constant dense<0.000000e+00> : vector<32x32xf32>
    %209 = tpu.matmul %208, %129, %cst_74 {dimension_numbers = #tpu.dot_dimension_numbers<[1], [0], [0], [1], [0, 0, 1, 1], [], []>} : vector<32x128xbf16>, vector<128x32xbf16>, vector<32x32xf32> -> vector<32x32xf32>
    %210 = vector.extract_strided_slice %0 {offsets = [12, 0], sizes = [1, 32], strides = [1, 1]} : vector<32x256xf32> to vector<1x32xf32>
    %211 = vector.broadcast %210 : vector<1x32xf32> to vector<32x32xf32>
    %212 = arith.addf %209, %211 : vector<32x32xf32>
    %213 = arith.addf %123, %212 : vector<32x32xf32>
    %214 = vector.extract_strided_slice %0 {offsets = [13, 0], sizes = [1, 32], strides = [1, 1]} : vector<32x256xf32> to vector<1x32xf32>
    %215 = vector.extract_strided_slice %0 {offsets = [14, 0], sizes = [1, 32], strides = [1, 1]} : vector<32x256xf32> to vector<1x32xf32>
    %cst_75 = arith.constant dense<0.000000e+00> : vector<32xf32>
    %216 = vector.multi_reduction <add>, %213, %cst_75 [1] : vector<32x32xf32> to vector<32xf32>
    %217 = vector.shape_cast %216 : vector<32xf32> to vector<32x1xf32>
    %cst_76 = arith.constant 3.200000e+01 : f32
    %218 = vector.broadcast %cst_76 : f32 to vector<32x1xf32>
    %219 = arith.divf %217, %218 : vector<32x1xf32>
    %220 = vector.broadcast %219 : vector<32x1xf32> to vector<32x32xf32>
    %221 = arith.subf %213, %220 : vector<32x32xf32>
    %222 = vector.broadcast %219 : vector<32x1xf32> to vector<32x32xf32>
    %223 = arith.subf %213, %222 : vector<32x32xf32>
    %224 = arith.mulf %221, %223 : vector<32x32xf32>
    %cst_77 = arith.constant dense<0.000000e+00> : vector<32xf32>
    %225 = vector.multi_reduction <add>, %224, %cst_77 [1] : vector<32x32xf32> to vector<32xf32>
    %226 = vector.shape_cast %225 : vector<32xf32> to vector<32x1xf32>
    %cst_78 = arith.constant 3.200000e+01 : f32
    %227 = vector.broadcast %cst_78 : f32 to vector<32x1xf32>
    %228 = arith.divf %226, %227 : vector<32x1xf32>
    %229 = vector.broadcast %219 : vector<32x1xf32> to vector<32x32xf32>
    %230 = arith.subf %213, %229 : vector<32x32xf32>
    %cst_79 = arith.constant 9.99999997E-7 : f32
    %231 = vector.broadcast %cst_79 : f32 to vector<32x1xf32>
    %232 = arith.addf %228, %231 : vector<32x1xf32>
    %233 = math.rsqrt %232 : vector<32x1xf32>
    %234 = vector.broadcast %233 : vector<32x1xf32> to vector<32x32xf32>
    %235 = arith.mulf %230, %234 : vector<32x32xf32>
    %236 = vector.broadcast %214 : vector<1x32xf32> to vector<32x32xf32>
    %237 = arith.mulf %235, %236 : vector<32x32xf32>
    %238 = vector.broadcast %215 : vector<1x32xf32> to vector<32x32xf32>
    %239 = arith.addf %237, %238 : vector<32x32xf32>
    %c0_80 = arith.constant 0 : index
    %c0_81 = arith.constant 0 : index
    %240 = vector.load %arg7[%c0_80, %c0_81] : memref<32x256xbf16, #tpu.memory_space<vmem>>, vector<32x256xbf16>
    %241 = arith.truncf %239 : vector<32x32xf32> to vector<32x32xbf16>
    %cst_82 = arith.constant dense<0.000000e+00> : vector<32x256xf32>
    %242 = tpu.matmul %241, %240, %cst_82 {dimension_numbers = #tpu.dot_dimension_numbers<[1], [0], [0], [1], [0, 0, 1, 1], [], []>} : vector<32x32xbf16>, vector<32x256xbf16>, vector<32x256xf32> -> vector<32x256xf32>
    %243 = vector.extract_strided_slice %242 {offsets = [0, 0], sizes = [32, 64], strides = [1, 1]} : vector<32x256xf32> to vector<32x64xf32>
    %244 = vector.extract_strided_slice %242 {offsets = [0, 64], sizes = [32, 64], strides = [1, 1]} : vector<32x256xf32> to vector<32x64xf32>
    %245 = vector.extract_strided_slice %242 {offsets = [0, 128], sizes = [32, 64], strides = [1, 1]} : vector<32x256xf32> to vector<32x64xf32>
    %246 = vector.extract_strided_slice %242 {offsets = [0, 192], sizes = [32, 64], strides = [1, 1]} : vector<32x256xf32> to vector<32x64xf32>
    %247 = tpu.concatenate %243, %244, %245, %246 in 0 : vector<32x64xf32>, vector<32x64xf32>, vector<32x64xf32>, vector<32x64xf32> -> vector<128x64xf32>
    %c0_83 = arith.constant 0 : index
    %c0_84 = arith.constant 0 : index
    %248 = vector.load %arg8[%c0_83, %c0_84] : memref<8x128xbf16, #tpu.memory_space<vmem>>, vector<8x128xbf16>
    %249 = arith.truncf %247 : vector<128x64xf32> to vector<128x64xbf16>
    %cst_85 = arith.constant dense<0.000000e+00> : vector<8x64xf32>
    %250 = tpu.matmul %248, %249, %cst_85 {dimension_numbers = #tpu.dot_dimension_numbers<[1], [0], [0], [1], [0, 0, 1, 1], [], []>} : vector<8x128xbf16>, vector<128x64xbf16>, vector<8x64xf32> -> vector<8x64xf32>
    %251 = vector.extract_strided_slice %0 {offsets = [15, 0], sizes = [1, 64], strides = [1, 1]} : vector<32x256xf32> to vector<1x64xf32>
    %252 = vector.broadcast %251 : vector<1x64xf32> to vector<8x64xf32>
    %253 = arith.addf %250, %252 : vector<8x64xf32>
    %c0_86 = arith.constant 0 : index
    %c0_87 = arith.constant 0 : index
    %c0_88 = arith.constant 0 : index
    %c0_89 = arith.constant 0 : index
    %254 = vector.load %arg9[%c0_86, %c0_87, %c0_88, %c0_89] : memref<2x8x8x64xf32, #tpu.memory_space<vmem>>, vector<1x8x8x64xf32>
    %255 = vector.shape_cast %254 : vector<1x8x8x64xf32> to vector<8x8x64xf32>
    %c0_90 = arith.constant 0 : index
    %c0_91 = arith.constant 0 : index
    %c0_92 = arith.constant 0 : index
    %256 = vector.load %arg10[%c0_90, %c0_91, %c0_92] : memref<2x64x256xbf16, #tpu.memory_space<vmem>>, vector<1x64x256xbf16>
    %257 = vector.shape_cast %256 : vector<1x64x256xbf16> to vector<64x256xbf16>
    %c0_93 = arith.constant 0 : index
    %c0_94 = arith.constant 0 : index
    %c0_95 = arith.constant 0 : index
    %258 = vector.load %arg11[%c0_93, %c0_94, %c0_95] : memref<2x256x64xbf16, #tpu.memory_space<vmem>>, vector<1x256x64xbf16>
    %259 = vector.shape_cast %258 : vector<1x256x64xbf16> to vector<256x64xbf16>
    %260 = vector.shape_cast %253 : vector<8x64xf32> to vector<1x8x64xf32>
    %261 = vector.broadcast %260 : vector<1x8x64xf32> to vector<8x8x64xf32>
    %262 = arith.mulf %261, %255 : vector<8x8x64xf32>
    %cst_96 = arith.constant dense<0.000000e+00> : vector<8x64xf32>
    %263 = vector.multi_reduction <add>, %262, %cst_96 [1] : vector<8x8x64xf32> to vector<8x64xf32>
    %264 = vector.extract_strided_slice %0 {offsets = [16, 0], sizes = [1, 64], strides = [1, 1]} : vector<32x256xf32> to vector<1x64xf32>
    %265 = vector.broadcast %264 : vector<1x64xf32> to vector<8x64xf32>
    %266 = arith.addf %263, %265 : vector<8x64xf32>
    %267 = vector.extract_strided_slice %0 {offsets = [17, 0], sizes = [1, 64], strides = [1, 1]} : vector<32x256xf32> to vector<1x64xf32>
    %268 = vector.extract_strided_slice %0 {offsets = [18, 0], sizes = [1, 64], strides = [1, 1]} : vector<32x256xf32> to vector<1x64xf32>
    %cst_97 = arith.constant dense<0.000000e+00> : vector<8xf32>
    %269 = vector.multi_reduction <add>, %266, %cst_97 [1] : vector<8x64xf32> to vector<8xf32>
    %270 = vector.shape_cast %269 : vector<8xf32> to vector<8x1xf32>
    %cst_98 = arith.constant 6.400000e+01 : f32
    %271 = vector.broadcast %cst_98 : f32 to vector<8x1xf32>
    %272 = arith.divf %270, %271 : vector<8x1xf32>
    %273 = vector.broadcast %272 : vector<8x1xf32> to vector<8x64xf32>
    %274 = arith.subf %266, %273 : vector<8x64xf32>
    %275 = vector.broadcast %272 : vector<8x1xf32> to vector<8x64xf32>
    %276 = arith.subf %266, %275 : vector<8x64xf32>
    %277 = arith.mulf %274, %276 : vector<8x64xf32>
    %cst_99 = arith.constant dense<0.000000e+00> : vector<8xf32>
    %278 = vector.multi_reduction <add>, %277, %cst_99 [1] : vector<8x64xf32> to vector<8xf32>
    %279 = vector.shape_cast %278 : vector<8xf32> to vector<8x1xf32>
    %cst_100 = arith.constant 6.400000e+01 : f32
    %280 = vector.broadcast %cst_100 : f32 to vector<8x1xf32>
    %281 = arith.divf %279, %280 : vector<8x1xf32>
    %282 = vector.broadcast %272 : vector<8x1xf32> to vector<8x64xf32>
    %283 = arith.subf %266, %282 : vector<8x64xf32>
    %cst_101 = arith.constant 9.99999997E-7 : f32
    %284 = vector.broadcast %cst_101 : f32 to vector<8x1xf32>
    %285 = arith.addf %281, %284 : vector<8x1xf32>
    %286 = math.rsqrt %285 : vector<8x1xf32>
    %287 = vector.broadcast %286 : vector<8x1xf32> to vector<8x64xf32>
    %288 = arith.mulf %283, %287 : vector<8x64xf32>
    %289 = vector.broadcast %267 : vector<1x64xf32> to vector<8x64xf32>
    %290 = arith.mulf %288, %289 : vector<8x64xf32>
    %291 = vector.broadcast %268 : vector<1x64xf32> to vector<8x64xf32>
    %292 = arith.addf %290, %291 : vector<8x64xf32>
    %293 = arith.truncf %292 : vector<8x64xf32> to vector<8x64xbf16>
    %cst_102 = arith.constant dense<0.000000e+00> : vector<8x256xf32>
    %294 = tpu.matmul %293, %257, %cst_102 {dimension_numbers = #tpu.dot_dimension_numbers<[1], [0], [0], [1], [0, 0, 1, 1], [], []>} : vector<8x64xbf16>, vector<64x256xbf16>, vector<8x256xf32> -> vector<8x256xf32>
    %295 = vector.extract_strided_slice %0 {offsets = [19, 0], sizes = [1, 256], strides = [1, 1]} : vector<32x256xf32> to vector<1x256xf32>
    %296 = vector.broadcast %295 : vector<1x256xf32> to vector<8x256xf32>
    %297 = arith.addf %294, %296 : vector<8x256xf32>
    %cst_103 = arith.constant 5.000000e-01 : f32
    %298 = vector.broadcast %cst_103 : f32 to vector<8x256xf32>
    %299 = arith.mulf %298, %297 : vector<8x256xf32>
    %cst_104 = arith.constant 0.707106769 : f32
    %300 = vector.broadcast %cst_104 : f32 to vector<8x256xf32>
    %301 = arith.mulf %297, %300 : vector<8x256xf32>
    %cst_105 = arith.constant 0.000000e+00 : f32
    %302 = vector.broadcast %cst_105 : f32 to vector<8x256xf32>
    %303 = arith.cmpf oge, %301, %302 : vector<8x256xf32>
    %cst_106 = arith.constant 1.000000e+00 : f32
    %cst_107 = arith.constant -1.000000e+00 : f32
    %304 = vector.broadcast %cst_106 : f32 to vector<8x256xf32>
    %305 = vector.broadcast %cst_107 : f32 to vector<8x256xf32>
    %306 = arith.select %303, %304, %305 : vector<8x256xi1>, vector<8x256xf32>
    %307 = math.absf %301 : vector<8x256xf32>
    %cst_108 = arith.constant 0.327591091 : f32
    %308 = vector.broadcast %cst_108 : f32 to vector<8x256xf32>
    %309 = arith.mulf %308, %307 : vector<8x256xf32>
    %cst_109 = arith.constant 1.000000e+00 : f32
    %310 = vector.broadcast %cst_109 : f32 to vector<8x256xf32>
    %311 = arith.addf %310, %309 : vector<8x256xf32>
    %312 = tpu.reciprocal %311 {approx = true} : vector<8x256xf32> -> vector<8x256xf32>
    %cst_110 = arith.constant 1.06140542 : f32
    %313 = vector.broadcast %cst_110 : f32 to vector<8x256xf32>
    %314 = arith.mulf %313, %312 : vector<8x256xf32>
    %cst_111 = arith.constant -1.45315206 : f32
    %315 = vector.broadcast %cst_111 : f32 to vector<8x256xf32>
    %316 = arith.addf %314, %315 : vector<8x256xf32>
    %317 = arith.mulf %316, %312 : vector<8x256xf32>
    %cst_112 = arith.constant 1.42141378 : f32
    %318 = vector.broadcast %cst_112 : f32 to vector<8x256xf32>
    %319 = arith.addf %317, %318 : vector<8x256xf32>
    %320 = arith.mulf %319, %312 : vector<8x256xf32>
    %cst_113 = arith.constant -0.284496725 : f32
    %321 = vector.broadcast %cst_113 : f32 to vector<8x256xf32>
    %322 = arith.addf %320, %321 : vector<8x256xf32>
    %323 = arith.mulf %322, %312 : vector<8x256xf32>
    %cst_114 = arith.constant 0.254829586 : f32
    %324 = vector.broadcast %cst_114 : f32 to vector<8x256xf32>
    %325 = arith.addf %323, %324 : vector<8x256xf32>
    %326 = arith.mulf %325, %312 : vector<8x256xf32>
    %cst_115 = arith.constant 0.000000e+00 : f32
    %327 = vector.broadcast %cst_115 : f32 to vector<8x256xf32>
    %328 = arith.subf %327, %307 : vector<8x256xf32>
    %329 = arith.mulf %328, %307 : vector<8x256xf32>
    %330 = math.exp %329 : vector<8x256xf32>
    %331 = arith.mulf %326, %330 : vector<8x256xf32>
    %cst_116 = arith.constant 1.000000e+00 : f32
    %332 = vector.broadcast %cst_116 : f32 to vector<8x256xf32>
    %333 = arith.subf %332, %331 : vector<8x256xf32>
    %334 = arith.mulf %306, %333 : vector<8x256xf32>
    %cst_117 = arith.constant 1.000000e+00 : f32
    %335 = vector.broadcast %cst_117 : f32 to vector<8x256xf32>
    %336 = arith.addf %335, %334 : vector<8x256xf32>
    %337 = arith.mulf %299, %336 : vector<8x256xf32>
    %338 = arith.truncf %337 : vector<8x256xf32> to vector<8x256xbf16>
    %cst_118 = arith.constant dense<0.000000e+00> : vector<8x64xf32>
    %339 = tpu.matmul %338, %259, %cst_118 {dimension_numbers = #tpu.dot_dimension_numbers<[1], [0], [0], [1], [0, 0, 1, 1], [], []>} : vector<8x256xbf16>, vector<256x64xbf16>, vector<8x64xf32> -> vector<8x64xf32>
    %340 = vector.extract_strided_slice %0 {offsets = [20, 0], sizes = [1, 64], strides = [1, 1]} : vector<32x256xf32> to vector<1x64xf32>
    %341 = vector.broadcast %340 : vector<1x64xf32> to vector<8x64xf32>
    %342 = arith.addf %339, %341 : vector<8x64xf32>
    %343 = arith.addf %253, %342 : vector<8x64xf32>
    %c1_119 = arith.constant 1 : index
    %c0_120 = arith.constant 0 : index
    %c0_121 = arith.constant 0 : index
    %c0_122 = arith.constant 0 : index
    %344 = vector.load %arg9[%c1_119, %c0_120, %c0_121, %c0_122] : memref<2x8x8x64xf32, #tpu.memory_space<vmem>>, vector<1x8x8x64xf32>
    %345 = vector.shape_cast %344 : vector<1x8x8x64xf32> to vector<8x8x64xf32>
    %c1_123 = arith.constant 1 : index
    %c0_124 = arith.constant 0 : index
    %c0_125 = arith.constant 0 : index
    %346 = vector.load %arg10[%c1_123, %c0_124, %c0_125] : memref<2x64x256xbf16, #tpu.memory_space<vmem>>, vector<1x64x256xbf16>
    %347 = vector.shape_cast %346 : vector<1x64x256xbf16> to vector<64x256xbf16>
    %c1_126 = arith.constant 1 : index
    %c0_127 = arith.constant 0 : index
    %c0_128 = arith.constant 0 : index
    %348 = vector.load %arg11[%c1_126, %c0_127, %c0_128] : memref<2x256x64xbf16, #tpu.memory_space<vmem>>, vector<1x256x64xbf16>
    %349 = vector.shape_cast %348 : vector<1x256x64xbf16> to vector<256x64xbf16>
    %350 = vector.shape_cast %343 : vector<8x64xf32> to vector<1x8x64xf32>
    %351 = vector.broadcast %350 : vector<1x8x64xf32> to vector<8x8x64xf32>
    %352 = arith.mulf %351, %345 : vector<8x8x64xf32>
    %cst_129 = arith.constant dense<0.000000e+00> : vector<8x64xf32>
    %353 = vector.multi_reduction <add>, %352, %cst_129 [1] : vector<8x8x64xf32> to vector<8x64xf32>
    %354 = vector.extract_strided_slice %0 {offsets = [21, 0], sizes = [1, 64], strides = [1, 1]} : vector<32x256xf32> to vector<1x64xf32>
    %355 = vector.broadcast %354 : vector<1x64xf32> to vector<8x64xf32>
    %356 = arith.addf %353, %355 : vector<8x64xf32>
    %357 = vector.extract_strided_slice %0 {offsets = [22, 0], sizes = [1, 64], strides = [1, 1]} : vector<32x256xf32> to vector<1x64xf32>
    %358 = vector.extract_strided_slice %0 {offsets = [23, 0], sizes = [1, 64], strides = [1, 1]} : vector<32x256xf32> to vector<1x64xf32>
    %cst_130 = arith.constant dense<0.000000e+00> : vector<8xf32>
    %359 = vector.multi_reduction <add>, %356, %cst_130 [1] : vector<8x64xf32> to vector<8xf32>
    %360 = vector.shape_cast %359 : vector<8xf32> to vector<8x1xf32>
    %cst_131 = arith.constant 6.400000e+01 : f32
    %361 = vector.broadcast %cst_131 : f32 to vector<8x1xf32>
    %362 = arith.divf %360, %361 : vector<8x1xf32>
    %363 = vector.broadcast %362 : vector<8x1xf32> to vector<8x64xf32>
    %364 = arith.subf %356, %363 : vector<8x64xf32>
    %365 = vector.broadcast %362 : vector<8x1xf32> to vector<8x64xf32>
    %366 = arith.subf %356, %365 : vector<8x64xf32>
    %367 = arith.mulf %364, %366 : vector<8x64xf32>
    %cst_132 = arith.constant dense<0.000000e+00> : vector<8xf32>
    %368 = vector.multi_reduction <add>, %367, %cst_132 [1] : vector<8x64xf32> to vector<8xf32>
    %369 = vector.shape_cast %368 : vector<8xf32> to vector<8x1xf32>
    %cst_133 = arith.constant 6.400000e+01 : f32
    %370 = vector.broadcast %cst_133 : f32 to vector<8x1xf32>
    %371 = arith.divf %369, %370 : vector<8x1xf32>
    %372 = vector.broadcast %362 : vector<8x1xf32> to vector<8x64xf32>
    %373 = arith.subf %356, %372 : vector<8x64xf32>
    %cst_134 = arith.constant 9.99999997E-7 : f32
    %374 = vector.broadcast %cst_134 : f32 to vector<8x1xf32>
    %375 = arith.addf %371, %374 : vector<8x1xf32>
    %376 = math.rsqrt %375 : vector<8x1xf32>
    %377 = vector.broadcast %376 : vector<8x1xf32> to vector<8x64xf32>
    %378 = arith.mulf %373, %377 : vector<8x64xf32>
    %379 = vector.broadcast %357 : vector<1x64xf32> to vector<8x64xf32>
    %380 = arith.mulf %378, %379 : vector<8x64xf32>
    %381 = vector.broadcast %358 : vector<1x64xf32> to vector<8x64xf32>
    %382 = arith.addf %380, %381 : vector<8x64xf32>
    %383 = arith.truncf %382 : vector<8x64xf32> to vector<8x64xbf16>
    %cst_135 = arith.constant dense<0.000000e+00> : vector<8x256xf32>
    %384 = tpu.matmul %383, %347, %cst_135 {dimension_numbers = #tpu.dot_dimension_numbers<[1], [0], [0], [1], [0, 0, 1, 1], [], []>} : vector<8x64xbf16>, vector<64x256xbf16>, vector<8x256xf32> -> vector<8x256xf32>
    %385 = vector.extract_strided_slice %0 {offsets = [24, 0], sizes = [1, 256], strides = [1, 1]} : vector<32x256xf32> to vector<1x256xf32>
    %386 = vector.broadcast %385 : vector<1x256xf32> to vector<8x256xf32>
    %387 = arith.addf %384, %386 : vector<8x256xf32>
    %cst_136 = arith.constant 5.000000e-01 : f32
    %388 = vector.broadcast %cst_136 : f32 to vector<8x256xf32>
    %389 = arith.mulf %388, %387 : vector<8x256xf32>
    %cst_137 = arith.constant 0.707106769 : f32
    %390 = vector.broadcast %cst_137 : f32 to vector<8x256xf32>
    %391 = arith.mulf %387, %390 : vector<8x256xf32>
    %cst_138 = arith.constant 0.000000e+00 : f32
    %392 = vector.broadcast %cst_138 : f32 to vector<8x256xf32>
    %393 = arith.cmpf oge, %391, %392 : vector<8x256xf32>
    %cst_139 = arith.constant 1.000000e+00 : f32
    %cst_140 = arith.constant -1.000000e+00 : f32
    %394 = vector.broadcast %cst_139 : f32 to vector<8x256xf32>
    %395 = vector.broadcast %cst_140 : f32 to vector<8x256xf32>
    %396 = arith.select %393, %394, %395 : vector<8x256xi1>, vector<8x256xf32>
    %397 = math.absf %391 : vector<8x256xf32>
    %cst_141 = arith.constant 0.327591091 : f32
    %398 = vector.broadcast %cst_141 : f32 to vector<8x256xf32>
    %399 = arith.mulf %398, %397 : vector<8x256xf32>
    %cst_142 = arith.constant 1.000000e+00 : f32
    %400 = vector.broadcast %cst_142 : f32 to vector<8x256xf32>
    %401 = arith.addf %400, %399 : vector<8x256xf32>
    %402 = tpu.reciprocal %401 {approx = true} : vector<8x256xf32> -> vector<8x256xf32>
    %cst_143 = arith.constant 1.06140542 : f32
    %403 = vector.broadcast %cst_143 : f32 to vector<8x256xf32>
    %404 = arith.mulf %403, %402 : vector<8x256xf32>
    %cst_144 = arith.constant -1.45315206 : f32
    %405 = vector.broadcast %cst_144 : f32 to vector<8x256xf32>
    %406 = arith.addf %404, %405 : vector<8x256xf32>
    %407 = arith.mulf %406, %402 : vector<8x256xf32>
    %cst_145 = arith.constant 1.42141378 : f32
    %408 = vector.broadcast %cst_145 : f32 to vector<8x256xf32>
    %409 = arith.addf %407, %408 : vector<8x256xf32>
    %410 = arith.mulf %409, %402 : vector<8x256xf32>
    %cst_146 = arith.constant -0.284496725 : f32
    %411 = vector.broadcast %cst_146 : f32 to vector<8x256xf32>
    %412 = arith.addf %410, %411 : vector<8x256xf32>
    %413 = arith.mulf %412, %402 : vector<8x256xf32>
    %cst_147 = arith.constant 0.254829586 : f32
    %414 = vector.broadcast %cst_147 : f32 to vector<8x256xf32>
    %415 = arith.addf %413, %414 : vector<8x256xf32>
    %416 = arith.mulf %415, %402 : vector<8x256xf32>
    %cst_148 = arith.constant 0.000000e+00 : f32
    %417 = vector.broadcast %cst_148 : f32 to vector<8x256xf32>
    %418 = arith.subf %417, %397 : vector<8x256xf32>
    %419 = arith.mulf %418, %397 : vector<8x256xf32>
    %420 = math.exp %419 : vector<8x256xf32>
    %421 = arith.mulf %416, %420 : vector<8x256xf32>
    %cst_149 = arith.constant 1.000000e+00 : f32
    %422 = vector.broadcast %cst_149 : f32 to vector<8x256xf32>
    %423 = arith.subf %422, %421 : vector<8x256xf32>
    %424 = arith.mulf %396, %423 : vector<8x256xf32>
    %cst_150 = arith.constant 1.000000e+00 : f32
    %425 = vector.broadcast %cst_150 : f32 to vector<8x256xf32>
    %426 = arith.addf %425, %424 : vector<8x256xf32>
    %427 = arith.mulf %389, %426 : vector<8x256xf32>
    %428 = arith.truncf %427 : vector<8x256xf32> to vector<8x256xbf16>
    %cst_151 = arith.constant dense<0.000000e+00> : vector<8x64xf32>
    %429 = tpu.matmul %428, %349, %cst_151 {dimension_numbers = #tpu.dot_dimension_numbers<[1], [0], [0], [1], [0, 0, 1, 1], [], []>} : vector<8x256xbf16>, vector<256x64xbf16>, vector<8x64xf32> -> vector<8x64xf32>
    %430 = vector.extract_strided_slice %0 {offsets = [25, 0], sizes = [1, 64], strides = [1, 1]} : vector<32x256xf32> to vector<1x64xf32>
    %431 = vector.broadcast %430 : vector<1x64xf32> to vector<8x64xf32>
    %432 = arith.addf %429, %431 : vector<8x64xf32>
    %433 = arith.addf %343, %432 : vector<8x64xf32>
    %434 = vector.extract_strided_slice %433 {offsets = [0, 0], sizes = [4, 64], strides = [1, 1]} : vector<8x64xf32> to vector<4x64xf32>
    %cst_152 = arith.constant dense<0.000000e+00> : vector<64xf32>
    %435 = vector.multi_reduction <add>, %434, %cst_152 [0] : vector<4x64xf32> to vector<64xf32>
    %436 = vector.shape_cast %435 : vector<64xf32> to vector<1x64xf32>
    %cst_153 = arith.constant 4.000000e+00 : f32
    %437 = vector.broadcast %cst_153 : f32 to vector<1x64xf32>
    %438 = arith.divf %436, %437 : vector<1x64xf32>
    %439 = vector.extract_strided_slice %433 {offsets = [4, 0], sizes = [4, 64], strides = [1, 1]} : vector<8x64xf32> to vector<4x64xf32>
    %cst_154 = arith.constant dense<0.000000e+00> : vector<64xf32>
    %440 = vector.multi_reduction <add>, %439, %cst_154 [0] : vector<4x64xf32> to vector<64xf32>
    %441 = vector.shape_cast %440 : vector<64xf32> to vector<1x64xf32>
    %cst_155 = arith.constant 4.000000e+00 : f32
    %442 = vector.broadcast %cst_155 : f32 to vector<1x64xf32>
    %443 = arith.divf %441, %442 : vector<1x64xf32>
    %444 = tpu.concatenate %438, %443 in 0 : vector<1x64xf32>, vector<1x64xf32> -> vector<2x64xf32>
    %445 = vector.extract_strided_slice %0 {offsets = [26, 0], sizes = [1, 64], strides = [1, 1]} : vector<32x256xf32> to vector<1x64xf32>
    %446 = vector.extract_strided_slice %0 {offsets = [27, 0], sizes = [1, 64], strides = [1, 1]} : vector<32x256xf32> to vector<1x64xf32>
    %cst_156 = arith.constant dense<0.000000e+00> : vector<2xf32>
    %447 = vector.multi_reduction <add>, %444, %cst_156 [1] : vector<2x64xf32> to vector<2xf32>
    %448 = vector.shape_cast %447 : vector<2xf32> to vector<2x1xf32>
    %cst_157 = arith.constant 6.400000e+01 : f32
    %449 = vector.broadcast %cst_157 : f32 to vector<2x1xf32>
    %450 = arith.divf %448, %449 : vector<2x1xf32>
    %451 = vector.broadcast %450 : vector<2x1xf32> to vector<2x64xf32>
    %452 = arith.subf %444, %451 : vector<2x64xf32>
    %453 = vector.broadcast %450 : vector<2x1xf32> to vector<2x64xf32>
    %454 = arith.subf %444, %453 : vector<2x64xf32>
    %455 = arith.mulf %452, %454 : vector<2x64xf32>
    %cst_158 = arith.constant dense<0.000000e+00> : vector<2xf32>
    %456 = vector.multi_reduction <add>, %455, %cst_158 [1] : vector<2x64xf32> to vector<2xf32>
    %457 = vector.shape_cast %456 : vector<2xf32> to vector<2x1xf32>
    %cst_159 = arith.constant 6.400000e+01 : f32
    %458 = vector.broadcast %cst_159 : f32 to vector<2x1xf32>
    %459 = arith.divf %457, %458 : vector<2x1xf32>
    %460 = vector.broadcast %450 : vector<2x1xf32> to vector<2x64xf32>
    %461 = arith.subf %444, %460 : vector<2x64xf32>
    %cst_160 = arith.constant 9.99999997E-7 : f32
    %462 = vector.broadcast %cst_160 : f32 to vector<2x1xf32>
    %463 = arith.addf %459, %462 : vector<2x1xf32>
    %464 = math.rsqrt %463 : vector<2x1xf32>
    %465 = vector.broadcast %464 : vector<2x1xf32> to vector<2x64xf32>
    %466 = arith.mulf %461, %465 : vector<2x64xf32>
    %467 = vector.broadcast %445 : vector<1x64xf32> to vector<2x64xf32>
    %468 = arith.mulf %466, %467 : vector<2x64xf32>
    %469 = vector.broadcast %446 : vector<1x64xf32> to vector<2x64xf32>
    %470 = arith.addf %468, %469 : vector<2x64xf32>
    %c0_161 = arith.constant 0 : index
    %c0_162 = arith.constant 0 : index
    %471 = vector.load %arg12[%c0_161, %c0_162] : memref<64x128xbf16, #tpu.memory_space<vmem>>, vector<64x128xbf16>
    %472 = arith.truncf %470 : vector<2x64xf32> to vector<2x64xbf16>
    %cst_163 = arith.constant dense<0.000000e+00> : vector<2x128xf32>
    %473 = tpu.matmul %472, %471, %cst_163 {dimension_numbers = #tpu.dot_dimension_numbers<[1], [0], [0], [1], [0, 0, 1, 1], [], []>} : vector<2x64xbf16>, vector<64x128xbf16>, vector<2x128xf32> -> vector<2x128xf32>
    %474 = vector.extract_strided_slice %0 {offsets = [28, 0], sizes = [1, 128], strides = [1, 1]} : vector<32x256xf32> to vector<1x128xf32>
    %475 = vector.broadcast %474 : vector<1x128xf32> to vector<2x128xf32>
    %476 = arith.addf %473, %475 : vector<2x128xf32>
    %c0_164 = arith.constant 0 : index
    %c0_165 = arith.constant 0 : index
    %477 = vector.load %arg13[%c0_164, %c0_165] : memref<2x128xf32, #tpu.memory_space<vmem>>, vector<2x128xf32>
    tpu.vector_store %arg13[%c0_164, %c0_165], %476 {strides = array<i32>} : memref<2x128xf32, #tpu.memory_space<vmem>>, vector<2x128xf32>,
    return
  }
  func.func @transform_0(%arg0: i32) -> (i32, i32) {
    %c0_i32 = arith.constant 0 : i32
    %c0_i32_0 = arith.constant 0 : i32
    %c0_i32_1 = arith.constant 0 : i32
    return %c0_i32, %c0_i32_0 : i32, i32
  }
  func.func @transform_1(%arg0: i32) -> (i32, i32) {
    %c0_i32 = arith.constant 0 : i32
    %c0_i32_0 = arith.constant 0 : i32
    %c0_i32_1 = arith.constant 0 : i32
    return %c0_i32, %c0_i32_0 : i32, i32
  }
  func.func @transform_2(%arg0: i32) -> (i32, i32) {
    %c0_i32 = arith.constant 0 : i32
    %c0_i32_0 = arith.constant 0 : i32
    %c0_i32_1 = arith.constant 0 : i32
    return %c0_i32, %c0_i32_0 : i32, i32
  }
  func.func @transform_3(%arg0: i32) -> (i32, i32, i32, i32) {
    %c0_i32 = arith.constant 0 : i32
    %c0_i32_0 = arith.constant 0 : i32
    %c0_i32_1 = arith.constant 0 : i32
    %c0_i32_2 = arith.constant 0 : i32
    %c0_i32_3 = arith.constant 0 : i32
    return %c0_i32, %c0_i32_0, %c0_i32_1, %c0_i32_2 : i32, i32, i32, i32
  }
  func.func @transform_4(%arg0: i32) -> (i32, i32, i32) {
    %c0_i32 = arith.constant 0 : i32
    %c0_i32_0 = arith.constant 0 : i32
    %c0_i32_1 = arith.constant 0 : i32
    %c0_i32_2 = arith.constant 0 : i32
    return %c0_i32, %c0_i32_0, %c0_i32_1 : i32, i32, i32
  }
  func.func @transform_5(%arg0: i32) -> (i32, i32, i32) {
    %c0_i32 = arith.constant 0 : i32
    %c0_i32_0 = arith.constant 0 : i32
    %c0_i32_1 = arith.constant 0 : i32
    %c0_i32_2 = arith.constant 0 : i32
    return %c0_i32, %c0_i32_0, %c0_i32_1 : i32, i32, i32
  }
  func.func @transform_6(%arg0: i32) -> (i32, i32) {
    %c0_i32 = arith.constant 0 : i32
    %c0_i32_0 = arith.constant 0 : i32
    %c0_i32_1 = arith.constant 0 : i32
    return %c0_i32, %c0_i32_0 : i32, i32
  }
  func.func @transform_7(%arg0: i32) -> (i32, i32) {
    %c0_i32 = arith.constant 0 : i32
    %c0_i32_0 = arith.constant 0 : i32
    %c0_i32_1 = arith.constant 0 : i32
    return %c0_i32, %c0_i32_0 : i32, i32
  }
  func.func @transform_8(%arg0: i32) -> (i32, i32, i32, i32) {
    %c0_i32 = arith.constant 0 : i32
    %c0_i32_0 = arith.constant 0 : i32
    %c0_i32_1 = arith.constant 0 : i32
    %c0_i32_2 = arith.constant 0 : i32
    %c0_i32_3 = arith.constant 0 : i32
    return %c0_i32, %c0_i32_0, %c0_i32_1, %c0_i32_2 : i32, i32, i32, i32
  }
  func.func @transform_9(%arg0: i32) -> (i32, i32, i32) {
    %c0_i32 = arith.constant 0 : i32
    %c0_i32_0 = arith.constant 0 : i32
    %c0_i32_1 = arith.constant 0 : i32
    %c0_i32_2 = arith.constant 0 : i32
    return %c0_i32, %c0_i32_0, %c0_i32_1 : i32, i32, i32
  }
  func.func @transform_10(%arg0: i32) -> (i32, i32, i32) {
    %c0_i32 = arith.constant 0 : i32
    %c0_i32_0 = arith.constant 0 : i32
    %c0_i32_1 = arith.constant 0 : i32
    %c0_i32_2 = arith.constant 0 : i32
    return %c0_i32, %c0_i32_0, %c0_i32_1 : i32, i32, i32
  }
  func.func @transform_11(%arg0: i32) -> (i32, i32) {
    %c0_i32 = arith.constant 0 : i32
    %c0_i32_0 = arith.constant 0 : i32
    %c0_i32_1 = arith.constant 0 : i32
    return %c0_i32, %c0_i32_0 : i32, i32
  }
  func.func @transform_12(%arg0: i32) -> (i32, i32) {
    %c0_i32 = arith.constant 0 : i32
    %c0_i32_0 = arith.constant 0 : i32
    %c0_i32_1 = arith.constant 0 : i32
    return %c0_i32, %c0_i32_0 : i32, i32
  }
}

</mosaic_0001>

<bundles_post_ra>
// kernel: _lambda_.1
= control target key start
LH: loop header
LB: loop body
LE: loop exit
PB: predicated region body
PF: predicated region fallthrough
CT: control target
= control target key end

     0   :  { %17 = vsyncpa [#allocation3], 0  ;;  %s8616_s0 = inlined_call_operand.vmem [shape: f32[32,128], index: 0, kind: input, shape index: {}]   ;;  %s8617_s1 = inlined_call_operand.vmem [shape: f32[32,256], index: 1, kind: input, shape index: {}]   ;;  %s8618_s2 = inlined_call_operand.vmem [shape: bf16[128,32], index: 2, kind: input, shape index: {}]   ;;  %s8619_s3 = inlined_call_operand.hbm [shape: f32[2,32,32,32], index: 3, kind: input, shape index: {}]   ;;  %s8620_s4 = inlined_call_operand.vmem [shape: bf16[2,32,128], index: 4, kind: input, shape index: {}]   ;;  %s8621_s5 = inlined_call_operand.vmem [shape: bf16[2,128,32], index: 5, kind: input, shape index: {}]   ;;  %s8622_s6 = inlined_call_operand.vmem [shape: bf16[32,256], index: 6, kind: input, shape index: {}]   ;;  %s8623_s7 = inlined_call_operand.vmem [shape: bf16[8,128], index: 7, kind: input, shape index: {}]   ;;  %s8624_s8 = inlined_call_operand.vmem [shape: f32[2,8,8,64], index: 8, kind: input, shape index: {}]   ;;  %s8625_s9 = inlined_call_operand.vmem [shape: bf16[2,64,256], index: 9, kind: input, shape index: {}]   ;;  %s8626_s10 = inlined_call_operand.vmem [shape: bf16[2,256,64], index: 10, kind: input, shape index: {}]   ;;  %s8627_s11 = inlined_call_operand.vmem [shape: bf16[64,128], index: 11, kind: input, shape index: {}]   ;;  %s8628_s12 = inlined_call_operand.hbm [shape: f32[2,128], index: 12, kind: output, shape index: {}]  }
   0x1   :  { %18 = vsyncpa [#allocation4], 0  ;;  %s29_s23 = sshll.u32 %s8619_s3, 4  ;;  %s5693_s24 = smov [#allocation2]   ;;  %s30_s23 = int_to_ptr.hbm [resolvable:$true] %s29_s23 }
   0x2   :  { %s31_s25 = sshll.u32 %s5693_s24, 4  ;;  %s5694_s26 = smov 128   ;;  %s32_s25 = int_to_ptr.vmem [resolvable:$true] %s31_s25 }
   0x3   :  { %s5695_s27 = smov 8  }
   0x4   :  { %37 = dma.hbm_to_vmem [thread:$0]  %s30_s23, 32768, %s32_s25, [#allocation3], %s5694_s26, %s5694_s26, %s5695_s27  }
   0x5   :  { %5689 = dma.done.wait [#allocation3], 32768  }
   0x6   :  { %5690 = vsyncadd [#allocation3], 4294934528  ;;  %v5439_v0 = vld [vmem:[%s8618_s2 + $0x38] sm:$0xff]  ;;  %v5438_v1 = vld [vmem:[%s8618_s2 + $0x30] sm:$0xff]  ;;  %vm155_vm0 = vcmask 261120   ;;  %v5696_v28 = vmov 32.0  }
   0x7   :  { %136 = vmatpush.bf16.msra.mxu0 %v5439_v0  ;;  %v5437_v2 = vld [vmem:[%s8618_s2 + $0x28] sm:$0xff]  ;;  %v5436_v3 = vld [vmem:[%s8618_s2 + $0x20] sm:$0xff]  ;;  %v5435_v4 = vld [vmem:[%s8618_s2 + $0x18] sm:$0xff]  ;;  %5545 = vrcp.f32 %v5696_v28  ;;  %vm1019_vm14 = vcmask 1041409   ;;  %vm1022_vm15 = vcmask 1042434  }
   0x8   :  { %v5434_v5 = vld [vmem:[%s8618_s2 + $0x10] sm:$0xff]  ;;  %v5433_v6 = vld [vmem:[%s8618_s2 + $0x8] sm:$0xff]  ;;  %v5432_v7 = vld [vmem:[%s8618_s2] sm:$0xff]  ;;  %s5005_s2 = sshll.u32 %s8628_s12, 4  ;;  %s5006_s2 = int_to_ptr.hbm [resolvable:$true] %s5005_s2 }
   0x9   :  { %v65_v8 = vld [vmem:[%s8616_s0] sm:$0xff]  ;;  %v66_v9 = vld [vmem:[%s8616_s0 + $0x8] sm:$0xff]  ;;  %v67_v11 = vld [vmem:[%s8616_s0 + $0x10] sm:$0xff] }
   0xa   :  { %v85_v10 = vpack.c.bf16 %v66_v9, %v65_v8  ;;  %v68_v12 = vld [vmem:[%s8616_s0 + $0x18] sm:$0xff]  ;;  %v5809_v14 = vld [vmem:[%s8617_s1] sm:$0xff] }
   0xb   :  { %137 = vmatpush.bf16.msra.mxu0 %v5438_v1  ;;  %v86_v13 = vpack.c.bf16 %v68_v12, %v67_v11  ;;  %v87_v15 = vperm.slane %v5809_v14, 0  ;;  %v5844_v8 = vperm.slane %v5809_v14, 1  ;;  %v5848_v11 = vperm.slane %v5809_v14, 2  ;;  %v341_v28 = vld [vmem:[#allocation2 + $0x280] sm:$0xff] }
   0xd   :  { %v5546_v29 = vpop.eup %5545 }
   0xe   :  { %v169_v30 = vmul.f32 32.0, %v5546_v29  ;;  %vm173_vm1 = vweird.f32 %v5546_v29 }
   0xf   :  { %138 = vmatpush.bf16.msra.mxu0 %v5437_v2 }
  0x10   :  { %v170_v31 = vsub.f32 1.0, %v169_v30  ;;  %v349_v30 = vld [vmem:[#allocation2 + $0x2c0] sm:$0xff] }
  0x12   :  { %v171_v32 = vmul.f32 %v5546_v29, %v170_v31  ;;  %v353_v31 = vld [vmem:[#allocation2 + $0x2e0] sm:$0xff] }
  0x13   :  { %139 = vmatpush.bf16.msra.mxu0 %v5436_v3 }
  0x14   :  { %v172_v33 = vadd.f32 %v5546_v29, %v171_v32 }
  0x16   :  { %v5816_v34 = vsel %vm173_vm1, %v5546_v29, %v172_v33  ;;  %v345_v29 = vld [vmem:[#allocation2 + $0x2a0] sm:$0xff]  ;;  %vm1025_vm1 = vcmask 1043459  }
  0x17   :  { %140 = vmatpush.bf16.msra.mxu0 %v5435_v4 }
  0x1b   :  { %141 = vmatpush.bf16.msra.mxu0 %v5434_v5 }
  0x1f   :  { %142 = vmatpush.bf16.msra.mxu0 %v5433_v6 }
  0x23   :  { %143 = vmatpush.bf16.msra.mxu0 %v5432_v7 }
  0x26   :  { %144 = vmatmul.bf16.vlgmr.msra.gmra.mxu0 %v85_v10 }
  0x36   :  { %149 = vmatmul.bf16.gmra.mxu0 %v86_v13 }
  0xa3   :  { %v145_v16 = vpop.f32.mrf.mxu0 }
  0xa4   :  { %v146_v17 = vadd.f32 %v145_v16, %v87_v15 }
  0xa6   :  { %v156_v18 = vsel %vm155_vm0, %v146_v17, 0.0 }
  0xa7   :  { %157 = vadd.xlane.f32.xlu0 %v156_v18 }
  0xab   :  { %v147_v19 = vpop.f32.mrf.mxu0 }
  0xac   :  { %v148_v20 = vadd.f32 %v147_v19, %v87_v15  ;;  %v325_v19 = vld [vmem:[#allocation2 + $0x200] sm:$0xff] }
  0xae   :  { %v159_v21 = vsel %vm155_vm0, %v148_v20, 0.0 }
  0xaf   :  { %160 = vadd.xlane.f32.xlu0 %v159_v21 }
  0xb3   :  { %v150_v22 = vpop.f32.mrf.mxu0 }
  0xb4   :  { %v151_v23 = vadd.f32 %v150_v22, %v87_v15 }
  0xb6   :  { %v162_v24 = vsel %vm155_vm0, %v151_v23, 0.0 }
  0xb7   :  { %163 = vadd.xlane.f32.xlu1 %v162_v24  ;;  %v333_v24 = vld [vmem:[#allocation2 + $0x240] sm:$0xff] }
  0xbb   :  { %v152_v25 = vpop.f32.mrf.mxu0 }
  0xbc   :  { %v153_v26 = vadd.f32 %v152_v25, %v87_v15 }
  0xbe   :  { %v165_v27 = vsel %vm155_vm0, %v153_v26, 0.0 }
  0xbf   :  { %166 = vadd.xlane.f32.xlu1 %v165_v27  ;;  %v337_v27 = vld [vmem:[#allocation2 + $0x260] sm:$0xff] }
 0x11a   :  { %v158_v35 = vpop.xlane.xlu0 %157 }
 0x11b   :  { %v175_v36 = vmul.f32 %v5816_v34, %v158_v35 }
 0x11d   :  { %v179_v37 = vsub.f32 %v146_v17, %v175_v36 }
 0x11f   :  { %v183_v38 = vmul.f32 %v179_v37, %v179_v37 }
 0x121   :  { %v187_v39 = vsel %vm155_vm0, %v183_v38, 0.0 }
 0x122   :  { %188 = vadd.xlane.f32.xlu2 %v187_v39  ;;  %v161_v40 = vpop.xlane.xlu0 %160 }
 0x123   :  { %v176_v41 = vmul.f32 %v5816_v34, %v161_v40 }
 0x125   :  { %v5821_v42 = vsub.f32 %v148_v20, %v176_v41 }
 0x127   :  { %v184_v43 = vmul.f32 %v5821_v42, %v5821_v42 }
 0x129   :  { %v190_v44 = vsel %vm155_vm0, %v184_v43, 0.0 }
 0x12a   :  { %v164_v45 = vpop.xlane.xlu1 %163  ;;  %191 = vadd.xlane.f32.xlu2 %v190_v44 }
 0x12b   :  { %v177_v46 = vmul.f32 %v5816_v34, %v164_v45 }
 0x12d   :  { %v5827_v47 = vsub.f32 %v151_v23, %v177_v46  ;;  %v329_v23 = vld [vmem:[#allocation2 + $0x220] sm:$0xff]  ;;  %v5873_v46 = vperm.slane %v5809_v14, 3 }
 0x12f   :  { %v185_v48 = vmul.f32 %v5827_v47, %v5827_v47 }
 0x131   :  { %v193_v49 = vsel %vm155_vm0, %v185_v48, 0.0 }
 0x132   :  { %v167_v50 = vpop.xlane.xlu1 %166  ;;  %194 = vadd.xlane.f32.xlu0 %v193_v49  ;;  %v330_v49 = vld [vmem:[#allocation2 + $0x228] sm:$0xff] }
 0x133   :  { %v178_v51 = vmul.f32 %v5816_v34, %v167_v50 }
 0x135   :  { %v5833_v52 = vsub.f32 %v153_v26, %v178_v51  ;;  %v334_v51 = vld [vmem:[#allocation2 + $0x248] sm:$0xff] }
 0x137   :  { %v186_v53 = vmul.f32 %v5833_v52, %v5833_v52 }
 0x139   :  { %v196_v54 = vsel %vm155_vm0, %v186_v53, 0.0  ;;  %v338_v53 = vld [vmem:[#allocation2 + $0x268] sm:$0xff] }
 0x13a   :  { %197 = vadd.xlane.f32.xlu1 %v196_v54 }
 0x195   :  { %v189_v55 = vpop.xlane.xlu2 %188 }
 0x196   :  { %v199_v56 = vmul.f32 %v189_v55, %v5816_v34 }
 0x198   :  { %v203_v57 = vadd.f32 1e-06, %v199_v56 }
 0x19a   :  { %5547 = vrsqrt.f32 %v203_v57  ;;  %vm213_vm3 = vweird.f32 %v203_v57 }
 0x19d   :  { %v192_v58 = vpop.xlane.xlu2 %191 }
 0x19e   :  { %v200_v59 = vmul.f32 %v192_v58, %v5816_v34  ;;  %v342_v58 = vld [vmem:[#allocation2 + $0x288] sm:$0xff] }
 0x1a0   :  { %v5548_v60 = vpop.eup %5547  ;;  %v204_v61 = vadd.f32 1e-06, %v200_v59 }
 0x1a1   :  { %v208_v62 = vmul.f32 %v5548_v60, %v203_v57  ;;  %vm214_vm2 = vweird.f32 %v5548_v60 }
 0x1a2   :  { %5549 = vrsqrt.f32 %v204_v61  ;;  %vm215_vm4 = vmor %vm213_vm3, %vm214_vm2  ;;  %vm223_vm6 = vweird.f32 %v204_v61  ;;  %vm1028_vm2 = vcmask 1044484   ;;  %vm1031_vm3 = vcmask 1045509  }
 0x1a3   :  { %v209_v63 = vmul.f32 %v5548_v60, %v208_v62  ;;  %v293_v62 = vld [vmem:[#allocation2 + $0x100] sm:$0xff] }
 0x1a5   :  { %v210_v0 = vmul.f32 0.5, %v209_v63  ;;  %v195_v1 = vpop.xlane.xlu0 %194 }
 0x1a6   :  { %v201_v2 = vmul.f32 %v195_v1, %v5816_v34  ;;  %v346_v1 = vld [vmem:[#allocation2 + $0x2a8] sm:$0xff] }
 0x1a7   :  { %v211_v3 = vsub.f32 1.5, %v210_v0 }
 0x1a8   :  { %v5550_v4 = vpop.eup %5549  ;;  %v5841_v5 = vadd.f32 1e-06, %v201_v2  ;;  %v350_v2 = vld [vmem:[#allocation2 + $0x2c8] sm:$0xff] }
 0x1a9   :  { %v212_v6 = vmul.f32 %v5548_v60, %v211_v3  ;;  %v218_v7 = vmul.f32 %v5550_v4, %v204_v61  ;;  %vm224_vm5 = vweird.f32 %v5550_v4 }
 0x1aa   :  { %5551 = vrsqrt.f32 %v5841_v5  ;;  %vm225_vm7 = vmor %vm223_vm6, %vm224_vm5  ;;  %vm233_vm8 = vweird.f32 %v5841_v5  ;;  %vm1037_vm5 = vcmask 1047559  }
 0x1ab   :  { %v216_v9 = vsel %vm215_vm4, %v5548_v60, %v212_v6  ;;  %v219_v10 = vmul.f32 %v5550_v4, %v218_v7  ;;  %v354_v6 = vld [vmem:[#allocation2 + $0x2e8] sm:$0xff]  ;;  %vm1034_vm4 = vcmask 1046534  }
 0x1ac   :  { %v247_v12 = vmul.f32 %v216_v9, %v179_v37 }
 0x1ad   :  { %v220_v13 = vmul.f32 0.5, %v219_v10  ;;  %v198_v15 = vpop.xlane.xlu1 %197 }
 0x1ae   :  { %v252_v16 = vmul.f32 %v5844_v8, %v247_v12  ;;  %v202_v17 = vmul.f32 %v198_v15, %v5816_v34 }
 0x1af   :  { %v221_v18 = vsub.f32 1.5, %v220_v13 }
 0x1b0   :  { %v5852_v20 = vpop.eup %5551  ;;  %v5855_v21 = vadd.f32 %v5848_v11, %v252_v16  ;;  %v5857_v22 = vadd.f32 1e-06, %v202_v17  ;;  %v297_v17 = vld [vmem:[#allocation2 + $0x120] sm:$0xff] }
 0x1b1   :  { %v222_v25 = vmul.f32 %v5550_v4, %v221_v18  ;;  %v228_v26 = vmul.f32 %v5852_v20, %v5841_v5  ;;  %vm234_vm9 = vweird.f32 %v5852_v20 }
 0x1b2   :  { %5553 = vrsqrt.f32 %v5857_v22  ;;  %v473_v32 = vmul.f32 %v325_v19, %v5855_v21  ;;  %v477_v36 = vmul.f32 %v329_v23, %v5855_v21  ;;  %v481_v37 = vmul.f32 %v333_v24, %v5855_v21  ;;  %vm235_vm11 = vmor %vm233_vm8, %vm234_vm9 }
 0x1b3   :  { %v226_v33 = vsel %vm225_vm7, %v5550_v4, %v222_v25  ;;  %v229_v35 = vmul.f32 %v5852_v20, %v228_v26  ;;  %v485_v39 = vmul.f32 %v337_v27, %v5855_v21  ;;  %v489_v40 = vmul.f32 %v341_v28, %v5855_v21  ;;  %v301_v25 = vld [vmem:[#allocation2 + $0x140] sm:$0xff] }
 0x1b4   :  { %v248_v38 = vmul.f32 %v226_v33, %v5821_v42  ;;  %v493_v41 = vmul.f32 %v345_v29, %v5855_v21  ;;  %v497_v44 = vmul.f32 %v349_v30, %v5855_v21  ;;  %v501_v45 = vmul.f32 %v353_v31, %v5855_v21  ;;  %v326_v42 = vld [vmem:[#allocation2 + $0x208] sm:$0xff]  ;;  %v327_v30 = vld [vmem:[#allocation2 + $0x210] sm:$0xff] }
 0x1b5   :  { %v230_v43 = vmul.f32 0.5, %v229_v35  ;;  %v745_v54 = vsel %vm155_vm0, %v473_v32, 0.0  ;;  %v758_v55 = vsel %vm155_vm0, %v477_v36, 0.0  ;;  %v771_v56 = vsel %vm155_vm0, %v481_v37, 0.0  ;;  %v331_v33 = vld [vmem:[#allocation2 + $0x230] sm:$0xff] }
 0x1b6   :  { %v253_v48 = vmul.f32 %v5844_v8, %v248_v38  ;;  %v784_v59 = vsel %vm155_vm0, %v485_v39, 0.0  ;;  %v5888_v60 = vsel %vm155_vm0, %v489_v40, 0.0  ;;  %v5891_v61 = vsel %vm155_vm0, %v493_v41, 0.0  ;;  %v335_v35 = vld [vmem:[#allocation2 + $0x250] sm:$0xff] }
 0x1b7   :  { %v231_v50 = vsub.f32 1.5, %v230_v43  ;;  %vm243_vm10 = vweird.f32 %v5857_v22  ;;  %v5898_v3 = vsel %vm155_vm0, %v497_v44, 0.0  ;;  %v5901_v4 = vsel %vm155_vm0, %v501_v45, 0.0  ;;  %v339_v36 = vld [vmem:[#allocation2 + $0x270] sm:$0xff] }
 0x1b8   :  { %v5881_v57 = vpop.eup %5553  ;;  %v5884_v14 = vadd.f32 %v5848_v11, %v253_v48  ;;  %v5915_v18 = vmul.f32 %v293_v62, %v5855_v21  ;;  %v5928_v31 = vmul.f32 %v297_v17, %v5855_v21  ;;  %v5931_v39 = vmul.f32 %v301_v25, %v5855_v21  ;;  %v343_v41 = vld [vmem:[#allocation2 + $0x290] sm:$0xff] }
 0x1b9   :  { %v232_v63 = vmul.f32 %v5852_v20, %v231_v50  ;;  %v238_v0 = vmul.f32 %v5881_v57, %v5857_v22  ;;  %vm244_vm12 = vweird.f32 %v5881_v57  ;;  %v347_v43 = vld [vmem:[#allocation2 + $0x2b0] sm:$0xff] }
 0x1ba   :  { %v474_v7 = vmul.f32 %v326_v42, %v5884_v14  ;;  %v478_v9 = vmul.f32 %v330_v49, %v5884_v14  ;;  %v482_v10 = vmul.f32 %v334_v51, %v5884_v14  ;;  %v486_v12 = vmul.f32 %v338_v53, %v5884_v14  ;;  %v351_v44 = vld [vmem:[#allocation2 + $0x2d0] sm:$0xff]  ;;  %vm245_vm13 = vmor %vm243_vm10, %vm244_vm12 }
 0x1bb   :  { %v236_v13 = vsel %vm235_vm11, %v5852_v20, %v232_v63  ;;  %v239_v15 = vmul.f32 %v5881_v57, %v238_v0  ;;  %v490_v16 = vmul.f32 %v342_v58, %v5884_v14  ;;  %v494_v19 = vmul.f32 %v346_v1, %v5884_v14  ;;  %v355_v50 = vld [vmem:[#allocation2 + $0x2f0] sm:$0xff] }
 0x1bc   :  { %v249_v5 = vmul.f32 %v236_v13, %v5827_v47  ;;  %v498_v23 = vmul.f32 %v350_v2, %v5884_v14  ;;  %v746_v24 = vsel %vm155_vm0, %v474_v7, 0.0  ;;  %v502_v20 = vmul.f32 %v354_v6, %v5884_v14 }
 0x1bd   :  { %v240_v26 = vmul.f32 0.5, %v239_v15  ;;  %v759_v27 = vsel %vm155_vm0, %v478_v9, 0.0  ;;  %v772_v28 = vsel %vm155_vm0, %v482_v10, 0.0  ;;  %v785_v47 = vsel %vm155_vm0, %v486_v12, 0.0  ;;  %v328_v15 = vld [vmem:[#allocation2 + $0x218] sm:$0xff] }
 0x1be   :  { %v254_v29 = vmul.f32 %v5844_v8, %v249_v5  ;;  %v747_v37 = vadd.f32 %v746_v24, %v745_v54  ;;  %v760_v38 = vadd.f32 %v759_v27, %v758_v55  ;;  %v773_v45 = vadd.f32 %v772_v28, %v771_v56  ;;  %v344_v24 = vld [vmem:[#allocation2 + $0x298] sm:$0xff] }
 0x1bf   :  { %v241_v32 = vsub.f32 1.5, %v240_v26  ;;  %v786_v48 = vadd.f32 %v785_v47, %v784_v59  ;;  %v798_v42 = vsel %vm155_vm0, %v490_v16, 0.0  ;;  %v811_v51 = vsel %vm155_vm0, %v494_v19, 0.0  ;;  %v332_v16 = vld [vmem:[#allocation2 + $0x238] sm:$0xff] }
 0x1c0   :  { %v5934_v40 = vadd.f32 %v5848_v11, %v254_v29  ;;  %v824_v53 = vsel %vm155_vm0, %v498_v23, 0.0  ;;  %v837_v54 = vsel %vm155_vm0, %v502_v20, 0.0  ;;  %v812_v12 = vadd.f32 %v811_v51, %v5891_v61  ;;  %v336_v19 = vld [vmem:[#allocation2 + $0x258] sm:$0xff] }
 0x1c1   :  { %v242_v49 = vmul.f32 %v5881_v57, %v241_v32  ;;  %v825_v5 = vadd.f32 %v824_v53, %v5898_v3  ;;  %v340_v23 = vld [vmem:[#allocation2 + $0x278] sm:$0xff] }
 0x1c2   :  { %v475_v55 = vmul.f32 %v327_v30, %v5934_v40  ;;  %v479_v56 = vmul.f32 %v331_v33, %v5934_v40  ;;  %v483_v58 = vmul.f32 %v335_v35, %v5934_v40  ;;  %v487_v59 = vmul.f32 %v339_v36, %v5934_v40  ;;  %v352_v27 = vld [vmem:[#allocation2 + $0x2d8] sm:$0xff] }
 0x1c3   :  { %v246_v62 = vsel %vm245_vm13, %v5881_v57, %v242_v49  ;;  %v491_v63 = vmul.f32 %v343_v41, %v5934_v40  ;;  %v495_v0 = vmul.f32 %v347_v43, %v5934_v40  ;;  %v499_v1 = vmul.f32 %v351_v44, %v5934_v40  ;;  %v356_v28 = vld [vmem:[#allocation2 + $0x2f8] sm:$0xff] }
 0x1c4   :  { %v250_v2 = vmul.f32 %v246_v62, %v5833_v52  ;;  %v503_v22 = vmul.f32 %v355_v50, %v5934_v40  ;;  %v748_v6 = vsel %vm155_vm0, %v475_v55, 0.0  ;;  %v761_v7 = vsel %vm155_vm0, %v479_v56, 0.0 }
 0x1c5   :  { %v774_v9 = vsel %vm155_vm0, %v483_v58, 0.0  ;;  %v787_v10 = vsel %vm155_vm0, %v487_v59, 0.0  ;;  %v799_v57 = vadd.f32 %v798_v42, %v5888_v60  ;;  %v749_v17 = vadd.f32 %v748_v6, %v747_v37 }
 0x1c6   :  { %v255_v13 = vmul.f32 %v5844_v8, %v250_v2  ;;  %v800_v52 = vsel %vm155_vm0, %v491_v63, 0.0  ;;  %v762_v25 = vadd.f32 %v761_v7, %v760_v38  ;;  %v813_v26 = vsel %vm155_vm0, %v495_v0, 0.0  ;;  %v348_v8 = vld [vmem:[#allocation2 + $0x2b8] sm:$0xff] }
 0x1c7   :  { %v826_v20 = vsel %vm155_vm0, %v499_v1, 0.0  ;;  %v838_v60 = vadd.f32 %v837_v54, %v5901_v4  ;;  %v775_v29 = vadd.f32 %v774_v9, %v773_v45  ;;  %v788_v30 = vadd.f32 %v787_v10, %v786_v48 }
 0x1c8   :  { %v5968_v61 = vadd.f32 %v5848_v11, %v255_v13  ;;  %v839_v3 = vsel %vm155_vm0, %v503_v22, 0.0  ;;  %v801_v47 = vadd.f32 %v800_v52, %v799_v57  ;;  %v814_v32 = vadd.f32 %v813_v26, %v812_v12 }
 0x1c9   :  { %v827_v33 = vadd.f32 %v826_v20, %v825_v5  ;;  %v840_v35 = vadd.f32 %v839_v3, %v838_v60 }
 0x1ca   :  { %v476_v36 = vmul.f32 %v328_v15, %v5968_v61  ;;  %v480_v37 = vmul.f32 %v332_v16, %v5968_v61  ;;  %v484_v4 = vmul.f32 %v336_v19, %v5968_v61  ;;  %v488_v11 = vmul.f32 %v340_v23, %v5968_v61 }
 0x1cb   :  { %v492_v38 = vmul.f32 %v344_v24, %v5968_v61  ;;  %v496_v41 = vmul.f32 %v348_v8, %v5968_v61  ;;  %v500_v43 = vmul.f32 %v352_v27, %v5968_v61  ;;  %v504_v44 = vmul.f32 %v356_v28, %v5968_v61 }
 0x1cc   :  { %v750_v45 = vsel %vm155_vm0, %v476_v36, 0.0  ;;  %v763_v48 = vsel %vm155_vm0, %v480_v37, 0.0  ;;  %v776_v42 = vsel %vm155_vm0, %v484_v4, 0.0  ;;  %v789_v49 = vsel %vm155_vm0, %v488_v11, 0.0 }
 0x1cd   :  { %v751_v50 = vadd.f32 %v750_v45, %v749_v17  ;;  %v764_v51 = vadd.f32 %v763_v48, %v762_v25  ;;  %v777_v53 = vadd.f32 %v776_v42, %v775_v29  ;;  %v790_v54 = vadd.f32 %v789_v49, %v788_v30 }
 0x1ce   :  { %v802_v55 = vsel %vm155_vm0, %v492_v38, 0.0  ;;  %v815_v56 = vsel %vm155_vm0, %v496_v41, 0.0  ;;  %v828_v58 = vsel %vm155_vm0, %v500_v43, 0.0  ;;  %v841_v59 = vsel %vm155_vm0, %v504_v44, 0.0 }
 0x1cf   :  { %v752_v62 = vrot.slane %v751_v50, 4  ;;  %v765_v63 = vrot.slane %v764_v51, 4  ;;  %v778_v0 = vrot.slane %v777_v53, 4  ;;  %v791_v1 = vrot.slane %v790_v54, 4 }
 0x1d0   :  { %v803_v2 = vadd.f32 %v802_v55, %v801_v47  ;;  %v816_v22 = vadd.f32 %v815_v56, %v814_v32  ;;  %v829_v6 = vadd.f32 %v828_v58, %v827_v33  ;;  %v842_v7 = vadd.f32 %v841_v59, %v840_v35 }
 0x1d1   :  { %v753_v9 = vadd.f32 %v752_v62, %v751_v50  ;;  %v766_v10 = vadd.f32 %v765_v63, %v764_v51  ;;  %v779_v57 = vadd.f32 %v778_v0, %v777_v53  ;;  %v792_v12 = vadd.f32 %v791_v1, %v790_v54  ;;  %v294_v63 = vld [vmem:[#allocation2 + $0x108] sm:$0xff] }
 0x1d2   :  { %v804_v13 = vrot.slane %v803_v2, 4  ;;  %v817_v15 = vrot.slane %v816_v22, 4  ;;  %v830_v16 = vrot.slane %v829_v6, 4  ;;  %v843_v17 = vrot.slane %v842_v7, 4 }
 0x1d3   :  { %v754_v52 = vrot.slane %v753_v9, 2  ;;  %v767_v5 = vrot.slane %v766_v10, 2  ;;  %v780_v19 = vrot.slane %v779_v57, 2  ;;  %v793_v23 = vrot.slane %v792_v12, 2 }
 0x1d4   :  { %v805_v24 = vadd.f32 %v804_v13, %v803_v2  ;;  %v818_v25 = vadd.f32 %v817_v15, %v816_v22  ;;  %v831_v26 = vadd.f32 %v830_v16, %v829_v6  ;;  %v844_v20 = vadd.f32 %v843_v17, %v842_v7  ;;  %v295_v7 = vld [vmem:[#allocation2 + $0x110] sm:$0xff]  ;;  %v300_v17 = vld [vmem:[#allocation2 + $0x138] sm:$0xff] }
 0x1d5   :  { %v755_v60 = vadd.f32 %v754_v52, %v753_v9  ;;  %v768_v8 = vadd.f32 %v767_v5, %v766_v10  ;;  %v781_v27 = vadd.f32 %v780_v19, %v779_v57  ;;  %v794_v28 = vadd.f32 %v793_v23, %v792_v12  ;;  %v296_v9 = vld [vmem:[#allocation2 + $0x118] sm:$0xff]  ;;  %v298_v10 = vld [vmem:[#allocation2 + $0x128] sm:$0xff]  ;;  %v305_v57 = vld [vmem:[#allocation2 + $0x160] sm:$0xff] }
 0x1d6   :  { %v806_v29 = vrot.slane %v805_v24, 2  ;;  %v819_v30 = vrot.slane %v818_v25, 2  ;;  %v832_v3 = vrot.slane %v831_v26, 2  ;;  %v845_v47 = vrot.slane %v844_v20, 2  ;;  %v299_v16 = vld [vmem:[#allocation2 + $0x130] sm:$0xff]  ;;  %v302_v52 = vld [vmem:[#allocation2 + $0x148] sm:$0xff] }
 0x1d7   :  { %v756_v32 = vrot.slane %v755_v60, 1  ;;  %v769_v33 = vrot.slane %v768_v8, 1  ;;  %v782_v35 = vrot.slane %v781_v27, 1  ;;  %v795_v36 = vrot.slane %v794_v28, 1 }
 0x1d8   :  { %v807_v37 = vadd.f32 %v806_v29, %v805_v24  ;;  %v820_v4 = vadd.f32 %v819_v30, %v818_v25  ;;  %v833_v11 = vadd.f32 %v832_v3, %v831_v26  ;;  %v846_v38 = vadd.f32 %v845_v47, %v844_v20  ;;  %v303_v26 = vld [vmem:[#allocation2 + $0x150] sm:$0xff]  ;;  %v304_v20 = vld [vmem:[#allocation2 + $0x158] sm:$0xff] }
 0x1d9   :  { %v757_v41 = vadd.f32 %v756_v32, %v755_v60  ;;  %v770_v43 = vadd.f32 %v769_v33, %v768_v8  ;;  %v783_v44 = vadd.f32 %v782_v35, %v781_v27  ;;  %v796_v45 = vadd.f32 %v795_v36, %v794_v28  ;;  %v309_v60 = vld [vmem:[#allocation2 + $0x180] sm:$0xff]  ;;  %v306_v27 = vld [vmem:[#allocation2 + $0x168] sm:$0xff]  ;;  %v307_v28 = vld [vmem:[#allocation2 + $0x170] sm:$0xff] }
 0x1da   :  { %v808_v48 = vrot.slane %v807_v37, 1  ;;  %v821_v42 = vrot.slane %v820_v4, 1  ;;  %v834_v49 = vrot.slane %v833_v11, 1  ;;  %v847_v50 = vrot.slane %v846_v38, 1  ;;  %v308_v29 = vld [vmem:[#allocation2 + $0x178] sm:$0xff]  ;;  %v310_v33 = vld [vmem:[#allocation2 + $0x188] sm:$0xff] }
 0x1db   :  { %v5988_v51 = vadd.f32 %v5873_v46, %v757_v41  ;;  %v5991_v53 = vadd.f32 %v5873_v46, %v770_v43  ;;  %v5994_v54 = vadd.f32 %v5873_v46, %v783_v44  ;;  %v5997_v55 = vadd.f32 %v5873_v46, %v796_v45  ;;  %v311_v35 = vld [vmem:[#allocation2 + $0x190] sm:$0xff]  ;;  %v313_v36 = vld [vmem:[#allocation2 + $0x1a0] sm:$0xff]  ;;  %v312_v41 = vld [vmem:[#allocation2 + $0x198] sm:$0xff] }
 0x1dc   :  { %v809_v56 = vadd.f32 %v808_v48, %v807_v37  ;;  %v822_v58 = vadd.f32 %v821_v42, %v820_v4  ;;  %v835_v59 = vadd.f32 %v834_v49, %v833_v11  ;;  %v848_v62 = vadd.f32 %v847_v50, %v846_v38  ;;  %v314_v43 = vld [vmem:[#allocation2 + $0x1a8] sm:$0xff]  ;;  %v317_v44 = vld [vmem:[#allocation2 + $0x1c0] sm:$0xff]  ;;  %v315_v50 = vld [vmem:[#allocation2 + $0x1b0] sm:$0xff] }
 0x1dd   :  { %v1053_v0 = vrot.slane %v5991_v53, 7  ;;  %v1055_v13 = vrot.slane %v5994_v54, 6  ;;  %v1057_v15 = vrot.slane %v5997_v55, 5  ;;  %v6017_v5 = vmul.f32 %v294_v63, %v5884_v14 }
 0x1de   :  { %v6001_v1 = vadd.f32 %v5873_v46, %v809_v56  ;;  %v6004_v2 = vadd.f32 %v5873_v46, %v822_v58  ;;  %v6007_v22 = vadd.f32 %v5873_v46, %v835_v59  ;;  %v6010_v6 = vadd.f32 %v5873_v46, %v848_v62  ;;  %v316_v56 = vld [vmem:[#allocation2 + $0x1b8] sm:$0xff]  ;;  %v321_v58 = vld [vmem:[#allocation2 + $0x1e0] sm:$0xff] }
 0x1df   :  { %v1054_v12 = vsel %vm1019_vm14, %v1053_v0, %v5988_v51  ;;  %v443_v30 = vmul.f32 %v295_v7, %v5934_v40  ;;  %v444_v3 = vmul.f32 %v296_v9, %v5968_v61  ;;  %v446_v47 = vmul.f32 %v298_v10, %v5884_v14  ;;  %v318_v7 = vld [vmem:[#allocation2 + $0x1c8] sm:$0xff]  ;;  %v319_v9 = vld [vmem:[#allocation2 + $0x1d0] sm:$0xff]  ;;  %v320_v10 = vld [vmem:[#allocation2 + $0x1d8] sm:$0xff] }
 0x1e0   :  { %8653 = vst [vmem:[#allocation8_spill] sm:$0xff] %v6001_v1  ;;  %v1059_v19 = vrot.slane %v6001_v1, 4  ;;  %v1061_v23 = vrot.slane %v6004_v2, 3  ;;  %v1063_v24 = vrot.slane %v6007_v22, 2  ;;  %v1065_v25 = vrot.slane %v6010_v6, 1 }
 0x1e1   :  { %8654 = vst [vmem:[#allocation9_spill] sm:$0xff] %v6004_v2  ;;  %v1056_v8 = vsel %vm1022_vm15, %v1055_v13, %v1054_v12  ;;  %v447_v37 = vmul.f32 %v299_v16, %v5934_v40  ;;  %v448_v4 = vmul.f32 %v300_v17, %v5968_v61  ;;  %v450_v11 = vmul.f32 %v302_v52, %v5884_v14  ;;  %v322_v16 = vld [vmem:[#allocation2 + $0x1e8] sm:$0xff]  ;;  %v323_v17 = vld [vmem:[#allocation2 + $0x1f0] sm:$0xff]  ;;  %v324_v52 = vld [vmem:[#allocation2 + $0x1f8] sm:$0xff] }
 0x1e2   :  { %8655 = vst [vmem:[#allocation10_spill] sm:$0xff] %v6007_v22  ;;  %v1058_v32 = vsel %vm1025_vm1, %v1057_v15, %v1056_v8  ;;  %v451_v45 = vmul.f32 %v303_v26, %v5934_v40  ;;  %v452_v48 = vmul.f32 %v304_v20, %v5968_v61  ;;  %v453_v42 = vmul.f32 %v305_v57, %v5855_v21 }
 0x1e3   :  { %8656 = vst [vmem:[#allocation11_spill] sm:$0xff] %v6010_v6  ;;  %v1060_v38 = vsel %vm1028_vm2, %v1059_v19, %v1058_v32  ;;  %v454_v59 = vmul.f32 %v306_v27, %v5884_v14  ;;  %v455_v62 = vmul.f32 %v307_v28, %v5934_v40  ;;  %v456_v63 = vmul.f32 %v308_v29, %v5968_v61 }
 0x1e4   :  { %v1062_v49 = vsel %vm1031_vm3, %v1061_v23, %v1060_v38  ;;  %v457_v12 = vmul.f32 %v309_v60, %v5855_v21  ;;  %v458_v57 = vmul.f32 %v310_v33, %v5884_v14  ;;  %v459_v13 = vmul.f32 %v311_v35, %v5934_v40 }
 0x1e5   :  { %v1064_v0 = vsel %vm1034_vm4, %v1063_v24, %v1062_v49  ;;  %v460_v19 = vmul.f32 %v312_v41, %v5968_v61  ;;  %v461_v23 = vmul.f32 %v313_v36, %v5855_v21  ;;  %v462_v24 = vmul.f32 %v314_v43, %v5884_v14 }
 0x1e6   :  { %v1066_v15 = vsel %vm1037_vm5, %v1065_v25, %v1064_v0  ;;  %v463_v20 = vmul.f32 %v315_v50, %v5934_v40  ;;  %v464_v60 = vmul.f32 %v316_v56, %v5968_v61  ;;  %v465_v8 = vmul.f32 %v317_v44, %v5855_v21 }
 0x1e7   :  { %v1091_v26 = vsel %vm155_vm0, %v1066_v15, 0.0  ;;  %v466_v25 = vmul.f32 %v318_v7, %v5884_v14  ;;  %v467_v27 = vmul.f32 %v319_v9, %v5934_v40  ;;  %v6054_v28 = vmul.f32 %v320_v10, %v5968_v61 }
 0x1e8   :  { %1092 = vadd.xlane.f32.xlu1 %v1091_v26  ;;  %v6057_v29 = vmul.f32 %v321_v58, %v5855_v21  ;;  %v6060_v32 = vmul.f32 %v322_v16, %v5884_v14  ;;  %v6063_v33 = vmul.f32 %v323_v17, %v5934_v40  ;;  %v6066_v35 = vmul.f32 %v324_v52, %v5968_v61 }
 0x1e9   :  { %v641_v36 = vsel %vm155_vm0, %v5915_v18, 0.0  ;;  %v642_v38 = vsel %vm155_vm0, %v6017_v5, 0.0  ;;  %v644_v41 = vsel %vm155_vm0, %v443_v30, 0.0  ;;  %v646_v43 = vsel %vm155_vm0, %v444_v3, 0.0 }
 0x1ea   :  { %v654_v44 = vsel %vm155_vm0, %v5928_v31, 0.0  ;;  %v643_v49 = vadd.f32 %v642_v38, %v641_v36  ;;  %v655_v50 = vsel %vm155_vm0, %v446_v47, 0.0  ;;  %v657_v56 = vsel %vm155_vm0, %v447_v37, 0.0 }
 0x1eb   :  { %v659_v58 = vsel %vm155_vm0, %v448_v4, 0.0  ;;  %v656_v0 = vadd.f32 %v655_v50, %v654_v44  ;;  %v667_v18 = vsel %vm155_vm0, %v5931_v39, 0.0  ;;  %v668_v5 = vsel %vm155_vm0, %v450_v11, 0.0 }
 0x1ec   :  { %v670_v30 = vsel %vm155_vm0, %v451_v45, 0.0  ;;  %v645_v7 = vadd.f32 %v644_v41, %v643_v49  ;;  %v669_v3 = vadd.f32 %v668_v5, %v667_v18  ;;  %v672_v9 = vsel %vm155_vm0, %v452_v48, 0.0 }
 0x1ed   :  { %v680_v31 = vsel %vm155_vm0, %v453_v42, 0.0  ;;  %v658_v10 = vadd.f32 %v657_v56, %v656_v0  ;;  %v681_v47 = vsel %vm155_vm0, %v454_v59, 0.0  ;;  %v683_v37 = vsel %vm155_vm0, %v455_v62, 0.0 }
 0x1ee   :  { %v685_v4 = vsel %vm155_vm0, %v456_v63, 0.0  ;;  %v647_v15 = vadd.f32 %v646_v43, %v645_v7  ;;  %v671_v16 = vadd.f32 %v670_v30, %v669_v3  ;;  %v682_v39 = vadd.f32 %v681_v47, %v680_v31 }
 0x1ef   :  { %v693_v11 = vsel %vm155_vm0, %v457_v12, 0.0  ;;  %v660_v17 = vadd.f32 %v659_v58, %v658_v10  ;;  %v694_v45 = vsel %vm155_vm0, %v458_v57, 0.0  ;;  %v696_v52 = vsel %vm155_vm0, %v459_v13, 0.0 }
 0x1f0   :  { %v698_v48 = vsel %vm155_vm0, %v460_v19, 0.0  ;;  %v648_v42 = vrot.slane %v647_v15, 4  ;;  %v673_v26 = vadd.f32 %v672_v9, %v671_v16  ;;  %v684_v36 = vadd.f32 %v683_v37, %v682_v39 }
 0x1f1   :  { %v695_v59 = vadd.f32 %v694_v45, %v693_v11  ;;  %v661_v38 = vrot.slane %v660_v17, 4  ;;  %v706_v62 = vsel %vm155_vm0, %v461_v23, 0.0  ;;  %v707_v63 = vsel %vm155_vm0, %v462_v24, 0.0 }
 0x1f2   :  { %v709_v41 = vsel %vm155_vm0, %v463_v20, 0.0  ;;  %v649_v43 = vadd.f32 %v648_v42, %v647_v15  ;;  %v674_v12 = vrot.slane %v673_v26, 4  ;;  %v686_v44 = vadd.f32 %v685_v4, %v684_v36 }
 0x1f3   :  { %v697_v49 = vadd.f32 %v696_v52, %v695_v59  ;;  %v662_v57 = vadd.f32 %v661_v38, %v660_v17  ;;  %v708_v50 = vadd.f32 %v707_v63, %v706_v62  ;;  %v711_v13 = vsel %vm155_vm0, %v464_v60, 0.0 }
 0x1f4   :  { %v719_v19 = vsel %vm155_vm0, %v465_v8, 0.0  ;;  %v650_v56 = vrot.slane %v649_v43, 2  ;;  %v675_v58 = vadd.f32 %v674_v12, %v673_v26  ;;  %v687_v0 = vrot.slane %v686_v44, 4  ;;  %v261_v12 = vld [vmem:[#allocation2] sm:$0xff] }
 0x1f5   :  { %v699_v18 = vadd.f32 %v698_v48, %v697_v49  ;;  %v663_v5 = vrot.slane %v662_v57, 2  ;;  %v710_v23 = vadd.f32 %v709_v41, %v708_v50  ;;  %v720_v24 = vsel %vm155_vm0, %v466_v25, 0.0 }
 0x1f6   :  { %v722_v20 = vsel %vm155_vm0, %v467_v27, 0.0  ;;  %v651_v30 = vadd.f32 %v650_v56, %v649_v43  ;;  %v676_v7 = vrot.slane %v675_v58, 2  ;;  %v688_v3 = vadd.f32 %v687_v0, %v686_v44 }
 0x1f7   :  { %v700_v9 = vrot.slane %v699_v18, 4  ;;  %v664_v31 = vadd.f32 %v663_v5, %v662_v57  ;;  %v712_v10 = vadd.f32 %v711_v13, %v710_v23  ;;  %v721_v47 = vadd.f32 %v720_v24, %v719_v19 }
 0x1f8   :  { %v724_v60 = vsel %vm155_vm0, %v6054_v28, 0.0  ;;  %v652_v8 = vrot.slane %v651_v30, 1  ;;  %v677_v37 = vadd.f32 %v676_v7, %v675_v58  ;;  %v689_v4 = vrot.slane %v688_v3, 2  ;;  %v262_v58 = vld [vmem:[#allocation2 + $0x8] sm:$0xff]  ;;  %v264_v7 = vld [vmem:[#allocation2 + $0x18] sm:$0xff] }
 0x1f9   :  { %v701_v15 = vadd.f32 %v700_v9, %v699_v18  ;;  %v665_v16 = vrot.slane %v664_v31, 1  ;;  %v713_v39 = vrot.slane %v712_v10, 4  ;;  %v723_v11 = vadd.f32 %v722_v20, %v721_v47  ;;  %v263_v18 = vld [vmem:[#allocation2 + $0x10] sm:$0xff] }
 0x1fa   :  { %v732_v25 = vsel %vm155_vm0, %v6057_v29, 0.0  ;;  %v653_v27 = vadd.f32 %v652_v8, %v651_v30  ;;  %v678_v17 = vrot.slane %v677_v37, 1  ;;  %v690_v45 = vadd.f32 %v689_v4, %v688_v3  ;;  %v266_v4 = vld [vmem:[#allocation2 + $0x28] sm:$0xff] }
 0x1fb   :  { %v702_v52 = vrot.slane %v701_v15, 2  ;;  %v666_v48 = vadd.f32 %v665_v16, %v664_v31  ;;  %v714_v42 = vadd.f32 %v713_v39, %v712_v10  ;;  %v725_v26 = vadd.f32 %v724_v60, %v723_v11  ;;  %v265_v10 = vld [vmem:[#allocation2 + $0x20] sm:$0xff] }
 0x1fc   :  { %v733_v28 = vsel %vm155_vm0, %v6060_v32, 0.0  ;;  %v679_v36 = vadd.f32 %v678_v17, %v677_v37  ;;  %v691_v59 = vrot.slane %v690_v45, 1  ;;  %v735_v43 = vsel %vm155_vm0, %v6063_v33, 0.0  ;;  %v269_v17 = vld [vmem:[#allocation2 + $0x40] sm:$0xff] }
 0x1fd   :  { %v703_v38 = vadd.f32 %v702_v52, %v701_v15  ;;  %v734_v62 = vadd.f32 %v733_v28, %v732_v25  ;;  %v715_v63 = vrot.slane %v714_v42, 2  ;;  %v726_v41 = vrot.slane %v725_v26, 4  ;;  %v267_v15 = vld [vmem:[#allocation2 + $0x30] sm:$0xff] }
 0x1fe   :  { %v737_v29 = vsel %vm155_vm0, %v6066_v35, 0.0  ;;  %v692_v44 = vadd.f32 %v691_v59, %v690_v45  ;;  %v6110_v50 = vadd.f32 %v5873_v46, %v653_v27  ;;  %v6113_v19 = vadd.f32 %v5873_v46, %v666_v48  ;;  %v268_v27 = vld [vmem:[#allocation2 + $0x38] sm:$0xff]  ;;  %v271_v28 = vld [vmem:[#allocation2 + $0x50] sm:$0xff] }
 0x1ff   :  { %v704_v49 = vrot.slane %v703_v38, 1  ;;  %v736_v57 = vadd.f32 %v735_v43, %v734_v62  ;;  %v716_v32 = vadd.f32 %v715_v63, %v714_v42  ;;  %v727_v13 = vadd.f32 %v726_v41, %v725_v26  ;;  %v270_v26 = vld [vmem:[#allocation2 + $0x48] sm:$0xff]  ;;  %v273_v63 = vld [vmem:[#allocation2 + $0x60] sm:$0xff] }
 0x200   :  { %v6116_v56 = vadd.f32 %v5873_v46, %v679_v36  ;;  %v6119_v35 = vadd.f32 %v5873_v46, %v692_v44  ;;  %v6122_v5 = vmul.f32 %v261_v12, %v5855_v21  ;;  %v1039_v20 = vrot.slane %v6113_v19, 7  ;;  %v272_v36 = vld [vmem:[#allocation2 + $0x58] sm:$0xff]  ;;  %v274_v41 = vld [vmem:[#allocation2 + $0x68] sm:$0xff] }
 0x201   :  { %v705_v33 = vadd.f32 %v704_v49, %v703_v38  ;;  %v738_v0 = vadd.f32 %v737_v29, %v736_v57  ;;  %v717_v23 = vrot.slane %v716_v32, 1  ;;  %v728_v24 = vrot.slane %v727_v13, 2  ;;  %v275_v49 = vld [vmem:[#allocation2 + $0x70] sm:$0xff]  ;;  %v276_v57 = vld [vmem:[#allocation2 + $0x78] sm:$0xff] }
 0x202   :  { %v1041_v30 = vrot.slane %v6116_v56, 6  ;;  %v1043_v31 = vrot.slane %v6119_v35, 5  ;;  %v6131_v47 = vmul.f32 %v262_v58, %v5884_v14  ;;  %v1040_v37 = vsel %vm1019_vm14, %v1039_v20, %v6110_v50 }
 0x203   :  { %v739_v3 = vrot.slane %v738_v0, 4  ;;  %v6127_v9 = vadd.f32 %v5873_v46, %v705_v33  ;;  %v718_v60 = vadd.f32 %v717_v23, %v716_v32  ;;  %v729_v8 = vadd.f32 %v728_v24, %v727_v13  ;;  %v277_v32 = vld [vmem:[#allocation2 + $0x80] sm:$0xff]  ;;  %v280_v23 = vld [vmem:[#allocation2 + $0x98] sm:$0xff] }
 0x204   :  { %v6136_v16 = vmul.f32 %v263_v18, %v5934_v40  ;;  %v1042_v11 = vsel %vm1022_vm15, %v1041_v30, %v1040_v37  ;;  %v6141_v45 = vmul.f32 %v264_v7, %v5968_v61  ;;  %v6148_v59 = vmul.f32 %v265_v10, %v5855_v21  ;;  %v279_v18 = vld [vmem:[#allocation2 + $0x90] sm:$0xff]  ;;  %v282_v10 = vld [vmem:[#allocation2 + $0xa8] sm:$0xff] }
 0x205   :  { %v740_v39 = vadd.f32 %v739_v3, %v738_v0  ;;  %v1045_v25 = vrot.slane %v6127_v9, 4  ;;  %v730_v52 = vrot.slane %v729_v8, 1  ;;  %v6144_v48 = vadd.f32 %v5873_v46, %v718_v60  ;;  %v278_v0 = vld [vmem:[#allocation2 + $0x88] sm:$0xff]  ;;  %v283_v60 = vld [vmem:[#allocation2 + $0xb0] sm:$0xff] }
 0x206   :  { %v1044_v42 = vsel %vm1025_vm1, %v1043_v31, %v1042_v11  ;;  %v414_v43 = vmul.f32 %v266_v4, %v5884_v14  ;;  %v415_v29 = vmul.f32 %v267_v15, %v5934_v40  ;;  %v416_v13 = vmul.f32 %v268_v27, %v5968_v61  ;;  %v281_v31 = vld [vmem:[#allocation2 + $0xa0] sm:$0xff]  ;;  %v284_v15 = vld [vmem:[#allocation2 + $0xb8] sm:$0xff]  ;;  %v286_v11 = vld [vmem:[#allocation2 + $0xc8] sm:$0xff] }
 0x207   :  { %v741_v38 = vrot.slane %v740_v39, 2  ;;  %v1046_v62 = vsel %vm1028_vm2, %v1045_v25, %v1044_v42  ;;  %v731_v12 = vadd.f32 %v730_v52, %v729_v8  ;;  %v1047_v44 = vrot.slane %v6144_v48, 3  ;;  %v287_v42 = vld [vmem:[#allocation2 + $0xd0] sm:$0xff] }
 0x208   :  { %v417_v58 = vmul.f32 %v269_v17, %v5855_v21  ;;  %v418_v24 = vmul.f32 %v270_v26, %v5884_v14  ;;  %v419_v20 = vmul.f32 %v271_v28, %v5934_v40  ;;  %v420_v30 = vmul.f32 %v272_v36, %v5968_v61  ;;  %v288_v26 = vld [vmem:[#allocation2 + $0xd8] sm:$0xff]  ;;  %v289_v28 = vld [vmem:[#allocation2 + $0xe0] sm:$0xff] }
 0x209   :  { %v742_v33 = vadd.f32 %v741_v38, %v740_v39  ;;  %v6160_v7 = vadd.f32 %v5873_v46, %v731_v12  ;;  %v1048_v3 = vsel %vm1031_vm3, %v1047_v44, %v1046_v62  ;;  %v421_v8 = vmul.f32 %v273_v63, %v5855_v21  ;;  %v285_v39 = vld [vmem:[#allocation2 + $0xc0] sm:$0xff]  ;;  %v291_v12 = vld [vmem:[#allocation2 + $0xf0] sm:$0xff]  ;;  %v292_v44 = vld [vmem:[#allocation2 + $0xf8] sm:$0xff] }
 0x20a   :  { %v422_v37 = vmul.f32 %v274_v41, %v5884_v14  ;;  %v423_v25 = vmul.f32 %v275_v49, %v5934_v40  ;;  %v424_v27 = vmul.f32 %v276_v57, %v5968_v61  ;;  %v425_v17 = vmul.f32 %v277_v32, %v5855_v21  ;;  %v290_v41 = vld [vmem:[#allocation2 + $0xe8] sm:$0xff] }
 0x20b   :  { %v743_v4 = vrot.slane %v742_v33, 1  ;;  %v1049_v52 = vrot.slane %v6160_v7, 2  ;;  %v426_v36 = vmul.f32 %v278_v0, %v5884_v14  ;;  %v427_v38 = vmul.f32 %v279_v18, %v5934_v40 }
 0x20c   :  { %v428_v62 = vmul.f32 %v280_v23, %v5968_v61  ;;  %v429_v49 = vmul.f32 %v281_v31, %v5855_v21  ;;  %v430_v57 = vmul.f32 %v282_v10, %v5884_v14  ;;  %v431_v32 = vmul.f32 %v283_v60, %v5934_v40 }
 0x20d   :  { %v744_v63 = vadd.f32 %v743_v4, %v742_v33  ;;  %v1050_v6 = vsel %vm1034_vm4, %v1049_v52, %v1048_v3  ;;  %v432_v22 = vmul.f32 %v284_v15, %v5968_v61  ;;  %v433_v0 = vmul.f32 %v285_v39, %v5855_v21 }
 0x20e   :  { %v6179_v18 = vmul.f32 %v286_v11, %v5884_v14  ;;  %v6185_v23 = vmul.f32 %v287_v42, %v5934_v40  ;;  %v6188_v31 = vmul.f32 %v288_v26, %v5968_v61  ;;  %v6191_v10 = vmul.f32 %v289_v28, %v5855_v21 }
 0x20f   :  { %v6182_v33 = vadd.f32 %v5873_v46, %v744_v63  ;;  %v6194_v3 = vmul.f32 %v290_v41, %v5884_v14  ;;  %v6197_v60 = vmul.f32 %v291_v12, %v5934_v40  ;;  %v6200_v4 = vmul.f32 %v292_v44, %v5968_v61 }
 0x210   :  { %v537_v15 = vsel %vm155_vm0, %v6122_v5, 0.0  ;;  %v538_v11 = vsel %vm155_vm0, %v6131_v47, 0.0  ;;  %v540_v52 = vsel %vm155_vm0, %v6136_v16, 0.0  ;;  %v542_v42 = vsel %vm155_vm0, %v6141_v45, 0.0 }
 0x211   :  { %v1051_v39 = vrot.slane %v6182_v33, 1  ;;  %v539_v26 = vadd.f32 %v538_v11, %v537_v15  ;;  %v550_v28 = vsel %vm155_vm0, %v6148_v59, 0.0  ;;  %v551_v63 = vsel %vm155_vm0, %v414_v43, 0.0 }
 0x212   :  { %v553_v41 = vsel %vm155_vm0, %v415_v29, 0.0  ;;  %v552_v12 = vadd.f32 %v551_v63, %v550_v28  ;;  %v555_v44 = vsel %vm155_vm0, %v416_v13, 0.0  ;;  %v563_v47 = vsel %vm155_vm0, %v417_v58, 0.0 }
 0x213   :  { %v1052_v5 = vsel %vm1037_vm5, %v1051_v39, %v1050_v6  ;;  %v541_v2 = vadd.f32 %v540_v52, %v539_v26  ;;  %v564_v45 = vsel %vm155_vm0, %v418_v24, 0.0  ;;  %v566_v15 = vsel %vm155_vm0, %v419_v20, 0.0 }
 0x214   :  { %v1088_v16 = vsel %vm155_vm0, %v1052_v5, 0.0  ;;  %v554_v59 = vadd.f32 %v553_v41, %v552_v12  ;;  %v565_v11 = vadd.f32 %v564_v45, %v563_v47  ;;  %v568_v43 = vsel %vm155_vm0, %v420_v30, 0.0 }
 0x215   :  { %1089 = vadd.xlane.f32.xlu0 %v1088_v16  ;;  %v576_v29 = vsel %vm155_vm0, %v421_v8, 0.0  ;;  %v543_v6 = vadd.f32 %v542_v42, %v541_v2  ;;  %v577_v39 = vsel %vm155_vm0, %v422_v37, 0.0  ;;  %v579_v13 = vsel %vm155_vm0, %v423_v25, 0.0 }
 0x216   :  { %v581_v58 = vsel %vm155_vm0, %v424_v27, 0.0  ;;  %v556_v28 = vadd.f32 %v555_v44, %v554_v59  ;;  %v567_v52 = vadd.f32 %v566_v15, %v565_v11  ;;  %v578_v26 = vadd.f32 %v577_v39, %v576_v29 }
 0x217   :  { %v589_v24 = vsel %vm155_vm0, %v425_v17, 0.0  ;;  %v544_v20 = vrot.slane %v543_v6, 4  ;;  %v590_v63 = vsel %vm155_vm0, %v426_v36, 0.0  ;;  %v592_v41 = vsel %vm155_vm0, %v427_v38, 0.0 }
 0x218   :  { %v594_v30 = vsel %vm155_vm0, %v428_v62, 0.0  ;;  %v557_v8 = vrot.slane %v556_v28, 4  ;;  %v569_v2 = vadd.f32 %v568_v43, %v567_v52  ;;  %v580_v42 = vadd.f32 %v579_v13, %v578_v26 }
 0x219   :  { %v591_v37 = vadd.f32 %v590_v63, %v589_v24  ;;  %v545_v5 = vadd.f32 %v544_v20, %v543_v6  ;;  %v602_v25 = vsel %vm155_vm0, %v429_v49, 0.0  ;;  %v603_v27 = vsel %vm155_vm0, %v430_v57, 0.0 }
 0x21a   :  { %v605_v12 = vsel %vm155_vm0, %v431_v32, 0.0  ;;  %v558_v44 = vadd.f32 %v557_v8, %v556_v28  ;;  %v570_v17 = vrot.slane %v569_v2, 4  ;;  %v582_v47 = vadd.f32 %v581_v58, %v580_v42 }
 0x21b   :  { %v593_v16 = vadd.f32 %v592_v41, %v591_v37  ;;  %v546_v36 = vrot.slane %v545_v5, 2  ;;  %v604_v45 = vadd.f32 %v603_v27, %v602_v25  ;;  %v607_v38 = vsel %vm155_vm0, %v432_v22, 0.0 }
 0x21c   :  { %v615_v62 = vsel %vm155_vm0, %v433_v0, 0.0  ;;  %v559_v15 = vrot.slane %v558_v44, 2  ;;  %v571_v59 = vadd.f32 %v570_v17, %v569_v2  ;;  %v583_v11 = vrot.slane %v582_v47, 4 }
 0x21d   :  { %v595_v43 = vadd.f32 %v594_v30, %v593_v16  ;;  %v547_v29 = vadd.f32 %v546_v36, %v545_v5  ;;  %v606_v49 = vadd.f32 %v605_v12, %v604_v45  ;;  %v616_v57 = vsel %vm155_vm0, %v6179_v18, 0.0  ;;  %v357_v16 = vld [vmem:[#allocation2 + $0x300] sm:$0xff] }
 0x21e   :  { %v618_v32 = vsel %vm155_vm0, %v6185_v23, 0.0  ;;  %v560_v6 = vadd.f32 %v559_v15, %v558_v44  ;;  %v572_v39 = vrot.slane %v571_v59, 2  ;;  %v584_v13 = vadd.f32 %v583_v11, %v582_v47 }
 0x21f   :  { %v596_v58 = vrot.slane %v595_v43, 4  ;;  %v548_v28 = vrot.slane %v547_v29, 1  ;;  %v608_v22 = vadd.f32 %v607_v38, %v606_v49  ;;  %v617_v52 = vadd.f32 %v616_v57, %v615_v62 }
 0x220   :  { %v620_v0 = vsel %vm155_vm0, %v6188_v31, 0.0  ;;  %v561_v26 = vrot.slane %v560_v6, 1  ;;  %v573_v24 = vadd.f32 %v572_v39, %v571_v59  ;;  %v585_v20 = vrot.slane %v584_v13, 2  ;;  %v359_v39 = vld [vmem:[#allocation2 + $0x310] sm:$0xff] }
 0x221   :  { %v597_v63 = vadd.f32 %v596_v58, %v595_v43  ;;  %v549_v41 = vadd.f32 %v548_v28, %v547_v29  ;;  %v609_v30 = vrot.slane %v608_v22, 4  ;;  %v619_v18 = vadd.f32 %v618_v32, %v617_v52 }
 0x222   :  { %v628_v23 = vsel %vm155_vm0, %v6191_v10, 0.0  ;;  %v562_v8 = vadd.f32 %v561_v26, %v560_v6  ;;  %v574_v2 = vrot.slane %v573_v24, 1  ;;  %v586_v42 = vadd.f32 %v585_v20, %v584_v13 }
 0x223   :  { %v598_v37 = vrot.slane %v597_v63, 2  ;;  %v610_v5 = vadd.f32 %v609_v30, %v608_v22  ;;  %v621_v25 = vadd.f32 %v620_v0, %v619_v18  ;;  %v629_v27 = vsel %vm155_vm0, %v6194_v3, 0.0  ;;  %v360_v22 = vld [vmem:[#allocation2 + $0x318] sm:$0xff] }
 0x224   :  { %v631_v31 = vsel %vm155_vm0, %v6197_v60, 0.0  ;;  %v575_v12 = vadd.f32 %v574_v2, %v573_v24  ;;  %v587_v44 = vrot.slane %v586_v42, 1  ;;  %v630_v47 = vadd.f32 %v629_v27, %v628_v23  ;;  %v358_v60 = vld [vmem:[#allocation2 + $0x308] sm:$0xff]  ;;  %v364_v2 = vld [vmem:[#allocation2 + $0x338] sm:$0xff]  ;;  %v365_v27 = vld [vmem:[#allocation2 + $0x340] sm:$0xff] }
 0x225   :  { %v599_v17 = vadd.f32 %v598_v37, %v597_v63  ;;  %v611_v36 = vrot.slane %v610_v5, 2  ;;  %v622_v45 = vrot.slane %v621_v25, 4  ;;  %v633_v10 = vsel %vm155_vm0, %v6200_v4, 0.0  ;;  %v361_v63 = vld [vmem:[#allocation2 + $0x320] sm:$0xff] }
 0x226   :  { %v6250_v38 = vadd.f32 %v5873_v46, %v549_v41  ;;  %v588_v62 = vadd.f32 %v587_v44, %v586_v42  ;;  %v632_v59 = vadd.f32 %v631_v31, %v630_v47  ;;  %v6253_v3 = vadd.f32 %v5873_v46, %v562_v8  ;;  %v362_v41 = vld [vmem:[#allocation2 + $0x328] sm:$0xff]  ;;  %v363_v8 = vld [vmem:[#allocation2 + $0x330] sm:$0xff] }
 0x227   :  { %v600_v15 = vrot.slane %v599_v17, 1  ;;  %v612_v11 = vadd.f32 %v611_v36, %v610_v5  ;;  %v623_v43 = vadd.f32 %v622_v45, %v621_v25  ;;  %v6256_v29 = vadd.f32 %v5873_v46, %v575_v12  ;;  %v366_v31 = vld [vmem:[#allocation2 + $0x348] sm:$0xff]  ;;  %v367_v47 = vld [vmem:[#allocation2 + $0x350] sm:$0xff]  ;;  %v369_v36 = vld [vmem:[#allocation2 + $0x360] sm:$0xff] }
 0x228   :  { %8657 = vst [vmem:[#allocation12_spill] sm:$0xff] %v6250_v38  ;;  %v6259_v49 = vmul.f32 %v357_v16, %v5855_v21  ;;  %v634_v4 = vadd.f32 %v633_v10, %v632_v59  ;;  %v6262_v32 = vadd.f32 %v5873_v46, %v588_v62  ;;  %v1018_v6 = vrot.slane %v6253_v3, 7  ;;  %v368_v16 = vld [vmem:[#allocation2 + $0x358] sm:$0xff]  ;;  %v370_v59 = vld [vmem:[#allocation2 + $0x368] sm:$0xff] }
 0x229   :  { %8658 = vst [vmem:[#allocation13_spill] sm:$0xff] %v6253_v3  ;;  %v601_v57 = vadd.f32 %v600_v15, %v599_v17  ;;  %v613_v13 = vrot.slane %v612_v11, 1  ;;  %v624_v58 = vrot.slane %v623_v43, 2  ;;  %v1021_v28 = vrot.slane %v6256_v29, 6  ;;  %v388_v3 = vld [vmem:[#allocation2 + $0x3f8] sm:$0xff] }
 0x22a   :  { %8659 = vst [vmem:[#allocation14_spill] sm:$0xff] %v6256_v29  ;;  %v6267_v52 = vmul.f32 %v358_v60, %v5884_v14  ;;  %v635_v0 = vrot.slane %v634_v4, 4  ;;  %v1020_v24 = vsel %vm1019_vm14, %v1018_v6, %v6250_v38  ;;  %v1024_v20 = vrot.slane %v6262_v32, 5  ;;  %v371_v60 = vld [vmem:[#allocation2 + $0x370] sm:$0xff]  ;;  %v372_v6 = vld [vmem:[#allocation2 + $0x378] sm:$0xff] }
 0x22b   :  { %8660 = vst [vmem:[#allocation15_spill] sm:$0xff] %v6262_v32  ;;  %v6270_v26 = vadd.f32 %v5873_v46, %v601_v57  ;;  %v614_v30 = vadd.f32 %v613_v13, %v612_v11  ;;  %v625_v18 = vadd.f32 %v624_v58, %v623_v43  ;;  %v1023_v23 = vsel %vm1022_vm15, %v1021_v28, %v1020_v24  ;;  %v374_v13 = vld [vmem:[#allocation2 + $0x388] sm:$0xff]  ;;  %v376_v24 = vld [vmem:[#allocation2 + $0x398] sm:$0xff]  ;;  %v387_v29 = vld [vmem:[#allocation2 + $0x3f0] sm:$0xff] }
 0x22c   :  { %v6277_v42 = vmul.f32 %v359_v39, %v5934_v40  ;;  %v636_v37 = vadd.f32 %v635_v0, %v634_v4  ;;  %v1026_v5 = vsel %vm1025_vm1, %v1024_v20, %v1023_v23  ;;  %v6282_v12 = vmul.f32 %v360_v22, %v5968_v61  ;;  %v373_v39 = vld [vmem:[#allocation2 + $0x380] sm:$0xff]  ;;  %v375_v0 = vld [vmem:[#allocation2 + $0x390] sm:$0xff] }
 0x22d   :  { %8661 = vst [vmem:[#allocation16_spill] sm:$0xff] %v6270_v26  ;;  %v1027_v25 = vrot.slane %v6270_v26, 4  ;;  %v626_v44 = vrot.slane %v625_v18, 1  ;;  %v6285_v17 = vadd.f32 %v5873_v46, %v614_v30  ;;  %v6288_v45 = vmul.f32 %v361_v63, %v5855_v21  ;;  %v377_v20 = vld [vmem:[#allocation2 + $0x3a0] sm:$0xff] }
 0x22e   :  { %v6291_v10 = vmul.f32 %v362_v41, %v5884_v14  ;;  %v637_v62 = vrot.slane %v636_v37, 2  ;;  %v511_v11 = vmul.f32 %v363_v8, %v5934_v40  ;;  %v512_v43 = vmul.f32 %v364_v2, %v5968_v61  ;;  %v378_v8 = vld [vmem:[#allocation2 + $0x3a8] sm:$0xff]  ;;  %v379_v2 = vld [vmem:[#allocation2 + $0x3b0] sm:$0xff] }
 0x22f   :  { %8662 = vst [vmem:[#allocation17_spill] sm:$0xff] %v6285_v17  ;;  %v1029_v15 = vsel %vm1028_vm2, %v1027_v25, %v1026_v5  ;;  %v627_v57 = vadd.f32 %v626_v44, %v625_v18  ;;  %v1030_v4 = vrot.slane %v6285_v17, 3  ;;  %v513_v58 = vmul.f32 %v365_v27, %v5855_v21  ;;  %v380_v5 = vld [vmem:[#allocation2 + $0x3b8] sm:$0xff]  ;;  %v382_v44 = vld [vmem:[#allocation2 + $0x3c8] sm:$0xff] }
 0x230   :  { %v514_v28 = vmul.f32 %v366_v31, %v5884_v14  ;;  %v638_v22 = vadd.f32 %v637_v62, %v636_v37  ;;  %v515_v63 = vmul.f32 %v367_v47, %v5934_v40  ;;  %v516_v41 = vmul.f32 %v368_v16, %v5968_v61  ;;  %v381_v31 = vld [vmem:[#allocation2 + $0x3c0] sm:$0xff]  ;;  %v383_v47 = vld [vmem:[#allocation2 + $0x3d0] sm:$0xff]  ;;  %v386_v17 = vld [vmem:[#allocation2 + $0x3e8] sm:$0xff] }
 0x231   :  { %v517_v30 = vmul.f32 %v369_v36, %v5855_v21  ;;  %v6303_v18 = vadd.f32 %v5873_v46, %v627_v57  ;;  %v1032_v23 = vsel %vm1031_vm3, %v1030_v4, %v1029_v15  ;;  %v518_v25 = vmul.f32 %v370_v59, %v5884_v14  ;;  %v384_v15 = vld [vmem:[#allocation2 + $0x3d8] sm:$0xff]  ;;  %v385_v4 = vld [vmem:[#allocation2 + $0x3e0] sm:$0xff] }
 0x232   :  { %v519_v37 = vmul.f32 %v371_v60, %v5934_v40  ;;  %v639_v27 = vrot.slane %v638_v22, 1  ;;  %v520_v16 = vmul.f32 %v372_v6, %v5968_v61  ;;  %v521_v36 = vmul.f32 %v373_v39, %v5855_v21 }
 0x233   :  { %8663 = vst [vmem:[#allocation18_spill] sm:$0xff] %v6303_v18  ;;  %v522_v62 = vmul.f32 %v374_v13, %v5884_v14  ;;  %v1033_v57 = vrot.slane %v6303_v18, 2  ;;  %v523_v26 = vmul.f32 %v375_v0, %v5934_v40  ;;  %v524_v59 = vmul.f32 %v376_v24, %v5968_v61 }
 0x234   :  { %v525_v60 = vmul.f32 %v377_v20, %v5855_v21  ;;  %v640_v32 = vadd.f32 %v639_v27, %v638_v22  ;;  %v526_v6 = vmul.f32 %v378_v8, %v5884_v14  ;;  %v527_v39 = vmul.f32 %v379_v2, %v5934_v40 }
 0x235   :  { %v528_v13 = vmul.f32 %v380_v5, %v5968_v61  ;;  %v1035_v18 = vsel %vm1034_vm4, %v1033_v57, %v1032_v23  ;;  %v529_v38 = vmul.f32 %v381_v31, %v5855_v21  ;;  %v530_v1 = vmul.f32 %v382_v44, %v5884_v14 }
 0x236   :  { %v6322_v0 = vmul.f32 %v383_v47, %v5934_v40  ;;  %v6325_v24 = vadd.f32 %v5873_v46, %v640_v32  ;;  %v6328_v22 = vmul.f32 %v384_v15, %v5968_v61  ;;  %v6331_v20 = vmul.f32 %v385_v4, %v5855_v21 }
 0x237   :  { %v6334_v8 = vmul.f32 %v386_v17, %v5884_v14  ;;  %v6337_v23 = vmul.f32 %v387_v29, %v5934_v40  ;;  %v6340_v2 = vmul.f32 %v388_v3, %v5968_v61  ;;  %v849_v5 = vsel %vm155_vm0, %v6259_v49, 0.0 }
 0x238   :  { %v850_v32 = vsel %vm155_vm0, %v6267_v52, 0.0  ;;  %v1036_v27 = vrot.slane %v6325_v24, 1  ;;  %v852_v44 = vsel %vm155_vm0, %v6277_v42, 0.0  ;;  %v854_v17 = vsel %vm155_vm0, %v6282_v12, 0.0 }
 0x239   :  { %v851_v31 = vadd.f32 %v850_v32, %v849_v5  ;;  %v862_v29 = vsel %vm155_vm0, %v6288_v45, 0.0  ;;  %v863_v3 = vsel %vm155_vm0, %v6291_v10, 0.0  ;;  %v865_v49 = vsel %vm155_vm0, %v511_v11, 0.0 }
 0x23a   :  { %v867_v47 = vsel %vm155_vm0, %v512_v43, 0.0  ;;  %v1038_v52 = vsel %vm1037_vm5, %v1036_v27, %v1035_v18  ;;  %v864_v15 = vadd.f32 %v863_v3, %v862_v29  ;;  %v875_v4 = vsel %vm155_vm0, %v513_v58, 0.0 }
 0x23b   :  { %v853_v57 = vadd.f32 %v852_v44, %v851_v31  ;;  %v1085_v42 = vsel %vm155_vm0, %v1038_v52, 0.0  ;;  %v876_v12 = vsel %vm155_vm0, %v514_v28, 0.0  ;;  %v878_v5 = vsel %vm155_vm0, %v515_v63, 0.0 }
 0x23c   :  { %v880_v45 = vsel %vm155_vm0, %v516_v41, 0.0  ;;  %1086 = vadd.xlane.f32.xlu2 %v1085_v42  ;;  %v866_v32 = vadd.f32 %v865_v49, %v864_v15  ;;  %v877_v11 = vadd.f32 %v876_v12, %v875_v4  ;;  %v888_v43 = vsel %vm155_vm0, %v517_v30, 0.0 }
 0x23d   :  { %v855_v10 = vadd.f32 %v854_v17, %v853_v57  ;;  %v889_v18 = vsel %vm155_vm0, %v518_v25, 0.0  ;;  %v891_v27 = vsel %vm155_vm0, %v519_v37, 0.0  ;;  %v893_v58 = vsel %vm155_vm0, %v520_v16, 0.0 }
 0x23e   :  { %v901_v31 = vsel %vm155_vm0, %v521_v36, 0.0  ;;  %v868_v28 = vadd.f32 %v867_v47, %v866_v32  ;;  %v879_v29 = vadd.f32 %v878_v5, %v877_v11  ;;  %v890_v63 = vadd.f32 %v889_v18, %v888_v43 }
 0x23f   :  { %v856_v44 = vrot.slane %v855_v10, 4  ;;  %v902_v41 = vsel %vm155_vm0, %v522_v62, 0.0  ;;  %v904_v17 = vsel %vm155_vm0, %v523_v26, 0.0  ;;  %v906_v3 = vsel %vm155_vm0, %v524_v59, 0.0 }
 0x240   :  { %v914_v30 = vsel %vm155_vm0, %v525_v60, 0.0  ;;  %v869_v25 = vrot.slane %v868_v28, 4  ;;  %v881_v52 = vadd.f32 %v880_v45, %v879_v29  ;;  %v892_v37 = vadd.f32 %v891_v27, %v890_v63 }
 0x241   :  { %v857_v49 = vadd.f32 %v856_v44, %v855_v10  ;;  %v903_v57 = vadd.f32 %v902_v41, %v901_v31  ;;  %v915_v16 = vsel %vm155_vm0, %v526_v6, 0.0  ;;  %v917_v36 = vsel %vm155_vm0, %v527_v39, 0.0 }
 0x242   :  { %v919_v47 = vsel %vm155_vm0, %v528_v13, 0.0  ;;  %v870_v4 = vadd.f32 %v869_v25, %v868_v28  ;;  %v882_v62 = vrot.slane %v881_v52, 4  ;;  %v894_v42 = vadd.f32 %v893_v58, %v892_v37 }
 0x243   :  { %v858_v15 = vrot.slane %v857_v49, 2  ;;  %v905_v26 = vadd.f32 %v904_v17, %v903_v57  ;;  %v916_v12 = vadd.f32 %v915_v16, %v914_v30  ;;  %v927_v59 = vsel %vm155_vm0, %v529_v38, 0.0 }
 0x244   :  { %v928_v60 = vsel %vm155_vm0, %v530_v1, 0.0  ;;  %v871_v45 = vrot.slane %v870_v4, 2  ;;  %v883_v10 = vadd.f32 %v882_v62, %v881_v52  ;;  %v895_v32 = vrot.slane %v894_v42, 4 }
 0x245   :  { %v859_v5 = vadd.f32 %v858_v15, %v857_v49  ;;  %v907_v11 = vadd.f32 %v906_v3, %v905_v26  ;;  %v918_v6 = vadd.f32 %v917_v36, %v916_v12  ;;  %v929_v43 = vadd.f32 %v928_v60, %v927_v59 }
 0x246   :  { %v930_v39 = vsel %vm155_vm0, %v6322_v0, 0.0  ;;  %v872_v18 = vadd.f32 %v871_v45, %v870_v4  ;;  %v884_v27 = vrot.slane %v883_v10, 2  ;;  %v896_v58 = vadd.f32 %v895_v32, %v894_v42 }
 0x247   :  { %v860_v13 = vrot.slane %v859_v5, 1  ;;  %v908_v31 = vrot.slane %v907_v11, 4  ;;  %v920_v44 = vadd.f32 %v919_v47, %v918_v6  ;;  %v931_v28 = vadd.f32 %v930_v39, %v929_v43 }
 0x248   :  { %v932_v1 = vsel %vm155_vm0, %v6328_v22, 0.0  ;;  %v873_v29 = vrot.slane %v872_v18, 1  ;;  %v885_v63 = vadd.f32 %v884_v27, %v883_v10  ;;  %v897_v41 = vrot.slane %v896_v58, 2 }
 0x249   :  { %v861_v38 = vadd.f32 %v860_v13, %v859_v5  ;;  %v909_v17 = vadd.f32 %v908_v31, %v907_v11  ;;  %v921_v3 = vrot.slane %v920_v44, 4  ;;  %v933_v30 = vadd.f32 %v932_v1, %v931_v28 }
 0x24a   :  { %v940_v0 = vsel %vm155_vm0, %v6331_v20, 0.0  ;;  %v874_v49 = vadd.f32 %v873_v29, %v872_v18  ;;  %v886_v25 = vrot.slane %v885_v63, 1  ;;  %v898_v52 = vadd.f32 %v897_v41, %v896_v58 }
 0x24b   :  { %v941_v37 = vsel %vm155_vm0, %v6334_v8, 0.0  ;;  %v910_v57 = vrot.slane %v909_v17, 2  ;;  %v922_v16 = vadd.f32 %v921_v3, %v920_v44  ;;  %v934_v36 = vrot.slane %v933_v30, 4 }
 0x24c   :  { %v942_v22 = vadd.f32 %v941_v37, %v940_v0  ;;  %v887_v47 = vadd.f32 %v886_v25, %v885_v63  ;;  %v899_v15 = vrot.slane %v898_v52, 1  ;;  %v943_v4 = vsel %vm155_vm0, %v6337_v23, 0.0 }
 0x24d   :  { %v945_v62 = vsel %vm155_vm0, %v6340_v2, 0.0  ;;  %v911_v42 = vadd.f32 %v910_v57, %v909_v17  ;;  %v923_v20 = vrot.slane %v922_v16, 2  ;;  %v935_v26 = vadd.f32 %v934_v36, %v933_v30 }
 0x24e   :  { %v944_v12 = vadd.f32 %v943_v4, %v942_v22  ;;  %v900_v59 = vadd.f32 %v899_v15, %v898_v52  ;;  %v6390_v60 = vadd.f32 %v5873_v46, %v874_v49  ;;  %v6393_v8 = vadd.f32 %v5873_v46, %v887_v47 }
 0x24f   :  { %v912_v5 = vrot.slane %v911_v42, 1  ;;  %v924_v45 = vadd.f32 %v923_v20, %v922_v16  ;;  %v936_v10 = vrot.slane %v935_v26, 2  ;;  %v6396_v23 = vadd.f32 %v5873_v46, %v861_v38 }
 0x250   :  { %v946_v32 = vadd.f32 %v945_v62, %v944_v12  ;;  %v6399_v2 = vadd.f32 %v5873_v46, %v900_v59  ;;  %v1067_v11 = vrot.slane %v6390_v60, 7  ;;  %v1069_v6 = vrot.slane %v6393_v8, 6 }
 0x251   :  { %v913_v43 = vadd.f32 %v912_v5, %v911_v42  ;;  %v925_v39 = vrot.slane %v924_v45, 1  ;;  %v937_v13 = vadd.f32 %v936_v10, %v935_v26 }
 0x252   :  { %v947_v18 = vrot.slane %v946_v32, 4  ;;  %v1068_v27 = vsel %vm1019_vm14, %v1067_v11, %v6396_v23  ;;  %v1071_v58 = vrot.slane %v6399_v2, 5 }
 0x253   :  { %v926_v31 = vadd.f32 %v925_v39, %v924_v45  ;;  %v938_v44 = vrot.slane %v937_v13, 1  ;;  %v6407_v1 = vadd.f32 %v5873_v46, %v913_v43  ;;  %v1070_v38 = vsel %vm1022_vm15, %v1069_v6, %v1068_v27 }
 0x254   :  { %v948_v28 = vadd.f32 %v947_v18, %v946_v32  ;;  %v1072_v17 = vsel %vm1025_vm1, %v1071_v58, %v1070_v38 }
 0x255   :  { %v939_v29 = vadd.f32 %v938_v44, %v937_v13  ;;  %v6411_v41 = vadd.f32 %v5873_v46, %v926_v31  ;;  %v1073_v3 = vrot.slane %v6407_v1, 4 }
 0x256   :  { %v949_v63 = vrot.slane %v948_v28, 2 }
 0x257   :  { %v6416_v0 = vadd.f32 %v5873_v46, %v939_v29  ;;  %v1074_v49 = vsel %vm1028_vm2, %v1073_v3, %v1072_v17  ;;  %v1075_v52 = vrot.slane %v6411_v41, 3 }
 0x258   :  { %v950_v30 = vadd.f32 %v949_v63, %v948_v28 }
 0x259   :  { %v1076_v57 = vsel %vm1031_vm3, %v1075_v52, %v1074_v49  ;;  %v1077_v16 = vrot.slane %v6416_v0, 2 }
 0x25a   :  { %v951_v25 = vrot.slane %v950_v30, 1 }
 0x25b   :  { %v1078_v22 = vsel %vm1034_vm4, %v1077_v16, %v1076_v57  ;;  %v1093_v42 = vpop.xlane.xlu1 %1092 }
 0x25c   :  { %v952_v37 = vadd.f32 %v951_v25, %v950_v30  ;;  %v1099_v26 = vmul.f32 %v1093_v42, %v5816_v34 }
 0x25e   :  { %v6423_v36 = vadd.f32 %v5873_v46, %v952_v37  ;;  %v1119_v63 = vrot.slane %v1099_v26, 1  ;;  %v1120_v49 = vrot.slane %v1099_v26, 2  ;;  %v1121_v52 = vrot.slane %v1099_v26, 3 }
 0x25f   :  { %v1122_v37 = vrot.slane %v1099_v26, 4  ;;  %v1123_v57 = vrot.slane %v1099_v26, 5 }
 0x260   :  { %v1079_v47 = vrot.slane %v6423_v36, 1  ;;  %v6484_v42 = vsub.f32 %v5994_v54, %v1120_v49 }
 0x262   :  { %v1080_v15 = vsel %vm1037_vm5, %v1079_v47, %v1078_v22  ;;  %v1124_v22 = vrot.slane %v1099_v26, 6  ;;  %v1125_v47 = vrot.slane %v1099_v26, 7 }
 0x263   :  { %v1094_v4 = vsel %vm155_vm0, %v1080_v15, 0.0  ;;  %v6477_v15 = vsub.f32 %v5988_v51, %v1099_v26  ;;  %v8666_v51 = vld [vmem:[#allocation10_spill] sm:$0xff] }
 0x264   :  { %1095 = vadd.xlane.f32.xlu2 %v1094_v4  ;;  %v6497_v26 = vsub.f32 %v8666_v51, %v1124_v22  ;;  %v8669_v51 = vld [vmem:[#allocation13_spill] sm:$0xff] }
 0x288   :  { %v1090_v62 = vpop.xlane.xlu0 %1089 }
 0x289   :  { %v1098_v20 = vmul.f32 %v1090_v62, %v5816_v34  ;;  %v6481_v62 = vsub.f32 %v5991_v53, %v1119_v63 }
 0x28b   :  { %v1112_v59 = vrot.slane %v1098_v20, 1  ;;  %v1113_v5 = vrot.slane %v1098_v20, 2  ;;  %v1114_v46 = vrot.slane %v1098_v20, 3  ;;  %v1115_v45 = vrot.slane %v1098_v20, 4 }
 0x28c   :  { %v1116_v10 = vrot.slane %v1098_v20, 5  ;;  %v1117_v32 = vrot.slane %v1098_v20, 6  ;;  %v1118_v11 = vrot.slane %v1098_v20, 7  ;;  %v6432_v6 = vsub.f32 %v6110_v50, %v1098_v20 }
 0x28d   :  { %v6435_v43 = vsub.f32 %v6113_v19, %v1112_v59  ;;  %v6438_v39 = vsub.f32 %v6116_v56, %v1113_v5  ;;  %v6441_v13 = vsub.f32 %v6119_v35, %v1114_v46  ;;  %v6444_v18 = vsub.f32 %v6127_v9, %v1115_v45  ;;  %v8664_v59 = vld [vmem:[#allocation8_spill] sm:$0xff]  ;;  %v8665_v46 = vld [vmem:[#allocation9_spill] sm:$0xff] }
 0x28e   :  { %v6450_v58 = vsub.f32 %v6144_v48, %v1116_v10  ;;  %v6453_v50 = vsub.f32 %v6160_v7, %v1117_v32  ;;  %v6456_v19 = vsub.f32 %v6182_v33, %v1118_v11  ;;  %v1205_v48 = vmul.f32 %v6432_v6, %v6432_v6  ;;  %v8667_v32 = vld [vmem:[#allocation11_spill] sm:$0xff] }
 0x28f   :  { %v1206_v56 = vmul.f32 %v6435_v43, %v6435_v43  ;;  %v1207_v35 = vmul.f32 %v6438_v39, %v6438_v39  ;;  %v1208_v9 = vmul.f32 %v6441_v13, %v6441_v13  ;;  %v1209_v31 = vmul.f32 %v6444_v18, %v6444_v18 }
 0x290   :  { %v1210_v7 = vmul.f32 %v6450_v58, %v6450_v58  ;;  %v1211_v33 = vmul.f32 %v6453_v50, %v6453_v50  ;;  %v1212_v44 = vmul.f32 %v6456_v19, %v6456_v19  ;;  %v6487_v20 = vsub.f32 %v5997_v55, %v1121_v52 }
 0x291   :  { %v1275_v28 = vrot.slane %v1206_v56, 7  ;;  %v1277_v38 = vrot.slane %v1207_v35, 6  ;;  %v1279_v29 = vrot.slane %v1208_v9, 5  ;;  %v1281_v17 = vrot.slane %v1209_v31, 4 }
 0x292   :  { %v1283_v3 = vrot.slane %v1210_v7, 3  ;;  %v1285_v30 = vrot.slane %v1211_v33, 2  ;;  %v6491_v5 = vsub.f32 %v8664_v59, %v1122_v37  ;;  %v6494_v45 = vsub.f32 %v8665_v46, %v1123_v57  ;;  %v8668_v59 = vld [vmem:[#allocation12_spill] sm:$0xff] }
 0x293   :  { %v1276_v25 = vsel %vm1019_vm14, %v1275_v28, %v1205_v48  ;;  %v1287_v10 = vrot.slane %v1212_v44, 1  ;;  %v6501_v54 = vsub.f32 %v8667_v32, %v1125_v47  ;;  %v1214_v55 = vmul.f32 %v6481_v62, %v6481_v62  ;;  %v8670_v32 = vld [vmem:[#allocation14_spill] sm:$0xff] }
 0x294   :  { %v1278_v16 = vsel %vm1022_vm15, %v1277_v38, %v1276_v25  ;;  %v1215_v56 = vmul.f32 %v6484_v42, %v6484_v42  ;;  %v1216_v35 = vmul.f32 %v6487_v20, %v6487_v20  ;;  %v1217_v9 = vmul.f32 %v6491_v5, %v6491_v5 }
 0x295   :  { %v1280_v4 = vsel %vm1025_vm1, %v1279_v29, %v1278_v16  ;;  %v1213_v48 = vmul.f32 %v6477_v15, %v6477_v15  ;;  %v1218_v7 = vmul.f32 %v6494_v45, %v6494_v45  ;;  %v1219_v33 = vmul.f32 %v6497_v26, %v6497_v26 }
 0x296   :  { %v1220_v28 = vmul.f32 %v6501_v54, %v6501_v54  ;;  %v1289_v38 = vrot.slane %v1214_v55, 7  ;;  %v1291_v29 = vrot.slane %v1215_v56, 6  ;;  %v1293_v63 = vrot.slane %v1216_v35, 5  ;;  %v8672_v35 = vld [vmem:[#allocation16_spill] sm:$0xff] }
 0x298   :  { %v1290_v49 = vsel %vm1019_vm14, %v1289_v38, %v1213_v48  ;;  %v1301_v48 = vrot.slane %v1220_v28, 1 }
 0x299   :  { %v1292_v57 = vsel %vm1022_vm15, %v1291_v29, %v1290_v49 }
 0x2af   :  { %v1087_v12 = vpop.xlane.xlu2 %1086 }
 0x2b0   :  { %v6447_v27 = vmul.f32 %v1087_v12, %v5816_v34  ;;  %v1282_v12 = vsel %vm1028_vm2, %v1281_v17, %v1280_v4  ;;  %v1295_v17 = vrot.slane %v1217_v9, 4  ;;  %v1294_v4 = vsel %vm1025_vm1, %v1293_v63, %v1292_v57 }
 0x2b1   :  { %v1284_v53 = vsel %vm1031_vm3, %v1283_v3, %v1282_v12  ;;  %v1297_v3 = vrot.slane %v1218_v7, 3  ;;  %v8673_v7 = vld [vmem:[#allocation17_spill] sm:$0xff] }
 0x2b2   :  { %v1286_v11 = vsel %vm1034_vm4, %v1285_v30, %v1284_v53  ;;  %v1299_v30 = vrot.slane %v1219_v33, 2  ;;  %v1105_v25 = vrot.slane %v6447_v27, 1  ;;  %v1106_v52 = vrot.slane %v6447_v27, 2  ;;  %v8674_v33 = vld [vmem:[#allocation18_spill] sm:$0xff] }
 0x2b3   :  { %v1288_v31 = vsel %vm1037_vm5, %v1287_v10, %v1286_v11  ;;  %v1107_v37 = vrot.slane %v6447_v27, 3  ;;  %v1108_v16 = vrot.slane %v6447_v27, 4  ;;  %v1109_v22 = vrot.slane %v6447_v27, 5  ;;  %v8671_v11 = vld [vmem:[#allocation15_spill] sm:$0xff] }
 0x2b4   :  { %v1324_v44 = vsel %vm155_vm0, %v1288_v31, 0.0  ;;  %v1110_v47 = vrot.slane %v6447_v27, 6  ;;  %v1111_v12 = vrot.slane %v6447_v27, 7  ;;  %v6534_v46 = vsub.f32 %v8668_v59, %v6447_v27 }
 0x2b5   :  { %1325 = vadd.xlane.f32.xlu1 %v1324_v44  ;;  %v6537_v53 = vsub.f32 %v8669_v51, %v1105_v25  ;;  %v1296_v10 = vsel %vm1028_vm2, %v1295_v17, %v1294_v4  ;;  %v6541_v55 = vsub.f32 %v8670_v32, %v1106_v52  ;;  %v6544_v56 = vsub.f32 %v8671_v11, %v1107_v37 }
 0x2b6   :  { %v6547_v9 = vsub.f32 %v8672_v35, %v1108_v16  ;;  %v1298_v31 = vsel %vm1031_vm3, %v1297_v3, %v1296_v10  ;;  %v6551_v27 = vsub.f32 %v8673_v7, %v1109_v22  ;;  %v6554_v44 = vsub.f32 %v8674_v33, %v1110_v47 }
 0x2b7   :  { %v1300_v38 = vsel %vm1034_vm4, %v1299_v30, %v1298_v31  ;;  %v6558_v29 = vsub.f32 %v6325_v24, %v1111_v12  ;;  %v1198_v63 = vmul.f32 %v6537_v53, %v6537_v53  ;;  %v1199_v17 = vmul.f32 %v6541_v55, %v6541_v55 }
 0x2b8   :  { %v1302_v3 = vsel %vm1037_vm5, %v1301_v48, %v1300_v38  ;;  %v1200_v28 = vmul.f32 %v6544_v56, %v6544_v56  ;;  %v1201_v49 = vmul.f32 %v6547_v9, %v6547_v9  ;;  %v1197_v24 = vmul.f32 %v6534_v46, %v6534_v46 }
 0x2b9   :  { %v1327_v25 = vsel %vm155_vm0, %v1302_v3, 0.0  ;;  %v1202_v30 = vmul.f32 %v6551_v27, %v6551_v27  ;;  %v1261_v52 = vrot.slane %v1198_v63, 7  ;;  %v1203_v37 = vmul.f32 %v6554_v44, %v6554_v44 }
 0x2ba   :  { %1328 = vadd.xlane.f32.xlu2 %v1327_v25  ;;  %v1263_v57 = vrot.slane %v1199_v17, 6  ;;  %v1204_v16 = vmul.f32 %v6558_v29, %v6558_v29  ;;  %v1265_v47 = vrot.slane %v1200_v28, 5  ;;  %v1267_v12 = vrot.slane %v1201_v49, 4 }
 0x2bb   :  { %v1262_v22 = vsel %vm1019_vm14, %v1261_v52, %v1197_v24  ;;  %v1269_v51 = vrot.slane %v1202_v30, 3  ;;  %v1271_v32 = vrot.slane %v1203_v37, 2 }
 0x2bc   :  { %v1264_v4 = vsel %vm1022_vm15, %v1263_v57, %v1262_v22  ;;  %v1273_v35 = vrot.slane %v1204_v16, 1 }
 0x2bd   :  { %v1266_v59 = vsel %vm1025_vm1, %v1265_v47, %v1264_v4 }
 0x2be   :  { %v1268_v10 = vsel %vm1028_vm2, %v1267_v12, %v1266_v59 }
 0x2bf   :  { %v1270_v11 = vsel %vm1031_vm3, %v1269_v51, %v1268_v10 }
 0x2c0   :  { %v1272_v48 = vsel %vm1034_vm4, %v1271_v32, %v1270_v11 }
 0x2c1   :  { %v1274_v33 = vsel %vm1037_vm5, %v1273_v35, %v1272_v48 }
 0x2c2   :  { %v1321_v38 = vsel %vm155_vm0, %v1274_v33, 0.0 }
 0x2c3   :  { %1322 = vadd.xlane.f32.xlu0 %v1321_v38 }
 0x2d7   :  { %v1096_v31 = vpop.xlane.xlu2 %1095 }
 0x2d8   :  { %v1100_v7 = vmul.f32 %v1096_v31, %v5816_v34 }
 0x2da   :  { %v1126_v63 = vrot.slane %v1100_v7, 1  ;;  %v1127_v17 = vrot.slane %v1100_v7, 2  ;;  %v1128_v3 = vrot.slane %v1100_v7, 3  ;;  %v1129_v28 = vrot.slane %v1100_v7, 4 }
 0x2db   :  { %v1130_v49 = vrot.slane %v1100_v7, 5  ;;  %v1131_v25 = vrot.slane %v1100_v7, 6  ;;  %v1132_v24 = vrot.slane %v1100_v7, 7  ;;  %v6588_v30 = vsub.f32 %v6396_v23, %v1100_v7 }
 0x2dc   :  { %v6591_v52 = vsub.f32 %v6390_v60, %v1126_v63  ;;  %v6594_v37 = vsub.f32 %v6393_v8, %v1127_v17  ;;  %v6597_v57 = vsub.f32 %v6399_v2, %v1128_v3  ;;  %v6600_v16 = vsub.f32 %v6407_v1, %v1129_v28 }
 0x2dd   :  { %v6603_v22 = vsub.f32 %v6411_v41, %v1130_v49  ;;  %v6606_v47 = vsub.f32 %v6416_v0, %v1131_v25  ;;  %v6609_v23 = vsub.f32 %v6423_v36, %v1132_v24  ;;  %v1221_v41 = vmul.f32 %v6588_v30, %v6588_v30 }
 0x2de   :  { %v1222_v60 = vmul.f32 %v6591_v52, %v6591_v52  ;;  %v1223_v8 = vmul.f32 %v6594_v37, %v6594_v37  ;;  %v1224_v2 = vmul.f32 %v6597_v57, %v6597_v57  ;;  %v1225_v1 = vmul.f32 %v6600_v16, %v6600_v16 }
 0x2df   :  { %v1226_v0 = vmul.f32 %v6603_v22, %v6603_v22  ;;  %v1227_v12 = vmul.f32 %v6606_v47, %v6606_v47  ;;  %v1228_v59 = vmul.f32 %v6609_v23, %v6609_v23 }
 0x2e0   :  { %v1303_v36 = vrot.slane %v1222_v60, 7  ;;  %v1305_v4 = vrot.slane %v1223_v8, 6  ;;  %v1307_v10 = vrot.slane %v1224_v2, 5  ;;  %v1309_v11 = vrot.slane %v1225_v1, 4 }
 0x2e1   :  { %v1311_v31 = vrot.slane %v1226_v0, 3  ;;  %v1313_v7 = vrot.slane %v1227_v12, 2  ;;  %v1315_v38 = vrot.slane %v1228_v59, 1 }
 0x2e2   :  { %v1304_v51 = vsel %vm1019_vm14, %v1303_v36, %v1221_v41 }
 0x2e3   :  { %v1306_v32 = vsel %vm1022_vm15, %v1305_v4, %v1304_v51 }
 0x2e4   :  { %v1308_v35 = vsel %vm1025_vm1, %v1307_v10, %v1306_v32 }
 0x2e5   :  { %v1310_v48 = vsel %vm1028_vm2, %v1309_v11, %v1308_v35 }
 0x2e6   :  { %v1312_v33 = vsel %vm1031_vm3, %v1311_v31, %v1310_v48 }
 0x2e7   :  { %v1314_v63 = vsel %vm1034_vm4, %v1313_v7, %v1312_v33  ;;  %v6644_v33 = vld [vmem:[%s8617_s1] sm:$0xff] }
 0x2e8   :  { %v1316_v17 = vsel %vm1037_vm5, %v1315_v38, %v1314_v63  ;;  %v6647_v38 = vperm.slane %v6644_v33, 4 }
 0x2e9   :  { %v1330_v3 = vsel %vm155_vm0, %v1316_v17, 0.0 }
 0x2ea   :  { %1331 = vadd.xlane.f32.xlu0 %v1330_v3 }
 0x328   :  { %v1326_v28 = vpop.xlane.xlu1 %1325 }
 0x329   :  { %v1334_v49 = vmul.f32 %v1326_v28, %v5816_v34  ;;  %v5441_v28 = vld [vmem:[%s8620_s4 + $0x8] sm:$0xff] }
 0x32a   :  { %1722 = vmatpush.bf16.msra.mxu2 %v5441_v28 }
 0x32b   :  { %v1338_v25 = vadd.f32 1e-06, %v1334_v49 }
 0x32d   :  { %5555 = vrsqrt.f32 %v1338_v25  ;;  %v1329_v8 = vpop.xlane.xlu2 %1328  ;;  %vm1357_vm7 = vweird.f32 %v1338_v25 }
 0x32e   :  { %v1335_v2 = vmul.f32 %v1329_v8, %v5816_v34 }
 0x330   :  { %v1339_v41 = vadd.f32 1e-06, %v1335_v2 }
 0x332   :  { %5557 = vrsqrt.f32 %v1339_v41  ;;  %vm1367_vm10 = vweird.f32 %v1339_v41 }
 0x333   :  { %v5556_v24 = vpop.eup %5555 }
 0x334   :  { %v1352_v60 = vmul.f32 %v5556_v24, %v1338_v25  ;;  %vm1358_vm6 = vweird.f32 %v5556_v24 }
 0x335   :  { %vm1359_vm8 = vmor %vm1357_vm7, %vm1358_vm6 }
 0x336   :  { %v1353_v1 = vmul.f32 %v5556_v24, %v1352_v60  ;;  %v1323_v4 = vpop.xlane.xlu0 %1322 }
 0x337   :  { %v1333_v12 = vmul.f32 %v1323_v4, %v5816_v34 }
 0x338   :  { %v1354_v0 = vmul.f32 0.5, %v1353_v1  ;;  %v5558_v32 = vpop.eup %5557 }
 0x339   :  { %v6638_v51 = vadd.f32 1e-06, %v1333_v12  ;;  %v1362_v35 = vmul.f32 %v5558_v32, %v1339_v41  ;;  %vm1368_vm9 = vweird.f32 %v5558_v32 }
 0x33a   :  { %v1355_v36 = vsub.f32 1.5, %v1354_v0  ;;  %v6657_v0 = vperm.slane %v6644_v33, 5  ;;  %vm1369_vm11 = vmor %vm1367_vm10, %vm1368_vm9 }
 0x33b   :  { %5559 = vrsqrt.f32 %v6638_v51  ;;  %v1363_v7 = vmul.f32 %v5558_v32, %v1362_v35  ;;  %vm1347_vm12 = vweird.f32 %v6638_v51 }
 0x33c   :  { %v1356_v59 = vmul.f32 %v5556_v24, %v1355_v36 }
 0x33d   :  { %v1364_v3 = vmul.f32 0.5, %v1363_v7 }
 0x33e   :  { %v1360_v10 = vsel %vm1359_vm8, %v5556_v24, %v1356_v59 }
 0x33f   :  { %v1392_v11 = vrot.slane %v1360_v10, 1  ;;  %v1393_v31 = vrot.slane %v1360_v10, 2  ;;  %v1394_v48 = vrot.slane %v1360_v10, 3  ;;  %v1453_v63 = vmul.f32 %v1360_v10, %v6432_v6 }
 0x340   :  { %v1395_v49 = vrot.slane %v1360_v10, 4  ;;  %v1396_v25 = vrot.slane %v1360_v10, 5  ;;  %v1397_v24 = vrot.slane %v1360_v10, 6  ;;  %v1398_v60 = vrot.slane %v1360_v10, 7 }
 0x341   :  { %v1454_v17 = vmul.f32 %v1392_v11, %v6435_v43  ;;  %v1455_v8 = vmul.f32 %v1393_v31, %v6438_v39  ;;  %v1456_v2 = vmul.f32 %v1394_v48, %v6441_v13  ;;  %v5560_v1 = vpop.eup %5559  ;;  %v1365_v6 = vsub.f32 1.5, %v1364_v3  ;;  %v5440_v43 = vld [vmem:[%s8620_s4] sm:$0xff] }
 0x342   :  { %v1457_v36 = vmul.f32 %v1395_v49, %v6444_v18  ;;  %v1342_v4 = vmul.f32 %v5560_v1, %v6638_v51  ;;  %v1458_v39 = vmul.f32 %v1396_v25, %v6450_v58  ;;  %v1459_v13 = vmul.f32 %v1397_v24, %v6453_v50  ;;  %1723 = vmatpush.bf16.msra.mxu2 %v5440_v43 }
 0x343   :  { %v1366_v12 = vmul.f32 %v5558_v32, %v1365_v6  ;;  %v1460_v59 = vmul.f32 %v1398_v60, %v6456_v19  ;;  %v1486_v10 = vmul.f32 %v6647_v38, %v1453_v63  ;;  %v1487_v11 = vmul.f32 %v6647_v38, %v1454_v17 }
 0x344   :  { %v1343_v35 = vmul.f32 %v5560_v1, %v1342_v4  ;;  %v1488_v31 = vmul.f32 %v6647_v38, %v1455_v8  ;;  %v1489_v18 = vmul.f32 %v6647_v38, %v1456_v2  ;;  %v1490_v48 = vmul.f32 %v6647_v38, %v1457_v36 }
 0x345   :  { %vm1348_vm13 = vweird.f32 %v5560_v1  ;;  %v6673_v58 = vsel %vm1369_vm11, %v5558_v32, %v1366_v12  ;;  %v1491_v7 = vmul.f32 %v6647_v38, %v1458_v39  ;;  %v1492_v63 = vmul.f32 %v6647_v38, %v1459_v13 }
 0x346   :  { %v1344_v19 = vmul.f32 0.5, %v1343_v35  ;;  %v1399_v41 = vrot.slane %v6673_v58, 1  ;;  %v1493_v3 = vmul.f32 %v6647_v38, %v1460_v59  ;;  %v6681_v28 = vadd.f32 %v6657_v0, %v1486_v10  ;;  %vm1349_vm6 = vmor %vm1347_vm12, %vm1348_vm13 }
 0x347   :  { %v6684_v49 = vadd.f32 %v6657_v0, %v1487_v11  ;;  %v6687_v25 = vadd.f32 %v6657_v0, %v1488_v31  ;;  %v6690_v24 = vadd.f32 %v6657_v0, %v1489_v18  ;;  %v6693_v60 = vadd.f32 %v6657_v0, %v1490_v48 }
 0x348   :  { %v1345_v32 = vsub.f32 1.5, %v1344_v19  ;;  %v1400_v8 = vrot.slane %v6673_v58, 2  ;;  %v1401_v2 = vrot.slane %v6673_v58, 3  ;;  %v6699_v6 = vmul.f32 %v6673_v58, %v6477_v15 }
 0x349   :  { %v6704_v4 = vmul.f32 %v1399_v41, %v6481_v62  ;;  %v6707_v39 = vadd.f32 %v6657_v0, %v1491_v7  ;;  %v6710_v13 = vadd.f32 %v6657_v0, %v1492_v63  ;;  %v6717_v15 = vadd.f32 %v6657_v0, %v1493_v3 }
 0x34a   :  { %v1346_v36 = vmul.f32 %v5560_v1, %v1345_v32  ;;  %v1551_v12 = vpack.c.bf16 %v6681_v28, %v6681_v28  ;;  %v1552_v62 = vpack.c.bf16 %v6684_v49, %v6684_v49  ;;  %v1553_v10 = vpack.c.bf16 %v6687_v25, %v6687_v25 }
 0x34b   :  { %v1554_v11 = vpack.c.bf16 %v6690_v24, %v6690_v24  ;;  %v1555_v51 = vpack.c.bf16 %v6693_v60, %v6693_v60 }
 0x34c   :  { %v1350_v59 = vsel %vm1349_vm6, %v5560_v1, %v1346_v36 }
 0x34d   :  { %v1385_v35 = vrot.slane %v1350_v59, 1  ;;  %v1386_v31 = vrot.slane %v1350_v59, 2  ;;  %v1387_v18 = vrot.slane %v1350_v59, 3  ;;  %v1445_v48 = vmul.f32 %v1350_v59, %v6534_v46 }
 0x34e   :  { %v1389_v19 = vrot.slane %v1350_v59, 5  ;;  %v1390_v41 = vrot.slane %v1350_v59, 6  ;;  %v1391_v7 = vrot.slane %v1350_v59, 7 }
 0x34f   :  { %v1446_v1 = vmul.f32 %v1385_v35, %v6537_v53  ;;  %v1447_v63 = vmul.f32 %v1386_v31, %v6541_v55  ;;  %v1478_v3 = vmul.f32 %v6647_v38, %v1445_v48 }
 0x350   :  { %v1450_v49 = vmul.f32 %v1389_v19, %v6551_v27  ;;  %v1451_v32 = vmul.f32 %v1390_v41, %v6554_v44  ;;  %v1452_v46 = vmul.f32 %v1391_v7, %v6558_v29 }
 0x351   :  { %v1479_v36 = vmul.f32 %v6647_v38, %v1446_v1  ;;  %v1511_v55 = vadd.f32 %v6657_v0, %v1478_v3 }
 0x352   :  { %v1483_v27 = vmul.f32 %v6647_v38, %v1450_v49  ;;  %v1484_v44 = vmul.f32 %v6647_v38, %v1451_v32  ;;  %v1485_v29 = vmul.f32 %v6647_v38, %v1452_v46 }
 0x353   :  { %v1512_v35 = vadd.f32 %v6657_v0, %v1479_v36  ;;  %v1543_v1 = vpack.c.bf16 %v1511_v55, %v1511_v55  ;;  %v1556_v36 = vpack.c.bf16 %v6707_v39, %v6707_v39  ;;  %v1558_v55 = vpack.c.bf16 %v6717_v15, %v6717_v15 }
 0x354   :  { %v1516_v19 = vadd.f32 %v6657_v0, %v1483_v27  ;;  %v1517_v41 = vadd.f32 %v6657_v0, %v1484_v44  ;;  %v1518_v7 = vadd.f32 %v6657_v0, %v1485_v29  ;;  %v1557_v27 = vpack.c.bf16 %v6710_v13, %v6710_v13 }
 0x355   :  { %v1616_v44 = vunpack.c.l.b16 %v1551_v12  ;;  %v1617_v29 = vunpack.c.l.b16 %v1552_v62  ;;  %v1619_v15 = vunpack.c.l.b16 %v1554_v11  ;;  %v1620_v62 = vunpack.c.l.b16 %v1555_v51 }
 0x356   :  { %v1548_v32 = vpack.c.bf16 %v1516_v19, %v1516_v19  ;;  %v1549_v46 = vpack.c.bf16 %v1517_v41, %v1517_v41  ;;  %v1618_v19 = vunpack.c.l.b16 %v1553_v10 }
 0x357   :  { %v1654_v24 = vrot.slane %v1617_v29, 7  ;;  %v1660_v29 = vrot.slane %v1620_v62, 4 }
 0x358   :  { %v1613_v39 = vunpack.c.l.b16 %v1548_v32  ;;  %v1656_v11 = vrot.slane %v1618_v19, 6  ;;  %v1402_v19 = vrot.slane %v6673_v58, 4 }
 0x35a   :  { %v1648_v51 = vrot.slane %v1613_v39, 3 }
 0x35d   :  { %v1332_v50 = vpop.xlane.xlu0 %1331 }
 0x35e   :  { %v1336_v17 = vmul.f32 %v1332_v50, %v5816_v34  ;;  %v1388_v50 = vrot.slane %v1350_v59, 4  ;;  %v1480_v59 = vmul.f32 %v6647_v38, %v1447_v63  ;;  %v1544_v63 = vpack.c.bf16 %v1512_v35, %v1512_v35 }
 0x360   :  { %v6701_v43 = vadd.f32 1e-06, %v1336_v17  ;;  %v1448_v17 = vmul.f32 %v1387_v18, %v6544_v56  ;;  %v1449_v28 = vmul.f32 %v1388_v50, %v6547_v9  ;;  %v1513_v31 = vadd.f32 %v6657_v0, %v1480_v59 }
 0x362   :  { %5561 = vrsqrt.f32 %v6701_v43  ;;  %v1481_v53 = vmul.f32 %v6647_v38, %v1448_v17  ;;  %vm1377_vm7 = vweird.f32 %v6701_v43  ;;  %v1482_v9 = vmul.f32 %v6647_v38, %v1449_v28 }
 0x363   :  { %v1545_v3 = vpack.c.bf16 %v1513_v31, %v1513_v31  ;;  %v1608_v31 = vunpack.c.l.b16 %v1543_v1  ;;  %v1621_v1 = vunpack.c.l.b16 %v1556_v36 }
 0x364   :  { %v1514_v48 = vadd.f32 %v6657_v0, %v1481_v53  ;;  %v1515_v50 = vadd.f32 %v6657_v0, %v1482_v9  ;;  %v1550_v53 = vpack.c.bf16 %v1518_v7, %v1518_v7 }
 0x365   :  { %v1610_v9 = vunpack.c.l.b16 %v1545_v3 }
 0x366   :  { %v1546_v28 = vpack.c.bf16 %v1514_v48, %v1514_v48  ;;  %v1547_v49 = vpack.c.bf16 %v1515_v50, %v1515_v50  ;;  %v1614_v50 = vunpack.c.l.b16 %v1549_v46  ;;  %v1615_v13 = vunpack.c.l.b16 %v1550_v53 }
 0x367   :  { %v1642_v12 = vrot.slane %v1610_v9, 6  ;;  %v1655_v53 = vsel %vm1019_vm14, %v1654_v24, %v1616_v44  ;;  %v1403_v44 = vrot.slane %v6673_v58, 5 }
 0x368   :  { %v5562_v25 = vpop.eup %5561  ;;  %v1612_v48 = vunpack.c.l.b16 %v1547_v49  ;;  %v1650_v46 = vrot.slane %v1614_v50, 2 }
 0x369   :  { %v1372_v56 = vmul.f32 %v5562_v25, %v6701_v43  ;;  %vm1378_vm8 = vweird.f32 %v5562_v25  ;;  %v1623_v43 = vunpack.c.l.b16 %v1558_v55  ;;  %v1657_v55 = vsel %vm1022_vm15, %v1656_v11, %v1655_v53 }
 0x36a   :  { %vm1379_vm9 = vmor %vm1377_vm7, %vm1378_vm8  ;;  %v1466_v24 = vmul.f32 %v1403_v44, %v6494_v45 }
 0x36b   :  { %v1373_v18 = vmul.f32 %v5562_v25, %v1372_v56  ;;  %v1609_v56 = vunpack.c.l.b16 %v1544_v63  ;;  %v1622_v63 = vunpack.c.l.b16 %v1557_v27  ;;  %v1666_v50 = vrot.slane %v1623_v43, 1 }
 0x36d   :  { %v1374_v17 = vmul.f32 0.5, %v1373_v18  ;;  %v1611_v18 = vunpack.c.l.b16 %v1546_v28  ;;  %v1640_v41 = vrot.slane %v1609_v56, 7  ;;  %v1658_v56 = vrot.slane %v1619_v15, 5 }
 0x36e   :  { %v1405_v15 = vrot.slane %v6673_v58, 7 }
 0x36f   :  { %v1375_v59 = vsub.f32 1.5, %v1374_v17  ;;  %v1641_v10 = vsel %vm1019_vm14, %v1640_v41, %v1608_v31  ;;  %v1644_v3 = vrot.slane %v1611_v18, 5  ;;  %v1659_v31 = vsel %vm1025_vm1, %v1658_v56, %v1657_v55 }
 0x370   :  { %v1643_v49 = vsel %vm1022_vm15, %v1642_v12, %v1641_v10  ;;  %v1662_v18 = vrot.slane %v1621_v1, 3  ;;  %v1661_v39 = vsel %vm1028_vm2, %v1660_v29, %v1659_v31 }
 0x371   :  { %v1376_v35 = vmul.f32 %v5562_v25, %v1375_v59  ;;  %v1645_v60 = vsel %vm1025_vm1, %v1644_v3, %v1643_v49  ;;  %v1652_v59 = vrot.slane %v1615_v13, 1  ;;  %v1404_v13 = vrot.slane %v6673_v58, 6 }
 0x372   :  { %v1663_v41 = vsel %vm1031_vm3, %v1662_v18, %v1661_v39  ;;  %v1464_v3 = vmul.f32 %v1401_v2, %v6487_v20  ;;  %v1465_v49 = vmul.f32 %v1402_v19, %v6491_v5  ;;  %v1494_v2 = vmul.f32 %v6647_v38, %v6699_v6 }
 0x373   :  { %v6764_v7 = vsel %vm1379_vm9, %v5562_v25, %v1376_v35  ;;  %v1646_v25 = vrot.slane %v1612_v48, 4  ;;  %v1664_v48 = vrot.slane %v1622_v63, 2  ;;  %v1463_v63 = vmul.f32 %v1400_v8, %v6484_v42 }
 0x374   :  { %v1406_v17 = vrot.slane %v6764_v7, 1  ;;  %v1407_v28 = vrot.slane %v6764_v7, 2  ;;  %v1408_v32 = vrot.slane %v6764_v7, 3  ;;  %v1409_v62 = vrot.slane %v6764_v7, 4 }
 0x375   :  { %v1647_v36 = vsel %vm1028_vm2, %v1646_v25, %v1645_v60  ;;  %v1665_v12 = vsel %vm1034_vm4, %v1664_v48, %v1663_v41  ;;  %v1410_v1 = vrot.slane %v6764_v7, 5  ;;  %v1412_v10 = vrot.slane %v6764_v7, 7 }
 0x376   :  { %v1470_v9 = vmul.f32 %v1406_v17, %v6591_v52  ;;  %v1649_v27 = vsel %vm1031_vm3, %v1648_v51, %v1647_v36  ;;  %v1667_v43 = vsel %vm1037_vm5, %v1666_v50, %v1665_v12  ;;  %v1411_v17 = vrot.slane %v6764_v7, 6 }
 0x377   :  { %v1651_v35 = vsel %vm1034_vm4, %v1650_v46, %v1649_v27  ;;  %v1471_v11 = vmul.f32 %v1407_v28, %v6594_v37  ;;  %v1467_v60 = vmul.f32 %v1404_v13, %v6497_v26  ;;  %v1468_v42 = vmul.f32 %v1405_v15, %v6501_v54 }
 0x378   :  { %v1653_v52 = vsel %vm1037_vm5, %v1652_v59, %v1651_v35  ;;  %v1472_v8 = vmul.f32 %v1408_v32, %v6597_v57  ;;  %v1495_v51 = vmul.f32 %v6647_v38, %v6704_v4  ;;  %v1469_v58 = vmul.f32 %v6764_v7, %v6588_v30 }
 0x379   :  { %v1696_v25 = vpack.c.b16 %v1667_v43, %v1653_v52  ;;  %v1473_v20 = vmul.f32 %v1409_v62, %v6600_v16  ;;  %v1474_v5 = vmul.f32 %v1410_v1, %v6603_v22  ;;  %v1496_v45 = vmul.f32 %v6647_v38, %v1463_v63 }
 0x37a   :  { %v1475_v26 = vmul.f32 %v1411_v17, %v6606_v47  ;;  %v1476_v54 = vmul.f32 %v1412_v10, %v6609_v23  ;;  %v1497_v37 = vmul.f32 %v6647_v38, %v1464_v3  ;;  %v1503_v57 = vmul.f32 %v6647_v38, %v1470_v9 }
 0x37b   :  { %5055 = vmatmul.msk.bf16.vlgmr.msra.gmra.mxu2 %vm155_vm0, %v1696_v25  ;;  %v1498_v30 = vmul.f32 %v6647_v38, %v1465_v49  ;;  %v1499_v4 = vmul.f32 %v6647_v38, %v1466_v24  ;;  %v1504_v16 = vmul.f32 %v6647_v38, %v1471_v11  ;;  %v1500_v22 = vmul.f32 %v6647_v38, %v1467_v60 }
 0x37c   :  { %v1501_v7 = vmul.f32 %v6647_v38, %v1468_v42  ;;  %v1505_v47 = vmul.f32 %v6647_v38, %v1472_v8  ;;  %v1528_v23 = vadd.f32 %v6657_v0, %v1495_v51  ;;  %v1502_v28 = vmul.f32 %v6647_v38, %v1469_v58 }
 0x37d   :  { %v1506_v32 = vmul.f32 %v6647_v38, %v1473_v20  ;;  %v1507_v6 = vmul.f32 %v6647_v38, %v1474_v5  ;;  %v1529_v46 = vadd.f32 %v6657_v0, %v1496_v45  ;;  %v1508_v36 = vmul.f32 %v6647_v38, %v1475_v26 }
 0x37e   :  { %v1509_v59 = vmul.f32 %v6647_v38, %v1476_v54  ;;  %v1530_v53 = vadd.f32 %v6657_v0, %v1497_v37  ;;  %v1536_v56 = vadd.f32 %v6657_v0, %v1503_v57  ;;  %v1527_v9 = vadd.f32 %v6657_v0, %v1494_v2 }
 0x37f   :  { %v1531_v27 = vadd.f32 %v6657_v0, %v1498_v30  ;;  %v1532_v55 = vadd.f32 %v6657_v0, %v1499_v4  ;;  %v1537_v29 = vadd.f32 %v6657_v0, %v1504_v16  ;;  %v1533_v35 = vadd.f32 %v6657_v0, %v1500_v22 }
 0x380   :  { %v1534_v31 = vadd.f32 %v6657_v0, %v1501_v7  ;;  %v1538_v18 = vadd.f32 %v6657_v0, %v1505_v47  ;;  %v1560_v48 = vpack.c.bf16 %v1528_v23, %v1528_v23  ;;  %v1535_v38 = vadd.f32 %v6657_v0, %v1502_v28 }
 0x381   :  { %v1539_v39 = vadd.f32 %v6657_v0, %v1506_v32  ;;  %v1540_v50 = vadd.f32 %v6657_v0, %v1507_v6  ;;  %v1561_v19 = vpack.c.bf16 %v1529_v46, %v1529_v46  ;;  %v1541_v44 = vadd.f32 %v6657_v0, %v1508_v36 }
 0x382   :  { %v1542_v52 = vadd.f32 %v6657_v0, %v1509_v59  ;;  %v1562_v41 = vpack.c.bf16 %v1530_v53, %v1530_v53  ;;  %v1568_v13 = vpack.c.bf16 %v1536_v56, %v1536_v56  ;;  %v1559_v15 = vpack.c.bf16 %v1527_v9, %v1527_v9 }
 0x383   :  { %v1563_v12 = vpack.c.bf16 %v1531_v27, %v1531_v27  ;;  %v1564_v62 = vpack.c.bf16 %v1532_v55, %v1532_v55  ;;  %v1569_v1 = vpack.c.bf16 %v1537_v29, %v1537_v29  ;;  %v1565_v63 = vpack.c.bf16 %v1533_v35, %v1533_v35 }
 0x384   :  { %v1566_v43 = vpack.c.bf16 %v1534_v31, %v1534_v31  ;;  %v1570_v17 = vpack.c.bf16 %v1538_v18, %v1538_v18  ;;  %v1625_v10 = vunpack.c.l.b16 %v1560_v48  ;;  %v1567_v3 = vpack.c.bf16 %v1535_v38, %v1535_v38 }
 0x385   :  { %v1571_v25 = vpack.c.bf16 %v1539_v39, %v1539_v39  ;;  %v1572_v49 = vpack.c.bf16 %v1540_v50, %v1540_v50  ;;  %v1626_v24 = vunpack.c.l.b16 %v1561_v19  ;;  %v1573_v11 = vpack.c.bf16 %v1541_v44, %v1541_v44 }
 0x386   :  { %v1574_v60 = vpack.c.bf16 %v1542_v52, %v1542_v52  ;;  %v1627_v42 = vunpack.c.l.b16 %v1562_v41  ;;  %v1633_v8 = vunpack.c.l.b16 %v1568_v13  ;;  %v1624_v51 = vunpack.c.l.b16 %v1559_v15 }
 0x387   :  { %v1628_v0 = vunpack.c.l.b16 %v1563_v12  ;;  %v1629_v58 = vunpack.c.l.b16 %v1564_v62  ;;  %v1634_v20 = vunpack.c.l.b16 %v1569_v1  ;;  %v1630_v5 = vunpack.c.l.b16 %v1565_v63 }
 0x388   :  { %v1635_v45 = vunpack.c.l.b16 %v1570_v17  ;;  %v1668_v26 = vrot.slane %v1625_v10, 7  ;;  %v1670_v54 = vrot.slane %v1626_v24, 6  ;;  %v1631_v37 = vunpack.c.l.b16 %v1566_v43 }
 0x389   :  { %v1632_v57 = vunpack.c.l.b16 %v1567_v3  ;;  %v1636_v2 = vunpack.c.l.b16 %v1571_v25  ;;  %v1637_v30 = vunpack.c.l.b16 %v1572_v49  ;;  %v1672_v16 = vrot.slane %v1627_v42, 5 }
 0x38a   :  { %v1669_v4 = vsel %vm1019_vm14, %v1668_v26, %v1624_v51  ;;  %v1682_v22 = vrot.slane %v1633_v8, 7  ;;  %v1684_v7 = vrot.slane %v1634_v20, 6  ;;  %v1638_v47 = vunpack.c.l.b16 %v1573_v11 }
 0x38b   :  { %v1639_v23 = vunpack.c.l.b16 %v1574_v60  ;;  %v1671_v28 = vsel %vm1022_vm15, %v1670_v54, %v1669_v4  ;;  %v1674_v32 = vrot.slane %v1628_v0, 4  ;;  %v1676_v46 = vrot.slane %v1629_v58, 3  ;;  %v5449_v0 = vld [vmem:[%s8621_s5 + $0x38] sm:$0xff]  ;;  %v5447_v4 = vld [vmem:[%s8621_s5 + $0x28] sm:$0xff] }
 0x38c   :  { %v1673_v6 = vsel %vm1025_vm1, %v1672_v16, %v1671_v28  ;;  %v1683_v36 = vsel %vm1019_vm14, %v1682_v22, %v1632_v57  ;;  %v1686_v59 = vrot.slane %v1635_v45, 5  ;;  %v1678_v56 = vrot.slane %v1630_v5, 2  ;;  %1890 = vmatpush.bf16.msrb.mxu2 %v5449_v0  ;;  %v5448_v5 = vld [vmem:[%s8621_s5 + $0x30] sm:$0xff] }
 0x38d   :  { %v1675_v53 = vsel %vm1028_vm2, %v1674_v32, %v1673_v6  ;;  %v1685_v9 = vsel %vm1022_vm15, %v1684_v7, %v1683_v36  ;;  %v1688_v27 = vrot.slane %v1636_v2, 4  ;;  %v1690_v35 = vrot.slane %v1637_v30, 3  ;;  %v5446_v6 = vld [vmem:[%s8621_s5 + $0x20] sm:$0xff] }
 0x38e   :  { %v1677_v55 = vsel %vm1031_vm3, %v1676_v46, %v1675_v53  ;;  %v1687_v29 = vsel %vm1025_vm1, %v1686_v59, %v1685_v9  ;;  %v1692_v48 = vrot.slane %v1638_v47, 2  ;;  %v1680_v38 = vrot.slane %v1631_v37, 1 }
 0x38f   :  { %v1679_v31 = vsel %vm1034_vm4, %v1678_v56, %v1677_v55  ;;  %v1689_v18 = vsel %vm1028_vm2, %v1688_v27, %v1687_v29  ;;  %v1694_v50 = vrot.slane %v1639_v23, 1  ;;  %v1575_v13 = vperm.slane %v6644_v33, 6  ;;  %v5445_v55 = vld [vmem:[%s8621_s5 + $0x18] sm:$0xff] }
 0x390   :  { %v1691_v39 = vsel %vm1031_vm3, %v1690_v35, %v1689_v18  ;;  %v1681_v44 = vsel %vm1037_vm5, %v1680_v38, %v1679_v31  ;;  %1891 = vmatpush.bf16.msrb.mxu2 %v5448_v5 }
 0x391   :  { %v1693_v19 = vsel %vm1034_vm4, %v1692_v48, %v1691_v39 }
 0x392   :  { %v1695_v52 = vsel %vm1037_vm5, %v1694_v50, %v1693_v19  ;;  %v5444_v50 = vld [vmem:[%s8621_s5 + $0x10] sm:$0xff] }
 0x393   :  { %v1697_v41 = vpack.c.b16 %v1695_v52, %v1681_v44 }
 0x394   :  { %1892 = vmatpush.bf16.msrb.mxu2 %v5447_v4 }
 0x395   :  { %5056 = vmatmul.msk.bf16.gmra.mxu2 %vm155_vm0, %v1697_v41 }
 0x398   :  { %1893 = vmatpush.bf16.msrb.mxu2 %v5446_v6 }
 0x39c   :  { %1894 = vmatpush.bf16.msrb.mxu2 %v5445_v55 }
 0x3a0   :  { %1895 = vmatpush.bf16.msrb.mxu2 %v5444_v50 }
 0x3fe   :  { %v1725_v15 = vpop.f32.mrf.mxu2 }
 0x3ff   :  { %v6867_v12 = vadd.f32 %v1725_v15, %v1575_v13 }
 0x401   :  { %v6870_v62 = vmul.f32 0.70710677, %v6867_v12 }
 0x403   :  { %v1751_v1 = vand.u32 2147483647, %v6870_v62  ;;  %vm1743_vm10 = vcmp.ge.f32.partialorder %v6870_v62, 0.0 }
 0x405   :  { %v1755_v63 = vmul.f32 0.3275911, %v1751_v1  ;;  %v1803_v60 = vsub.f32 0.0, %v1751_v1 }
 0x406   :  { %v1727_v17 = vpop.f32.mrf.mxu2 }
 0x407   :  { %v1759_v43 = vadd.f32 1.0, %v1755_v63  ;;  %v6873_v10 = vadd.f32 %v1727_v17, %v1575_v13  ;;  %v1807_v58 = vmul.f32 %v1803_v60, %v1751_v1  ;;  %v5443_v1 = vld [vmem:[%s8621_s5 + $0x8] sm:$0xff] }
 0x408   :  { %1896 = vmatpush.bf16.msrb.mxu2 %v5443_v1 }
 0x409   :  { %5563 = vrcp.f32 %v1759_v43  ;;  %v6876_v3 = vmul.f32 0.70710677, %v6873_v10  ;;  %v1811_v37 = vmul.f32 1.442695, %v1807_v58  ;;  %v8640_v43 = vmov -1.0  }
 0x40a   :  { %v1747_v17 = vsel %vm1743_vm10, 1.0, %v8640_v43 }
 0x40b   :  { %v1752_v25 = vand.u32 2147483647, %v6876_v3  ;;  %vm1744_vm11 = vcmp.ge.f32.partialorder %v6876_v3, 0.0  ;;  %v1736_v3 = vmul.f32 0.5, %v6873_v10 }
 0x40d   :  { %v1756_v24 = vmul.f32 0.3275911, %v1752_v25  ;;  %v1804_v26 = vsub.f32 0.0, %v1752_v25 }
 0x40f   :  { %v5564_v49 = vpop.eup %5563  ;;  %v1760_v42 = vadd.f32 1.0, %v1756_v24  ;;  %v1808_v47 = vmul.f32 %v1804_v26, %v1752_v25 }
 0x410   :  { %v1767_v11 = vmul.f32 1.0614054, %v5564_v49 }
 0x411   :  { %5565 = vrcp.f32 %v1760_v42  ;;  %v1813_v53 = vmul.f32 1.442695, %v1808_v47  ;;  %v5442_v42 = vld [vmem:[%s8621_s5] sm:$0xff] }
 0x412   :  { %v1771_v8 = vadd.f32 -1.4531521, %v1767_v11  ;;  %5567 = vpow2.f32 %v1811_v37  ;;  %1897 = vmatpush.bf16.msrb.mxu2 %v5442_v42  ;;  %v1982_v42 = vld [vmem:[#allocation2 + $0x620] sm:$0xff] }
 0x413   :  { %5569 = vpow2.f32 %v1813_v53 }
 0x414   :  { %v1775_v51 = vmul.f32 %v5564_v49, %v1771_v8 }
 0x416   :  { %v1779_v20 = vadd.f32 1.4214138, %v1775_v51  ;;  %v1748_v51 = vsel %vm1744_vm11, 1.0, %v8640_v43 }
 0x417   :  { %v5566_v54 = vpop.eup %5565 }
 0x418   :  { %v1783_v45 = vmul.f32 %v5564_v49, %v1779_v20  ;;  %v1768_v2 = vmul.f32 1.0614054, %v5566_v54  ;;  %v1730_v30 = vpop.f32.mrf.mxu2  ;;  %v5568_v29 = vpop.eup %5567 }
 0x419   :  { %v6888_v16 = vadd.f32 %v1730_v30, %v1575_v13 }
 0x41a   :  { %v1787_v57 = vadd.f32 -0.28449672, %v1783_v45  ;;  %v1772_v7 = vadd.f32 -1.4531521, %v1768_v2  ;;  %v1735_v45 = vmul.f32 0.5, %v6867_v12 }
 0x41b   :  { %v6891_v23 = vmul.f32 0.70710677, %v6888_v16  ;;  %v1737_v1 = vmul.f32 0.5, %v6888_v16  ;;  %v1986_v16 = vld [vmem:[#allocation2 + $0x640] sm:$0xff] }
 0x41c   :  { %v1791_v22 = vmul.f32 %v5564_v49, %v1787_v57  ;;  %v1776_v32 = vmul.f32 %v5566_v54, %v1772_v7 }
 0x41d   :  { %v1753_v46 = vand.u32 2147483647, %v6891_v23  ;;  %vm1745_vm12 = vcmp.ge.f32.partialorder %v6891_v23, 0.0 }
 0x41e   :  { %v1795_v28 = vadd.f32 0.2548296, %v1791_v22  ;;  %v1780_v59 = vadd.f32 1.4214138, %v1776_v32  ;;  %v1749_v50 = vsel %vm1745_vm12, 1.0, %v8640_v43 }
 0x41f   :  { %v1757_v56 = vmul.f32 0.3275911, %v1753_v46  ;;  %v1805_v25 = vsub.f32 0.0, %v1753_v46 }
 0x420   :  { %v1799_v36 = vmul.f32 %v5564_v49, %v1795_v28  ;;  %v1784_v9 = vmul.f32 %v5566_v54, %v1780_v59  ;;  %v1732_v27 = vpop.f32.mrf.mxu2 }
 0x421   :  { %v1761_v35 = vadd.f32 1.0, %v1757_v56  ;;  %v6900_v31 = vadd.f32 %v1732_v27, %v1575_v13  ;;  %v5570_v13 = vpop.eup %5569  ;;  %v1809_v0 = vmul.f32 %v1805_v25, %v1753_v46 }
 0x422   :  { %v1819_v18 = vmul.f32 %v5568_v29, %v1799_v36  ;;  %v1788_v48 = vadd.f32 -0.28449672, %v1784_v9 }
 0x423   :  { %5571 = vrcp.f32 %v1761_v35  ;;  %v6903_v38 = vmul.f32 0.70710677, %v6900_v31  ;;  %v1815_v57 = vmul.f32 1.442695, %v1809_v0 }
 0x424   :  { %v1792_v39 = vmul.f32 %v5566_v54, %v1788_v48  ;;  %v1823_v44 = vsub.f32 1.0, %v1819_v18 }
 0x425   :  { %v1754_v19 = vand.u32 2147483647, %v6903_v38  ;;  %vm1746_vm13 = vcmp.ge.f32.partialorder %v6903_v38, 0.0 }
 0x426   :  { %v1796_v52 = vadd.f32 0.2548296, %v1792_v39  ;;  %v1827_v24 = vmul.f32 %v1823_v44, %v1747_v17 }
 0x427   :  { %v1758_v41 = vmul.f32 0.3275911, %v1754_v19  ;;  %v1806_v2 = vsub.f32 0.0, %v1754_v19 }
 0x428   :  { %v1800_v15 = vmul.f32 %v5566_v54, %v1796_v52  ;;  %v1831_v58 = vadd.f32 1.0, %v1827_v24  ;;  %v6928_v24 = vperm.slane %v6644_v33, 7  ;;  %v1994_v33 = vld [vmem:[#allocation2 + $0x680] sm:$0xff] }
 0x429   :  { %v5572_v63 = vpop.eup %5571  ;;  %v1762_v49 = vadd.f32 1.0, %v1758_v41  ;;  %v1810_v6 = vmul.f32 %v1806_v2, %v1754_v19  ;;  %v1750_v41 = vsel %vm1746_vm13, 1.0, %v8640_v43  ;;  %v2002_v2 = vld [vmem:[#allocation2 + $0x6c0] sm:$0xff] }
 0x42a   :  { %v1820_v62 = vmul.f32 %v5570_v13, %v1800_v15  ;;  %v1769_v11 = vmul.f32 1.0614054, %v5572_v63  ;;  %v1835_v30 = vmul.f32 %v1831_v58, %v1735_v45  ;;  %v1979_v58 = vld [vmem:[#allocation2 + $0x608] sm:$0xff] }
 0x42b   :  { %5573 = vrcp.f32 %v1762_v49  ;;  %v1817_v59 = vmul.f32 1.442695, %v1810_v6  ;;  %v1987_v45 = vld [vmem:[#allocation2 + $0x648] sm:$0xff] }
 0x42c   :  { %v1824_v60 = vsub.f32 1.0, %v1820_v62  ;;  %v1773_v8 = vadd.f32 -1.4531521, %v1769_v11  ;;  %5575 = vpow2.f32 %v1815_v57 }
 0x42d   :  { %5577 = vpow2.f32 %v1817_v59 }
 0x42e   :  { %v1828_v20 = vmul.f32 %v1824_v60, %v1748_v51  ;;  %v1777_v5 = vmul.f32 %v5572_v63, %v1773_v8  ;;  %v1978_v60 = vld [vmem:[#allocation2 + $0x600] sm:$0xff] }
 0x430   :  { %v1832_v26 = vadd.f32 1.0, %v1828_v20  ;;  %v1781_v54 = vadd.f32 1.4214138, %v1777_v5  ;;  %v1990_v20 = vld [vmem:[#allocation2 + $0x660] sm:$0xff]  ;;  %v1983_v5 = vld [vmem:[#allocation2 + $0x628] sm:$0xff] }
 0x431   :  { %v5574_v37 = vpop.eup %5573 }
 0x432   :  { %v1836_v4 = vmul.f32 %v1832_v26, %v1736_v3  ;;  %v1770_v22 = vmul.f32 1.0614054, %v5574_v37  ;;  %v1785_v7 = vmul.f32 %v5572_v63, %v1781_v54  ;;  %v5576_v9 = vpop.eup %5575  ;;  %v1991_v3 = vld [vmem:[#allocation2 + $0x668] sm:$0xff]  ;;  %v1998_v54 = vld [vmem:[#allocation2 + $0x6a0] sm:$0xff] }
 0x433   :  { %v5578_v39 = vpop.eup %5577 }
 0x434   :  { %v1839_v47 = vpack.c.bf16 %v1836_v4, %v1835_v30  ;;  %v1774_v28 = vadd.f32 -1.4531521, %v1770_v22  ;;  %v1789_v32 = vadd.f32 -0.28449672, %v1785_v7  ;;  %v2003_v30 = vld [vmem:[#allocation2 + $0x6c8] sm:$0xff] }
 0x436   :  { %1898 = vmatmul.bf16.vlgmr.msrb.gmra.mxu2 %v1839_v47  ;;  %v1778_v46 = vmul.f32 %v5574_v37, %v1774_v28  ;;  %v1793_v12 = vmul.f32 %v5572_v63, %v1789_v32  ;;  %v2006_v28 = vld [vmem:[#allocation2 + $0x6e0] sm:$0xff] }
 0x438   :  { %v1782_v36 = vadd.f32 1.4214138, %v1778_v46  ;;  %v1797_v10 = vadd.f32 0.2548296, %v1793_v12  ;;  %v2007_v12 = vld [vmem:[#allocation2 + $0x6e8] sm:$0xff] }
 0x43a   :  { %v1786_v53 = vmul.f32 %v5574_v37, %v1782_v36  ;;  %v1801_v56 = vmul.f32 %v5572_v63, %v1797_v10  ;;  %v1738_v63 = vmul.f32 0.5, %v6900_v31 }
 0x43c   :  { %v1790_v27 = vadd.f32 -0.28449672, %v1786_v53  ;;  %v1821_v55 = vmul.f32 %v5576_v9, %v1801_v56 }
 0x43e   :  { %v1794_v29 = vmul.f32 %v5574_v37, %v1790_v27  ;;  %v1825_v18 = vsub.f32 1.0, %v1821_v55 }
 0x440   :  { %v1798_v35 = vadd.f32 0.2548296, %v1794_v29  ;;  %v1829_v44 = vmul.f32 %v1825_v18, %v1749_v50 }
 0x442   :  { %v1802_v48 = vmul.f32 %v5574_v37, %v1798_v35  ;;  %v1833_v15 = vadd.f32 1.0, %v1829_v44  ;;  %v1999_v37 = vld [vmem:[#allocation2 + $0x6a8] sm:$0xff] }
 0x444   :  { %v1822_v19 = vmul.f32 %v5578_v39, %v1802_v48  ;;  %v1837_v17 = vmul.f32 %v1833_v15, %v1737_v1 }
 0x446   :  { %v1826_v52 = vsub.f32 1.0, %v1822_v19 }
 0x448   :  { %v1830_v13 = vmul.f32 %v1826_v52, %v1750_v41  ;;  %v1946_v52 = vld [vmem:[#allocation2 + $0x500] sm:$0xff]  ;;  %v1947_v41 = vld [vmem:[#allocation2 + $0x508] sm:$0xff] }
 0x44a   :  { %v1834_v23 = vadd.f32 1.0, %v1830_v13  ;;  %v1950_v13 = vld [vmem:[#allocation2 + $0x520] sm:$0xff] }
 0x44c   :  { %v1838_v25 = vmul.f32 %v1834_v23, %v1738_v63 }
 0x44e   :  { %v1840_v49 = vpack.c.bf16 %v1838_v25, %v1837_v17  ;;  %v1951_v17 = vld [vmem:[#allocation2 + $0x528] sm:$0xff]  ;;  %v1954_v25 = vld [vmem:[#allocation2 + $0x540] sm:$0xff] }
 0x450   :  { %1903 = vmatmul.bf16.gmra.mxu2 %v1840_v49  ;;  %v1955_v49 = vld [vmem:[#allocation2 + $0x548] sm:$0xff] }
 0x4b9   :  { %v1899_v38 = vpop.f32.mrf.mxu2 }
 0x4ba   :  { %v1900_v62 = vadd.f32 %v1899_v38, %v6928_v24 }
 0x4bc   :  { %v6932_v11 = vadd.f32 %v1900_v62, %v5855_v21  ;;  %v1995_v21 = vld [vmem:[#allocation2 + $0x688] sm:$0xff] }
 0x4be   :  { %v2128_v31 = vmul.f32 %v1978_v60, %v6932_v11  ;;  %v2132_v51 = vmul.f32 %v1982_v42, %v6932_v11  ;;  %v2136_v57 = vmul.f32 %v1986_v16, %v6932_v11  ;;  %v2140_v4 = vmul.f32 %v1990_v20, %v6932_v11  ;;  %v1959_v16 = vld [vmem:[#allocation2 + $0x568] sm:$0xff] }
 0x4bf   :  { %v2144_v22 = vmul.f32 %v1994_v33, %v6932_v11  ;;  %v2148_v10 = vmul.f32 %v1998_v54, %v6932_v11  ;;  %v2152_v56 = vmul.f32 %v2002_v2, %v6932_v11  ;;  %v2156_v29 = vmul.f32 %v2006_v28, %v6932_v11  ;;  %v1963_v33 = vld [vmem:[#allocation2 + $0x588] sm:$0xff] }
 0x4c0   :  { %v2400_v7 = vsel %vm155_vm0, %v2128_v31, 0.0  ;;  %v2413_v47 = vsel %vm155_vm0, %v2132_v51, 0.0  ;;  %v2426_v35 = vsel %vm155_vm0, %v2136_v57, 0.0  ;;  %v2439_v50 = vsel %vm155_vm0, %v2140_v4, 0.0  ;;  %v1962_v31 = vld [vmem:[#allocation2 + $0x580] sm:$0xff]  ;;  %v1971_v54 = vld [vmem:[#allocation2 + $0x5c8] sm:$0xff] }
 0x4c1   :  { %v1901_v8 = vpop.f32.mrf.mxu2  ;;  %v2452_v19 = vsel %vm155_vm0, %v2144_v22, 0.0  ;;  %v2465_v62 = vsel %vm155_vm0, %v2148_v10, 0.0  ;;  %v2478_v60 = vsel %vm155_vm0, %v2152_v56, 0.0  ;;  %v2491_v20 = vsel %vm155_vm0, %v2156_v29, 0.0  ;;  %v1975_v4 = vld [vmem:[#allocation2 + $0x5e8] sm:$0xff] }
 0x4c2   :  { %v1902_v0 = vadd.f32 %v1901_v8, %v6928_v24  ;;  %v1958_v8 = vld [vmem:[#allocation2 + $0x560] sm:$0xff]  ;;  %v2096_v22 = vmul.f32 %v1946_v52, %v6932_v11  ;;  %v1984_v52 = vld [vmem:[#allocation2 + $0x630] sm:$0xff] }
 0x4c3   :  { %v2108_v28 = vmul.f32 %v1958_v8, %v6932_v11 }
 0x4c4   :  { %v6938_v26 = vadd.f32 %v1902_v0, %v5884_v14 }
 0x4c6   :  { %v2129_v32 = vmul.f32 %v1979_v58, %v6938_v26  ;;  %v2133_v14 = vmul.f32 %v1983_v5, %v6938_v26  ;;  %v2137_v6 = vmul.f32 %v1987_v45, %v6938_v26  ;;  %v2141_v46 = vmul.f32 %v1991_v3, %v6938_v26  ;;  %v1966_v5 = vld [vmem:[#allocation2 + $0x5a0] sm:$0xff]  ;;  %v1967_v45 = vld [vmem:[#allocation2 + $0x5a8] sm:$0xff] }
 0x4c7   :  { %v2145_v36 = vmul.f32 %v1995_v21, %v6938_v26  ;;  %v2149_v59 = vmul.f32 %v1999_v37, %v6938_v26  ;;  %v2153_v53 = vmul.f32 %v2003_v30, %v6938_v26  ;;  %v2157_v9 = vmul.f32 %v2007_v12, %v6938_v26  ;;  %v1970_v21 = vld [vmem:[#allocation2 + $0x5c0] sm:$0xff] }
 0x4c8   :  { %v2401_v27 = vsel %vm155_vm0, %v2129_v32, 0.0  ;;  %v2414_v55 = vsel %vm155_vm0, %v2133_v14, 0.0  ;;  %v2427_v18 = vsel %vm155_vm0, %v2137_v6, 0.0  ;;  %v2440_v48 = vsel %vm155_vm0, %v2141_v46, 0.0  ;;  %v1974_v37 = vld [vmem:[#allocation2 + $0x5e0] sm:$0xff]  ;;  %v60_v32 = vld [vmem:[%s8617_s1 + $0x10] sm:$0xff] }
 0x4c9   :  { %v6961_v39 = vadd.f32 %v2401_v27, %v2400_v7  ;;  %v2453_v44 = vsel %vm155_vm0, %v2145_v36, 0.0  ;;  %v6966_v15 = vadd.f32 %v2414_v55, %v2413_v47  ;;  %v6968_v1 = vadd.f32 %v2427_v18, %v2426_v35 }
 0x4ca   :  { %v2466_v63 = vsel %vm155_vm0, %v2149_v59, 0.0  ;;  %v2479_v23 = vsel %vm155_vm0, %v2153_v53, 0.0  ;;  %v6972_v38 = vadd.f32 %v2440_v48, %v2439_v50  ;;  %v2492_v42 = vsel %vm155_vm0, %v2157_v9, 0.0 }
 0x4cb   :  { %v6977_v51 = vadd.f32 %v2453_v44, %v2452_v19  ;;  %v6979_v0 = vadd.f32 %v2466_v63, %v2465_v62  ;;  %v6981_v58 = vadd.f32 %v2479_v23, %v2478_v60  ;;  %v6984_v3 = vadd.f32 %v2492_v42, %v2491_v20  ;;  %v1980_v44 = vld [vmem:[#allocation2 + $0x610] sm:$0xff] }
 0x4cc   :  { %v2097_v57 = vmul.f32 %v1947_v41, %v6938_v26  ;;  %v2101_v2 = vmul.f32 %v1951_v17, %v6938_v26  ;;  %v2105_v30 = vmul.f32 %v1955_v49, %v6938_v26  ;;  %v2100_v7 = vmul.f32 %v1950_v13, %v6932_v11  ;;  %v1988_v23 = vld [vmem:[#allocation2 + $0x650] sm:$0xff] }
 0x4cd   :  { %v2104_v47 = vmul.f32 %v1954_v25, %v6932_v11  ;;  %v2109_v14 = vmul.f32 %v1959_v16, %v6938_v26  ;;  %v2112_v6 = vmul.f32 %v1962_v31, %v6932_v11  ;;  %v2113_v46 = vmul.f32 %v1963_v33, %v6938_v26  ;;  %v1992_v17 = vld [vmem:[#allocation2 + $0x670] sm:$0xff] }
 0x4ce   :  { %v2116_v12 = vmul.f32 %v1966_v5, %v6932_v11  ;;  %v2117_v36 = vmul.f32 %v1967_v45, %v6938_v26  ;;  %v2120_v10 = vmul.f32 %v1970_v21, %v6932_v11  ;;  %v2121_v59 = vmul.f32 %v1971_v54, %v6938_v26  ;;  %v1996_v25 = vld [vmem:[#allocation2 + $0x690] sm:$0xff] }
 0x4cf   :  { %v7004_v53 = vmul.f32 %v1974_v37, %v6932_v11  ;;  %v7007_v56 = vmul.f32 %v1975_v4, %v6938_v26  ;;  %v2297_v9 = vsel %vm155_vm0, %v2097_v57, 0.0  ;;  %v2310_v27 = vsel %vm155_vm0, %v2101_v2, 0.0  ;;  %v2000_v16 = vld [vmem:[#allocation2 + $0x6b0] sm:$0xff] }
 0x4d0   :  { %v2323_v55 = vsel %vm155_vm0, %v2105_v30, 0.0  ;;  %v7012_v35 = vperm.slane %v60_v32, 0  ;;  %v2296_v18 = vsel %vm155_vm0, %v2096_v22, 0.0  ;;  %v2309_v48 = vsel %vm155_vm0, %v2100_v7, 0.0  ;;  %v2004_v31 = vld [vmem:[#allocation2 + $0x6d0] sm:$0xff] }
 0x4d1   :  { %v2322_v50 = vsel %vm155_vm0, %v2104_v47, 0.0  ;;  %v7018_v41 = vadd.f32 %v2297_v9, %v2296_v18  ;;  %v2336_v13 = vsel %vm155_vm0, %v2109_v14, 0.0  ;;  %v2349_v63 = vsel %vm155_vm0, %v2113_v46, 0.0  ;;  %v2008_v20 = vld [vmem:[#allocation2 + $0x6f0] sm:$0xff] }
 0x4d2   :  { %v7022_v49 = vadd.f32 %v2310_v27, %v2309_v48  ;;  %v7024_v62 = vadd.f32 %v2323_v55, %v2322_v50  ;;  %v2335_v60 = vsel %vm155_vm0, %v2108_v28, 0.0  ;;  %v2362_v42 = vsel %vm155_vm0, %v2117_v36, 0.0  ;;  %v1981_v36 = vld [vmem:[#allocation2 + $0x618] sm:$0xff]  ;;  %v1952_v18 = vld [vmem:[#allocation2 + $0x530] sm:$0xff] }
 0x4d3   :  { %v1904_v29 = vpop.f32.mrf.mxu2  ;;  %v7031_v33 = vadd.f32 %v2336_v13, %v2335_v60  ;;  %v2348_v5 = vsel %vm155_vm0, %v2112_v6, 0.0  ;;  %v2361_v45 = vsel %vm155_vm0, %v2116_v12, 0.0  ;;  %v7040_v37 = vsel %vm155_vm0, %v2120_v10, 0.0  ;;  %v1985_v10 = vld [vmem:[#allocation2 + $0x638] sm:$0xff]  ;;  %v1956_v48 = vld [vmem:[#allocation2 + $0x550] sm:$0xff] }
 0x4d4   :  { %v1905_v19 = vadd.f32 %v1904_v29, %v6928_v24  ;;  %v7035_v21 = vadd.f32 %v2349_v63, %v2348_v5  ;;  %v7037_v54 = vadd.f32 %v2362_v42, %v2361_v45  ;;  %v7043_v57 = vsel %vm155_vm0, %v2121_v59, 0.0  ;;  %v1948_v29 = vld [vmem:[#allocation2 + $0x510] sm:$0xff]  ;;  %v2001_v42 = vld [vmem:[#allocation2 + $0x6b8] sm:$0xff] }
 0x4d5   :  { %v1960_v13 = vld [vmem:[#allocation2 + $0x570] sm:$0xff] }
 0x4d6   :  { %v7029_v8 = vadd.f32 %v1905_v19, %v5934_v40  ;;  %v1964_v63 = vld [vmem:[#allocation2 + $0x590] sm:$0xff] }
 0x4d8   :  { %v2130_v40 = vmul.f32 %v1980_v44, %v7029_v8  ;;  %v2134_v2 = vmul.f32 %v1984_v52, %v7029_v8  ;;  %v2138_v30 = vmul.f32 %v1988_v23, %v7029_v8  ;;  %v2142_v4 = vmul.f32 %v1992_v17, %v7029_v8  ;;  %v1989_v23 = vld [vmem:[#allocation2 + $0x658] sm:$0xff] }
 0x4d9   :  { %v2146_v22 = vmul.f32 %v1996_v25, %v7029_v8  ;;  %v2150_v7 = vmul.f32 %v2000_v16, %v7029_v8  ;;  %v2154_v47 = vmul.f32 %v2004_v31, %v7029_v8  ;;  %v2158_v28 = vmul.f32 %v2008_v20, %v7029_v8  ;;  %v1997_v17 = vld [vmem:[#allocation2 + $0x698] sm:$0xff] }
 0x4da   :  { %v2403_v32 = vsel %vm155_vm0, %v2130_v40, 0.0  ;;  %v2416_v14 = vsel %vm155_vm0, %v2134_v2, 0.0  ;;  %v2429_v6 = vsel %vm155_vm0, %v2138_v30, 0.0  ;;  %v2442_v46 = vsel %vm155_vm0, %v2142_v4, 0.0  ;;  %v2005_v16 = vld [vmem:[#allocation2 + $0x6d8] sm:$0xff] }
 0x4db   :  { %v1906_v12 = vpop.f32.mrf.mxu2  ;;  %v2404_v59 = vadd.f32 %v2403_v32, %v6961_v39  ;;  %v2417_v9 = vadd.f32 %v2416_v14, %v6966_v15  ;;  %v2430_v27 = vadd.f32 %v2429_v6, %v6968_v1  ;;  %v2443_v55 = vadd.f32 %v2442_v46, %v6972_v38  ;;  %v1968_v39 = vld [vmem:[#allocation2 + $0x5b0] sm:$0xff]  ;;  %v1993_v15 = vld [vmem:[#allocation2 + $0x678] sm:$0xff] }
 0x4dc   :  { %v1907_v50 = vadd.f32 %v1906_v12, %v6928_v24  ;;  %v2455_v19 = vsel %vm155_vm0, %v2146_v22, 0.0  ;;  %v2468_v44 = vsel %vm155_vm0, %v2150_v7, 0.0  ;;  %v2481_v52 = vsel %vm155_vm0, %v2154_v47, 0.0  ;;  %v2009_v31 = vld [vmem:[#allocation2 + $0x6f8] sm:$0xff] }
 0x4dd   :  { %v2456_v1 = vadd.f32 %v2455_v19, %v6977_v51  ;;  %v2469_v38 = vadd.f32 %v2468_v44, %v6979_v0  ;;  %v2482_v25 = vadd.f32 %v2481_v52, %v6981_v58  ;;  %v2494_v24 = vsel %vm155_vm0, %v2158_v28, 0.0 }
 0x4de   :  { %v7070_v60 = vadd.f32 %v1907_v50, %v5968_v61  ;;  %v2495_v20 = vadd.f32 %v2494_v24, %v6984_v3  ;;  %v7074_v5 = vmul.f32 %v1948_v29, %v7029_v8  ;;  %v7077_v45 = vmul.f32 %v1952_v18, %v7029_v8 }
 0x4df   :  { %v7080_v51 = vmul.f32 %v1956_v48, %v7029_v8  ;;  %v7083_v0 = vmul.f32 %v1960_v13, %v7029_v8  ;;  %v7086_v61 = vmul.f32 %v1964_v63, %v7029_v8  ;;  %v7089_v58 = vmul.f32 %v1968_v39, %v7029_v8 }
 0x4e0   :  { %v2131_v3 = vmul.f32 %v1981_v36, %v7070_v60  ;;  %v2135_v40 = vmul.f32 %v1985_v10, %v7070_v60  ;;  %v2139_v2 = vmul.f32 %v1989_v23, %v7070_v60  ;;  %v2143_v30 = vmul.f32 %v1993_v15, %v7070_v60 }
 0x4e1   :  { %v2147_v4 = vmul.f32 %v1997_v17, %v7070_v60  ;;  %v2151_v22 = vmul.f32 %v2001_v42, %v7070_v60  ;;  %v2155_v7 = vmul.f32 %v2005_v16, %v7070_v60  ;;  %v2159_v47 = vmul.f32 %v2009_v31, %v7070_v60 }
 0x4e2   :  { %v2405_v28 = vsel %vm155_vm0, %v2131_v3, 0.0  ;;  %v2418_v32 = vsel %vm155_vm0, %v2135_v40, 0.0  ;;  %v2431_v14 = vsel %vm155_vm0, %v2139_v2, 0.0  ;;  %v2444_v6 = vsel %vm155_vm0, %v2143_v30, 0.0 }
 0x4e3   :  { %v2406_v46 = vadd.f32 %v2405_v28, %v2404_v59  ;;  %v2419_v12 = vadd.f32 %v2418_v32, %v2417_v9  ;;  %v2432_v36 = vadd.f32 %v2431_v14, %v2430_v27  ;;  %v2445_v10 = vadd.f32 %v2444_v6, %v2443_v55 }
 0x4e4   :  { %v2457_v29 = vsel %vm155_vm0, %v2147_v4, 0.0  ;;  %v2470_v18 = vsel %vm155_vm0, %v2151_v22, 0.0  ;;  %v2483_v48 = vsel %vm155_vm0, %v2155_v7, 0.0  ;;  %v2496_v50 = vsel %vm155_vm0, %v2159_v47, 0.0 }
 0x4e5   :  { %v2407_v19 = vrot.slane %v2406_v46, 4  ;;  %v2420_v44 = vrot.slane %v2419_v12, 4  ;;  %v2433_v52 = vrot.slane %v2432_v36, 4  ;;  %v2446_v13 = vrot.slane %v2445_v10, 4 }
 0x4e6   :  { %v2458_v63 = vadd.f32 %v2457_v29, %v2456_v1  ;;  %v2471_v39 = vadd.f32 %v2470_v18, %v2469_v38  ;;  %v2484_v23 = vadd.f32 %v2483_v48, %v2482_v25  ;;  %v2497_v15 = vadd.f32 %v2496_v50, %v2495_v20 }
 0x4e7   :  { %v2408_v59 = vadd.f32 %v2407_v19, %v2406_v46  ;;  %v2421_v9 = vadd.f32 %v2420_v44, %v2419_v12  ;;  %v2434_v27 = vadd.f32 %v2433_v52, %v2432_v36  ;;  %v2447_v55 = vadd.f32 %v2446_v13, %v2445_v10 }
 0x4e8   :  { %v2459_v17 = vrot.slane %v2458_v63, 4  ;;  %v2472_v24 = vrot.slane %v2471_v39, 4  ;;  %v2485_v42 = vrot.slane %v2484_v23, 4  ;;  %v2498_v16 = vrot.slane %v2497_v15, 4 }
 0x4e9   :  { %v2409_v31 = vrot.slane %v2408_v59, 2  ;;  %v2422_v3 = vrot.slane %v2421_v9, 2  ;;  %v2435_v40 = vrot.slane %v2434_v27, 2  ;;  %v2448_v2 = vrot.slane %v2447_v55, 2 }
 0x4ea   :  { %v2460_v30 = vadd.f32 %v2459_v17, %v2458_v63  ;;  %v2473_v4 = vadd.f32 %v2472_v24, %v2471_v39  ;;  %v2486_v22 = vadd.f32 %v2485_v42, %v2484_v23  ;;  %v2499_v7 = vadd.f32 %v2498_v16, %v2497_v15  ;;  %v1949_v15 = vld [vmem:[#allocation2 + $0x518] sm:$0xff] }
 0x4eb   :  { %v2410_v1 = vadd.f32 %v2409_v31, %v2408_v59  ;;  %v2423_v38 = vadd.f32 %v2422_v3, %v2421_v9  ;;  %v2436_v25 = vadd.f32 %v2435_v40, %v2434_v27  ;;  %v2449_v20 = vadd.f32 %v2448_v2, %v2447_v55  ;;  %v1953_v31 = vld [vmem:[#allocation2 + $0x538] sm:$0xff] }
 0x4ec   :  { %v2461_v47 = vrot.slane %v2460_v30, 2  ;;  %v2474_v28 = vrot.slane %v2473_v4, 2  ;;  %v2487_v32 = vrot.slane %v2486_v22, 2  ;;  %v2500_v14 = vrot.slane %v2499_v7, 2  ;;  %v1957_v3 = vld [vmem:[#allocation2 + $0x558] sm:$0xff] }
 0x4ed   :  { %v2411_v6 = vrot.slane %v2410_v1, 1  ;;  %v2424_v46 = vrot.slane %v2423_v38, 1  ;;  %v2437_v12 = vrot.slane %v2436_v25, 1  ;;  %v2450_v36 = vrot.slane %v2449_v20, 1  ;;  %v1961_v40 = vld [vmem:[#allocation2 + $0x578] sm:$0xff] }
 0x4ee   :  { %v2462_v10 = vadd.f32 %v2461_v47, %v2460_v30  ;;  %v2475_v29 = vadd.f32 %v2474_v28, %v2473_v4  ;;  %v2488_v18 = vadd.f32 %v2487_v32, %v2486_v22  ;;  %v2501_v48 = vadd.f32 %v2500_v14, %v2499_v7  ;;  %v1969_v47 = vld [vmem:[#allocation2 + $0x5b8] sm:$0xff]  ;;  %v1972_v32 = vld [vmem:[#allocation2 + $0x5d0] sm:$0xff] }
 0x4ef   :  { %v2412_v50 = vadd.f32 %v2411_v6, %v2410_v1  ;;  %v2425_v19 = vadd.f32 %v2424_v46, %v2423_v38  ;;  %v2438_v44 = vadd.f32 %v2437_v12, %v2436_v25  ;;  %v2451_v52 = vadd.f32 %v2450_v36, %v2449_v20  ;;  %v1965_v20 = vld [vmem:[#allocation2 + $0x598] sm:$0xff]  ;;  %v1976_v6 = vld [vmem:[#allocation2 + $0x5f0] sm:$0xff] }
 0x4f0   :  { %v2463_v13 = vrot.slane %v2462_v10, 1  ;;  %v2476_v63 = vrot.slane %v2475_v29, 1  ;;  %v2489_v39 = vrot.slane %v2488_v18, 1  ;;  %v2502_v23 = vrot.slane %v2501_v48, 1  ;;  %v1973_v14 = vld [vmem:[#allocation2 + $0x5d8] sm:$0xff] }
 0x4f1   :  { %v7108_v59 = vadd.f32 %v7012_v35, %v2412_v50  ;;  %v7111_v9 = vadd.f32 %v7012_v35, %v2425_v19  ;;  %v7114_v27 = vadd.f32 %v7012_v35, %v2438_v44  ;;  %v7117_v55 = vadd.f32 %v7012_v35, %v2451_v52  ;;  %v1977_v50 = vld [vmem:[#allocation2 + $0x5f8] sm:$0xff] }
 0x4f2   :  { %v2464_v17 = vadd.f32 %v2463_v13, %v2462_v10  ;;  %v2477_v24 = vadd.f32 %v2476_v63, %v2475_v29  ;;  %v2490_v42 = vadd.f32 %v2489_v39, %v2488_v18  ;;  %v2503_v16 = vadd.f32 %v2502_v23, %v2501_v48 }
 0x4f3   :  { %v2701_v2 = vrot.slane %v7111_v9, 7  ;;  %v2703_v30 = vrot.slane %v7114_v27, 6  ;;  %v2705_v4 = vrot.slane %v7117_v55, 5  ;;  %v2099_v22 = vmul.f32 %v1949_v15, %v7070_v60 }
 0x4f4   :  { %v7124_v7 = vadd.f32 %v7012_v35, %v2464_v17  ;;  %v7127_v1 = vadd.f32 %v7012_v35, %v2477_v24  ;;  %v7130_v38 = vadd.f32 %v7012_v35, %v2490_v42  ;;  %v7133_v25 = vadd.f32 %v7012_v35, %v2503_v16 }
 0x4f5   :  { %v2702_v28 = vsel %vm1019_vm14, %v2701_v2, %v7108_v59  ;;  %v2103_v46 = vmul.f32 %v1953_v31, %v7070_v60  ;;  %v2107_v12 = vmul.f32 %v1957_v3, %v7070_v60  ;;  %v2111_v36 = vmul.f32 %v1961_v40, %v7070_v60 }
 0x4f6   :  { %8675 = vst [vmem:[#allocation8_spill] sm:$0xff] %v7124_v7  ;;  %v2704_v10 = vsel %vm1022_vm15, %v2703_v30, %v2702_v28  ;;  %v2707_v29 = vrot.slane %v7124_v7, 4  ;;  %v2709_v18 = vrot.slane %v7127_v1, 3  ;;  %v2711_v48 = vrot.slane %v7130_v38, 2 }
 0x4f7   :  { %8676 = vst [vmem:[#allocation9_spill] sm:$0xff] %v7127_v1  ;;  %v2706_v19 = vsel %vm1025_vm1, %v2705_v4, %v2704_v10  ;;  %v2713_v44 = vrot.slane %v7133_v25, 1  ;;  %v2115_v52 = vmul.f32 %v1965_v20, %v7070_v60  ;;  %v2119_v13 = vmul.f32 %v1969_v47, %v7070_v60 }
 0x4f8   :  { %8677 = vst [vmem:[#allocation10_spill] sm:$0xff] %v7130_v38  ;;  %v2708_v63 = vsel %vm1028_vm2, %v2707_v29, %v2706_v19  ;;  %v2122_v39 = vmul.f32 %v1972_v32, %v7029_v8  ;;  %v2123_v23 = vmul.f32 %v1973_v14, %v7070_v60  ;;  %v7152_v15 = vmul.f32 %v1976_v6, %v7029_v8 }
 0x4f9   :  { %8678 = vst [vmem:[#allocation11_spill] sm:$0xff] %v7133_v25  ;;  %v2710_v17 = vsel %vm1031_vm3, %v2709_v18, %v2708_v63  ;;  %v7156_v24 = vmul.f32 %v1977_v50, %v7070_v60  ;;  %v2299_v42 = vsel %vm155_vm0, %v7074_v5, 0.0  ;;  %v2301_v16 = vsel %vm155_vm0, %v2099_v22, 0.0 }
 0x4fa   :  { %v2712_v31 = vsel %vm1034_vm4, %v2711_v48, %v2710_v17  ;;  %v2300_v3 = vadd.f32 %v2299_v42, %v7018_v41  ;;  %v2312_v40 = vsel %vm155_vm0, %v7077_v45, 0.0  ;;  %v2314_v2 = vsel %vm155_vm0, %v2103_v46, 0.0 }
 0x4fb   :  { %v2714_v30 = vsel %vm1037_vm5, %v2713_v44, %v2712_v31  ;;  %v2313_v4 = vadd.f32 %v2312_v40, %v7022_v49  ;;  %v2325_v20 = vsel %vm155_vm0, %v7080_v51, 0.0  ;;  %v2327_v5 = vsel %vm155_vm0, %v2107_v12, 0.0 }
 0x4fc   :  { %v2739_v22 = vsel %vm155_vm0, %v2714_v30, 0.0  ;;  %v2302_v47 = vadd.f32 %v2301_v16, %v2300_v3  ;;  %v2326_v28 = vadd.f32 %v2325_v20, %v7024_v62  ;;  %v2338_v41 = vsel %vm155_vm0, %v7083_v0, 0.0 }
 0x4fd   :  { %2740 = vadd.xlane.f32.xlu0 %v2739_v22  ;;  %v2315_v45 = vadd.f32 %v2314_v2, %v2313_v4  ;;  %v2339_v32 = vadd.f32 %v2338_v41, %v7031_v33  ;;  %v2340_v14 = vsel %vm155_vm0, %v2111_v36, 0.0  ;;  %v2351_v49 = vsel %vm155_vm0, %v7086_v61, 0.0 }
 0x4fe   :  { %v2303_v51 = vrot.slane %v2302_v47, 4  ;;  %v2328_v6 = vadd.f32 %v2327_v5, %v2326_v28  ;;  %v2352_v46 = vadd.f32 %v2351_v49, %v7035_v21  ;;  %v2353_v12 = vsel %vm155_vm0, %v2115_v52, 0.0 }
 0x4ff   :  { %v2316_v10 = vrot.slane %v2315_v45, 4  ;;  %v2341_v62 = vadd.f32 %v2340_v14, %v2339_v32  ;;  %v2364_v0 = vsel %vm155_vm0, %v7089_v58, 0.0  ;;  %v2366_v29 = vsel %vm155_vm0, %v2119_v13, 0.0 }
 0x500   :  { %v2304_v18 = vadd.f32 %v2303_v51, %v2302_v47  ;;  %v2329_v33 = vrot.slane %v2328_v6, 4  ;;  %v2354_v48 = vadd.f32 %v2353_v12, %v2352_v46  ;;  %v2365_v36 = vadd.f32 %v2364_v0, %v7037_v54 }
 0x501   :  { %v2317_v50 = vadd.f32 %v2316_v10, %v2315_v45  ;;  %v2342_v61 = vrot.slane %v2341_v62, 4  ;;  %v2376_v19 = vadd.f32 %v7043_v57, %v7040_v37  ;;  %v2377_v21 = vsel %vm155_vm0, %v2122_v39, 0.0 }
 0x502   :  { %v2305_v44 = vrot.slane %v2304_v18, 2  ;;  %v2330_v52 = vadd.f32 %v2329_v33, %v2328_v6  ;;  %v2355_v63 = vrot.slane %v2354_v48, 4  ;;  %v2367_v17 = vadd.f32 %v2366_v29, %v2365_v36  ;;  %v1914_v33 = vld [vmem:[#allocation2 + $0x400] sm:$0xff] }
 0x503   :  { %v2318_v42 = vrot.slane %v2317_v50, 2  ;;  %v2343_v58 = vadd.f32 %v2342_v61, %v2341_v62  ;;  %v2378_v16 = vadd.f32 %v2377_v21, %v2376_v19  ;;  %v2379_v13 = vsel %vm155_vm0, %v2123_v23, 0.0 }
 0x504   :  { %v2306_v31 = vadd.f32 %v2305_v44, %v2304_v18  ;;  %v2331_v3 = vrot.slane %v2330_v52, 2  ;;  %v2356_v40 = vadd.f32 %v2355_v63, %v2354_v48  ;;  %v2368_v54 = vrot.slane %v2367_v17, 4 }
 0x505   :  { %v2319_v2 = vadd.f32 %v2318_v42, %v2317_v50  ;;  %v2344_v30 = vrot.slane %v2343_v58, 2  ;;  %v2380_v4 = vadd.f32 %v2379_v13, %v2378_v16  ;;  %v2387_v37 = vsel %vm155_vm0, %v7004_v53, 0.0  ;;  %v1916_v42 = vld [vmem:[#allocation2 + $0x410] sm:$0xff] }
 0x506   :  { %v2307_v57 = vrot.slane %v2306_v31, 1  ;;  %v2332_v39 = vadd.f32 %v2331_v3, %v2330_v52  ;;  %v2357_v20 = vrot.slane %v2356_v40, 2  ;;  %v2369_v5 = vadd.f32 %v2368_v54, %v2367_v17  ;;  %v1915_v52 = vld [vmem:[#allocation2 + $0x408] sm:$0xff]  ;;  %v1918_v54 = vld [vmem:[#allocation2 + $0x420] sm:$0xff] }
 0x507   :  { %v2320_v22 = vrot.slane %v2319_v2, 1  ;;  %v2345_v47 = vadd.f32 %v2344_v30, %v2343_v58  ;;  %v2381_v28 = vrot.slane %v2380_v4, 4  ;;  %v2388_v23 = vsel %vm155_vm0, %v7007_v56, 0.0 }
 0x508   :  { %v2308_v41 = vadd.f32 %v2307_v57, %v2306_v31  ;;  %v2333_v45 = vrot.slane %v2332_v39, 1  ;;  %v2358_v32 = vadd.f32 %v2357_v20, %v2356_v40  ;;  %v2370_v14 = vrot.slane %v2369_v5, 2  ;;  %v1917_v40 = vld [vmem:[#allocation2 + $0x418] sm:$0xff] }
 0x509   :  { %v2321_v49 = vadd.f32 %v2320_v22, %v2319_v2  ;;  %v2346_v51 = vrot.slane %v2345_v47, 1  ;;  %v2382_v6 = vadd.f32 %v2381_v28, %v2380_v4  ;;  %v2389_v46 = vadd.f32 %v2388_v23, %v2387_v37  ;;  %v1919_v37 = vld [vmem:[#allocation2 + $0x428] sm:$0xff]  ;;  %v1920_v22 = vld [vmem:[#allocation2 + $0x430] sm:$0xff]  ;;  %v1922_v28 = vld [vmem:[#allocation2 + $0x440] sm:$0xff] }
 0x50a   :  { %v2334_v12 = vadd.f32 %v2333_v45, %v2332_v39  ;;  %v2359_v53 = vrot.slane %v2358_v32, 1  ;;  %v2371_v10 = vadd.f32 %v2370_v14, %v2369_v5  ;;  %v2390_v62 = vsel %vm155_vm0, %v7152_v15, 0.0  ;;  %v1924_v14 = vld [vmem:[#allocation2 + $0x450] sm:$0xff] }
 0x50b   :  { %v2347_v0 = vadd.f32 %v2346_v51, %v2345_v47  ;;  %v2383_v29 = vrot.slane %v2382_v6, 2  ;;  %v2391_v18 = vadd.f32 %v2390_v62, %v2389_v46  ;;  %v2392_v56 = vsel %vm155_vm0, %v7156_v24, 0.0  ;;  %v1921_v47 = vld [vmem:[#allocation2 + $0x438] sm:$0xff]  ;;  %v1927_v62 = vld [vmem:[#allocation2 + $0x468] sm:$0xff] }
 0x50c   :  { %v2360_v48 = vadd.f32 %v2359_v53, %v2358_v32  ;;  %v2372_v36 = vrot.slane %v2371_v10, 1  ;;  %v7198_v50 = vadd.f32 %v7012_v35, %v2308_v41  ;;  %v7201_v61 = vadd.f32 %v7012_v35, %v2321_v49  ;;  %v1923_v32 = vld [vmem:[#allocation2 + $0x448] sm:$0xff]  ;;  %v1926_v49 = vld [vmem:[#allocation2 + $0x460] sm:$0xff] }
 0x50d   :  { %v2384_v19 = vadd.f32 %v2383_v29, %v2382_v6  ;;  %v2393_v21 = vadd.f32 %v2392_v56, %v2391_v18  ;;  %v7204_v44 = vadd.f32 %v7012_v35, %v2334_v12  ;;  %v7207_v15 = vadd.f32 %v7012_v35, %v2347_v0  ;;  %v1928_v0 = vld [vmem:[#allocation2 + $0x470] sm:$0xff]  ;;  %v1929_v56 = vld [vmem:[#allocation2 + $0x478] sm:$0xff] }
 0x50e   :  { %v2373_v63 = vadd.f32 %v2372_v36, %v2371_v10  ;;  %v7210_v24 = vadd.f32 %v7012_v35, %v2360_v48  ;;  %v2687_v17 = vrot.slane %v7201_v61, 7  ;;  %v7214_v58 = vmul.f32 %v1914_v33, %v6932_v11  ;;  %v1925_v10 = vld [vmem:[#allocation2 + $0x458] sm:$0xff]  ;;  %v1930_v33 = vld [vmem:[#allocation2 + $0x480] sm:$0xff] }
 0x50f   :  { %v2385_v16 = vrot.slane %v2384_v19, 1  ;;  %v2394_v13 = vrot.slane %v2393_v21, 4  ;;  %v2689_v31 = vrot.slane %v7204_v44, 6  ;;  %v2691_v3 = vrot.slane %v7207_v15, 5  ;;  %v1934_v48 = vld [vmem:[#allocation2 + $0x4a0] sm:$0xff] }
 0x510   :  { %v7219_v2 = vadd.f32 %v7012_v35, %v2373_v63  ;;  %v2688_v30 = vsel %vm1019_vm14, %v2687_v17, %v7198_v50  ;;  %v2693_v4 = vrot.slane %v7210_v24, 4  ;;  %v7225_v57 = vmul.f32 %v1915_v52, %v6938_v26  ;;  %v1931_v17 = vld [vmem:[#allocation2 + $0x488] sm:$0xff] }
 0x511   :  { %v2386_v39 = vadd.f32 %v2385_v16, %v2384_v19  ;;  %v2395_v20 = vadd.f32 %v2394_v13, %v2393_v21  ;;  %v2690_v5 = vsel %vm1022_vm15, %v2689_v31, %v2688_v30  ;;  %v7229_v23 = vmul.f32 %v1916_v42, %v7029_v8  ;;  %v1932_v42 = vld [vmem:[#allocation2 + $0x490] sm:$0xff]  ;;  %v1933_v16 = vld [vmem:[#allocation2 + $0x498] sm:$0xff]  ;;  %v1938_v13 = vld [vmem:[#allocation2 + $0x4c0] sm:$0xff] }
 0x512   :  { %v2692_v41 = vsel %vm1025_vm1, %v2691_v3, %v2690_v5  ;;  %v2695_v45 = vrot.slane %v7219_v2, 3  ;;  %v7234_v51 = vmul.f32 %v1917_v40, %v7070_v60  ;;  %v7237_v6 = vmul.f32 %v1918_v54, %v6932_v11  ;;  %v1935_v40 = vld [vmem:[#allocation2 + $0x4a8] sm:$0xff]  ;;  %v1936_v54 = vld [vmem:[#allocation2 + $0x4b0] sm:$0xff]  ;;  %v1937_v30 = vld [vmem:[#allocation2 + $0x4b8] sm:$0xff] }
 0x513   :  { %v2396_v46 = vrot.slane %v2395_v20, 2  ;;  %v7240_v12 = vadd.f32 %v7012_v35, %v2386_v39  ;;  %v2694_v53 = vsel %vm1028_vm2, %v2693_v4, %v2692_v41  ;;  %v2069_v29 = vmul.f32 %v1919_v37, %v6938_v26  ;;  %v1941_v41 = vld [vmem:[#allocation2 + $0x4d8] sm:$0xff] }
 0x514   :  { %v2696_v18 = vsel %vm1031_vm3, %v2695_v45, %v2694_v53  ;;  %v2070_v36 = vmul.f32 %v1920_v22, %v7029_v8  ;;  %v2071_v19 = vmul.f32 %v1921_v47, %v7070_v60  ;;  %v2072_v21 = vmul.f32 %v1922_v28, %v6932_v11  ;;  %v1939_v47 = vld [vmem:[#allocation2 + $0x4c8] sm:$0xff]  ;;  %v1940_v28 = vld [vmem:[#allocation2 + $0x4d0] sm:$0xff] }
 0x515   :  { %v2397_v52 = vadd.f32 %v2396_v46, %v2395_v20  ;;  %v2697_v63 = vrot.slane %v7240_v12, 2  ;;  %v2073_v31 = vmul.f32 %v1923_v32, %v6938_v26  ;;  %v2074_v3 = vmul.f32 %v1924_v14, %v7029_v8  ;;  %v1942_v14 = vld [vmem:[#allocation2 + $0x4e0] sm:$0xff]  ;;  %v1943_v46 = vld [vmem:[#allocation2 + $0x4e8] sm:$0xff]  ;;  %v1944_v53 = vld [vmem:[#allocation2 + $0x4f0] sm:$0xff] }
 0x516   :  { %v2075_v4 = vmul.f32 %v1925_v10, %v7070_v60  ;;  %v2076_v37 = vmul.f32 %v1926_v49, %v6932_v11  ;;  %v2077_v39 = vmul.f32 %v1927_v62, %v6938_v26  ;;  %v2078_v20 = vmul.f32 %v1928_v0, %v7029_v8 }
 0x517   :  { %v2398_v5 = vrot.slane %v2397_v52, 1  ;;  %v2698_v22 = vsel %vm1034_vm4, %v2697_v63, %v2696_v18  ;;  %v2079_v45 = vmul.f32 %v1929_v56, %v7070_v60  ;;  %v2080_v32 = vmul.f32 %v1930_v33, %v6932_v11  ;;  %v1945_v18 = vld [vmem:[#allocation2 + $0x4f8] sm:$0xff] }
 0x518   :  { %v2081_v10 = vmul.f32 %v1931_v17, %v6938_v26  ;;  %v2082_v49 = vmul.f32 %v1932_v42, %v7029_v8  ;;  %v2083_v62 = vmul.f32 %v1933_v16, %v7070_v60  ;;  %v2084_v0 = vmul.f32 %v1934_v48, %v6932_v11 }
 0x519   :  { %v2399_v43 = vadd.f32 %v2398_v5, %v2397_v52  ;;  %v2085_v63 = vmul.f32 %v1935_v40, %v6938_v26  ;;  %v2086_v25 = vmul.f32 %v1936_v54, %v7029_v8  ;;  %v2087_v56 = vmul.f32 %v1937_v30, %v7070_v60 }
 0x51a   :  { %v7266_v33 = vmul.f32 %v1938_v13, %v6932_v11  ;;  %v7269_v38 = vmul.f32 %v1939_v47, %v6938_v26  ;;  %v7272_v17 = vmul.f32 %v1940_v28, %v7029_v8  ;;  %v7275_v42 = vmul.f32 %v1941_v41, %v7070_v60 }
 0x51b   :  { %v7278_v48 = vadd.f32 %v7012_v35, %v2399_v43  ;;  %v7281_v52 = vmul.f32 %v1942_v14, %v6932_v11  ;;  %v7284_v16 = vmul.f32 %v1943_v46, %v6938_v26  ;;  %v7287_v13 = vmul.f32 %v1944_v53, %v7029_v8 }
 0x51c   :  { %v7290_v40 = vmul.f32 %v1945_v18, %v7070_v60  ;;  %v2192_v54 = vsel %vm155_vm0, %v7214_v58, 0.0  ;;  %v2193_v30 = vsel %vm155_vm0, %v7225_v57, 0.0  ;;  %v2195_v43 = vsel %vm155_vm0, %v7229_v23, 0.0 }
 0x51d   :  { %v2699_v5 = vrot.slane %v7278_v48, 1  ;;  %v2194_v47 = vadd.f32 %v2193_v30, %v2192_v54  ;;  %v2197_v28 = vsel %vm155_vm0, %v7234_v51, 0.0  ;;  %v2205_v41 = vsel %vm155_vm0, %v7237_v6, 0.0 }
 0x51e   :  { %v2206_v14 = vsel %vm155_vm0, %v2069_v29, 0.0  ;;  %v2208_v46 = vsel %vm155_vm0, %v2070_v36, 0.0  ;;  %v2210_v58 = vsel %vm155_vm0, %v2071_v19, 0.0  ;;  %v2218_v57 = vsel %vm155_vm0, %v2072_v21, 0.0 }
 0x51f   :  { %v2700_v53 = vsel %vm1037_vm5, %v2699_v5, %v2698_v22  ;;  %v2196_v23 = vadd.f32 %v2195_v43, %v2194_v47  ;;  %v2207_v18 = vadd.f32 %v2206_v14, %v2205_v41  ;;  %v2219_v54 = vsel %vm155_vm0, %v2073_v31, 0.0 }
 0x520   :  { %v2736_v30 = vsel %vm155_vm0, %v2700_v53, 0.0  ;;  %v2220_v51 = vadd.f32 %v2219_v54, %v2218_v57  ;;  %v2221_v1 = vsel %vm155_vm0, %v2074_v3, 0.0  ;;  %v2223_v6 = vsel %vm155_vm0, %v2075_v4, 0.0 }
 0x521   :  { %2737 = vadd.xlane.f32.xlu2 %v2736_v30  ;;  %v2198_v29 = vadd.f32 %v2197_v28, %v2196_v23  ;;  %v2209_v36 = vadd.f32 %v2208_v46, %v2207_v18  ;;  %v2231_v19 = vsel %vm155_vm0, %v2076_v37, 0.0  ;;  %v2232_v21 = vsel %vm155_vm0, %v2077_v39, 0.0 }
 0x522   :  { %v2222_v7 = vadd.f32 %v2221_v1, %v2220_v51  ;;  %v2233_v22 = vadd.f32 %v2232_v21, %v2231_v19  ;;  %v2234_v43 = vsel %vm155_vm0, %v2078_v20, 0.0  ;;  %v2236_v31 = vsel %vm155_vm0, %v2079_v45, 0.0 }
 0x523   :  { %v2199_v5 = vrot.slane %v2198_v29, 4  ;;  %v2211_v47 = vadd.f32 %v2210_v58, %v2209_v36  ;;  %v2244_v41 = vsel %vm155_vm0, %v2080_v32, 0.0  ;;  %v2245_v3 = vsel %vm155_vm0, %v2081_v10, 0.0 }
 0x524   :  { %v2224_v4 = vadd.f32 %v2223_v6, %v2222_v7  ;;  %v2235_v14 = vadd.f32 %v2234_v43, %v2233_v22  ;;  %v2246_v28 = vadd.f32 %v2245_v3, %v2244_v41  ;;  %v2247_v46 = vsel %vm155_vm0, %v2082_v49, 0.0 }
 0x525   :  { %v2200_v37 = vadd.f32 %v2199_v5, %v2198_v29  ;;  %v2212_v57 = vrot.slane %v2211_v47, 4  ;;  %v2249_v1 = vsel %vm155_vm0, %v2083_v62, 0.0  ;;  %v2257_v39 = vsel %vm155_vm0, %v2084_v0, 0.0 }
 0x526   :  { %v2225_v20 = vrot.slane %v2224_v4, 4  ;;  %v2237_v53 = vadd.f32 %v2236_v31, %v2235_v14  ;;  %v2248_v45 = vadd.f32 %v2247_v46, %v2246_v28  ;;  %v2258_v58 = vsel %vm155_vm0, %v2085_v63, 0.0 }
 0x527   :  { %v2201_v23 = vrot.slane %v2200_v37, 2  ;;  %v2213_v32 = vadd.f32 %v2212_v57, %v2211_v47  ;;  %v2259_v18 = vadd.f32 %v2258_v58, %v2257_v39  ;;  %v2260_v7 = vsel %vm155_vm0, %v2086_v25, 0.0 }
 0x528   :  { %v2226_v10 = vadd.f32 %v2225_v20, %v2224_v4  ;;  %v2238_v54 = vrot.slane %v2237_v53, 4  ;;  %v2250_v30 = vadd.f32 %v2249_v1, %v2248_v45  ;;  %v2262_v49 = vsel %vm155_vm0, %v2087_v56, 0.0 }
 0x529   :  { %v2202_v51 = vadd.f32 %v2201_v23, %v2200_v37  ;;  %v2214_v6 = vrot.slane %v2213_v32, 2  ;;  %v2261_v62 = vadd.f32 %v2260_v7, %v2259_v18  ;;  %v2270_v0 = vsel %vm155_vm0, %v7266_v33, 0.0  ;;  %v2010_v7 = vld [vmem:[#allocation2 + $0x700] sm:$0xff] }
 0x52a   :  { %v2227_v29 = vrot.slane %v2226_v10, 2  ;;  %v2239_v36 = vadd.f32 %v2238_v54, %v2237_v53  ;;  %v2251_v19 = vrot.slane %v2250_v30, 4  ;;  %v2271_v63 = vsel %vm155_vm0, %v7269_v38, 0.0 }
 0x52b   :  { %v2203_v21 = vrot.slane %v2202_v51, 1  ;;  %v2215_v22 = vadd.f32 %v2214_v6, %v2213_v32  ;;  %v2263_v25 = vadd.f32 %v2262_v49, %v2261_v62  ;;  %v2272_v43 = vadd.f32 %v2271_v63, %v2270_v0  ;;  %v2011_v6 = vld [vmem:[#allocation2 + $0x708] sm:$0xff] }
 0x52c   :  { %v2228_v31 = vadd.f32 %v2227_v29, %v2226_v10  ;;  %v2240_v5 = vrot.slane %v2239_v36, 2  ;;  %v2252_v47 = vadd.f32 %v2251_v19, %v2250_v30  ;;  %v2273_v56 = vsel %vm155_vm0, %v7272_v17, 0.0 }
 0x52d   :  { %v2204_v41 = vadd.f32 %v2203_v21, %v2202_v51  ;;  %v2216_v3 = vrot.slane %v2215_v22, 1  ;;  %v2264_v4 = vrot.slane %v2263_v25, 4  ;;  %v2274_v33 = vadd.f32 %v2273_v56, %v2272_v43  ;;  %v2012_v21 = vld [vmem:[#allocation2 + $0x710] sm:$0xff] }
 0x52e   :  { %v2229_v14 = vrot.slane %v2228_v31, 1  ;;  %v2241_v28 = vadd.f32 %v2240_v5, %v2239_v36  ;;  %v2253_v46 = vrot.slane %v2252_v47, 2  ;;  %v2275_v38 = vsel %vm155_vm0, %v7275_v42, 0.0 }
 0x52f   :  { %v2217_v37 = vadd.f32 %v2216_v3, %v2215_v22  ;;  %v2265_v57 = vadd.f32 %v2264_v4, %v2263_v25  ;;  %v2276_v1 = vadd.f32 %v2275_v38, %v2274_v33  ;;  %v2283_v39 = vsel %vm155_vm0, %v7281_v52, 0.0  ;;  %v2013_v22 = vld [vmem:[#allocation2 + $0x718] sm:$0xff]  ;;  %v2014_v4 = vld [vmem:[#allocation2 + $0x720] sm:$0xff]  ;;  %v2015_v33 = vld [vmem:[#allocation2 + $0x728] sm:$0xff] }
 0x530   :  { %v2230_v20 = vadd.f32 %v2229_v14, %v2228_v31  ;;  %v2242_v53 = vrot.slane %v2241_v28, 1  ;;  %v2254_v45 = vadd.f32 %v2253_v46, %v2252_v47  ;;  %v2284_v17 = vsel %vm155_vm0, %v7284_v16, 0.0  ;;  %v2016_v14 = vld [vmem:[#allocation2 + $0x730] sm:$0xff]  ;;  %v2017_v38 = vld [vmem:[#allocation2 + $0x738] sm:$0xff] }
 0x531   :  { %v2266_v58 = vrot.slane %v2265_v57, 2  ;;  %v2277_v23 = vrot.slane %v2276_v1, 4  ;;  %v2285_v32 = vadd.f32 %v2284_v17, %v2283_v39  ;;  %v2286_v18 = vsel %vm155_vm0, %v7287_v13, 0.0  ;;  %v2019_v17 = vld [vmem:[#allocation2 + $0x748] sm:$0xff] }
 0x532   :  { %v2243_v42 = vadd.f32 %v2242_v53, %v2241_v28  ;;  %v2255_v10 = vrot.slane %v2254_v45, 1  ;;  %v2288_v54 = vsel %vm155_vm0, %v7290_v40, 0.0  ;;  %v7341_v52 = vadd.f32 %v7012_v35, %v2204_v41 }
 0x533   :  { %v2267_v30 = vadd.f32 %v2266_v58, %v2265_v57  ;;  %v2278_v49 = vadd.f32 %v2277_v23, %v2276_v1  ;;  %v2287_v51 = vadd.f32 %v2286_v18, %v2285_v32  ;;  %v7344_v16 = vadd.f32 %v7012_v35, %v2217_v37  ;;  %v2018_v37 = vld [vmem:[#allocation2 + $0x740] sm:$0xff]  ;;  %v2020_v58 = vld [vmem:[#allocation2 + $0x750] sm:$0xff]  ;;  %v2021_v23 = vld [vmem:[#allocation2 + $0x758] sm:$0xff] }
 0x534   :  { %8679 = vst [vmem:[#allocation12_spill] sm:$0xff] %v7341_v52  ;;  %v2256_v62 = vadd.f32 %v2255_v10, %v2254_v45  ;;  %v7347_v0 = vadd.f32 %v7012_v35, %v2230_v20  ;;  %v7350_v13 = vadd.f32 %v7012_v35, %v2243_v42  ;;  %v7353_v29 = vmul.f32 %v2010_v7, %v6932_v11  ;;  %v2022_v18 = vld [vmem:[#allocation2 + $0x760] sm:$0xff] }
 0x535   :  { %8680 = vst [vmem:[#allocation13_spill] sm:$0xff] %v7344_v16  ;;  %v2268_v40 = vrot.slane %v2267_v30, 1  ;;  %v2279_v36 = vrot.slane %v2278_v49, 2  ;;  %v2289_v19 = vadd.f32 %v2288_v54, %v2287_v51  ;;  %v2673_v63 = vrot.slane %v7344_v16, 7  ;;  %v2026_v7 = vld [vmem:[#allocation2 + $0x780] sm:$0xff] }
 0x536   :  { %8681 = vst [vmem:[#allocation14_spill] sm:$0xff] %v7347_v0  ;;  %v7357_v25 = vadd.f32 %v7012_v35, %v2256_v62  ;;  %v2675_v43 = vrot.slane %v7347_v0, 6  ;;  %v2677_v31 = vrot.slane %v7350_v13, 5  ;;  %v7362_v5 = vmul.f32 %v2011_v6, %v6938_v26  ;;  %v2023_v6 = vld [vmem:[#allocation2 + $0x768] sm:$0xff]  ;;  %v2024_v62 = vld [vmem:[#allocation2 + $0x770] sm:$0xff] }
 0x537   :  { %8682 = vst [vmem:[#allocation15_spill] sm:$0xff] %v7350_v13  ;;  %v2269_v47 = vadd.f32 %v2268_v40, %v2267_v30  ;;  %v2280_v56 = vadd.f32 %v2279_v36, %v2278_v49  ;;  %v2290_v41 = vrot.slane %v2289_v19, 4  ;;  %v2674_v3 = vsel %vm1019_vm14, %v2673_v63, %v7341_v52  ;;  %v2025_v40 = vld [vmem:[#allocation2 + $0x778] sm:$0xff]  ;;  %v2028_v63 = vld [vmem:[#allocation2 + $0x790] sm:$0xff] }
 0x538   :  { %8683 = vst [vmem:[#allocation16_spill] sm:$0xff] %v7357_v25  ;;  %v2676_v28 = vsel %vm1022_vm15, %v2675_v43, %v2674_v3  ;;  %v2679_v46 = vrot.slane %v7357_v25, 4  ;;  %v7369_v57 = vmul.f32 %v2012_v21, %v7029_v8  ;;  %v7372_v1 = vmul.f32 %v2013_v22, %v7070_v60  ;;  %v2030_v21 = vld [vmem:[#allocation2 + $0x7a0] sm:$0xff]  ;;  %v2040_v25 = vld [vmem:[#allocation2 + $0x7f0] sm:$0xff]  ;;  %v2041_v13 = vld [vmem:[#allocation2 + $0x7f8] sm:$0xff] }
 0x539   :  { %v2281_v39 = vrot.slane %v2280_v56, 1  ;;  %v2291_v20 = vadd.f32 %v2290_v41, %v2289_v19  ;;  %v7375_v53 = vadd.f32 %v7012_v35, %v2269_v47  ;;  %v2678_v45 = vsel %vm1025_vm1, %v2677_v31, %v2676_v28  ;;  %v2027_v19 = vld [vmem:[#allocation2 + $0x788] sm:$0xff] }
 0x53a   :  { %v2680_v32 = vsel %vm1028_vm2, %v2679_v46, %v2678_v45  ;;  %v7380_v42 = vmul.f32 %v2014_v4, %v6932_v11  ;;  %v7383_v10 = vmul.f32 %v2015_v33, %v6938_v26  ;;  %v7386_v54 = vmul.f32 %v2016_v14, %v7029_v8  ;;  %v2029_v4 = vld [vmem:[#allocation2 + $0x798] sm:$0xff]  ;;  %v2031_v33 = vld [vmem:[#allocation2 + $0x7a8] sm:$0xff]  ;;  %v2032_v14 = vld [vmem:[#allocation2 + $0x7b0] sm:$0xff] }
 0x53b   :  { %8684 = vst [vmem:[#allocation17_spill] sm:$0xff] %v7375_v53  ;;  %v2282_v30 = vadd.f32 %v2281_v39, %v2280_v56  ;;  %v2292_v49 = vrot.slane %v2291_v20, 2  ;;  %v2681_v51 = vrot.slane %v7375_v53, 3  ;;  %v2167_v36 = vmul.f32 %v2017_v38, %v7070_v60  ;;  %v2033_v46 = vld [vmem:[#allocation2 + $0x7b8] sm:$0xff]  ;;  %v2034_v38 = vld [vmem:[#allocation2 + $0x7c0] sm:$0xff]  ;;  %v2039_v53 = vld [vmem:[#allocation2 + $0x7e8] sm:$0xff] }
 0x53c   :  { %v2168_v22 = vmul.f32 %v2018_v37, %v6932_v11  ;;  %v2169_v43 = vmul.f32 %v2019_v17, %v6938_v26  ;;  %v2170_v31 = vmul.f32 %v2020_v58, %v7029_v8  ;;  %v2171_v47 = vmul.f32 %v2021_v23, %v7070_v60  ;;  %v2038_v37 = vld [vmem:[#allocation2 + $0x7e0] sm:$0xff] }
 0x53d   :  { %v2293_v56 = vadd.f32 %v2292_v49, %v2291_v20  ;;  %v7395_v41 = vadd.f32 %v7012_v35, %v2282_v30  ;;  %v2682_v3 = vsel %vm1031_vm3, %v2681_v51, %v2680_v32  ;;  %v2172_v28 = vmul.f32 %v2022_v18, %v6932_v11  ;;  %v2035_v32 = vld [vmem:[#allocation2 + $0x7c8] sm:$0xff]  ;;  %v2036_v30 = vld [vmem:[#allocation2 + $0x7d0] sm:$0xff]  ;;  %v2037_v49 = vld [vmem:[#allocation2 + $0x7d8] sm:$0xff] }
 0x53e   :  { %v2173_v39 = vmul.f32 %v2023_v6, %v6938_v26  ;;  %v2174_v45 = vmul.f32 %v2024_v62, %v7029_v8  ;;  %v2175_v17 = vmul.f32 %v2025_v40, %v7070_v60  ;;  %v2176_v20 = vmul.f32 %v2026_v7, %v6932_v11 }
 0x53f   :  { %8685 = vst [vmem:[#allocation18_spill] sm:$0xff] %v7395_v41  ;;  %v2294_v58 = vrot.slane %v2293_v56, 1  ;;  %v2683_v23 = vrot.slane %v7395_v41, 2  ;;  %v2177_v51 = vmul.f32 %v2027_v19, %v6938_v26  ;;  %v2178_v18 = vmul.f32 %v2028_v63, %v7029_v8 }
 0x540   :  { %v2179_v6 = vmul.f32 %v2029_v4, %v7070_v60  ;;  %v2180_v62 = vmul.f32 %v2030_v21, %v6932_v11  ;;  %v2181_v40 = vmul.f32 %v2031_v33, %v6938_v26  ;;  %v2182_v7 = vmul.f32 %v2032_v14, %v7029_v8 }
 0x541   :  { %v2295_v0 = vadd.f32 %v2294_v58, %v2293_v56  ;;  %v2684_v41 = vsel %vm1034_vm4, %v2683_v23, %v2682_v3  ;;  %v2183_v16 = vmul.f32 %v2033_v46, %v7070_v60  ;;  %v7413_v19 = vmul.f32 %v2034_v38, %v6932_v11 }
 0x542   :  { %v7416_v63 = vmul.f32 %v2035_v32, %v6938_v26  ;;  %v7419_v52 = vmul.f32 %v2036_v30, %v7029_v8  ;;  %v7422_v21 = vmul.f32 %v2037_v49, %v7070_v60  ;;  %v7425_v4 = vmul.f32 %v2038_v37, %v6932_v11 }
 0x543   :  { %v7428_v56 = vadd.f32 %v7012_v35, %v2295_v0  ;;  %v7431_v3 = vmul.f32 %v2039_v53, %v6938_v26  ;;  %v7434_v33 = vmul.f32 %v2040_v25, %v7029_v8  ;;  %v7437_v14 = vmul.f32 %v2041_v13, %v7070_v60 }
 0x544   :  { %v2504_v46 = vsel %vm155_vm0, %v7353_v29, 0.0  ;;  %v2505_v38 = vsel %vm155_vm0, %v7362_v5, 0.0  ;;  %v2507_v37 = vsel %vm155_vm0, %v7369_v57, 0.0  ;;  %v2509_v0 = vsel %vm155_vm0, %v7372_v1, 0.0 }
 0x545   :  { %v2685_v53 = vrot.slane %v7428_v56, 1  ;;  %v2506_v58 = vadd.f32 %v2505_v38, %v2504_v46  ;;  %v2517_v25 = vsel %vm155_vm0, %v7380_v42, 0.0  ;;  %v2518_v13 = vsel %vm155_vm0, %v7383_v10, 0.0 }
 0x546   :  { %v2519_v23 = vadd.f32 %v2518_v13, %v2517_v25  ;;  %v2520_v29 = vsel %vm155_vm0, %v7386_v54, 0.0  ;;  %v2522_v5 = vsel %vm155_vm0, %v2167_v36, 0.0  ;;  %v2530_v57 = vsel %vm155_vm0, %v2168_v22, 0.0 }
 0x547   :  { %v2686_v32 = vsel %vm1037_vm5, %v2685_v53, %v2684_v41  ;;  %v2508_v1 = vadd.f32 %v2507_v37, %v2506_v58  ;;  %v2531_v30 = vsel %vm155_vm0, %v2169_v43, 0.0  ;;  %v2533_v49 = vsel %vm155_vm0, %v2170_v31, 0.0 }
 0x548   :  { %v2733_v42 = vsel %vm155_vm0, %v2686_v32, 0.0  ;;  %v2521_v46 = vadd.f32 %v2520_v29, %v2519_v23  ;;  %v2532_v38 = vadd.f32 %v2531_v30, %v2530_v57  ;;  %v2535_v10 = vsel %vm155_vm0, %v2171_v47, 0.0 }
 0x549   :  { %2734 = vadd.xlane.f32.xlu1 %v2733_v42  ;;  %v2510_v25 = vadd.f32 %v2509_v0, %v2508_v1  ;;  %v2543_v54 = vsel %vm155_vm0, %v2172_v28, 0.0  ;;  %v2544_v36 = vsel %vm155_vm0, %v2173_v39, 0.0  ;;  %v2546_v22 = vsel %vm155_vm0, %v2174_v45, 0.0 }
 0x54a   :  { %v2523_v41 = vadd.f32 %v2522_v5, %v2521_v46  ;;  %v2534_v37 = vadd.f32 %v2533_v49, %v2532_v38  ;;  %v2545_v53 = vadd.f32 %v2544_v36, %v2543_v54  ;;  %v2548_v43 = vsel %vm155_vm0, %v2175_v17, 0.0 }
 0x54b   :  { %v2511_v31 = vrot.slane %v2510_v25, 4  ;;  %v2556_v58 = vsel %vm155_vm0, %v2176_v20, 0.0  ;;  %v2557_v13 = vsel %vm155_vm0, %v2177_v51, 0.0  ;;  %v2559_v47 = vsel %vm155_vm0, %v2178_v18, 0.0 }
 0x54c   :  { %v2524_v23 = vrot.slane %v2523_v41, 4  ;;  %v2536_v0 = vadd.f32 %v2535_v10, %v2534_v37  ;;  %v2547_v29 = vadd.f32 %v2546_v22, %v2545_v53  ;;  %v2558_v28 = vadd.f32 %v2557_v13, %v2556_v58 }
 0x54d   :  { %v2512_v57 = vadd.f32 %v2511_v31, %v2510_v25  ;;  %v2561_v39 = vsel %vm155_vm0, %v2179_v6, 0.0  ;;  %v2569_v45 = vsel %vm155_vm0, %v2180_v62, 0.0  ;;  %v2570_v5 = vsel %vm155_vm0, %v2181_v40, 0.0 }
 0x54e   :  { %v2525_v32 = vadd.f32 %v2524_v23, %v2523_v41  ;;  %v2537_v17 = vrot.slane %v2536_v0, 4  ;;  %v2549_v1 = vadd.f32 %v2548_v43, %v2547_v29  ;;  %v2560_v30 = vadd.f32 %v2559_v47, %v2558_v28 }
 0x54f   :  { %v2513_v20 = vrot.slane %v2512_v57, 2  ;;  %v2571_v49 = vadd.f32 %v2570_v5, %v2569_v45  ;;  %v2572_v51 = vsel %vm155_vm0, %v2182_v7, 0.0  ;;  %v2574_v18 = vsel %vm155_vm0, %v2183_v16, 0.0 }
 0x550   :  { %v2526_v42 = vrot.slane %v2525_v32, 2  ;;  %v2538_v46 = vadd.f32 %v2537_v17, %v2536_v0  ;;  %v2550_v38 = vrot.slane %v2549_v1, 4  ;;  %v2562_v10 = vadd.f32 %v2561_v39, %v2560_v30 }
 0x551   :  { %v2514_v25 = vadd.f32 %v2513_v20, %v2512_v57  ;;  %v2573_v6 = vadd.f32 %v2572_v51, %v2571_v49  ;;  %v2582_v62 = vsel %vm155_vm0, %v7413_v19, 0.0  ;;  %v2583_v40 = vsel %vm155_vm0, %v7416_v63, 0.0 }
 0x552   :  { %v2527_v54 = vadd.f32 %v2526_v42, %v2525_v32  ;;  %v2539_v36 = vrot.slane %v2538_v46, 2  ;;  %v2551_v22 = vadd.f32 %v2550_v38, %v2549_v1  ;;  %v2563_v41 = vrot.slane %v2562_v10, 4 }
 0x553   :  { %v2515_v37 = vrot.slane %v2514_v25, 1  ;;  %v2575_v7 = vadd.f32 %v2574_v18, %v2573_v6  ;;  %v2584_v53 = vadd.f32 %v2583_v40, %v2582_v62  ;;  %v2585_v16 = vsel %vm155_vm0, %v7419_v52, 0.0 }
 0x554   :  { %v2528_v43 = vrot.slane %v2527_v54, 1  ;;  %v2540_v31 = vadd.f32 %v2539_v36, %v2538_v46  ;;  %v2552_v58 = vrot.slane %v2551_v22, 2  ;;  %v2564_v13 = vadd.f32 %v2563_v41, %v2562_v10 }
 0x555   :  { %v2516_v47 = vadd.f32 %v2515_v37, %v2514_v25  ;;  %v2576_v23 = vrot.slane %v2575_v7, 4  ;;  %v2586_v19 = vadd.f32 %v2585_v16, %v2584_v53  ;;  %v2587_v63 = vsel %vm155_vm0, %v7422_v21, 0.0 }
 0x556   :  { %v2529_v0 = vadd.f32 %v2528_v43, %v2527_v54  ;;  %v2541_v29 = vrot.slane %v2540_v31, 1  ;;  %v2553_v28 = vadd.f32 %v2552_v58, %v2551_v22  ;;  %v2565_v57 = vrot.slane %v2564_v13, 2 }
 0x557   :  { %v2577_v39 = vadd.f32 %v2576_v23, %v2575_v7  ;;  %v2588_v45 = vadd.f32 %v2587_v63, %v2586_v19  ;;  %v2595_v5 = vsel %vm155_vm0, %v7425_v4, 0.0  ;;  %v2596_v52 = vsel %vm155_vm0, %v7431_v3, 0.0 }
 0x558   :  { %v2542_v32 = vadd.f32 %v2541_v29, %v2540_v31  ;;  %v2554_v17 = vrot.slane %v2553_v28, 1  ;;  %v2566_v1 = vadd.f32 %v2565_v57, %v2564_v13  ;;  %v2597_v30 = vadd.f32 %v2596_v52, %v2595_v5 }
 0x559   :  { %v2578_v20 = vrot.slane %v2577_v39, 2  ;;  %v2589_v49 = vrot.slane %v2588_v45, 4  ;;  %v2598_v21 = vsel %vm155_vm0, %v7434_v33, 0.0  ;;  %v2600_v51 = vsel %vm155_vm0, %v7437_v14, 0.0 }
 0x55a   :  { %v2555_v18 = vadd.f32 %v2554_v17, %v2553_v28  ;;  %v2567_v42 = vrot.slane %v2566_v1, 1  ;;  %v2599_v46 = vadd.f32 %v2598_v21, %v2597_v30  ;;  %v7490_v10 = vadd.f32 %v7012_v35, %v2529_v0 }
 0x55b   :  { %v2579_v38 = vadd.f32 %v2578_v20, %v2577_v39  ;;  %v2590_v4 = vadd.f32 %v2589_v49, %v2588_v45  ;;  %v7493_v3 = vadd.f32 %v7012_v35, %v2542_v32  ;;  %v7496_v62 = vadd.f32 %v7012_v35, %v2516_v47 }
 0x55c   :  { %v2568_v25 = vadd.f32 %v2567_v42, %v2566_v1  ;;  %v2601_v6 = vadd.f32 %v2600_v51, %v2599_v46  ;;  %v7499_v33 = vadd.f32 %v7012_v35, %v2555_v18  ;;  %v2715_v54 = vrot.slane %v7490_v10, 7 }
 0x55d   :  { %v2580_v14 = vrot.slane %v2579_v38, 1  ;;  %v2591_v40 = vrot.slane %v2590_v4, 2  ;;  %v2717_v36 = vrot.slane %v7493_v3, 6 }
 0x55e   :  { %v2602_v22 = vrot.slane %v2601_v6, 4  ;;  %v7504_v7 = vadd.f32 %v7012_v35, %v2568_v25  ;;  %v2716_v53 = vsel %vm1019_vm14, %v2715_v54, %v7496_v62  ;;  %v2719_v31 = vrot.slane %v7499_v33, 5 }
 0x55f   :  { %v2581_v41 = vadd.f32 %v2580_v14, %v2579_v38  ;;  %v2592_v37 = vadd.f32 %v2591_v40, %v2590_v4  ;;  %v2718_v43 = vsel %vm1022_vm15, %v2717_v36, %v2716_v53 }
 0x560   :  { %v2603_v16 = vadd.f32 %v2602_v22, %v2601_v6  ;;  %v2720_v23 = vsel %vm1025_vm1, %v2719_v31, %v2718_v43  ;;  %v2721_v63 = vrot.slane %v7504_v7, 4 }
 0x561   :  { %v2593_v58 = vrot.slane %v2592_v37, 1  ;;  %v7511_v47 = vadd.f32 %v7012_v35, %v2581_v41 }
 0x562   :  { %v2604_v13 = vrot.slane %v2603_v16, 2  ;;  %v2722_v28 = vsel %vm1028_vm2, %v2721_v63, %v2720_v23 }
 0x563   :  { %v2594_v19 = vadd.f32 %v2593_v58, %v2592_v37  ;;  %v2723_v39 = vrot.slane %v7511_v47, 3 }
 0x564   :  { %v2605_v0 = vadd.f32 %v2604_v13, %v2603_v16 }
 0x565   :  { %v7516_v29 = vadd.f32 %v7012_v35, %v2594_v19  ;;  %v2724_v5 = vsel %vm1031_vm3, %v2723_v39, %v2722_v28 }
 0x566   :  { %v2606_v57 = vrot.slane %v2605_v0, 1 }
 0x567   :  { %v2725_v52 = vrot.slane %v7516_v29, 2 }
 0x568   :  { %v2607_v45 = vadd.f32 %v2606_v57, %v2605_v0 }
 0x569   :  { %v2726_v17 = vsel %vm1034_vm4, %v2725_v52, %v2724_v5 }
 0x56a   :  { %v7523_v32 = vadd.f32 %v7012_v35, %v2607_v45 }
 0x56c   :  { %v2727_v1 = vrot.slane %v7523_v32, 1 }
 0x56e   :  { %v2728_v30 = vsel %vm1037_vm5, %v2727_v1, %v2726_v17 }
 0x56f   :  { %v2742_v20 = vsel %vm155_vm0, %v2728_v30, 0.0 }
 0x570   :  { %2743 = vadd.xlane.f32.xlu1 %v2742_v20  ;;  %v2741_v21 = vpop.xlane.xlu0 %2740 }
 0x571   :  { %v2747_v18 = vmul.f32 %v2741_v21, %v5816_v34 }
 0x573   :  { %v2767_v23 = vrot.slane %v2747_v18, 1  ;;  %v2768_v28 = vrot.slane %v2747_v18, 2  ;;  %v2769_v39 = vrot.slane %v2747_v18, 3  ;;  %v2770_v45 = vrot.slane %v2747_v18, 4 }
 0x574   :  { %v2771_v5 = vrot.slane %v2747_v18, 5  ;;  %v2772_v17 = vrot.slane %v2747_v18, 6  ;;  %v2773_v1 = vrot.slane %v2747_v18, 7  ;;  %v7577_v30 = vsub.f32 %v7108_v59, %v2747_v18  ;;  %v8688_v59 = vld [vmem:[#allocation10_spill] sm:$0xff] }
 0x575   :  { %v7584_v21 = vsub.f32 %v7114_v27, %v2768_v28 }
 0x576   :  { %v7597_v18 = vsub.f32 %v8688_v59, %v2772_v17  ;;  %v8691_v59 = vld [vmem:[#allocation13_spill] sm:$0xff] }
 0x594   :  { %v2738_v49 = vpop.xlane.xlu2 %2737 }
 0x595   :  { %v2746_v51 = vmul.f32 %v2738_v49, %v5816_v34  ;;  %v7581_v49 = vsub.f32 %v7111_v9, %v2767_v23 }
 0x597   :  { %v2760_v46 = vrot.slane %v2746_v51, 1  ;;  %v2761_v38 = vrot.slane %v2746_v51, 2  ;;  %v2762_v35 = vrot.slane %v2746_v51, 3  ;;  %v2763_v4 = vrot.slane %v2746_v51, 4 }
 0x598   :  { %v2764_v25 = vrot.slane %v2746_v51, 5  ;;  %v2765_v6 = vrot.slane %v2746_v51, 6  ;;  %v2766_v14 = vrot.slane %v2746_v51, 7  ;;  %v7532_v40 = vsub.f32 %v7198_v50, %v2746_v51 }
 0x599   :  { %v7535_v54 = vsub.f32 %v7201_v61, %v2760_v46  ;;  %v7538_v36 = vsub.f32 %v7204_v44, %v2761_v38  ;;  %v7541_v22 = vsub.f32 %v7207_v15, %v2762_v35  ;;  %v7544_v41 = vsub.f32 %v7210_v24, %v2763_v4  ;;  %v8686_v46 = vld [vmem:[#allocation8_spill] sm:$0xff]  ;;  %v8687_v35 = vld [vmem:[#allocation9_spill] sm:$0xff] }
 0x59a   :  { %v7550_v53 = vsub.f32 %v7219_v2, %v2764_v25  ;;  %v7553_v50 = vsub.f32 %v7240_v12, %v2765_v6  ;;  %v7556_v61 = vsub.f32 %v7278_v48, %v2766_v14  ;;  %v2853_v2 = vmul.f32 %v7532_v40, %v7532_v40  ;;  %v8689_v6 = vld [vmem:[#allocation11_spill] sm:$0xff] }
 0x59b   :  { %v2854_v44 = vmul.f32 %v7535_v54, %v7535_v54  ;;  %v2855_v15 = vmul.f32 %v7538_v36, %v7538_v36  ;;  %v2856_v24 = vmul.f32 %v7541_v22, %v7541_v22  ;;  %v2857_v16 = vmul.f32 %v7544_v41, %v7544_v41 }
 0x59c   :  { %v2858_v12 = vmul.f32 %v7550_v53, %v7550_v53  ;;  %v2859_v48 = vmul.f32 %v7553_v50, %v7553_v50  ;;  %v2860_v43 = vmul.f32 %v7556_v61, %v7556_v61  ;;  %v7587_v51 = vsub.f32 %v7117_v55, %v2769_v39 }
 0x59d   :  { %v2923_v31 = vrot.slane %v2854_v44, 7  ;;  %v2925_v58 = vrot.slane %v2855_v15, 6  ;;  %v2927_v13 = vrot.slane %v2856_v24, 5  ;;  %v2929_v19 = vrot.slane %v2857_v16, 4 }
 0x59e   :  { %v2931_v63 = vrot.slane %v2858_v12, 3  ;;  %v2933_v0 = vrot.slane %v2859_v48, 2  ;;  %v7591_v38 = vsub.f32 %v8686_v46, %v2770_v45  ;;  %v7594_v4 = vsub.f32 %v8687_v35, %v2771_v5  ;;  %v8690_v46 = vld [vmem:[#allocation12_spill] sm:$0xff] }
 0x59f   :  { %v2924_v57 = vsel %vm1019_vm14, %v2923_v31, %v2853_v2  ;;  %v2935_v25 = vrot.slane %v2860_v43, 1  ;;  %v7601_v27 = vsub.f32 %v8689_v6, %v2773_v1  ;;  %v2862_v55 = vmul.f32 %v7581_v49, %v7581_v49  ;;  %v8692_v6 = vld [vmem:[#allocation14_spill] sm:$0xff] }
 0x5a0   :  { %v2926_v52 = vsel %vm1022_vm15, %v2925_v58, %v2924_v57  ;;  %v2863_v44 = vmul.f32 %v7584_v21, %v7584_v21  ;;  %v2864_v15 = vmul.f32 %v7587_v51, %v7587_v51  ;;  %v2865_v24 = vmul.f32 %v7591_v38, %v7591_v38 }
 0x5a1   :  { %v2928_v20 = vsel %vm1025_vm1, %v2927_v13, %v2926_v52  ;;  %v2861_v2 = vmul.f32 %v7577_v30, %v7577_v30  ;;  %v2866_v12 = vmul.f32 %v7594_v4, %v7594_v4  ;;  %v2867_v48 = vmul.f32 %v7597_v18, %v7597_v18 }
 0x5a2   :  { %v2868_v31 = vmul.f32 %v7601_v27, %v7601_v27  ;;  %v2937_v58 = vrot.slane %v2862_v55, 7  ;;  %v2939_v13 = vrot.slane %v2863_v44, 6  ;;  %v2941_v23 = vrot.slane %v2864_v15, 5  ;;  %v8694_v15 = vld [vmem:[#allocation16_spill] sm:$0xff] }
 0x5a4   :  { %v2938_v28 = vsel %vm1019_vm14, %v2937_v58, %v2861_v2  ;;  %v2949_v2 = vrot.slane %v2868_v31, 1 }
 0x5a5   :  { %v2940_v5 = vsel %vm1022_vm15, %v2939_v13, %v2938_v28 }
 0x5bc   :  { %v2735_v42 = vpop.xlane.xlu1 %2734 }
 0x5bd   :  { %v7547_v37 = vmul.f32 %v2735_v42, %v5816_v34  ;;  %v2930_v42 = vsel %vm1028_vm2, %v2929_v19, %v2928_v20  ;;  %v2943_v19 = vrot.slane %v2865_v24, 4  ;;  %v2942_v20 = vsel %vm1025_vm1, %v2941_v23, %v2940_v5 }
 0x5be   :  { %v2932_v9 = vsel %vm1031_vm3, %v2931_v63, %v2930_v42  ;;  %v2945_v63 = vrot.slane %v2866_v12, 3  ;;  %v8695_v12 = vld [vmem:[#allocation17_spill] sm:$0xff] }
 0x5bf   :  { %v2934_v14 = vsel %vm1034_vm4, %v2933_v0, %v2932_v9  ;;  %v2947_v0 = vrot.slane %v2867_v48, 2  ;;  %v2753_v57 = vrot.slane %v7547_v37, 1  ;;  %v2754_v39 = vrot.slane %v7547_v37, 2  ;;  %v8696_v48 = vld [vmem:[#allocation18_spill] sm:$0xff] }
 0x5c0   :  { %v2936_v16 = vsel %vm1037_vm5, %v2935_v25, %v2934_v14  ;;  %v2755_v45 = vrot.slane %v7547_v37, 3  ;;  %v2756_v52 = vrot.slane %v7547_v37, 4  ;;  %v2757_v17 = vrot.slane %v7547_v37, 5  ;;  %v8693_v14 = vld [vmem:[#allocation15_spill] sm:$0xff] }
 0x5c1   :  { %v2972_v43 = vsel %vm155_vm0, %v2936_v16, 0.0  ;;  %v2758_v1 = vrot.slane %v7547_v37, 6  ;;  %v2759_v42 = vrot.slane %v7547_v37, 7  ;;  %v7634_v35 = vsub.f32 %v8690_v46, %v7547_v37 }
 0x5c2   :  { %2973 = vadd.xlane.f32.xlu0 %v2972_v43  ;;  %v7637_v9 = vsub.f32 %v8691_v59, %v2753_v57  ;;  %v2944_v25 = vsel %vm1028_vm2, %v2943_v19, %v2942_v20  ;;  %v7641_v55 = vsub.f32 %v8692_v6, %v2754_v39  ;;  %v7644_v44 = vsub.f32 %v8693_v14, %v2755_v45 }
 0x5c3   :  { %v7647_v24 = vsub.f32 %v8694_v15, %v2756_v52  ;;  %v2946_v16 = vsel %vm1031_vm3, %v2945_v63, %v2944_v25  ;;  %v7651_v37 = vsub.f32 %v8695_v12, %v2757_v17  ;;  %v7654_v43 = vsub.f32 %v8696_v48, %v2758_v1 }
 0x5c4   :  { %v2948_v58 = vsel %vm1034_vm4, %v2947_v0, %v2946_v16  ;;  %v7658_v13 = vsub.f32 %v7428_v56, %v2759_v42  ;;  %v2846_v23 = vmul.f32 %v7637_v9, %v7637_v9  ;;  %v2847_v19 = vmul.f32 %v7641_v55, %v7641_v55 }
 0x5c5   :  { %v2950_v63 = vsel %vm1037_vm5, %v2949_v2, %v2948_v58  ;;  %v2848_v31 = vmul.f32 %v7644_v44, %v7644_v44  ;;  %v2849_v28 = vmul.f32 %v7647_v24, %v7647_v24  ;;  %v2845_v56 = vmul.f32 %v7634_v35, %v7634_v35 }
 0x5c6   :  { %v2975_v57 = vsel %vm155_vm0, %v2950_v63, 0.0  ;;  %v2850_v0 = vmul.f32 %v7651_v37, %v7651_v37  ;;  %v2909_v39 = vrot.slane %v2846_v23, 7  ;;  %v2851_v45 = vmul.f32 %v7654_v43, %v7654_v43 }
 0x5c7   :  { %2976 = vadd.xlane.f32.xlu1 %v2975_v57  ;;  %v2911_v5 = vrot.slane %v2847_v19, 6  ;;  %v2852_v52 = vmul.f32 %v7658_v13, %v7658_v13  ;;  %v2913_v1 = vrot.slane %v2848_v31, 5  ;;  %v2915_v42 = vrot.slane %v2849_v28, 4 }
 0x5c8   :  { %v2910_v17 = vsel %vm1019_vm14, %v2909_v39, %v2845_v56  ;;  %v2917_v59 = vrot.slane %v2850_v0, 3  ;;  %v2919_v6 = vrot.slane %v2851_v45, 2 }
 0x5c9   :  { %v2912_v20 = vsel %vm1022_vm15, %v2911_v5, %v2910_v17  ;;  %v2921_v15 = vrot.slane %v2852_v52, 1 }
 0x5ca   :  { %v2914_v46 = vsel %vm1025_vm1, %v2913_v1, %v2912_v20 }
 0x5cb   :  { %v2916_v25 = vsel %vm1028_vm2, %v2915_v42, %v2914_v46 }
 0x5cc   :  { %v2918_v14 = vsel %vm1031_vm3, %v2917_v59, %v2916_v25 }
 0x5cd   :  { %v2920_v2 = vsel %vm1034_vm4, %v2919_v6, %v2918_v14 }
 0x5ce   :  { %v2922_v48 = vsel %vm1037_vm5, %v2921_v15, %v2920_v2 }
 0x5cf   :  { %v2969_v58 = vsel %vm155_vm0, %v2922_v48, 0.0 }
 0x5d0   :  { %2970 = vadd.xlane.f32.xlu2 %v2969_v58 }
 0x5e3   :  { %v2744_v16 = vpop.xlane.xlu1 %2743 }
 0x5e4   :  { %v2748_v12 = vmul.f32 %v2744_v16, %v5816_v34 }
 0x5e6   :  { %v2774_v23 = vrot.slane %v2748_v12, 1  ;;  %v2775_v19 = vrot.slane %v2748_v12, 2  ;;  %v2776_v63 = vrot.slane %v2748_v12, 3  ;;  %v2777_v31 = vrot.slane %v2748_v12, 4 }
 0x5e7   :  { %v2778_v28 = vrot.slane %v2748_v12, 5  ;;  %v2779_v57 = vrot.slane %v2748_v12, 6  ;;  %v2780_v56 = vrot.slane %v2748_v12, 7  ;;  %v7688_v0 = vsub.f32 %v7496_v62, %v2748_v12 }
 0x5e8   :  { %v7691_v39 = vsub.f32 %v7490_v10, %v2774_v23  ;;  %v7694_v45 = vsub.f32 %v7493_v3, %v2775_v19  ;;  %v7697_v5 = vsub.f32 %v7499_v33, %v2776_v63  ;;  %v7700_v52 = vsub.f32 %v7504_v7, %v2777_v31 }
 0x5e9   :  { %v7703_v17 = vsub.f32 %v7511_v47, %v2778_v28  ;;  %v7706_v1 = vsub.f32 %v7516_v29, %v2779_v57  ;;  %v7709_v62 = vsub.f32 %v7523_v32, %v2780_v56  ;;  %v2869_v47 = vmul.f32 %v7688_v0, %v7688_v0 }
 0x5ea   :  { %v2870_v10 = vmul.f32 %v7691_v39, %v7691_v39  ;;  %v2871_v3 = vmul.f32 %v7694_v45, %v7694_v45  ;;  %v2872_v33 = vmul.f32 %v7697_v5, %v7697_v5  ;;  %v2873_v7 = vmul.f32 %v7700_v52, %v7700_v52 }
 0x5eb   :  { %v2874_v29 = vmul.f32 %v7703_v17, %v7703_v17  ;;  %v2875_v42 = vmul.f32 %v7706_v1, %v7706_v1  ;;  %v2876_v46 = vmul.f32 %v7709_v62, %v7709_v62 }
 0x5ec   :  { %v2951_v32 = vrot.slane %v2870_v10, 7  ;;  %v2953_v20 = vrot.slane %v2871_v3, 6  ;;  %v2955_v25 = vrot.slane %v2872_v33, 5  ;;  %v2957_v14 = vrot.slane %v2873_v7, 4 }
 0x5ed   :  { %v2959_v16 = vrot.slane %v2874_v29, 3  ;;  %v2961_v12 = vrot.slane %v2875_v42, 2  ;;  %v2963_v58 = vrot.slane %v2876_v46, 1 }
 0x5ee   :  { %v2952_v59 = vsel %vm1019_vm14, %v2951_v32, %v2869_v47 }
 0x5ef   :  { %v2954_v6 = vsel %vm1022_vm15, %v2953_v20, %v2952_v59 }
 0x5f0   :  { %v2956_v15 = vsel %vm1025_vm1, %v2955_v25, %v2954_v6 }
 0x5f1   :  { %v2958_v2 = vsel %vm1028_vm2, %v2957_v14, %v2956_v15 }
 0x5f2   :  { %v2960_v48 = vsel %vm1031_vm3, %v2959_v16, %v2958_v2 }
 0x5f3   :  { %v2962_v23 = vsel %vm1034_vm4, %v2961_v12, %v2960_v48 }
 0x5f4   :  { %v2964_v19 = vsel %vm1037_vm5, %v2963_v58, %v2962_v23  ;;  %v5451_v58 = vld [vmem:[%s8620_s4 + $0x18] sm:$0xff] }
 0x5f5   :  { %v2978_v63 = vsel %vm155_vm0, %v2964_v19, 0.0  ;;  %3370 = vmatpush.bf16.msra.mxu3 %v5451_v58 }
 0x5f6   :  { %2979 = vadd.xlane.f32.xlu2 %v2978_v63 }
 0x635   :  { %v2974_v31 = vpop.xlane.xlu0 %2973 }
 0x636   :  { %v2982_v28 = vmul.f32 %v2974_v31, %v5816_v34 }
 0x638   :  { %v2986_v57 = vadd.f32 1e-06, %v2982_v28 }
 0x63a   :  { %5579 = vrsqrt.f32 %v2986_v57  ;;  %v2977_v3 = vpop.xlane.xlu1 %2976  ;;  %vm3005_vm7 = vweird.f32 %v2986_v57 }
 0x63b   :  { %v2983_v33 = vmul.f32 %v2977_v3, %v5816_v34 }
 0x63d   :  { %v2987_v47 = vadd.f32 1e-06, %v2983_v33  ;;  %v5450_v33 = vld [vmem:[%s8620_s4 + $0x10] sm:$0xff] }
 0x63e   :  { %3371 = vmatpush.bf16.msra.mxu3 %v5450_v33 }
 0x63f   :  { %5581 = vrsqrt.f32 %v2987_v47  ;;  %vm3015_vm10 = vweird.f32 %v2987_v47 }
 0x640   :  { %v5580_v56 = vpop.eup %5579 }
 0x641   :  { %v3000_v10 = vmul.f32 %v5580_v56, %v2986_v57  ;;  %vm3006_vm6 = vweird.f32 %v5580_v56  ;;  %v7748_v57 = vld [vmem:[%s8617_s1 + $0x10] sm:$0xff] }
 0x642   :  { %vm3007_vm8 = vmor %vm3005_vm7, %vm3006_vm6 }
 0x643   :  { %v3001_v7 = vmul.f32 %v5580_v56, %v3000_v10  ;;  %v2971_v20 = vpop.xlane.xlu2 %2970 }
 0x644   :  { %v2981_v42 = vmul.f32 %v2971_v20, %v5816_v34 }
 0x645   :  { %v3002_v29 = vmul.f32 0.5, %v3001_v7  ;;  %v5582_v25 = vpop.eup %5581 }
 0x646   :  { %v7738_v59 = vadd.f32 1e-06, %v2981_v42  ;;  %v3010_v14 = vmul.f32 %v5582_v25, %v2987_v47  ;;  %vm3016_vm9 = vweird.f32 %v5582_v25 }
 0x647   :  { %v3003_v32 = vsub.f32 1.5, %v3002_v29  ;;  %vm3017_vm11 = vmor %vm3015_vm10, %vm3016_vm9 }
 0x648   :  { %5583 = vrsqrt.f32 %v7738_v59  ;;  %v3011_v15 = vmul.f32 %v5582_v25, %v3010_v14  ;;  %vm2995_vm12 = vweird.f32 %v7738_v59 }
 0x649   :  { %v3004_v46 = vmul.f32 %v5580_v56, %v3003_v32 }
 0x64a   :  { %v3012_v48 = vmul.f32 0.5, %v3011_v15 }
 0x64b   :  { %v3008_v6 = vsel %vm3007_vm8, %v5580_v56, %v3004_v46  ;;  %v7751_v56 = vperm.slane %v7748_v57, 1 }
 0x64c   :  { %v3040_v16 = vrot.slane %v3008_v6, 1  ;;  %v3041_v2 = vrot.slane %v3008_v6, 2  ;;  %v3042_v12 = vrot.slane %v3008_v6, 3  ;;  %v3043_v23 = vrot.slane %v3008_v6, 4 }
 0x64d   :  { %v3044_v19 = vrot.slane %v3008_v6, 5  ;;  %v3101_v63 = vmul.f32 %v3008_v6, %v7532_v40  ;;  %v3045_v31 = vrot.slane %v3008_v6, 6  ;;  %v3046_v28 = vrot.slane %v3008_v6, 7 }
 0x64e   :  { %v5584_v10 = vpop.eup %5583  ;;  %v3013_v3 = vsub.f32 1.5, %v3012_v48  ;;  %v3102_v40 = vmul.f32 %v3040_v16, %v7535_v54  ;;  %v3103_v29 = vmul.f32 %v3041_v2, %v7538_v36  ;;  %v3104_v20 = vmul.f32 %v3042_v12, %v7541_v22 }
 0x64f   :  { %v2990_v7 = vmul.f32 %v5584_v10, %v7738_v59  ;;  %v3105_v42 = vmul.f32 %v3043_v23, %v7544_v41  ;;  %v3106_v46 = vmul.f32 %v3044_v19, %v7550_v53  ;;  %v3107_v14 = vmul.f32 %v3045_v31, %v7553_v50 }
 0x650   :  { %v3014_v32 = vmul.f32 %v5582_v25, %v3013_v3  ;;  %v3108_v15 = vmul.f32 %v3046_v28, %v7556_v61  ;;  %v3134_v54 = vmul.f32 %v7751_v56, %v3101_v63  ;;  %vm2996_vm13 = vweird.f32 %v5584_v10 }
 0x651   :  { %v2991_v6 = vmul.f32 %v5584_v10, %v2990_v7  ;;  %v7769_v22 = vperm.slane %v7748_v57, 2  ;;  %v3135_v16 = vmul.f32 %v7751_v56, %v3102_v40  ;;  %v3136_v50 = vmul.f32 %v7751_v56, %v3103_v29  ;;  %vm2997_vm6 = vmor %vm2995_vm12, %vm2996_vm13 }
 0x652   :  { %v7766_v47 = vsel %vm3017_vm11, %v5582_v25, %v3014_v32  ;;  %v3137_v2 = vmul.f32 %v7751_v56, %v3104_v20  ;;  %v3138_v12 = vmul.f32 %v7751_v56, %v3105_v42  ;;  %v3139_v25 = vmul.f32 %v7751_v56, %v3106_v46 }
 0x653   :  { %v2992_v41 = vmul.f32 0.5, %v2991_v6  ;;  %v3047_v53 = vrot.slane %v7766_v47, 1  ;;  %v3140_v58 = vmul.f32 %v7751_v56, %v3107_v14  ;;  %v3141_v23 = vmul.f32 %v7751_v56, %v3108_v15 }
 0x654   :  { %v7781_v19 = vadd.f32 %v7769_v22, %v3134_v54  ;;  %v3048_v63 = vrot.slane %v7766_v47, 2  ;;  %v3049_v31 = vrot.slane %v7766_v47, 3  ;;  %v7787_v28 = vmul.f32 %v7766_v47, %v7577_v30 }
 0x655   :  { %v2993_v48 = vsub.f32 1.5, %v2992_v41  ;;  %v7792_v40 = vmul.f32 %v3047_v53, %v7581_v49  ;;  %v7795_v7 = vadd.f32 %v7769_v22, %v3135_v16  ;;  %v7798_v29 = vadd.f32 %v7769_v22, %v3136_v50 }
 0x656   :  { %v7805_v30 = vadd.f32 %v7769_v22, %v3137_v2  ;;  %v7808_v32 = vadd.f32 %v7769_v22, %v3138_v12  ;;  %v7811_v49 = vadd.f32 %v7769_v22, %v3139_v25  ;;  %v7814_v42 = vadd.f32 %v7769_v22, %v3140_v58 }
 0x657   :  { %v2994_v33 = vmul.f32 %v5584_v10, %v2993_v48  ;;  %v7817_v46 = vadd.f32 %v7769_v22, %v3141_v23  ;;  %v3199_v59 = vpack.c.bf16 %v7781_v19, %v7781_v19 }
 0x659   :  { %v2998_v20 = vsel %vm2997_vm6, %v5584_v10, %v2994_v33 }
 0x65a   :  { %v3033_v6 = vrot.slane %v2998_v20, 1  ;;  %v3034_v14 = vrot.slane %v2998_v20, 2  ;;  %v3035_v15 = vrot.slane %v2998_v20, 3  ;;  %v3093_v54 = vmul.f32 %v2998_v20, %v7634_v35 }
 0x65b   :  { %v3037_v41 = vrot.slane %v2998_v20, 5  ;;  %v3038_v53 = vrot.slane %v2998_v20, 6  ;;  %v3039_v16 = vrot.slane %v2998_v20, 7 }
 0x65c   :  { %v3094_v10 = vmul.f32 %v3033_v6, %v7637_v9  ;;  %v3095_v50 = vmul.f32 %v3034_v14, %v7641_v55  ;;  %v3126_v2 = vmul.f32 %v7751_v56, %v3093_v54  ;;  %v3200_v55 = vpack.c.bf16 %v7795_v7, %v7795_v7 }
 0x65d   :  { %v3098_v25 = vmul.f32 %v3037_v41, %v7651_v37  ;;  %v3099_v48 = vmul.f32 %v3038_v53, %v7654_v43  ;;  %v3100_v35 = vmul.f32 %v3039_v16, %v7658_v13 }
 0x65e   :  { %v3127_v23 = vmul.f32 %v7751_v56, %v3094_v10  ;;  %v3128_v33 = vmul.f32 %v7751_v56, %v3095_v50  ;;  %v3159_v43 = vadd.f32 %v7769_v22, %v3126_v2  ;;  %v3201_v2 = vpack.c.bf16 %v7798_v29, %v7798_v29 }
 0x65f   :  { %v3131_v37 = vmul.f32 %v7751_v56, %v3098_v25  ;;  %v3132_v13 = vmul.f32 %v7751_v56, %v3099_v48  ;;  %v3205_v29 = vpack.c.bf16 %v7814_v42, %v7814_v42 }
 0x660   :  { %v3160_v6 = vadd.f32 %v7769_v22, %v3127_v23  ;;  %v3161_v14 = vadd.f32 %v7769_v22, %v3128_v33  ;;  %v3191_v50 = vpack.c.bf16 %v3159_v43, %v3159_v43  ;;  %v3202_v33 = vpack.c.bf16 %v7805_v30, %v7805_v30 }
 0x661   :  { %v3165_v41 = vadd.f32 %v7769_v22, %v3132_v13  ;;  %v3206_v13 = vpack.c.bf16 %v7817_v46, %v7817_v46  ;;  %v3264_v46 = vunpack.c.l.b16 %v3199_v59 }
 0x662   :  { %v3192_v16 = vpack.c.bf16 %v3160_v6, %v3160_v6 }
 0x669   :  { %v2980_v36 = vpop.xlane.xlu2 %2979 }
 0x66a   :  { %v2984_v61 = vmul.f32 %v2980_v36, %v5816_v34  ;;  %v3036_v36 = vrot.slane %v2998_v20, 4  ;;  %v3133_v20 = vmul.f32 %v7751_v56, %v3100_v35  ;;  %v3197_v35 = vpack.c.bf16 %v3165_v41, %v3165_v41 }
 0x66c   :  { %v7789_v3 = vadd.f32 1e-06, %v2984_v61  ;;  %v3096_v61 = vmul.f32 %v3035_v15, %v7644_v44  ;;  %v3097_v12 = vmul.f32 %v3036_v36, %v7647_v24  ;;  %v3164_v36 = vadd.f32 %v7769_v22, %v3131_v37 }
 0x66d   :  { %v3166_v53 = vadd.f32 %v7769_v22, %v3133_v20  ;;  %v3204_v37 = vpack.c.bf16 %v7811_v49, %v7811_v49  ;;  %v3256_v20 = vunpack.c.l.b16 %v3191_v50  ;;  %v3266_v49 = vunpack.c.l.b16 %v3201_v2 }
 0x66e   :  { %5585 = vrsqrt.f32 %v7789_v3  ;;  %v3129_v9 = vmul.f32 %v7751_v56, %v3096_v61  ;;  %v3130_v24 = vmul.f32 %v7751_v56, %v3097_v12  ;;  %vm3025_vm7 = vweird.f32 %v7789_v3 }
 0x66f   :  { %v3193_v61 = vpack.c.bf16 %v3161_v14, %v3161_v14  ;;  %v3196_v48 = vpack.c.bf16 %v3164_v36, %v3164_v36 }
 0x670   :  { %v3162_v54 = vadd.f32 %v7769_v22, %v3129_v9  ;;  %v3163_v7 = vadd.f32 %v7769_v22, %v3130_v24  ;;  %v3257_v9 = vunpack.c.l.b16 %v3192_v16  ;;  %v3203_v24 = vpack.c.bf16 %v7808_v32, %v7808_v32 }
 0x671   :  { %v3258_v6 = vunpack.c.l.b16 %v3193_v61 }
 0x672   :  { %v3194_v12 = vpack.c.bf16 %v3162_v54, %v3162_v54  ;;  %v3195_v25 = vpack.c.bf16 %v3163_v7, %v3163_v7  ;;  %v3262_v54 = vunpack.c.l.b16 %v3197_v35  ;;  %v3265_v7 = vunpack.c.l.b16 %v3200_v55 }
 0x673   :  { %v3288_v36 = vrot.slane %v3257_v9, 7  ;;  %v3268_v16 = vunpack.c.l.b16 %v3203_v24  ;;  %v3290_v50 = vrot.slane %v3258_v6, 6  ;;  %v3304_v35 = vrot.slane %v3266_v49, 6 }
 0x674   :  { %v5586_v58 = vpop.eup %5585  ;;  %v3259_v30 = vunpack.c.l.b16 %v3194_v12  ;;  %v3260_v14 = vunpack.c.l.b16 %v3195_v25  ;;  %v3271_v12 = vunpack.c.l.b16 %v3206_v13  ;;  %v3051_v49 = vrot.slane %v7766_v47, 5 }
 0x675   :  { %v3020_v44 = vmul.f32 %v5586_v58, %v7789_v3  ;;  %vm3026_vm8 = vweird.f32 %v5586_v58  ;;  %v3269_v3 = vunpack.c.l.b16 %v3204_v37 }
 0x676   :  { %vm3027_vm9 = vmor %vm3025_vm7, %vm3026_vm8  ;;  %v3292_v55 = vrot.slane %v3259_v30, 5  ;;  %v3294_v25 = vrot.slane %v3260_v14, 4 }
 0x677   :  { %v3021_v15 = vmul.f32 %v5586_v58, %v3020_v44  ;;  %v3198_v44 = vpack.c.bf16 %v3166_v53, %v3166_v53  ;;  %v3267_v53 = vunpack.c.l.b16 %v3202_v33 }
 0x679   :  { %v3022_v10 = vmul.f32 0.5, %v3021_v15  ;;  %v3261_v15 = vunpack.c.l.b16 %v3196_v48  ;;  %v3263_v41 = vunpack.c.l.b16 %v3198_v44  ;;  %v3302_v48 = vrot.slane %v3265_v7, 7 }
 0x67a   :  { %v3298_v44 = vrot.slane %v3262_v54, 2  ;;  %v3306_v37 = vrot.slane %v3267_v53, 5  ;;  %v3314_v7 = vrot.slane %v3271_v12, 1  ;;  %v3050_v54 = vrot.slane %v7766_v47, 4 }
 0x67b   :  { %v3023_v23 = vsub.f32 1.5, %v3022_v10  ;;  %v3289_v10 = vsel %vm1019_vm14, %v3288_v36, %v3256_v20  ;;  %v3296_v33 = vrot.slane %v3261_v15, 3  ;;  %v3303_v24 = vsel %vm1019_vm14, %v3302_v48, %v3264_v46 }
 0x67c   :  { %v3291_v2 = vsel %vm1022_vm15, %v3290_v50, %v3289_v10  ;;  %v3305_v13 = vsel %vm1022_vm15, %v3304_v35, %v3303_v24  ;;  %v3308_v20 = vrot.slane %v3268_v16, 4  ;;  %v3111_v46 = vmul.f32 %v3048_v63, %v7584_v21 }
 0x67d   :  { %v3024_v43 = vmul.f32 %v5586_v58, %v3023_v23  ;;  %v3293_v59 = vsel %vm1025_vm1, %v3292_v55, %v3291_v2  ;;  %v3307_v30 = vsel %vm1025_vm1, %v3306_v37, %v3305_v13  ;;  %v3053_v16 = vrot.slane %v7766_v47, 7 }
 0x67e   :  { %v3295_v9 = vsel %vm1028_vm2, %v3294_v25, %v3293_v59  ;;  %v3309_v15 = vsel %vm1028_vm2, %v3308_v20, %v3307_v30  ;;  %v3112_v12 = vmul.f32 %v3049_v31, %v7587_v51  ;;  %v3113_v63 = vmul.f32 %v3050_v54, %v7591_v38 }
 0x67f   :  { %v7863_v32 = vsel %vm3027_vm9, %v5586_v58, %v3024_v43  ;;  %v3270_v58 = vunpack.c.l.b16 %v3205_v29  ;;  %v3297_v29 = vsel %vm1031_vm3, %v3296_v33, %v3295_v9  ;;  %v3300_v43 = vrot.slane %v3263_v41, 1 }
 0x680   :  { %v3054_v42 = vrot.slane %v7863_v32, 1  ;;  %v3055_v61 = vrot.slane %v7863_v32, 2  ;;  %v3056_v23 = vrot.slane %v7863_v32, 3  ;;  %v3299_v6 = vsel %vm1034_vm4, %v3298_v44, %v3297_v29 }
 0x681   :  { %v3312_v14 = vrot.slane %v3270_v58, 2  ;;  %v3301_v36 = vsel %vm1037_vm5, %v3300_v43, %v3299_v6  ;;  %v3052_v41 = vrot.slane %v7766_v47, 6  ;;  %v3058_v10 = vrot.slane %v7863_v32, 5 }
 0x682   :  { %v3118_v19 = vmul.f32 %v3054_v42, %v7691_v39  ;;  %v3310_v39 = vrot.slane %v3269_v3, 3  ;;  %v3057_v3 = vrot.slane %v7863_v32, 4  ;;  %v3059_v58 = vrot.slane %v7863_v32, 6 }
 0x683   :  { %v3119_v55 = vmul.f32 %v3055_v61, %v7694_v45  ;;  %v3060_v21 = vrot.slane %v7863_v32, 7  ;;  %v3114_v25 = vmul.f32 %v3051_v49, %v7594_v4  ;;  %v3115_v48 = vmul.f32 %v3052_v41, %v7597_v18 }
 0x684   :  { %v3311_v42 = vsel %vm1031_vm3, %v3310_v39, %v3309_v15  ;;  %v3120_v35 = vmul.f32 %v3056_v23, %v7697_v5  ;;  %v3143_v59 = vmul.f32 %v7751_v56, %v7792_v40  ;;  %v3144_v33 = vmul.f32 %v7751_v56, %v3111_v46 }
 0x685   :  { %v3313_v53 = vsel %vm1034_vm4, %v3312_v14, %v3311_v42  ;;  %v3117_v51 = vmul.f32 %v7863_v32, %v7688_v0  ;;  %v3116_v45 = vmul.f32 %v3053_v16, %v7601_v27  ;;  %v3121_v38 = vmul.f32 %v3057_v3, %v7700_v52 }
 0x686   :  { %v3315_v50 = vsel %vm1037_vm5, %v3314_v7, %v3313_v53  ;;  %v3122_v4 = vmul.f32 %v3058_v10, %v7703_v17  ;;  %v3123_v18 = vmul.f32 %v3059_v58, %v7706_v1  ;;  %v3145_v5 = vmul.f32 %v7751_v56, %v3112_v12 }
 0x687   :  { %v3344_v2 = vpack.c.b16 %v3315_v50, %v3301_v36  ;;  %v3151_v47 = vmul.f32 %v7751_v56, %v3118_v19  ;;  %v3152_v31 = vmul.f32 %v7751_v56, %v3119_v55  ;;  %v3124_v40 = vmul.f32 %v3060_v21, %v7709_v62 }
 0x688   :  { %v3142_v0 = vmul.f32 %v7751_v56, %v7787_v28  ;;  %v3146_v32 = vmul.f32 %v7751_v56, %v3113_v63  ;;  %v3147_v27 = vmul.f32 %v7751_v56, %v3114_v25  ;;  %v3148_v52 = vmul.f32 %v7751_v56, %v3115_v48 }
 0x689   :  { %5117 = vmatmul.msk.bf16.vlgmr.msra.gmra.mxu3 %vm155_vm0, %v3344_v2  ;;  %v3153_v17 = vmul.f32 %v7751_v56, %v3120_v35  ;;  %v3176_v1 = vadd.f32 %v7769_v22, %v3143_v59  ;;  %v3177_v61 = vadd.f32 %v7769_v22, %v3144_v33  ;;  %v3149_v23 = vmul.f32 %v7751_v56, %v3116_v45 }
 0x68a   :  { %v3150_v19 = vmul.f32 %v7751_v56, %v3117_v51  ;;  %v3154_v62 = vmul.f32 %v7751_v56, %v3121_v38  ;;  %v3155_v28 = vmul.f32 %v7751_v56, %v3122_v4  ;;  %v3156_v9 = vmul.f32 %v7751_v56, %v3123_v18 }
 0x68b   :  { %v3178_v44 = vadd.f32 %v7769_v22, %v3145_v5  ;;  %v3184_v24 = vadd.f32 %v7769_v22, %v3151_v47  ;;  %v3185_v37 = vadd.f32 %v7769_v22, %v3152_v31  ;;  %v3157_v29 = vmul.f32 %v7751_v56, %v3124_v40 }
 0x68c   :  { %v3175_v43 = vadd.f32 %v7769_v22, %v3142_v0  ;;  %v3179_v13 = vadd.f32 %v7769_v22, %v3146_v32  ;;  %v3180_v20 = vadd.f32 %v7769_v22, %v3147_v27  ;;  %v3181_v6 = vadd.f32 %v7769_v22, %v3148_v52 }
 0x68d   :  { %v3186_v30 = vadd.f32 %v7769_v22, %v3153_v17  ;;  %v3208_v39 = vpack.c.bf16 %v3176_v1, %v3176_v1  ;;  %v3209_v14 = vpack.c.bf16 %v3177_v61, %v3177_v61  ;;  %v3182_v15 = vadd.f32 %v7769_v22, %v3149_v23 }
 0x68e   :  { %v3183_v7 = vadd.f32 %v7769_v22, %v3150_v19  ;;  %v3187_v54 = vadd.f32 %v7769_v22, %v3154_v62  ;;  %v3188_v56 = vadd.f32 %v7769_v22, %v3155_v28  ;;  %v3189_v49 = vadd.f32 %v7769_v22, %v3156_v9 }
 0x68f   :  { %v3210_v36 = vpack.c.bf16 %v3178_v44, %v3178_v44  ;;  %v3216_v42 = vpack.c.bf16 %v3184_v24, %v3184_v24  ;;  %v3217_v41 = vpack.c.bf16 %v3185_v37, %v3185_v37  ;;  %v3190_v46 = vadd.f32 %v7769_v22, %v3157_v29 }
 0x690   :  { %v3207_v53 = vpack.c.bf16 %v3175_v43, %v3175_v43  ;;  %v3211_v16 = vpack.c.bf16 %v3179_v13, %v3179_v13  ;;  %v3212_v3 = vpack.c.bf16 %v3180_v20, %v3180_v20  ;;  %v3213_v10 = vpack.c.bf16 %v3181_v6, %v3181_v6 }
 0x691   :  { %v3218_v50 = vpack.c.bf16 %v3186_v30, %v3186_v30  ;;  %v3273_v58 = vunpack.c.l.b16 %v3208_v39  ;;  %v3274_v12 = vunpack.c.l.b16 %v3209_v14  ;;  %v3214_v55 = vpack.c.bf16 %v3182_v15, %v3182_v15 }
 0x692   :  { %v3215_v2 = vpack.c.bf16 %v3183_v7, %v3183_v7  ;;  %v3219_v21 = vpack.c.bf16 %v3187_v54, %v3187_v54  ;;  %v3220_v63 = vpack.c.bf16 %v3188_v56, %v3188_v56  ;;  %v3221_v25 = vpack.c.bf16 %v3189_v49, %v3189_v49 }
 0x693   :  { %v3275_v48 = vunpack.c.l.b16 %v3210_v36  ;;  %v3281_v35 = vunpack.c.l.b16 %v3216_v42  ;;  %v3282_v59 = vunpack.c.l.b16 %v3217_v41  ;;  %v3222_v33 = vpack.c.bf16 %v3190_v46, %v3190_v46 }
 0x694   :  { %v3272_v51 = vunpack.c.l.b16 %v3207_v53  ;;  %v3276_v45 = vunpack.c.l.b16 %v3211_v16  ;;  %v3277_v38 = vunpack.c.l.b16 %v3212_v3  ;;  %v3278_v22 = vunpack.c.l.b16 %v3213_v10 }
 0x695   :  { %v3283_v4 = vunpack.c.l.b16 %v3218_v50  ;;  %v3316_v18 = vrot.slane %v3273_v58, 7  ;;  %v3318_v5 = vrot.slane %v3274_v12, 6  ;;  %v3279_v47 = vunpack.c.l.b16 %v3214_v55 }
 0x696   :  { %v3280_v31 = vunpack.c.l.b16 %v3215_v2  ;;  %v3284_v40 = vunpack.c.l.b16 %v3219_v21  ;;  %v3285_v0 = vunpack.c.l.b16 %v3220_v63  ;;  %v3320_v27 = vrot.slane %v3275_v48, 5 }
 0x697   :  { %v3317_v32 = vsel %vm1019_vm14, %v3316_v18, %v3272_v51  ;;  %v3330_v52 = vrot.slane %v3281_v35, 7  ;;  %v3332_v17 = vrot.slane %v3282_v59, 6  ;;  %v3286_v1 = vunpack.c.l.b16 %v3221_v25  ;;  %v5459_v35 = vld [vmem:[%s8621_s5 + $0x78] sm:$0xff] }
 0x698   :  { %v3287_v61 = vunpack.c.l.b16 %v3222_v33  ;;  %v3319_v23 = vsel %vm1022_vm15, %v3318_v5, %v3317_v32  ;;  %v3322_v19 = vrot.slane %v3276_v45, 4  ;;  %v3324_v28 = vrot.slane %v3277_v38, 3  ;;  %3538 = vmatpush.bf16.msra.mxu1 %v5459_v35  ;;  %v5458_v33 = vld [vmem:[%s8621_s5 + $0x70] sm:$0xff] }
 0x699   :  { %v3321_v62 = vsel %vm1025_vm1, %v3320_v27, %v3319_v23  ;;  %v3331_v9 = vsel %vm1019_vm14, %v3330_v52, %v3280_v31  ;;  %v3334_v44 = vrot.slane %v3283_v4, 5  ;;  %v3326_v37 = vrot.slane %v3278_v22, 2  ;;  %v5457_v22 = vld [vmem:[%s8621_s5 + $0x68] sm:$0xff] }
 0x69a   :  { %v3323_v24 = vsel %vm1028_vm2, %v3322_v19, %v3321_v62  ;;  %v3333_v29 = vsel %vm1022_vm15, %v3332_v17, %v3331_v9  ;;  %v3336_v43 = vrot.slane %v3284_v40, 4  ;;  %v3338_v6 = vrot.slane %v3285_v0, 3  ;;  %v5456_v0 = vld [vmem:[%s8621_s5 + $0x60] sm:$0xff]  ;;  %v5455_v62 = vld [vmem:[%s8621_s5 + $0x58] sm:$0xff] }
 0x69b   :  { %v3325_v13 = vsel %vm1031_vm3, %v3324_v28, %v3323_v24  ;;  %v3335_v20 = vsel %vm1025_vm1, %v3334_v44, %v3333_v29  ;;  %v3340_v14 = vrot.slane %v3286_v1, 2  ;;  %v3328_v15 = vrot.slane %v3279_v47, 1 }
 0x69c   :  { %v3327_v30 = vsel %vm1034_vm4, %v3326_v37, %v3325_v13  ;;  %v3337_v39 = vsel %vm1028_vm2, %v3336_v43, %v3335_v20  ;;  %v3342_v54 = vrot.slane %v3287_v61, 1  ;;  %v3223_v41 = vperm.slane %v7748_v57, 3  ;;  %3539 = vmatpush.bf16.msra.mxu1 %v5458_v33  ;;  %v5454_v20 = vld [vmem:[%s8621_s5 + $0x50] sm:$0xff] }
 0x69d   :  { %v3339_v7 = vsel %vm1031_vm3, %v3338_v6, %v3337_v39  ;;  %v3329_v49 = vsel %vm1037_vm5, %v3328_v15, %v3327_v30 }
 0x69e   :  { %v3341_v56 = vsel %vm1034_vm4, %v3340_v14, %v3339_v7 }
 0x69f   :  { %v3343_v36 = vsel %vm1037_vm5, %v3342_v54, %v3341_v56  ;;  %v5453_v56 = vld [vmem:[%s8621_s5 + $0x48] sm:$0xff] }
 0x6a0   :  { %v3345_v42 = vpack.c.b16 %v3343_v36, %v3329_v49  ;;  %3540 = vmatpush.bf16.msra.mxu1 %v5457_v22 }
 0x6a2   :  { %5118 = vmatmul.msk.bf16.gmra.mxu3 %vm155_vm0, %v3345_v42 }
 0x6a4   :  { %3541 = vmatpush.bf16.msra.mxu1 %v5456_v0 }
 0x6a8   :  { %3542 = vmatpush.bf16.msra.mxu1 %v5455_v62 }
 0x6ac   :  { %3543 = vmatpush.bf16.msra.mxu1 %v5454_v20 }
 0x6b0   :  { %3544 = vmatpush.bf16.msra.mxu1 %v5453_v56 }
 0x70c   :  { %v3373_v46 = vpop.f32.mrf.mxu3 }
 0x70d   :  { %v7963_v53 = vadd.f32 %v3373_v46, %v3223_v41 }
 0x70f   :  { %v7966_v16 = vmul.f32 0.70710677, %v7963_v53  ;;  %v3383_v22 = vmul.f32 0.5, %v7963_v53 }
 0x711   :  { %v3399_v3 = vand.u32 2147483647, %v7966_v16  ;;  %vm3391_vm10 = vcmp.ge.f32.partialorder %v7966_v16, 0.0 }
 0x713   :  { %v3403_v10 = vmul.f32 0.3275911, %v3399_v3  ;;  %v3451_v25 = vsub.f32 0.0, %v3399_v3 }
 0x714   :  { %v3375_v50 = vpop.f32.mrf.mxu3 }
 0x715   :  { %v3407_v58 = vadd.f32 1.0, %v3403_v10  ;;  %v7969_v12 = vadd.f32 %v3375_v50, %v3223_v41  ;;  %v3455_v45 = vmul.f32 %v3451_v25, %v3399_v3 }
 0x717   :  { %5587 = vrcp.f32 %v3407_v58  ;;  %v7972_v55 = vmul.f32 0.70710677, %v7969_v12  ;;  %v3459_v5 = vmul.f32 1.442695, %v3455_v45  ;;  %v5452_v58 = vld [vmem:[%s8621_s5 + $0x40] sm:$0xff] }
 0x718   :  { %3545 = vmatpush.bf16.msra.mxu1 %v5452_v58 }
 0x719   :  { %v3400_v2 = vand.u32 2147483647, %v7972_v55  ;;  %vm3392_vm11 = vcmp.ge.f32.partialorder %v7972_v55, 0.0 }
 0x71b   :  { %v3404_v21 = vmul.f32 0.3275911, %v3400_v2  ;;  %v3452_v47 = vsub.f32 0.0, %v3400_v2 }
 0x71d   :  { %v5588_v63 = vpop.eup %5587  ;;  %v3408_v48 = vadd.f32 1.0, %v3404_v21  ;;  %v3456_v17 = vmul.f32 %v3452_v47, %v3400_v2 }
 0x71e   :  { %v3415_v59 = vmul.f32 1.0614054, %v5588_v63 }
 0x71f   :  { %5589 = vrcp.f32 %v3408_v48  ;;  %v3461_v44 = vmul.f32 1.442695, %v3456_v17 }
 0x720   :  { %v3419_v51 = vadd.f32 -1.4531521, %v3415_v59  ;;  %5591 = vpow2.f32 %v3459_v5 }
 0x721   :  { %5593 = vpow2.f32 %v3461_v44 }
 0x722   :  { %v3423_v38 = vmul.f32 %v5588_v63, %v3419_v51 }
 0x724   :  { %v3427_v4 = vadd.f32 1.4214138, %v3423_v38 }
 0x725   :  { %v5590_v18 = vpop.eup %5589  ;;  %v3378_v32 = vpop.f32.mrf.mxu3 }
 0x726   :  { %v3416_v31 = vmul.f32 1.0614054, %v5590_v18  ;;  %v3431_v40 = vmul.f32 %v5588_v63, %v3427_v4  ;;  %v7987_v1 = vadd.f32 %v3378_v32, %v3223_v41  ;;  %v5592_v43 = vpop.eup %5591  ;;  %v3384_v4 = vmul.f32 0.5, %v7969_v12 }
 0x727   :  { %v5594_v3 = vpop.eup %5593 }
 0x728   :  { %v3420_v27 = vadd.f32 -1.4531521, %v3416_v31  ;;  %v3435_v52 = vadd.f32 -0.28449672, %v3431_v40  ;;  %v7990_v19 = vmul.f32 0.70710677, %v7987_v1 }
 0x72a   :  { %v3424_v61 = vmul.f32 %v5590_v18, %v3420_v27  ;;  %v3439_v23 = vmul.f32 %v5588_v63, %v3435_v52  ;;  %v3401_v24 = vand.u32 2147483647, %v7990_v19  ;;  %vm3393_vm12 = vcmp.ge.f32.partialorder %v7990_v19, 0.0 }
 0x72c   :  { %v3428_v28 = vadd.f32 1.4214138, %v3424_v61  ;;  %v3443_v9 = vadd.f32 0.2548296, %v3439_v23  ;;  %v3405_v13 = vmul.f32 0.3275911, %v3401_v24 }
 0x72d   :  { %v3380_v6 = vpop.f32.mrf.mxu3  ;;  %v3453_v16 = vsub.f32 0.0, %v3401_v24 }
 0x72e   :  { %v3432_v37 = vmul.f32 %v5590_v18, %v3428_v28  ;;  %v3447_v29 = vmul.f32 %v5588_v63, %v3443_v9  ;;  %v3409_v14 = vadd.f32 1.0, %v3405_v13  ;;  %v7999_v15 = vadd.f32 %v3380_v6, %v3223_v41 }
 0x72f   :  { %v8697_v41 = vmov -1.0   ;;  %v3457_v38 = vmul.f32 %v3453_v16, %v3401_v24 }
 0x730   :  { %v3436_v30 = vadd.f32 -0.28449672, %v3432_v37  ;;  %v3467_v39 = vmul.f32 %v5592_v43, %v3447_v29  ;;  %5595 = vrcp.f32 %v3409_v14  ;;  %v8002_v54 = vmul.f32 0.70710677, %v7999_v15 }
 0x731   :  { %v3395_v10 = vsel %vm3391_vm10, 1.0, %v8697_v41  ;;  %v3396_v59 = vsel %vm3392_vm11, 1.0, %v8697_v41  ;;  %v3463_v0 = vmul.f32 1.442695, %v3457_v38 }
 0x732   :  { %v3440_v7 = vmul.f32 %v5590_v18, %v3436_v30  ;;  %v3471_v36 = vsub.f32 1.0, %v3467_v39  ;;  %v3402_v42 = vand.u32 2147483647, %v8002_v54  ;;  %vm3394_vm13 = vcmp.ge.f32.partialorder %v8002_v54, 0.0 }
 0x734   :  { %v3444_v49 = vadd.f32 0.2548296, %v3440_v7  ;;  %v3406_v50 = vmul.f32 0.3275911, %v3402_v42  ;;  %v3475_v21 = vmul.f32 %v3471_v36, %v3395_v10  ;;  %v3454_v32 = vsub.f32 0.0, %v3402_v42 }
 0x735   :  { %v3397_v7 = vsel %vm3393_vm12, 1.0, %v8697_v41  ;;  %v3385_v10 = vmul.f32 0.5, %v7987_v1 }
 0x736   :  { %v3448_v46 = vmul.f32 %v5590_v18, %v3444_v49  ;;  %v5596_v63 = vpop.eup %5595  ;;  %v3410_v25 = vadd.f32 1.0, %v3406_v50  ;;  %v3479_v51 = vadd.f32 1.0, %v3475_v21  ;;  %v3458_v62 = vmul.f32 %v3454_v32, %v3402_v42 }
 0x737   :  { %v3417_v35 = vmul.f32 1.0614054, %v5596_v63  ;;  %v3398_v42 = vsel %vm3394_vm13, 1.0, %v8697_v41  ;;  %v3386_v50 = vmul.f32 0.5, %v7999_v15 }
 0x738   :  { %v3468_v2 = vmul.f32 %v5594_v3, %v3448_v46  ;;  %5597 = vrcp.f32 %v3410_v25  ;;  %v3483_v5 = vmul.f32 %v3479_v51, %v3383_v22  ;;  %v3465_v44 = vmul.f32 1.442695, %v3458_v62 }
 0x739   :  { %v3421_v45 = vadd.f32 -1.4531521, %v3417_v35  ;;  %5599 = vpow2.f32 %v3463_v0 }
 0x73a   :  { %v3472_v48 = vsub.f32 1.0, %v3468_v2  ;;  %5601 = vpow2.f32 %v3465_v44  ;;  %v5161_v44 = vld [vmem:[%s8622_s6 + $0x10] sm:$0xf] }
 0x73b   :  { %v3425_v18 = vmul.f32 %v5596_v63, %v3421_v45 }
 0x73c   :  { %v3476_v33 = vmul.f32 %v3472_v48, %v3396_v59 }
 0x73d   :  { %v3429_v31 = vadd.f32 1.4214138, %v3425_v18 }
 0x73e   :  { %v3480_v55 = vadd.f32 1.0, %v3476_v33  ;;  %v5598_v40 = vpop.eup %5597 }
 0x73f   :  { %v3418_v52 = vmul.f32 1.0614054, %v5598_v40  ;;  %v3433_v17 = vmul.f32 %v5596_v63, %v3429_v31  ;;  %v5600_v29 = vpop.eup %5599 }
 0x740   :  { %v3484_v47 = vmul.f32 %v3480_v55, %v3384_v4  ;;  %v5602_v14 = vpop.eup %5601 }
 0x741   :  { %v3422_v61 = vadd.f32 -1.4531521, %v3418_v52  ;;  %v3437_v23 = vadd.f32 -0.28449672, %v3433_v17 }
 0x742   :  { %v3487_v27 = vpack.c.bf16 %v3484_v47, %v3483_v5 }
 0x743   :  { %v3426_v28 = vmul.f32 %v5598_v40, %v3422_v61  ;;  %v3441_v53 = vmul.f32 %v5596_v63, %v3437_v23 }
 0x744   :  { %3546 = vmatmul.bf16.vlgmr.msra.gmra.mxu1 %v3487_v27 }
 0x745   :  { %v3430_v9 = vadd.f32 1.4214138, %v3426_v28  ;;  %v3445_v12 = vadd.f32 0.2548296, %v3441_v53 }
 0x747   :  { %v3434_v24 = vmul.f32 %v5598_v40, %v3430_v9  ;;  %v3449_v37 = vmul.f32 %v5596_v63, %v3445_v12  ;;  %v3489_v63 = vperm.slane %v7748_v57, 4 }
 0x749   :  { %v3438_v43 = vadd.f32 -0.28449672, %v3434_v24  ;;  %v3469_v13 = vmul.f32 %v5600_v29, %v3449_v37  ;;  %v5463_v24 = vld [vmem:[%s8622_s6 + $0x14] sm:$0xf0] }
 0x74a   :  { %v5162_v37 = vor.u32 %v5463_v24, %v5161_v44 }
 0x74b   :  { %v3442_v20 = vmul.f32 %v5598_v40, %v3438_v43  ;;  %v3473_v30 = vsub.f32 1.0, %v3469_v13 }
 0x74c   :  { %3697 = vmatpush.bf16.msrb.mxu3 %v5162_v37 }
 0x74d   :  { %v3446_v6 = vadd.f32 0.2548296, %v3442_v20  ;;  %v3477_v49 = vmul.f32 %v3473_v30, %v3397_v7 }
 0x74f   :  { %v3450_v39 = vmul.f32 %v5598_v40, %v3446_v6  ;;  %v3481_v3 = vadd.f32 1.0, %v3477_v49 }
 0x751   :  { %v3470_v56 = vmul.f32 %v5602_v14, %v3450_v39  ;;  %v3485_v58 = vmul.f32 %v3481_v3, %v3385_v10  ;;  %v5153_v3 = vld [vmem:[%s8622_s6] sm:$0xf] }
 0x753   :  { %v3474_v36 = vsub.f32 1.0, %v3470_v56 }
 0x755   :  { %v3478_v46 = vmul.f32 %v3474_v36, %v3398_v42  ;;  %v5462_v42 = vld [vmem:[%s8622_s6 + $0x14] sm:$0xf] }
 0x757   :  { %v3482_v19 = vadd.f32 1.0, %v3478_v46  ;;  %v5163_v46 = vld [vmem:[%s8622_s6 + $0x18] sm:$0xf0] }
 0x759   :  { %v3486_v2 = vmul.f32 %v3482_v19, %v3386_v50  ;;  %v5166_v19 = vor.u32 %v5462_v42, %v5163_v46 }
 0x75b   :  { %v3488_v21 = vpack.c.bf16 %v3486_v2, %v3485_v58  ;;  %v5461_v58 = vld [vmem:[%s8622_s6 + $0x4] sm:$0xf0]  ;;  %3716 = vmatpush.bf16.msrb.mxu0 %v5166_v19 }
 0x75c   :  { %v5154_v2 = vor.u32 %v5461_v58, %v5153_v3 }
 0x75d   :  { %3551 = vmatmul.bf16.gmra.mxu1 %v3488_v21 }
 0x75e   :  { %3698 = vmatpush.bf16.msrb.mxu3 %v5154_v2 }
 0x7c1   :  { %v3547_v16 = vpop.f32.mrf.mxu1 }
 0x7c2   :  { %v3548_v54 = vadd.f32 %v3547_v16, %v3489_v63 }
 0x7c4   :  { %v3557_v25 = vadd.f32 %v3548_v54, %v6932_v11 }
 0x7c6   :  { %v3561_v48 = vsel %vm155_vm0, %v3557_v25, 0.0 }
 0x7c7   :  { %3562 = vadd.xlane.f32.xlu0 %v3561_v48  ;;  %v5460_v48 = vld [vmem:[%s8622_s6 + $0x4] sm:$0xf] }
 0x7c9   :  { %v3549_v35 = vpop.f32.mrf.mxu1 }
 0x7ca   :  { %v3550_v59 = vadd.f32 %v3549_v35, %v3489_v63  ;;  %v5155_v35 = vld [vmem:[%s8622_s6 + $0x8] sm:$0xf0]  ;;  %s5698_s6 = smov 64  }
 0x7cc   :  { %v3558_v1 = vadd.f32 %v3550_v59, %v6938_v26  ;;  %v3649_v59 = vperm.slane %v7748_v57, 5 }
 0x7ce   :  { %v3564_v15 = vsel %vm155_vm0, %v3558_v1, 0.0 }
 0x7cf   :  { %3565 = vadd.xlane.f32.xlu1 %v3564_v15 }
 0x7da   :  { %v3552_v33 = vpop.f32.mrf.mxu1 }
 0x7db   :  { %v3553_v51 = vadd.f32 %v3552_v33, %v3489_v63  ;;  %v5158_v33 = vor.u32 %v5460_v48, %v5155_v35 }
 0x7dd   :  { %v3559_v45 = vadd.f32 %v3553_v51, %v7029_v8  ;;  %3717 = vmatpush.bf16.msrb.mxu0 %v5158_v33 }
 0x7df   :  { %v3567_v38 = vsel %vm155_vm0, %v3559_v45, 0.0 }
 0x7e0   :  { %3568 = vadd.xlane.f32.xlu2 %v3567_v38 }
 0x7e2   :  { %v3554_v22 = vpop.f32.mrf.mxu1 }
 0x7e3   :  { %v3555_v4 = vadd.f32 %v3554_v22, %v3489_v63 }
 0x7e5   :  { %v3560_v11 = vadd.f32 %v3555_v4, %v7070_v60 }
 0x7e7   :  { %v3570_v55 = vsel %vm155_vm0, %v3560_v11, 0.0 }
 0x7e8   :  { %3571 = vadd.xlane.f32.xlu0 %v3570_v55 }
 0x83a   :  { %v3563_v18 = vpop.xlane.xlu0 %3562 }
 0x83b   :  { %v3573_v26 = vmul.f32 %v3563_v18, %v5816_v34 }
 0x83d   :  { %v3577_v5 = vsub.f32 %v3557_v25, %v3573_v26 }
 0x83f   :  { %v3581_v47 = vmul.f32 %v3577_v5, %v3577_v5 }
 0x841   :  { %v3585_v31 = vsel %vm155_vm0, %v3581_v47, 0.0 }
 0x842   :  { %3586 = vadd.xlane.f32.xlu1 %v3585_v31  ;;  %v3566_v40 = vpop.xlane.xlu1 %3565 }
 0x843   :  { %v3574_v8 = vmul.f32 %v3566_v40, %v5816_v34 }
 0x845   :  { %v8035_v0 = vsub.f32 %v3558_v1, %v3574_v8 }
 0x847   :  { %v3582_v32 = vmul.f32 %v8035_v0, %v8035_v0 }
 0x849   :  { %v3588_v60 = vsel %vm155_vm0, %v3582_v32, 0.0 }
 0x84a   :  { %3589 = vadd.xlane.f32.xlu2 %v3588_v60 }
 0x853   :  { %v3569_v27 = vpop.xlane.xlu2 %3568 }
 0x854   :  { %v3575_v52 = vmul.f32 %v3569_v27, %v5816_v34 }
 0x856   :  { %v8041_v17 = vsub.f32 %v3559_v45, %v3575_v52 }
 0x858   :  { %v3583_v61 = vmul.f32 %v8041_v17, %v8041_v17 }
 0x85a   :  { %v3591_v23 = vsel %vm155_vm0, %v3583_v61, 0.0 }
 0x85b   :  { %v3572_v62 = vpop.xlane.xlu0 %3571  ;;  %3592 = vadd.xlane.f32.xlu0 %v3591_v23 }
 0x85c   :  { %v3576_v28 = vmul.f32 %v3572_v62, %v5816_v34 }
 0x85e   :  { %v8047_v53 = vsub.f32 %v3560_v11, %v3576_v28  ;;  %v8084_v11 = vld [vmem:[%s8617_s1 + $0x10] sm:$0xff] }
 0x85f   :  { %v3654_v57 = vperm.slane %v8084_v11, 6 }
 0x860   :  { %v3584_v9 = vmul.f32 %v8047_v53, %v8047_v53 }
 0x862   :  { %v3594_v12 = vsel %vm155_vm0, %v3584_v9, 0.0 }
 0x863   :  { %3595 = vadd.xlane.f32.xlu1 %v3594_v12 }
 0x8b5   :  { %v3587_v29 = vpop.xlane.xlu1 %3586 }
 0x8b6   :  { %v3597_v43 = vmul.f32 %v3587_v29, %v5816_v34 }
 0x8b8   :  { %v3601_v13 = vadd.f32 1e-06, %v3597_v43 }
 0x8ba   :  { %5603 = vrsqrt.f32 %v3601_v13  ;;  %vm3611_vm7 = vweird.f32 %v3601_v13 }
 0x8bd   :  { %v3590_v20 = vpop.xlane.xlu2 %3589 }
 0x8be   :  { %v3598_v6 = vmul.f32 %v3590_v20, %v5816_v34 }
 0x8c0   :  { %v5604_v30 = vpop.eup %5603  ;;  %v3602_v39 = vadd.f32 1e-06, %v3598_v6 }
 0x8c1   :  { %v3606_v14 = vmul.f32 %v5604_v30, %v3601_v13  ;;  %vm3612_vm6 = vweird.f32 %v5604_v30 }
 0x8c2   :  { %5605 = vrsqrt.f32 %v3602_v39  ;;  %vm3613_vm8 = vmor %vm3611_vm7, %vm3612_vm6  ;;  %vm3621_vm10 = vweird.f32 %v3602_v39 }
 0x8c3   :  { %v3607_v7 = vmul.f32 %v5604_v30, %v3606_v14 }
 0x8c5   :  { %v3608_v56 = vmul.f32 0.5, %v3607_v7 }
 0x8c7   :  { %v3609_v49 = vsub.f32 1.5, %v3608_v56 }
 0x8c8   :  { %v5606_v36 = vpop.eup %5605 }
 0x8c9   :  { %v3610_v10 = vmul.f32 %v5604_v30, %v3609_v49  ;;  %v3616_v50 = vmul.f32 %v5606_v36, %v3602_v39  ;;  %vm3622_vm9 = vweird.f32 %v5606_v36 }
 0x8ca   :  { %vm3623_vm11 = vmor %vm3621_vm10, %vm3622_vm9 }
 0x8cb   :  { %v3617_v21 = vmul.f32 %v5606_v36, %v3616_v50  ;;  %v3614_v63 = vsel %vm3613_vm8, %v5604_v30, %v3610_v10 }
 0x8cc   :  { %v3645_v25 = vmul.f32 %v3614_v63, %v3577_v5 }
 0x8cd   :  { %v3618_v16 = vmul.f32 0.5, %v3617_v21 }
 0x8ce   :  { %v3593_v15 = vpop.xlane.xlu0 %3592  ;;  %v3650_v4 = vmul.f32 %v3649_v59, %v3645_v25 }
 0x8cf   :  { %v3619_v54 = vsub.f32 1.5, %v3618_v16  ;;  %v3599_v51 = vmul.f32 %v3593_v15, %v5816_v34 }
 0x8d0   :  { %v3655_v18 = vadd.f32 %v3654_v57, %v3650_v4  ;;  %v3761_v4 = vld [vmem:[%s8623_s7] sm:$0xf] }
 0x8d1   :  { %v3620_v1 = vmul.f32 %v5606_v36, %v3619_v54  ;;  %v3603_v22 = vadd.f32 1e-06, %v3599_v51 }
 0x8d3   :  { %v3624_v45 = vsel %vm3623_vm11, %v5606_v36, %v3620_v1  ;;  %5607 = vrsqrt.f32 %v3603_v22  ;;  %vm3631_vm13 = vweird.f32 %v3603_v22 }
 0x8d4   :  { %v3646_v38 = vmul.f32 %v3624_v45, %v8035_v0 }
 0x8d6   :  { %v3651_v55 = vmul.f32 %v3649_v59, %v3646_v38  ;;  %v3596_v5 = vpop.xlane.xlu1 %3595 }
 0x8d7   :  { %v3600_v47 = vmul.f32 %v3596_v5, %v5816_v34 }
 0x8d8   :  { %v3656_v26 = vadd.f32 %v3654_v57, %v3651_v55  ;;  %v8101_v55 = vld [vmem:[%s8617_s1 + $0x20] sm:$0xff] }
 0x8d9   :  { %v5608_v40 = vpop.eup %5607  ;;  %v3604_v8 = vadd.f32 1e-06, %v3600_v47  ;;  %v3786_v47 = vld [vmem:[%s8624_s8 + $0x10] sm:$0xff] }
 0x8da   :  { %v3663_v31 = vpack.c.bf16 %v3656_v26, %v3655_v18  ;;  %v3626_v0 = vmul.f32 %v5608_v40, %v3603_v22  ;;  %vm3632_vm12 = vweird.f32 %v5608_v40  ;;  %v3784_v18 = vld [vmem:[%s8624_s8] sm:$0xff]  ;;  %v3785_v26 = vld [vmem:[%s8624_s8 + $0x8] sm:$0xff] }
 0x8db   :  { %5609 = vrsqrt.f32 %v3604_v8  ;;  %vm3633_vm6 = vmor %vm3631_vm13, %vm3632_vm12  ;;  %vm3641_vm8 = vweird.f32 %v3604_v8 }
 0x8dc   :  { %5167 = vmatmul.msk.bf16.vlgmr.msrb.gmra.mxu3 %vm155_vm0, %v3663_v31  ;;  %5169 = vmatmul.msk.bf16.vlgmr.msrb.gmra.mxu0 %vm155_vm0, %v3663_v31  ;;  %v3627_v32 = vmul.f32 %v5608_v40, %v3626_v0  ;;  %v3788_v31 = vld [vmem:[%s8624_s8 + $0x20] sm:$0xff]  ;;  %v3790_v0 = vld [vmem:[%s8624_s8 + $0x30] sm:$0xff] }
 0x8de   :  { %v3628_v60 = vmul.f32 0.5, %v3627_v32  ;;  %v3791_v32 = vld [vmem:[%s8624_s8 + $0x38] sm:$0xff] }
 0x8e0   :  { %v3629_v27 = vsub.f32 1.5, %v3628_v60  ;;  %v8130_v60 = vperm.slane %v8101_v55, 0 }
 0x8e1   :  { %v5610_v52 = vpop.eup %5609 }
 0x8e2   :  { %v3630_v61 = vmul.f32 %v5608_v40, %v3629_v27  ;;  %v3636_v23 = vmul.f32 %v5610_v52, %v3604_v8  ;;  %vm3642_vm7 = vweird.f32 %v5610_v52  ;;  %v3789_v8 = vld [vmem:[%s8624_s8 + $0x28] sm:$0xff] }
 0x8e3   :  { %vm3643_vm9 = vmor %vm3641_vm8, %vm3642_vm7 }
 0x8e4   :  { %v3637_v62 = vmul.f32 %v5610_v52, %v3636_v23  ;;  %v3634_v34 = vsel %vm3633_vm6, %v5608_v40, %v3630_v61 }
 0x8e5   :  { %v3647_v12 = vmul.f32 %v3634_v34, %v8041_v17 }
 0x8e6   :  { %v3638_v28 = vmul.f32 0.5, %v3637_v62 }
 0x8e7   :  { %v3652_v29 = vmul.f32 %v3649_v59, %v3647_v12 }
 0x8e8   :  { %v3639_v9 = vsub.f32 1.5, %v3638_v28 }
 0x8e9   :  { %v3657_v13 = vadd.f32 %v3654_v57, %v3652_v29 }
 0x8ea   :  { %v3640_v44 = vmul.f32 %v5610_v52, %v3639_v9 }
 0x8ec   :  { %v3644_v24 = vsel %vm3643_vm9, %v5610_v52, %v3640_v44 }
 0x8ed   :  { %v3648_v37 = vmul.f32 %v3644_v24, %v8047_v53 }
 0x8ef   :  { %v3653_v43 = vmul.f32 %v3649_v59, %v3648_v37 }
 0x8f1   :  { %v3658_v20 = vadd.f32 %v3654_v57, %v3653_v43  ;;  %v3770_v57 = vperm.slane %v8084_v11, 7  ;;  %v3787_v11 = vld [vmem:[%s8624_s8 + $0x18] sm:$0xff] }
 0x8f3   :  { %v3664_v6 = vpack.c.bf16 %v3658_v20, %v3657_v13 }
 0x8f5   :  { %5168 = vmatmul.msk.bf16.gmra.mxu3 %vm155_vm0, %v3664_v6  ;;  %5170 = vmatmul.msk.bf16.gmra.mxu0 %vm155_vm0, %v3664_v6  ;;  %vm3840_vm0 = vcmask 523264  }
 0x959   :  { %v3719_v30 = vpop.f32.mrf.mxu0 }
 0x95f   :  { %v3700_v39 = vpop.f32.mrf.mxu3 }
 0x961   :  { %v3721_v14 = vpop.f32.mrf.mxu0 }
 0x962   :  { %v5530_v7 = vpack.i.bf16 %v3721_v14, %v3719_v30  ;;  %v3766_v17 = vpack.c.bf16 %v3721_v14, %v3719_v30 }
 0x964   :  { %5531 = vrot.lane.b32.xlu0 %v5530_v7, %s5698_s6 }
 0x967   :  { %v3702_v56 = vpop.f32.mrf.mxu3 }
 0x968   :  { %v3762_v49 = vpack.c.bf16 %v3702_v56, %v3700_v39  ;;  %v5540_v50 = vpack.i.bf16 %v3702_v56, %v3700_v39 }
 0x972   :  { %v3724_v36 = vpop.f32.mrf.mxu0 }
 0x978   :  { %v3705_v53 = vpop.f32.mrf.mxu3 }
 0x97a   :  { %v3726_v42 = vpop.f32.mrf.mxu0 }
 0x97b   :  { %v5525_v46 = vpack.i.bf16 %v3726_v42, %v3724_v36  ;;  %v3767_v48 = vpack.c.bf16 %v3726_v42, %v3724_v36 }
 0x97d   :  { %5526 = vrot.lane.b32.xlu2 %v5525_v46, %s5698_s6 }
 0x980   :  { %v3707_v3 = vpop.f32.mrf.mxu3 }
 0x981   :  { %v5535_v10 = vpack.i.bf16 %v3707_v3, %v3705_v53  ;;  %v3763_v22 = vpack.c.bf16 %v3707_v3, %v3705_v53 }
 0x983   :  { %5536 = vrot.lane.b32.xlu1 %v5535_v10, %s5698_s6 }
 0x985   :  { %5541 = vrot.lane.b32.xlu2 %v5540_v50, %s5698_s6 }
 0x9d6   :  { %v5532_v19 = vpop.permute.xlu0 %5531 }
 0x9d7   :  { %v5527_v58 = vpop.permute.xlu2 %5526  ;;  %v5534_v63 = vunpack.i.h.bf16 %v5532_v19  ;;  %v5533_v16 = vunpack.i.l.bf16 %v5532_v19 }
 0x9d8   :  { %v5529_v2 = vunpack.i.h.bf16 %v5527_v58  ;;  %v5528_v21 = vunpack.i.l.bf16 %v5527_v58 }
 0x9d9   :  { %v3768_v25 = vpack.c.bf16 %v5534_v63, %v5533_v16 }
 0x9da   :  { %v3769_v54 = vpack.c.bf16 %v5529_v2, %v5528_v21 }
 0x9dc   :  { %3771 = vmatpush.bf16.msra.mxu2 %v3769_v54 }
 0x9df   :  { %v5542_v35 = vpop.permute.xlu2 %5541 }
 0x9e0   :  { %3772 = vmatpush.bf16.msra.mxu2 %v3768_v25  ;;  %v5544_v33 = vunpack.i.h.bf16 %v5542_v35  ;;  %v5543_v51 = vunpack.i.l.bf16 %v5542_v35 }
 0x9e2   :  { %v3764_v38 = vpack.c.bf16 %v5544_v33, %v5543_v51 }
 0x9e4   :  { %3773 = vmatpush.bf16.msra.mxu2 %v3767_v48 }
 0x9e8   :  { %3774 = vmatpush.bf16.msra.mxu2 %v3766_v17 }
 0x9f5   :  { %v5537_v59 = vpop.permute.xlu1 %5536 }
 0x9f6   :  { %v5539_v1 = vunpack.i.h.bf16 %v5537_v59  ;;  %v5538_v15 = vunpack.i.l.bf16 %v5537_v59 }
 0x9f8   :  { %v3765_v45 = vpack.c.bf16 %v5539_v1, %v5538_v15 }
 0x9fa   :  { %3775 = vmatpush.bf16.msra.mxu2 %v3765_v45 }
 0x9fe   :  { %3776 = vmatpush.bf16.msra.mxu2 %v3764_v38 }
 0xa02   :  { %3777 = vmatpush.bf16.msra.mxu2 %v3763_v22 }
 0xa06   :  { %3778 = vmatpush.bf16.msra.mxu2 %v3762_v49 }
 0xa09   :  { %3779 = vmatmul.bf16.vlgmr.msra.gmra.mxu2 %v3761_v4 }
 0xa8c   :  { %v3780_v5 = vpop.f32.mrf.mxu2 }
 0xa8d   :  { %v8118_v40 = vadd.f32 %v3780_v5, %v3770_v57 }
 0xa8f   :  { %v3832_v27 = vmul.f32 %v3784_v18, %v8118_v40  ;;  %v3833_v52 = vmul.f32 %v3785_v26, %v8118_v40  ;;  %v3834_v61 = vmul.f32 %v3786_v47, %v8118_v40  ;;  %v3835_v23 = vmul.f32 %v3787_v11, %v8118_v40 }
 0xa90   :  { %v3836_v62 = vmul.f32 %v3788_v31, %v8118_v40  ;;  %v3837_v34 = vmul.f32 %v3789_v8, %v8118_v40  ;;  %v3838_v28 = vmul.f32 %v3790_v0, %v8118_v40  ;;  %v3839_v9 = vmul.f32 %v3791_v32, %v8118_v40 }
 0xa91   :  { %v3841_v12 = vsel %vm3840_vm0, %v3832_v27, 0.0  ;;  %v3848_v44 = vsel %vm3840_vm0, %v3833_v52, 0.0  ;;  %v3855_v24 = vsel %vm3840_vm0, %v3834_v61, 0.0  ;;  %v3862_v37 = vsel %vm3840_vm0, %v3835_v23, 0.0 }
 0xa92   :  { %v3842_v29 = vrot.slane %v3841_v12, 4  ;;  %v3849_v43 = vrot.slane %v3848_v44, 4  ;;  %v3856_v13 = vrot.slane %v3855_v24, 4  ;;  %v3863_v20 = vrot.slane %v3862_v37, 4 }
 0xa93   :  { %v3869_v6 = vsel %vm3840_vm0, %v3836_v62, 0.0  ;;  %v3876_v30 = vsel %vm3840_vm0, %v3837_v34, 0.0  ;;  %v3883_v39 = vsel %vm3840_vm0, %v3838_v28, 0.0  ;;  %v3890_v14 = vsel %vm3840_vm0, %v3839_v9, 0.0 }
 0xa94   :  { %v3782_v7 = vpop.f32.mrf.mxu2  ;;  %v3843_v17 = vadd.f32 %v3842_v29, %v3841_v12  ;;  %v3850_v56 = vadd.f32 %v3849_v43, %v3848_v44  ;;  %v3857_v49 = vadd.f32 %v3856_v13, %v3855_v24  ;;  %v3864_v36 = vadd.f32 %v3863_v20, %v3862_v37 }
 0xa95   :  { %v3870_v53 = vrot.slane %v3869_v6, 4  ;;  %v3877_v42 = vrot.slane %v3876_v30, 4  ;;  %v3884_v46 = vrot.slane %v3883_v39, 4  ;;  %v3891_v3 = vrot.slane %v3890_v14, 4 }
 0xa96   :  { %v3844_v10 = vrot.slane %v3843_v17, 2  ;;  %v3851_v50 = vrot.slane %v3850_v56, 2  ;;  %v3858_v19 = vrot.slane %v3857_v49, 2  ;;  %v3865_v58 = vrot.slane %v3864_v36, 2 }
 0xa97   :  { %v3871_v2 = vadd.f32 %v3870_v53, %v3869_v6  ;;  %v3878_v21 = vadd.f32 %v3877_v42, %v3876_v30  ;;  %v3885_v63 = vadd.f32 %v3884_v46, %v3883_v39  ;;  %v3892_v16 = vadd.f32 %v3891_v3, %v3890_v14 }
 0xa98   :  { %v3845_v54 = vadd.f32 %v3844_v10, %v3843_v17  ;;  %v3852_v25 = vadd.f32 %v3851_v50, %v3850_v56  ;;  %v3859_v48 = vadd.f32 %v3858_v19, %v3857_v49  ;;  %v3866_v35 = vadd.f32 %v3865_v58, %v3864_v36 }
 0xa99   :  { %v3872_v59 = vrot.slane %v3871_v2, 2  ;;  %v3879_v1 = vrot.slane %v3878_v21, 2  ;;  %v3886_v15 = vrot.slane %v3885_v63, 2  ;;  %v3893_v33 = vrot.slane %v3892_v16, 2 }
 0xa9a   :  { %v3846_v51 = vrot.slane %v3845_v54, 1  ;;  %v3853_v45 = vrot.slane %v3852_v25, 1  ;;  %v3860_v38 = vrot.slane %v3859_v48, 1  ;;  %v3867_v22 = vrot.slane %v3866_v35, 1 }
 0xa9b   :  { %v3873_v4 = vadd.f32 %v3872_v59, %v3871_v2  ;;  %v3880_v57 = vadd.f32 %v3879_v1, %v3878_v21  ;;  %v3887_v18 = vadd.f32 %v3886_v15, %v3885_v63  ;;  %v3894_v26 = vadd.f32 %v3893_v33, %v3892_v16 }
 0xa9c   :  { %v3847_v5 = vadd.f32 %v3846_v51, %v3845_v54  ;;  %v3854_v47 = vadd.f32 %v3853_v45, %v3852_v25  ;;  %v3861_v11 = vadd.f32 %v3860_v38, %v3859_v48  ;;  %v3868_v31 = vadd.f32 %v3867_v22, %v3866_v35 }
 0xa9d   :  { %v3874_v8 = vrot.slane %v3873_v4, 1  ;;  %v3881_v0 = vrot.slane %v3880_v57, 1  ;;  %v3888_v32 = vrot.slane %v3887_v18, 1  ;;  %v3895_v27 = vrot.slane %v3894_v26, 1 }
 0xa9e   :  { %v3899_v52 = vadd.f32 %v8130_v60, %v3854_v47  ;;  %v3900_v61 = vadd.f32 %v8130_v60, %v3861_v11  ;;  %v3901_v23 = vadd.f32 %v8130_v60, %v3868_v31  ;;  %v3898_v12 = vadd.f32 %v8130_v60, %v3847_v5 }
 0xa9f   :  { %v3875_v62 = vadd.f32 %v3874_v8, %v3873_v4  ;;  %v3882_v34 = vadd.f32 %v3881_v0, %v3880_v57  ;;  %v3889_v28 = vadd.f32 %v3888_v32, %v3887_v18  ;;  %v3896_v9 = vadd.f32 %v3895_v27, %v3894_v26 }
 0xaa0   :  { %v3914_v44 = vrot.slane %v3899_v52, 7  ;;  %v3916_v24 = vrot.slane %v3900_v61, 6  ;;  %v3918_v6 = vrot.slane %v3901_v23, 5  ;;  %v5699_v46 = vmov 64.0  }
 0xaa1   :  { %v3902_v37 = vadd.f32 %v8130_v60, %v3875_v62  ;;  %v3903_v29 = vadd.f32 %v8130_v60, %v3882_v34  ;;  %v3904_v43 = vadd.f32 %v8130_v60, %v3889_v28  ;;  %v3905_v13 = vadd.f32 %v8130_v60, %v3896_v9 }
 0xaa2   :  { %v3915_v20 = vsel %vm1019_vm14, %v3914_v44, %v3898_v12  ;;  %5611 = vrcp.f32 %v5699_v46 }
 0xaa3   :  { %v3917_v30 = vsel %vm1022_vm15, %v3916_v24, %v3915_v20  ;;  %v3920_v39 = vrot.slane %v3902_v37, 4  ;;  %v3922_v7 = vrot.slane %v3903_v29, 3  ;;  %v3924_v56 = vrot.slane %v3904_v43, 2  ;;  %v5199_v20 = vld [vmem:[%s8625_s9 + $0x38] sm:$0xf0] }
 0xaa4   :  { %v3919_v14 = vsel %vm1025_vm1, %v3918_v6, %v3917_v30  ;;  %v3926_v36 = vrot.slane %v3905_v13, 1  ;;  %v5468_v6 = vld [vmem:[%s8625_s9 + $0x24] sm:$0xf] }
 0xaa5   :  { %v3921_v17 = vsel %vm1028_vm2, %v3920_v39, %v3919_v14  ;;  %v5191_v39 = vld [vmem:[%s8625_s9 + $0x28] sm:$0xf0]  ;;  %v5197_v14 = vld [vmem:[%s8625_s9 + $0x30] sm:$0xf] }
 0xaa6   :  { %v3923_v49 = vsel %vm1031_vm3, %v3922_v7, %v3921_v17  ;;  %v5471_v7 = vld [vmem:[%s8625_s9 + $0x34] sm:$0xf0] }
 0xaa7   :  { %v3925_v53 = vsel %vm1034_vm4, %v3924_v56, %v3923_v49  ;;  %v5198_v17 = vor.u32 %v5471_v7, %v5197_v14  ;;  %v5189_v56 = vld [vmem:[%s8625_s9 + $0x20] sm:$0xf]  ;;  %v5194_v49 = vor.u32 %v5468_v6, %v5191_v39 }
 0xaa8   :  { %v3927_v42 = vsel %vm1037_vm5, %v3926_v36, %v3925_v53  ;;  %v5612_v3 = vpop.eup %5611  ;;  %v5469_v36 = vld [vmem:[%s8625_s9 + $0x24] sm:$0xf0]  ;;  %v5466_v53 = vld [vmem:[%s8625_s9 + $0x14] sm:$0xf] }
 0xaa9   :  { %v3929_v60 = vsel %vm3840_vm0, %v3927_v42, 0.0  ;;  %v3933_v10 = vmul.f32 64.0, %v5612_v3  ;;  %vm3937_vm10 = vweird.f32 %v5612_v3  ;;  %4140 = vmatpush.bf16.msrb.mxu1 %v5198_v17  ;;  %v5183_v42 = vld [vmem:[%s8625_s9 + $0x18] sm:$0xf0] }
 0xaaa   :  { %3930 = vadd.xlane.f32.xlu0 %v3929_v60  ;;  %v5190_v60 = vor.u32 %v5469_v36, %v5189_v56 }
 0xaab   :  { %v3934_v50 = vsub.f32 1.0, %v3933_v10  ;;  %v5467_v10 = vld [vmem:[%s8625_s9 + $0x14] sm:$0xf0] }
 0xaad   :  { %v3935_v19 = vmul.f32 %v5612_v3, %v3934_v50  ;;  %4141 = vmatpush.bf16.msrb.mxu1 %v5190_v60 }
 0xaaf   :  { %v3936_v58 = vadd.f32 %v5612_v3, %v3935_v19  ;;  %v5186_v19 = vor.u32 %v5466_v53, %v5183_v42 }
 0xab1   :  { %v8164_v2 = vsel %vm3937_vm10, %v5612_v3, %v3936_v58  ;;  %v5181_v3 = vld [vmem:[%s8625_s9 + $0x10] sm:$0xf] }
 0xb1d   :  { %v3931_v21 = vpop.xlane.xlu0 %3930 }
 0xb1e   :  { %v3939_v63 = vmul.f32 %v8164_v2, %v3931_v21  ;;  %v5182_v21 = vor.u32 %v5467_v10, %v5181_v3 }
 0xb20   :  { %v3941_v16 = vrot.slane %v3939_v63, 1  ;;  %v3942_v54 = vrot.slane %v3939_v63, 2  ;;  %v3943_v25 = vrot.slane %v3939_v63, 3  ;;  %v3944_v48 = vrot.slane %v3939_v63, 4  ;;  %4142 = vmatpush.bf16.msrb.mxu1 %v5182_v21 }
 0xb21   :  { %v3945_v35 = vrot.slane %v3939_v63, 5  ;;  %v3946_v59 = vrot.slane %v3939_v63, 6  ;;  %v3947_v1 = vrot.slane %v3939_v63, 7  ;;  %v8167_v15 = vsub.f32 %v3898_v12, %v3939_v63  ;;  %v5464_v63 = vld [vmem:[%s8625_s9 + $0x4] sm:$0xf] }
 0xb22   :  { %v8169_v33 = vsub.f32 %v3899_v52, %v3941_v16  ;;  %v8171_v51 = vsub.f32 %v3900_v61, %v3942_v54  ;;  %v8173_v45 = vsub.f32 %v3901_v23, %v3943_v25  ;;  %v8175_v38 = vsub.f32 %v3902_v37, %v3944_v48  ;;  %v5175_v16 = vld [vmem:[%s8625_s9 + $0x8] sm:$0xf0]  ;;  %v5173_v54 = vld [vmem:[%s8625_s9] sm:$0xf]  ;;  %v5465_v25 = vld [vmem:[%s8625_s9 + $0x4] sm:$0xf0] }
 0xb23   :  { %v8177_v22 = vsub.f32 %v3903_v29, %v3945_v35  ;;  %v8179_v4 = vsub.f32 %v3904_v43, %v3946_v59  ;;  %v8181_v57 = vsub.f32 %v3905_v13, %v3947_v1  ;;  %v3964_v11 = vmul.f32 %v8167_v15, %v8167_v15  ;;  %v5470_v13 = vld [vmem:[%s8625_s9 + $0x34] sm:$0xf] }
 0xb24   :  { %v3965_v18 = vmul.f32 %v8169_v33, %v8169_v33  ;;  %v3966_v26 = vmul.f32 %v8171_v51, %v8171_v51  ;;  %v3967_v5 = vmul.f32 %v8173_v45, %v8173_v45  ;;  %v3968_v47 = vmul.f32 %v8175_v38, %v8175_v38 }
 0xb25   :  { %v3969_v31 = vmul.f32 %v8177_v22, %v8177_v22  ;;  %v3970_v32 = vmul.f32 %v8179_v4, %v8179_v4  ;;  %v3971_v27 = vmul.f32 %v8181_v57, %v8181_v57  ;;  %v5202_v30 = vor.u32 %v5470_v13, %v5199_v20 }
 0xb26   :  { %v3980_v8 = vrot.slane %v3965_v18, 7  ;;  %v3982_v0 = vrot.slane %v3966_v26, 6  ;;  %v3984_v61 = vrot.slane %v3967_v5, 5  ;;  %v3986_v62 = vrot.slane %v3968_v47, 4 }
 0xb27   :  { %v3988_v28 = vrot.slane %v3969_v31, 3  ;;  %v3990_v12 = vrot.slane %v3970_v32, 2  ;;  %v3992_v24 = vrot.slane %v3971_v27, 1  ;;  %4153 = vmatpush.bf16.msra.mxu3 %v5202_v30  ;;  %v5178_v48 = vor.u32 %v5464_v63, %v5175_v16 }
 0xb28   :  { %v3981_v52 = vsel %vm1019_vm14, %v3980_v8, %v3964_v11  ;;  %v5174_v35 = vor.u32 %v5465_v25, %v5173_v54  ;;  %v4034_v11 = vperm.slane %v8101_v55, 1  ;;  %v4043_v8 = vperm.slane %v8101_v55, 2 }
 0xb29   :  { %v3983_v23 = vsel %vm1022_vm15, %v3982_v0, %v3981_v52 }
 0xb2a   :  { %v3985_v34 = vsel %vm1025_vm1, %v3984_v61, %v3983_v23  ;;  %4143 = vmatpush.bf16.msrb.mxu1 %v5174_v35 }
 0xb2b   :  { %v3987_v9 = vsel %vm1028_vm2, %v3986_v62, %v3985_v34  ;;  %4154 = vmatpush.bf16.msra.mxu3 %v5194_v49 }
 0xb2c   :  { %v3989_v44 = vsel %vm1031_vm3, %v3988_v28, %v3987_v9 }
 0xb2d   :  { %v3991_v37 = vsel %vm1034_vm4, %v3990_v12, %v3989_v44 }
 0xb2e   :  { %v3993_v29 = vsel %vm1037_vm5, %v3992_v24, %v3991_v37 }
 0xb2f   :  { %v3995_v43 = vsel %vm3840_vm0, %v3993_v29, 0.0  ;;  %4155 = vmatpush.bf16.msra.mxu3 %v5186_v19 }
 0xb30   :  { %3996 = vadd.xlane.f32.xlu2 %v3995_v43 }
 0xb33   :  { %4156 = vmatpush.bf16.msra.mxu3 %v5178_v48 }
 0xba3   :  { %v3997_v46 = vpop.xlane.xlu2 %3996 }
 0xba4   :  { %v3998_v50 = vmul.f32 %v3997_v46, %v8164_v2 }
 0xba6   :  { %v3999_v58 = vadd.f32 1e-06, %v3998_v50 }
 0xba8   :  { %5613 = vrsqrt.f32 %v3999_v58  ;;  %vm4006_vm12 = vweird.f32 %v3999_v58 }
 0xbae   :  { %v5614_v59 = vpop.eup %5613 }
 0xbaf   :  { %v4001_v1 = vmul.f32 %v5614_v59, %v3999_v58  ;;  %vm4007_vm11 = vweird.f32 %v5614_v59 }
 0xbb0   :  { %vm4008_vm13 = vmor %vm4006_vm12, %vm4007_vm11 }
 0xbb1   :  { %v4002_v18 = vmul.f32 %v5614_v59, %v4001_v1 }
 0xbb3   :  { %v4003_v26 = vmul.f32 0.5, %v4002_v18 }
 0xbb5   :  { %v4004_v5 = vsub.f32 1.5, %v4003_v26 }
 0xbb7   :  { %v4005_v47 = vmul.f32 %v5614_v59, %v4004_v5 }
 0xbb9   :  { %v4009_v31 = vsel %vm4008_vm13, %v5614_v59, %v4005_v47 }
 0xbba   :  { %v4011_v0 = vrot.slane %v4009_v31, 1  ;;  %v4012_v32 = vrot.slane %v4009_v31, 2  ;;  %v4013_v27 = vrot.slane %v4009_v31, 3  ;;  %v4014_v52 = vrot.slane %v4009_v31, 4 }
 0xbbb   :  { %v4026_v61 = vmul.f32 %v4009_v31, %v8167_v15  ;;  %v4015_v23 = vrot.slane %v4009_v31, 5  ;;  %v4016_v62 = vrot.slane %v4009_v31, 6  ;;  %v4017_v34 = vrot.slane %v4009_v31, 7 }
 0xbbc   :  { %v4027_v28 = vmul.f32 %v4011_v0, %v8169_v33  ;;  %v4028_v9 = vmul.f32 %v4012_v32, %v8171_v51  ;;  %v4029_v12 = vmul.f32 %v4013_v27, %v8173_v45  ;;  %v4030_v44 = vmul.f32 %v4014_v52, %v8175_v38 }
 0xbbd   :  { %v4035_v24 = vmul.f32 %v4034_v11, %v4026_v61  ;;  %v4031_v37 = vmul.f32 %v4015_v23, %v8177_v22  ;;  %v4032_v29 = vmul.f32 %v4016_v62, %v8179_v4  ;;  %v4033_v43 = vmul.f32 %v4017_v34, %v8181_v57  ;;  %v62_v61 = vld [vmem:[%s8617_s1 + $0x28] sm:$0xff] }
 0xbbe   :  { %v4036_v13 = vmul.f32 %v4034_v11, %v4027_v28  ;;  %v4037_v15 = vmul.f32 %v4034_v11, %v4028_v9  ;;  %v4038_v20 = vmul.f32 %v4034_v11, %v4029_v12  ;;  %v4039_v6 = vmul.f32 %v4034_v11, %v4030_v44  ;;  %v5479_v9 = vld [vmem:[%s8626_s10 + $0x38] sm:$0xff] }
 0xbbf   :  { %v4040_v30 = vmul.f32 %v4034_v11, %v4031_v37  ;;  %v4041_v39 = vmul.f32 %v4034_v11, %v4032_v29  ;;  %v4042_v33 = vmul.f32 %v4034_v11, %v4033_v43  ;;  %v4044_v14 = vadd.f32 %v4043_v8, %v4035_v24  ;;  %4313 = vmatpush.bf16.msra.mxu0 %v5479_v9 }
 0xbc0   :  { %v4045_v51 = vadd.f32 %v4043_v8, %v4036_v13  ;;  %v4046_v7 = vadd.f32 %v4043_v8, %v4037_v15  ;;  %v4047_v45 = vadd.f32 %v4043_v8, %v4038_v20  ;;  %v4048_v17 = vadd.f32 %v4043_v8, %v4039_v6  ;;  %v5478_v13 = vld [vmem:[%s8626_s10 + $0x30] sm:$0xff]  ;;  %v5487_v20 = vld [vmem:[%s8626_s10 + $0x78] sm:$0xff] }
 0xbc1   :  { %v4049_v38 = vadd.f32 %v4043_v8, %v4040_v30  ;;  %v4050_v56 = vadd.f32 %v4043_v8, %v4041_v39  ;;  %v4051_v49 = vadd.f32 %v4043_v8, %v4042_v33  ;;  %v4052_v22 = vpack.c.bf16 %v4044_v14, %v4044_v14  ;;  %4326 = vmatpush.bf16.msrb.mxu2 %v5487_v20  ;;  %v5477_v30 = vld [vmem:[%s8626_s10 + $0x28] sm:$0xff]  ;;  %v5486_v14 = vld [vmem:[%s8626_s10 + $0x70] sm:$0xff] }
 0xbc2   :  { %v4053_v36 = vpack.c.bf16 %v4045_v51, %v4045_v51  ;;  %v4054_v4 = vpack.c.bf16 %v4046_v7, %v4046_v7  ;;  %v4055_v53 = vpack.c.bf16 %v4047_v45, %v4047_v45  ;;  %v4056_v57 = vpack.c.bf16 %v4048_v17, %v4048_v17  ;;  %v5476_v45 = vld [vmem:[%s8626_s10 + $0x20] sm:$0xff] }
 0xbc3   :  { %v4057_v42 = vpack.c.bf16 %v4049_v38, %v4049_v38  ;;  %v4058_v60 = vpack.c.bf16 %v4050_v56, %v4050_v56  ;;  %v4059_v46 = vpack.c.bf16 %v4051_v49, %v4051_v49  ;;  %v4070_v58 = vunpack.c.l.b16 %v4052_v22  ;;  %4314 = vmatpush.bf16.msra.mxu0 %v5478_v13  ;;  %v5485_v38 = vld [vmem:[%s8626_s10 + $0x68] sm:$0xff]  ;;  %v5475_v49 = vld [vmem:[%s8626_s10 + $0x18] sm:$0xff] }
 0xbc4   :  { %v4071_v3 = vunpack.c.l.b16 %v4053_v36  ;;  %v4072_v10 = vunpack.c.l.b16 %v4054_v4  ;;  %v4073_v50 = vunpack.c.l.b16 %v4055_v53  ;;  %v4074_v19 = vunpack.c.l.b16 %v4056_v57  ;;  %v5484_v36 = vld [vmem:[%s8626_s10 + $0x60] sm:$0xff] }
 0xbc5   :  { %v4075_v21 = vunpack.c.l.b16 %v4057_v42  ;;  %v4076_v54 = vunpack.c.l.b16 %v4058_v60  ;;  %v4077_v25 = vunpack.c.l.b16 %v4059_v46  ;;  %v4060_v27 = vperm.slane %v8101_v55, 3  ;;  %4327 = vmatpush.bf16.msrb.mxu2 %v5486_v14  ;;  %v5474_v42 = vld [vmem:[%s8626_s10 + $0x10] sm:$0xff] }
 0xbc6   :  { %v4078_v63 = vrot.slane %v4071_v3, 7  ;;  %v4080_v16 = vrot.slane %v4072_v10, 6  ;;  %v4082_v35 = vrot.slane %v4073_v50, 5  ;;  %v4084_v1 = vrot.slane %v4074_v19, 4  ;;  %v5483_v10 = vld [vmem:[%s8626_s10 + $0x58] sm:$0xff] }
 0xbc7   :  { %v4086_v26 = vrot.slane %v4075_v21, 3  ;;  %v4088_v47 = vrot.slane %v4076_v54, 2  ;;  %v4090_v31 = vrot.slane %v4077_v25, 1  ;;  %v4061_v34 = vperm.slane %v62_v61, 3  ;;  %4315 = vmatpush.bf16.msra.mxu0 %v5477_v30  ;;  %v5473_v21 = vld [vmem:[%s8626_s10 + $0x8] sm:$0xff]  ;;  %v5482_v54 = vld [vmem:[%s8626_s10 + $0x50] sm:$0xff] }
 0xbc8   :  { %v4079_v48 = vsel %vm1019_vm14, %v4078_v63, %v4070_v58 }
 0xbc9   :  { %v4081_v59 = vsel %vm1022_vm15, %v4080_v16, %v4079_v48  ;;  %4328 = vmatpush.bf16.msrb.mxu2 %v5485_v38  ;;  %v5272_v38 = vld [vmem:[%s8624_s8 + $0x58] sm:$0xff] }
 0xbca   :  { %v4083_v18 = vsel %vm1025_vm1, %v4082_v35, %v4081_v59  ;;  %v5472_v59 = vld [vmem:[%s8626_s10] sm:$0xff] }
 0xbcb   :  { %v4085_v5 = vsel %vm1028_vm2, %v4084_v1, %v4083_v18  ;;  %4316 = vmatpush.bf16.msra.mxu0 %v5476_v45  ;;  %v5269_v45 = vld [vmem:[%s8624_s8 + $0x40] sm:$0xff] }
 0xbcc   :  { %v4087_v11 = vsel %vm1031_vm3, %v4086_v26, %v4085_v5  ;;  %v5481_v26 = vld [vmem:[%s8626_s10 + $0x48] sm:$0xff] }
 0xbcd   :  { %v4089_v8 = vsel %vm1034_vm4, %v4088_v47, %v4087_v11  ;;  %4329 = vmatpush.bf16.msrb.mxu2 %v5484_v36  ;;  %v5275_v36 = vld [vmem:[%s8624_s8 + $0x70] sm:$0xff] }
 0xbce   :  { %v4091_v0 = vsel %vm1037_vm5, %v4090_v31, %v4089_v8 }
 0xbcf   :  { %v4092_v32 = vpack.c.b16 %v4091_v0, %v4091_v0  ;;  %4317 = vmatpush.bf16.msra.mxu0 %v5475_v49  ;;  %v5480_v0 = vld [vmem:[%s8626_s10 + $0x40] sm:$0xff] }
 0xbd1   :  { %5203 = vmatmul.msk.bf16.vlgmr.msrb.gmra.mxu1 %vm3840_vm0, %v4092_v32  ;;  %5204 = vmatmul.msk.bf16.vlgmr.msra.gmra.mxu3 %vm3840_vm0, %v4092_v32 }
 0xbd2   :  { %4330 = vmatpush.bf16.msrb.mxu2 %v5483_v10 }
 0xbd3   :  { %4318 = vmatpush.bf16.msra.mxu0 %v5474_v42 }
 0xbd6   :  { %4331 = vmatpush.bf16.msrb.mxu2 %v5482_v54 }
 0xbd7   :  { %4319 = vmatpush.bf16.msra.mxu0 %v5473_v21 }
 0xbda   :  { %4332 = vmatpush.bf16.msrb.mxu2 %v5481_v26 }
 0xbdb   :  { %4320 = vmatpush.bf16.msra.mxu0 %v5472_v59 }
 0xbde   :  { %4333 = vmatpush.bf16.msrb.mxu2 %v5480_v0 }
 0xc4e   :  { %v4145_v52 = vpop.f32.mrf.mxu1 }
 0xc4f   :  { %v8279_v23 = vadd.f32 %v4145_v52, %v4060_v27 }
 0xc51   :  { %v8282_v62 = vmul.f32 0.70710677, %v8279_v23  ;;  %v4162_v9 = vmul.f32 0.5, %v8279_v23  ;;  %v4216_v23 = vperm.slane %v8101_v55, 4 }
 0xc53   :  { %v4170_v28 = vand.u32 2147483647, %v8282_v62  ;;  %vm4166_vm6 = vcmp.ge.f32.partialorder %v8282_v62, 0.0 }
 0xc54   :  { %v4158_v12 = vpop.f32.mrf.mxu3  ;;  %v4168_v52 = vsel %vm4166_vm6, 1.0, %v8697_v41 }
 0xc55   :  { %v4172_v44 = vmul.f32 0.3275911, %v4170_v28  ;;  %v8288_v24 = vadd.f32 %v4158_v12, %v4061_v34  ;;  %v4196_v7 = vsub.f32 0.0, %v4170_v28 }
 0xc56   :  { %v4147_v37 = vpop.f32.mrf.mxu1 }
 0xc57   :  { %v4174_v29 = vadd.f32 1.0, %v4172_v44  ;;  %v8291_v43 = vmul.f32 0.70710677, %v8288_v24  ;;  %v4198_v22 = vmul.f32 %v4196_v7, %v4170_v28  ;;  %v4163_v20 = vmul.f32 0.5, %v8288_v24  ;;  %v5270_v24 = vld [vmem:[%s8624_s8 + $0x48] sm:$0xff] }
 0xc59   :  { %5615 = vrcp.f32 %v4174_v29  ;;  %v4171_v15 = vand.u32 2147483647, %v8291_v43  ;;  %v4200_v3 = vmul.f32 1.442695, %v4198_v22  ;;  %vm4167_vm7 = vcmp.ge.f32.partialorder %v8291_v43, 0.0  ;;  %v5274_v22 = vld [vmem:[%s8624_s8 + $0x68] sm:$0xff] }
 0xc5a   :  { %v4169_v29 = vsel %vm4167_vm7, 1.0, %v8697_v41 }
 0xc5b   :  { %v4173_v6 = vmul.f32 0.3275911, %v4171_v15  ;;  %v4197_v57 = vsub.f32 0.0, %v4171_v15 }
 0xc5c   :  { %v4160_v39 = vpop.f32.mrf.mxu3 }
 0xc5d   :  { %v4175_v33 = vadd.f32 1.0, %v4173_v6  ;;  %v4199_v58 = vmul.f32 %v4197_v57, %v4171_v15 }
 0xc5f   :  { %v5616_v51 = vpop.eup %5615  ;;  %5617 = vrcp.f32 %v4175_v33  ;;  %v4202_v35 = vmul.f32 1.442695, %v4199_v58 }
 0xc60   :  { %v4178_v17 = vmul.f32 1.0614054, %v5616_v51  ;;  %5619 = vpow2.f32 %v4200_v3 }
 0xc61   :  { %5621 = vpow2.f32 %v4202_v35 }
 0xc62   :  { %v4180_v56 = vadd.f32 -1.4531521, %v4178_v17  ;;  %v5271_v17 = vld [vmem:[%s8624_s8 + $0x50] sm:$0xff] }
 0xc64   :  { %v4182_v4 = vmul.f32 %v5616_v51, %v4180_v56  ;;  %v5273_v56 = vld [vmem:[%s8624_s8 + $0x60] sm:$0xff] }
 0xc65   :  { %v5618_v53 = vpop.eup %5617 }
 0xc66   :  { %v4184_v60 = vadd.f32 1.4214138, %v4182_v4  ;;  %v4179_v46 = vmul.f32 1.0614054, %v5618_v53  ;;  %v5620_v11 = vpop.eup %5619  ;;  %v5276_v4 = vld [vmem:[%s8624_s8 + $0x78] sm:$0xff] }
 0xc67   :  { %v5622_v28 = vpop.eup %5621 }
 0xc68   :  { %v4186_v50 = vmul.f32 %v5616_v51, %v4184_v60  ;;  %v4181_v19 = vadd.f32 -1.4531521, %v4179_v46 }
 0xc6a   :  { %v4188_v63 = vadd.f32 -0.28449672, %v4186_v50  ;;  %v4183_v16 = vmul.f32 %v5618_v53, %v4181_v19 }
 0xc6c   :  { %v4190_v25 = vmul.f32 %v5616_v51, %v4188_v63  ;;  %v4185_v48 = vadd.f32 1.4214138, %v4183_v16 }
 0xc6e   :  { %v4192_v1 = vadd.f32 0.2548296, %v4190_v25  ;;  %v4187_v18 = vmul.f32 %v5618_v53, %v4185_v48 }
 0xc70   :  { %v4194_v5 = vmul.f32 %v5616_v51, %v4192_v1  ;;  %v4189_v47 = vadd.f32 -0.28449672, %v4187_v18 }
 0xc72   :  { %v4204_v31 = vmul.f32 %v5620_v11, %v4194_v5  ;;  %v4191_v8 = vmul.f32 %v5618_v53, %v4189_v47 }
 0xc74   :  { %v4206_v32 = vsub.f32 1.0, %v4204_v31  ;;  %v4193_v27 = vadd.f32 0.2548296, %v4191_v8 }
 0xc76   :  { %v4208_v61 = vmul.f32 %v4206_v32, %v4168_v52  ;;  %v4195_v34 = vmul.f32 %v5618_v53, %v4193_v27  ;;  %v8374_v53 = vperm.slane %v8101_v55, 5 }
 0xc78   :  { %v4210_v12 = vadd.f32 1.0, %v4208_v61  ;;  %v4205_v62 = vmul.f32 %v5622_v28, %v4195_v34 }
 0xc7a   :  { %v4212_v44 = vmul.f32 %v4210_v12, %v4162_v9  ;;  %v4207_v37 = vsub.f32 1.0, %v4205_v62 }
 0xc7c   :  { %v4214_v13 = vpack.c.bf16 %v4212_v44, %v4212_v44  ;;  %v4209_v15 = vmul.f32 %v4207_v37, %v4169_v29 }
 0xc7e   :  { %v4211_v6 = vadd.f32 1.0, %v4209_v15  ;;  %4321 = vmatmul.bf16.vlgmr.msra.gmra.mxu0 %v4214_v13 }
 0xc80   :  { %v4213_v30 = vmul.f32 %v4211_v6, %v4163_v20 }
 0xc82   :  { %v4215_v39 = vpack.c.bf16 %v4213_v30, %v4213_v30 }
 0xc84   :  { %4334 = vmatmul.bf16.vlgmr.msrb.gmra.mxu2 %v4215_v39 }
 0xcfb   :  { %v4322_v33 = vpop.f32.mrf.mxu0 }
 0xcfc   :  { %v4323_v51 = vadd.f32 %v4322_v33, %v4216_v23 }
 0xd03   :  { %v4324_v14 = vpop.f32.mrf.mxu0 }
 0xd07   :  { %v4335_v43 = vpop.f32.mrf.mxu2 }
 0xd08   :  { %v4336_v7 = vadd.f32 %v4335_v43, %v4323_v51 }
 0xd0a   :  { %v8362_v49 = vadd.f32 %v4336_v7, %v8118_v40 }
 0xd0c   :  { %v4391_v57 = vmul.f32 %v5269_v45, %v8362_v49  ;;  %v4392_v40 = vmul.f32 %v5270_v24, %v8362_v49  ;;  %v4393_v42 = vmul.f32 %v5271_v17, %v8362_v49  ;;  %v4394_v60 = vmul.f32 %v5272_v38, %v8362_v49 }
 0xd0d   :  { %v4395_v46 = vmul.f32 %v5273_v56, %v8362_v49  ;;  %v4396_v3 = vmul.f32 %v5274_v22, %v8362_v49  ;;  %v4397_v10 = vmul.f32 %v5275_v36, %v8362_v49  ;;  %v4398_v50 = vmul.f32 %v5276_v4, %v8362_v49 }
 0xd0e   :  { %v4399_v19 = vsel %vm3840_vm0, %v4391_v57, 0.0  ;;  %v4406_v55 = vsel %vm3840_vm0, %v4392_v40, 0.0  ;;  %v4413_v58 = vsel %vm3840_vm0, %v4393_v42, 0.0  ;;  %v4420_v21 = vsel %vm3840_vm0, %v4394_v60, 0.0 }
 0xd0f   :  { %v4337_v63 = vpop.f32.mrf.mxu2  ;;  %v4400_v16 = vrot.slane %v4399_v19, 4  ;;  %v4407_v54 = vrot.slane %v4406_v55, 4  ;;  %v4414_v25 = vrot.slane %v4413_v58, 4  ;;  %v4421_v48 = vrot.slane %v4420_v21, 4 }
 0xd10   :  { %v4427_v35 = vsel %vm3840_vm0, %v4395_v46, 0.0  ;;  %v4434_v59 = vsel %vm3840_vm0, %v4396_v3, 0.0  ;;  %v4441_v1 = vsel %vm3840_vm0, %v4397_v10, 0.0  ;;  %v4448_v18 = vsel %vm3840_vm0, %v4398_v50, 0.0 }
 0xd11   :  { %v4401_v26 = vadd.f32 %v4400_v16, %v4399_v19  ;;  %v4408_v5 = vadd.f32 %v4407_v54, %v4406_v55  ;;  %v4415_v47 = vadd.f32 %v4414_v25, %v4413_v58  ;;  %v4422_v11 = vadd.f32 %v4421_v48, %v4420_v21 }
 0xd12   :  { %v4428_v31 = vrot.slane %v4427_v35, 4  ;;  %v4435_v8 = vrot.slane %v4434_v59, 4  ;;  %v4442_v0 = vrot.slane %v4441_v1, 4  ;;  %v4449_v32 = vrot.slane %v4448_v18, 4 }
 0xd13   :  { %v4402_v27 = vrot.slane %v4401_v26, 2  ;;  %v4409_v52 = vrot.slane %v4408_v5, 2  ;;  %v4416_v61 = vrot.slane %v4415_v47, 2  ;;  %v4423_v34 = vrot.slane %v4422_v11, 2 }
 0xd14   :  { %v4429_v28 = vadd.f32 %v4428_v31, %v4427_v35  ;;  %v4436_v9 = vadd.f32 %v4435_v8, %v4434_v59  ;;  %v4443_v12 = vadd.f32 %v4442_v0, %v4441_v1  ;;  %v4450_v62 = vadd.f32 %v4449_v32, %v4448_v18 }
 0xd15   :  { %v4403_v44 = vadd.f32 %v4402_v27, %v4401_v26  ;;  %v4410_v37 = vadd.f32 %v4409_v52, %v4408_v5  ;;  %v4417_v29 = vadd.f32 %v4416_v61, %v4415_v47  ;;  %v4424_v13 = vadd.f32 %v4423_v34, %v4422_v11 }
 0xd16   :  { %v4430_v15 = vrot.slane %v4429_v28, 2  ;;  %v4437_v20 = vrot.slane %v4436_v9, 2  ;;  %v4444_v6 = vrot.slane %v4443_v12, 2  ;;  %v4451_v30 = vrot.slane %v4450_v62, 2 }
 0xd17   :  { %v4404_v39 = vrot.slane %v4403_v44, 1  ;;  %v4411_v33 = vrot.slane %v4410_v37, 1  ;;  %v4418_v23 = vrot.slane %v4417_v29, 1  ;;  %v4425_v14 = vrot.slane %v4424_v13, 1 }
 0xd18   :  { %v4431_v51 = vadd.f32 %v4430_v15, %v4429_v28  ;;  %v4438_v43 = vadd.f32 %v4437_v20, %v4436_v9  ;;  %v4445_v7 = vadd.f32 %v4444_v6, %v4443_v12  ;;  %v4452_v45 = vadd.f32 %v4451_v30, %v4450_v62 }
 0xd19   :  { %v4405_v24 = vadd.f32 %v4404_v39, %v4403_v44  ;;  %v4412_v17 = vadd.f32 %v4411_v33, %v4410_v37  ;;  %v4419_v38 = vadd.f32 %v4418_v23, %v4417_v29  ;;  %v4426_v56 = vadd.f32 %v4425_v14, %v4424_v13 }
 0xd1a   :  { %v4432_v22 = vrot.slane %v4431_v51, 1  ;;  %v4439_v36 = vrot.slane %v4438_v43, 1  ;;  %v4446_v4 = vrot.slane %v4445_v7, 1  ;;  %v4453_v57 = vrot.slane %v4452_v45, 1 }
 0xd1b   :  { %v4457_v40 = vadd.f32 %v8374_v53, %v4412_v17  ;;  %v4458_v42 = vadd.f32 %v8374_v53, %v4419_v38  ;;  %v4459_v60 = vadd.f32 %v8374_v53, %v4426_v56  ;;  %v4456_v19 = vadd.f32 %v8374_v53, %v4405_v24 }
 0xd1c   :  { %v4433_v46 = vadd.f32 %v4432_v22, %v4431_v51  ;;  %v4440_v3 = vadd.f32 %v4439_v36, %v4438_v43  ;;  %v4447_v10 = vadd.f32 %v4446_v4, %v4445_v7  ;;  %v4454_v50 = vadd.f32 %v4453_v57, %v4452_v45 }
 0xd1d   :  { %v4472_v55 = vrot.slane %v4457_v40, 7  ;;  %v4474_v58 = vrot.slane %v4458_v42, 6  ;;  %v4476_v48 = vrot.slane %v4459_v60, 5 }
 0xd1e   :  { %v4460_v21 = vadd.f32 %v8374_v53, %v4433_v46  ;;  %v4461_v63 = vadd.f32 %v8374_v53, %v4440_v3  ;;  %v4462_v16 = vadd.f32 %v8374_v53, %v4447_v10  ;;  %v4463_v54 = vadd.f32 %v8374_v53, %v4454_v50 }
 0xd1f   :  { %v4473_v25 = vsel %vm1019_vm14, %v4472_v55, %v4456_v19  ;;  %v5495_v55 = vld [vmem:[%s8625_s9 + $0x74] sm:$0xf0] }
 0xd20   :  { %v4475_v35 = vsel %vm1022_vm15, %v4474_v58, %v4473_v25  ;;  %v4478_v59 = vrot.slane %v4460_v21, 4  ;;  %v4480_v18 = vrot.slane %v4461_v63, 3  ;;  %v4482_v5 = vrot.slane %v4462_v16, 2  ;;  %v5494_v58 = vld [vmem:[%s8625_s9 + $0x74] sm:$0xf] }
 0xd21   :  { %v4477_v1 = vsel %vm1025_vm1, %v4476_v48, %v4475_v35  ;;  %v4484_v11 = vrot.slane %v4463_v54, 1  ;;  %v5493_v25 = vld [vmem:[%s8625_s9 + $0x64] sm:$0xf0]  ;;  %v5492_v35 = vld [vmem:[%s8625_s9 + $0x64] sm:$0xf] }
 0xd22   :  { %v4479_v26 = vsel %vm1028_vm2, %v4478_v59, %v4477_v1  ;;  %v5337_v59 = vld [vmem:[%s8625_s9 + $0x68] sm:$0xf0] }
 0xd23   :  { %v4481_v47 = vsel %vm1031_vm3, %v4480_v18, %v4479_v26  ;;  %v5340_v26 = vor.u32 %v5492_v35, %v5337_v59 }
 0xd24   :  { %v4483_v31 = vsel %vm1034_vm4, %v4482_v5, %v4481_v47  ;;  %v5327_v5 = vld [vmem:[%s8625_s9 + $0x50] sm:$0xf]  ;;  %v5491_v47 = vld [vmem:[%s8625_s9 + $0x54] sm:$0xf0] }
 0xd25   :  { %v4485_v8 = vsel %vm1037_vm5, %v4484_v11, %v4483_v31  ;;  %v5490_v11 = vld [vmem:[%s8625_s9 + $0x54] sm:$0xf]  ;;  %v5329_v31 = vld [vmem:[%s8625_s9 + $0x58] sm:$0xf0] }
 0xd26   :  { %v4487_v53 = vsel %vm3840_vm0, %v4485_v8, 0.0  ;;  %v5328_v8 = vor.u32 %v5491_v47, %v5327_v5 }
 0xd27   :  { %4488 = vadd.xlane.f32.xlu1 %v4487_v53  ;;  %v5332_v53 = vor.u32 %v5490_v11, %v5329_v31 }
 0xd9a   :  { %v4489_v0 = vpop.xlane.xlu1 %4488 }
 0xd9b   :  { %v4490_v32 = vmul.f32 %v4489_v0, %v8164_v2  ;;  %v5319_v0 = vld [vmem:[%s8625_s9 + $0x40] sm:$0xf] }
 0xd9d   :  { %v4492_v27 = vrot.slane %v4490_v32, 1  ;;  %v4493_v52 = vrot.slane %v4490_v32, 2  ;;  %v4494_v61 = vrot.slane %v4490_v32, 3  ;;  %v4495_v34 = vrot.slane %v4490_v32, 4 }
 0xd9e   :  { %v4496_v28 = vrot.slane %v4490_v32, 5  ;;  %v4497_v9 = vrot.slane %v4490_v32, 6  ;;  %v4498_v12 = vrot.slane %v4490_v32, 7  ;;  %v8409_v62 = vsub.f32 %v4456_v19, %v4490_v32  ;;  %v5343_v19 = vld [vmem:[%s8625_s9 + $0x70] sm:$0xf] }
 0xd9f   :  { %v8411_v44 = vsub.f32 %v4457_v40, %v4492_v27  ;;  %v8413_v37 = vsub.f32 %v4458_v42, %v4493_v52  ;;  %v8415_v29 = vsub.f32 %v4459_v60, %v4494_v61  ;;  %v8417_v13 = vsub.f32 %v4460_v21, %v4495_v34  ;;  %v5489_v32 = vld [vmem:[%s8625_s9 + $0x44] sm:$0xf0]  ;;  %v5488_v27 = vld [vmem:[%s8625_s9 + $0x44] sm:$0xf]  ;;  %v5321_v52 = vld [vmem:[%s8625_s9 + $0x48] sm:$0xf0] }
 0xda0   :  { %v8419_v15 = vsub.f32 %v4461_v63, %v4496_v28  ;;  %v8421_v20 = vsub.f32 %v4462_v16, %v4497_v9  ;;  %v8423_v6 = vsub.f32 %v4463_v54, %v4498_v12  ;;  %v4515_v14 = vmul.f32 %v8409_v62, %v8409_v62  ;;  %v5345_v16 = vld [vmem:[%s8625_s9 + $0x78] sm:$0xf0]  ;;  %v5335_v54 = vld [vmem:[%s8625_s9 + $0x60] sm:$0xf] }
 0xda1   :  { %v4516_v30 = vmul.f32 %v8411_v44, %v8411_v44  ;;  %v4517_v39 = vmul.f32 %v8413_v37, %v8413_v37  ;;  %v4518_v33 = vmul.f32 %v8415_v29, %v8415_v29  ;;  %v4519_v23 = vmul.f32 %v8417_v13, %v8417_v13 }
 0xda2   :  { %v4520_v51 = vmul.f32 %v8419_v15, %v8419_v15  ;;  %v4521_v45 = vmul.f32 %v8421_v20, %v8421_v20  ;;  %v4522_v24 = vmul.f32 %v8423_v6, %v8423_v6  ;;  %v5344_v63 = vor.u32 %v5495_v55, %v5343_v19 }
 0xda3   :  { %v4531_v43 = vrot.slane %v4516_v30, 7  ;;  %v4533_v7 = vrot.slane %v4517_v39, 6  ;;  %v4535_v38 = vrot.slane %v4518_v33, 5  ;;  %v4537_v22 = vrot.slane %v4519_v23, 4  ;;  %v5640_v23 = vld [vmem:[%s8617_s1 + $0x20] sm:$0xff] }
 0xda4   :  { %v4539_v4 = vrot.slane %v4520_v51, 3  ;;  %v4541_v40 = vrot.slane %v4521_v45, 2  ;;  %v4543_v60 = vrot.slane %v4522_v24, 1  ;;  %v5348_v48 = vor.u32 %v5494_v58, %v5345_v16  ;;  %4691 = vmatpush.bf16.msra.mxu1 %v5344_v63 }
 0xda5   :  { %v4532_v17 = vsel %vm1019_vm14, %v4531_v43, %v4515_v14  ;;  %v5336_v18 = vor.u32 %v5493_v25, %v5335_v54  ;;  %v5320_v34 = vor.u32 %v5489_v32, %v5319_v0  ;;  %v5324_v9 = vor.u32 %v5488_v27, %v5321_v52 }
 0xda6   :  { %v4534_v56 = vsel %vm1022_vm15, %v4533_v7, %v4532_v17  ;;  %4704 = vmatpush.bf16.msrb.mxu3 %v5348_v48  ;;  %v4585_v14 = vperm.slane %v5640_v23, 6  ;;  %v4594_v51 = vperm.slane %v5640_v23, 7 }
 0xda7   :  { %v4536_v36 = vsel %vm1025_vm1, %v4535_v38, %v4534_v56 }
 0xda8   :  { %v4538_v57 = vsel %vm1028_vm2, %v4537_v22, %v4536_v36  ;;  %4692 = vmatpush.bf16.msra.mxu1 %v5336_v18 }
 0xda9   :  { %v4540_v42 = vsel %vm1031_vm3, %v4539_v4, %v4538_v57 }
 0xdaa   :  { %v4542_v46 = vsel %vm1034_vm4, %v4541_v40, %v4540_v42  ;;  %4705 = vmatpush.bf16.msrb.mxu3 %v5340_v26 }
 0xdab   :  { %v4544_v3 = vsel %vm1037_vm5, %v4543_v60, %v4542_v46 }
 0xdac   :  { %v4546_v10 = vsel %vm3840_vm0, %v4544_v3, 0.0  ;;  %4693 = vmatpush.bf16.msra.mxu1 %v5328_v8 }
 0xdad   :  { %4547 = vadd.xlane.f32.xlu0 %v4546_v10 }
 0xdae   :  { %4706 = vmatpush.bf16.msrb.mxu3 %v5332_v53 }
 0xdb0   :  { %4694 = vmatpush.bf16.msra.mxu1 %v5320_v34 }
 0xdb2   :  { %4707 = vmatpush.bf16.msrb.mxu3 %v5324_v9 }
 0xe20   :  { %v4548_v50 = vpop.xlane.xlu0 %4547 }
 0xe21   :  { %v4549_v21 = vmul.f32 %v4548_v50, %v8164_v2 }
 0xe23   :  { %v4550_v1 = vadd.f32 1e-06, %v4549_v21 }
 0xe25   :  { %5623 = vrsqrt.f32 %v4550_v1  ;;  %vm4557_vm9 = vweird.f32 %v4550_v1 }
 0xe2b   :  { %v5624_v61 = vpop.eup %5623 }
 0xe2c   :  { %v4552_v28 = vmul.f32 %v5624_v61, %v4550_v1  ;;  %vm4558_vm8 = vweird.f32 %v5624_v61 }
 0xe2d   :  { %vm4559_vm10 = vmor %vm4557_vm9, %vm4558_vm8 }
 0xe2e   :  { %v4553_v12 = vmul.f32 %v5624_v61, %v4552_v28 }
 0xe30   :  { %v4554_v30 = vmul.f32 0.5, %v4553_v12 }
 0xe32   :  { %v4555_v39 = vsub.f32 1.5, %v4554_v30 }
 0xe34   :  { %v4556_v33 = vmul.f32 %v5624_v61, %v4555_v39 }
 0xe36   :  { %v4560_v43 = vsel %vm4559_vm10, %v5624_v61, %v4556_v33 }
 0xe37   :  { %v4562_v7 = vrot.slane %v4560_v43, 1  ;;  %v4563_v45 = vrot.slane %v4560_v43, 2  ;;  %v4564_v24 = vrot.slane %v4560_v43, 3  ;;  %v4565_v17 = vrot.slane %v4560_v43, 4 }
 0xe38   :  { %v4566_v38 = vrot.slane %v4560_v43, 5  ;;  %v4567_v56 = vrot.slane %v4560_v43, 6  ;;  %v4577_v22 = vmul.f32 %v4560_v43, %v8409_v62  ;;  %v4568_v36 = vrot.slane %v4560_v43, 7 }
 0xe39   :  { %v4578_v4 = vmul.f32 %v4562_v7, %v8411_v44  ;;  %v4579_v57 = vmul.f32 %v4563_v45, %v8413_v37  ;;  %v4580_v40 = vmul.f32 %v4564_v24, %v8415_v29  ;;  %v4581_v42 = vmul.f32 %v4565_v17, %v8417_v13  ;;  %v8521_v45 = vld [vmem:[%s8617_s1 + $0x30] sm:$0xff] }
 0xe3a   :  { %v4586_v60 = vmul.f32 %v4585_v14, %v4577_v22  ;;  %v4582_v46 = vmul.f32 %v4566_v38, %v8419_v15  ;;  %v4583_v3 = vmul.f32 %v4567_v56, %v8421_v20  ;;  %v4584_v10 = vmul.f32 %v4568_v36, %v8423_v6  ;;  %v64_v38 = vld [vmem:[%s8617_s1 + $0x38] sm:$0xff] }
 0xe3b   :  { %v4587_v50 = vmul.f32 %v4585_v14, %v4578_v4  ;;  %v4588_v19 = vmul.f32 %v4585_v14, %v4579_v57  ;;  %v4589_v55 = vmul.f32 %v4585_v14, %v4580_v40  ;;  %v4590_v62 = vmul.f32 %v4585_v14, %v4581_v42  ;;  %v5503_v57 = vld [vmem:[%s8626_s10 + $0xb8] sm:$0xff] }
 0xe3c   :  { %v4595_v58 = vadd.f32 %v4594_v51, %v4586_v60  ;;  %v4591_v21 = vmul.f32 %v4585_v14, %v4582_v46  ;;  %v4592_v44 = vmul.f32 %v4585_v14, %v4583_v3  ;;  %v4593_v63 = vmul.f32 %v4585_v14, %v4584_v10  ;;  %4864 = vmatpush.bf16.msrb.mxu1 %v5503_v57 }
 0xe3d   :  { %v4596_v37 = vadd.f32 %v4594_v51, %v4587_v50  ;;  %v4597_v16 = vadd.f32 %v4594_v51, %v4588_v19  ;;  %v4598_v29 = vadd.f32 %v4594_v51, %v4589_v55  ;;  %v4599_v54 = vadd.f32 %v4594_v51, %v4590_v62  ;;  %v5502_v50 = vld [vmem:[%s8626_s10 + $0xb0] sm:$0xff]  ;;  %v5511_v55 = vld [vmem:[%s8626_s10 + $0xf8] sm:$0xff] }
 0xe3e   :  { %v4603_v13 = vpack.c.bf16 %v4595_v58, %v4595_v58  ;;  %v4600_v25 = vadd.f32 %v4594_v51, %v4591_v21  ;;  %v4601_v48 = vadd.f32 %v4594_v51, %v4592_v44  ;;  %v4602_v15 = vadd.f32 %v4594_v51, %v4593_v63  ;;  %4877 = vmatpush.bf16.msra.mxu3 %v5511_v55  ;;  %v5501_v58 = vld [vmem:[%s8626_s10 + $0xa8] sm:$0xff]  ;;  %v5510_v63 = vld [vmem:[%s8626_s10 + $0xf0] sm:$0xff] }
 0xe3f   :  { %v4604_v35 = vpack.c.bf16 %v4596_v37, %v4596_v37  ;;  %v4605_v20 = vpack.c.bf16 %v4597_v16, %v4597_v16  ;;  %v4606_v59 = vpack.c.bf16 %v4598_v29, %v4598_v29  ;;  %v4607_v6 = vpack.c.bf16 %v4599_v54, %v4599_v54  ;;  %v5500_v29 = vld [vmem:[%s8626_s10 + $0xa0] sm:$0xff] }
 0xe40   :  { %v4608_v1 = vpack.c.bf16 %v4600_v25, %v4600_v25  ;;  %v4609_v18 = vpack.c.bf16 %v4601_v48, %v4601_v48  ;;  %v4610_v26 = vpack.c.bf16 %v4602_v15, %v4602_v15  ;;  %v4621_v8 = vunpack.c.l.b16 %v4603_v13  ;;  %4865 = vmatpush.bf16.msrb.mxu1 %v5502_v50  ;;  %v5509_v13 = vld [vmem:[%s8626_s10 + $0xe8] sm:$0xff]  ;;  %v5499_v48 = vld [vmem:[%s8626_s10 + $0x98] sm:$0xff] }
 0xe41   :  { %v4622_v5 = vunpack.c.l.b16 %v4604_v35  ;;  %v4623_v47 = vunpack.c.l.b16 %v4605_v20  ;;  %v4624_v11 = vunpack.c.l.b16 %v4606_v59  ;;  %v4625_v31 = vunpack.c.l.b16 %v4607_v6  ;;  %v5508_v35 = vld [vmem:[%s8626_s10 + $0xe0] sm:$0xff] }
 0xe42   :  { %v4626_v53 = vunpack.c.l.b16 %v4608_v1  ;;  %v4627_v27 = vunpack.c.l.b16 %v4609_v18  ;;  %v4628_v52 = vunpack.c.l.b16 %v4610_v26  ;;  %v4611_v24 = vperm.slane %v8521_v45, 0  ;;  %4878 = vmatpush.bf16.msra.mxu3 %v5510_v63  ;;  %v5498_v1 = vld [vmem:[%s8626_s10 + $0x90] sm:$0xff] }
 0xe43   :  { %v4629_v0 = vrot.slane %v4622_v5, 7  ;;  %v4631_v32 = vrot.slane %v4623_v47, 6  ;;  %v4633_v34 = vrot.slane %v4624_v11, 5  ;;  %v4635_v9 = vrot.slane %v4625_v31, 4  ;;  %v5507_v47 = vld [vmem:[%s8626_s10 + $0xd8] sm:$0xff] }
 0xe44   :  { %v4637_v30 = vrot.slane %v4626_v53, 3  ;;  %v4639_v33 = vrot.slane %v4627_v27, 2  ;;  %v4641_v14 = vrot.slane %v4628_v52, 1  ;;  %v4612_v36 = vperm.slane %v64_v38, 0  ;;  %4866 = vmatpush.bf16.msrb.mxu1 %v5501_v58  ;;  %v5497_v53 = vld [vmem:[%s8626_s10 + $0x88] sm:$0xff]  ;;  %v5506_v27 = vld [vmem:[%s8626_s10 + $0xd0] sm:$0xff] }
 0xe45   :  { %v4630_v61 = vsel %vm1019_vm14, %v4629_v0, %v4621_v8  ;;  %v5700_v63 = vmov 4.0  }
 0xe46   :  { %v4632_v28 = vsel %vm1022_vm15, %v4631_v32, %v4630_v61  ;;  %4879 = vmatpush.bf16.msra.mxu3 %v5509_v13 }
 0xe47   :  { %v4634_v12 = vsel %vm1025_vm1, %v4633_v34, %v4632_v28  ;;  %v5496_v28 = vld [vmem:[%s8626_s10 + $0x80] sm:$0xff]  ;;  %vm4891_vm1 = vcmask 519168  }
 0xe48   :  { %v4636_v39 = vsel %vm1028_vm2, %v4635_v9, %v4634_v12  ;;  %4867 = vmatpush.bf16.msrb.mxu1 %v5500_v29 }
 0xe49   :  { %v4638_v23 = vsel %vm1031_vm3, %v4637_v30, %v4636_v39  ;;  %v5505_v30 = vld [vmem:[%s8626_s10 + $0xc8] sm:$0xff]  ;;  %vm4918_vm3 = vcmask 1040384  }
 0xe4a   :  { %v4640_v51 = vsel %vm1034_vm4, %v4639_v33, %v4638_v23  ;;  %4880 = vmatpush.bf16.msra.mxu3 %v5508_v35  ;;  %vm4920_vm4 = vcmask 517120  }
 0xe4b   :  { %v4642_v43 = vsel %vm1037_vm5, %v4641_v14, %v4640_v51 }
 0xe4c   :  { %v4643_v7 = vpack.c.b16 %v4642_v43, %v4642_v43  ;;  %4868 = vmatpush.bf16.msrb.mxu1 %v5499_v48  ;;  %v5504_v43 = vld [vmem:[%s8626_s10 + $0xc0] sm:$0xff] }
 0xe4e   :  { %5349 = vmatmul.msk.bf16.vlgmr.msra.gmra.mxu1 %vm3840_vm0, %v4643_v7  ;;  %5350 = vmatmul.msk.bf16.vlgmr.msrb.gmra.mxu3 %vm3840_vm0, %v4643_v7 }
 0xe4f   :  { %4881 = vmatpush.bf16.msra.mxu3 %v5507_v47 }
 0xe50   :  { %4869 = vmatpush.bf16.msrb.mxu1 %v5498_v1 }
 0xe53   :  { %4882 = vmatpush.bf16.msra.mxu3 %v5506_v27 }
 0xe54   :  { %4870 = vmatpush.bf16.msrb.mxu1 %v5497_v53 }
 0xe57   :  { %4883 = vmatpush.bf16.msra.mxu3 %v5505_v30 }
 0xe58   :  { %4871 = vmatpush.bf16.msrb.mxu1 %v5496_v28 }
 0xe5b   :  { %4884 = vmatpush.bf16.msra.mxu3 %v5504_v43 }
 0xecb   :  { %v4696_v17 = vpop.f32.mrf.mxu1 }
 0xecc   :  { %v8527_v56 = vadd.f32 %v4696_v17, %v4611_v24 }
 0xece   :  { %v8530_v22 = vmul.f32 0.70710677, %v8527_v56  ;;  %v4713_v57 = vmul.f32 0.5, %v8527_v56  ;;  %v4767_v56 = vperm.slane %v8521_v45, 1 }
 0xed0   :  { %v4721_v4 = vand.u32 2147483647, %v8530_v22  ;;  %vm4717_vm14 = vcmp.ge.f32.partialorder %v8530_v22, 0.0 }
 0xed1   :  { %v4709_v40 = vpop.f32.mrf.mxu3  ;;  %v4719_v17 = vsel %vm4717_vm14, 1.0, %v8697_v41 }
 0xed2   :  { %v4723_v42 = vmul.f32 0.3275911, %v4721_v4  ;;  %v8536_v60 = vadd.f32 %v4709_v40, %v4612_v36  ;;  %v4747_v16 = vsub.f32 0.0, %v4721_v4 }
 0xed3   :  { %v4698_v46 = vpop.f32.mrf.mxu1 }
 0xed4   :  { %v4725_v3 = vadd.f32 1.0, %v4723_v42  ;;  %v8539_v10 = vmul.f32 0.70710677, %v8536_v60  ;;  %v4749_v15 = vmul.f32 %v4747_v16, %v4721_v4  ;;  %v4714_v55 = vmul.f32 0.5, %v8536_v60 }
 0xed6   :  { %5625 = vrcp.f32 %v4725_v3  ;;  %v4722_v19 = vand.u32 2147483647, %v8539_v10  ;;  %v4751_v5 = vmul.f32 1.442695, %v4749_v15  ;;  %vm4718_vm15 = vcmp.ge.f32.partialorder %v8539_v10, 0.0 }
 0xed7   :  { %v4720_v3 = vsel %vm4718_vm15, 1.0, %v8697_v41 }
 0xed8   :  { %v4724_v62 = vmul.f32 0.3275911, %v4722_v19  ;;  %v4748_v6 = vsub.f32 0.0, %v4722_v19 }
 0xed9   :  { %v4711_v21 = vpop.f32.mrf.mxu3 }
 0xeda   :  { %v4726_v44 = vadd.f32 1.0, %v4724_v62  ;;  %v4750_v8 = vmul.f32 %v4748_v6, %v4722_v19 }
 0xedc   :  { %v5626_v37 = vpop.eup %5625  ;;  %5627 = vrcp.f32 %v4726_v44  ;;  %v4753_v34 = vmul.f32 1.442695, %v4750_v8 }
 0xedd   :  { %v4729_v54 = vmul.f32 1.0614054, %v5626_v37  ;;  %5629 = vpow2.f32 %v4751_v5 }
 0xede   :  { %5631 = vpow2.f32 %v4753_v34 }
 0xedf   :  { %v4731_v25 = vadd.f32 -1.4531521, %v4729_v54  ;;  %5633 = vrcp.f32 %v5700_v63 }
 0xee1   :  { %v4733_v20 = vmul.f32 %v5626_v37, %v4731_v25 }
 0xee2   :  { %v5628_v59 = vpop.eup %5627 }
 0xee3   :  { %v4735_v18 = vadd.f32 1.4214138, %v4733_v20  ;;  %v4730_v26 = vmul.f32 1.0614054, %v5628_v59  ;;  %v5630_v23 = vpop.eup %5629 }
 0xee4   :  { %v5632_v4 = vpop.eup %5631 }
 0xee5   :  { %v4737_v11 = vmul.f32 %v5626_v37, %v4735_v18  ;;  %v4732_v31 = vadd.f32 -1.4531521, %v4730_v26 }
 0xee7   :  { %v4739_v0 = vadd.f32 -0.28449672, %v4737_v11  ;;  %v4734_v32 = vmul.f32 %v5628_v59, %v4732_v31 }
 0xee9   :  { %v4741_v52 = vmul.f32 %v5626_v37, %v4739_v0  ;;  %v4736_v61 = vadd.f32 1.4214138, %v4734_v32 }
 0xeeb   :  { %v4743_v9 = vadd.f32 0.2548296, %v4741_v52  ;;  %v4738_v12 = vmul.f32 %v5628_v59, %v4736_v61 }
 0xeed   :  { %v4745_v39 = vmul.f32 %v5626_v37, %v4743_v9  ;;  %v4740_v33 = vadd.f32 -0.28449672, %v4738_v12  ;;  %v5634_v37 = vpop.eup %5633 }
 0xeee   :  { %v4900_v41 = vmul.f32 4.0, %v5634_v37  ;;  %vm4904_vm2 = vweird.f32 %v5634_v37 }
 0xeef   :  { %v4755_v14 = vmul.f32 %v5630_v23, %v4745_v39  ;;  %v4742_v51 = vmul.f32 %v5628_v59, %v4740_v33  ;;  %v5515_v33 = vld [vmem:[%s8627_s11 + $0x18] sm:$0xff]  ;;  %v5514_v23 = vld [vmem:[%s8627_s11 + $0x10] sm:$0xff] }
 0xef0   :  { %v4901_v48 = vsub.f32 1.0, %v4900_v41  ;;  %4988 = vmatpush.bf16.msrb.mxu0 %v5515_v33 }
 0xef1   :  { %v4757_v7 = vsub.f32 1.0, %v4755_v14  ;;  %v4744_v24 = vadd.f32 0.2548296, %v4742_v51  ;;  %v5513_v14 = vld [vmem:[%s8627_s11 + $0x8] sm:$0xff] }
 0xef2   :  { %v4902_v1 = vmul.f32 %v5634_v37, %v4901_v48 }
 0xef3   :  { %v4759_v38 = vmul.f32 %v4757_v7, %v4719_v17  ;;  %v4746_v36 = vmul.f32 %v5628_v59, %v4744_v24  ;;  %v5512_v24 = vld [vmem:[%s8627_s11] sm:$0xff]  ;;  %s5701_s11 = smov [#allocation5]  }
 0xef4   :  { %v4903_v11 = vadd.f32 %v5634_v37, %v4902_v1  ;;  %4989 = vmatpush.bf16.msrb.mxu0 %v5514_v23  ;;  %s5003_s13 = sshll.u32 %s5701_s11, 4  ;;  %s5004_s13 = int_to_ptr.vmem [resolvable:$true] %s5003_s13 }
 0xef5   :  { %v4761_v40 = vadd.f32 1.0, %v4759_v38  ;;  %v4756_v22 = vmul.f32 %v5632_v4, %v4746_v36 }
 0xef7   :  { %v4763_v42 = vmul.f32 %v4761_v40, %v4713_v57  ;;  %v4758_v46 = vsub.f32 1.0, %v4756_v22  ;;  %v4943_v22 = vperm.slane %v8521_v45, 2 }
 0xef8   :  { %4990 = vmatpush.bf16.msrb.mxu0 %v5513_v14 }
 0xef9   :  { %v4765_v50 = vpack.c.bf16 %v4763_v42, %v4763_v42  ;;  %v4760_v19 = vmul.f32 %v4758_v46, %v4720_v3  ;;  %v4945_v46 = vperm.slane %v8521_v45, 3 }
 0xefb   :  { %v4762_v62 = vadd.f32 1.0, %v4760_v19  ;;  %4872 = vmatmul.bf16.vlgmr.msrb.gmra.mxu1 %v4765_v50 }
 0xefc   :  { %4991 = vmatpush.bf16.msrb.mxu0 %v5512_v24 }
 0xefd   :  { %v4764_v58 = vmul.f32 %v4762_v62, %v4714_v55  ;;  %v4956_v55 = vperm.slane %v8521_v45, 4 }
 0xeff   :  { %v4766_v21 = vpack.c.bf16 %v4764_v58, %v4764_v58 }
 0xf01   :  { %4885 = vmatmul.bf16.vlgmr.msra.gmra.mxu3 %v4766_v21 }
 0xf78   :  { %v4873_v44 = vpop.f32.mrf.mxu1 }
 0xf79   :  { %v4874_v16 = vadd.f32 %v4873_v44, %v4767_v56 }
 0xf80   :  { %v4875_v10 = vpop.f32.mrf.mxu1 }
 0xf84   :  { %v4886_v29 = vpop.f32.mrf.mxu3 }
 0xf85   :  { %v4887_v54 = vadd.f32 %v4886_v29, %v4874_v16 }
 0xf87   :  { %v4890_v13 = vadd.f32 %v4887_v54, %v8362_v49  ;;  %v4905_v49 = vsel %vm4904_vm2, %v5634_v37, %v4903_v11 }
 0xf89   :  { %v4892_v60 = vsel %vm4891_vm1, %v4890_v13, 0.0  ;;  %v4908_v25 = vrot.slane %v4890_v13, 4 }
 0xf8a   :  { %v4893_v15 = vrot.slane %v4892_v60, 4 }
 0xf8b   :  { %v4910_v35 = vsel %vm4891_vm1, %v4908_v25, 0.0 }
 0xf8c   :  { %v4894_v20 = vadd.f32 %v4893_v15, %v4892_v60  ;;  %v4911_v59 = vrot.slane %v4910_v35, 4  ;;  %v4888_v6 = vpop.f32.mrf.mxu3 }
 0xf8e   :  { %v4895_v18 = vrot.slane %v4894_v20, 2  ;;  %v4912_v26 = vadd.f32 %v4911_v59, %v4910_v35 }
 0xf90   :  { %v4896_v5 = vadd.f32 %v4895_v18, %v4894_v20  ;;  %v4913_v47 = vrot.slane %v4912_v26, 2 }
 0xf92   :  { %v4897_v31 = vrot.slane %v4896_v5, 1  ;;  %v4914_v8 = vadd.f32 %v4913_v47, %v4912_v26 }
 0xf94   :  { %v4898_v53 = vadd.f32 %v4897_v31, %v4896_v5  ;;  %v4915_v0 = vrot.slane %v4914_v8, 1 }
 0xf96   :  { %v4916_v32 = vadd.f32 %v4915_v0, %v4914_v8  ;;  %v4906_v27 = vmul.f32 %v4905_v49, %v4898_v53 }
 0xf98   :  { %v4917_v52 = vmul.f32 %v4916_v32, %v4905_v49 }
 0xf9a   :  { %v4919_v61 = vsel %vm4918_vm3, %v4906_v27, %v4917_v52 }
 0xf9b   :  { %v4921_v34 = vsel %vm4920_vm4, %v4919_v61, 0.0 }
 0xf9c   :  { %4922 = vadd.xlane.f32.xlu2 %v4921_v34 }
0x100f   :  { %v4923_v28 = vpop.xlane.xlu2 %4922 }
0x1010   :  { %v4924_v9 = vmul.f32 %v4923_v28, %v8164_v2 }
0x1012   :  { %v4925_v12 = vsub.f32 %v4919_v61, %v4924_v9 }
0x1014   :  { %v4926_v30 = vmul.f32 %v4925_v12, %v4925_v12 }
0x1016   :  { %v4927_v39 = vsel %vm4920_vm4, %v4926_v30, 0.0 }
0x1017   :  { %4928 = vadd.xlane.f32.xlu1 %v4927_v39 }
0x108a   :  { %v4929_v51 = vpop.xlane.xlu1 %4928 }
0x108b   :  { %v4930_v43 = vmul.f32 %v4929_v51, %v8164_v2 }
0x108d   :  { %v4931_v7 = vadd.f32 1e-06, %v4930_v43 }
0x108f   :  { %5635 = vrsqrt.f32 %v4931_v7  ;;  %vm4938_vm11 = vweird.f32 %v4931_v7 }
0x1095   :  { %v5636_v17 = vpop.eup %5635 }
0x1096   :  { %v4933_v38 = vmul.f32 %v5636_v17, %v4931_v7  ;;  %vm4939_vm5 = vweird.f32 %v5636_v17 }
0x1097   :  { %vm4940_vm12 = vmor %vm4938_vm11, %vm4939_vm5 }
0x1098   :  { %v4934_v36 = vmul.f32 %v5636_v17, %v4933_v38 }
0x109a   :  { %v4935_v4 = vmul.f32 0.5, %v4934_v36 }
0x109c   :  { %v4936_v57 = vsub.f32 1.5, %v4935_v4 }
0x109e   :  { %v4937_v40 = vmul.f32 %v5636_v17, %v4936_v57 }
0x10a0   :  { %v4941_v2 = vsel %vm4940_vm12, %v5636_v17, %v4937_v40 }
0x10a1   :  { %v4942_v42 = vmul.f32 %v4941_v2, %v4925_v12 }
0x10a3   :  { %v4944_v3 = vmul.f32 %v4943_v22, %v4942_v42 }
0x10a5   :  { %v4946_v50 = vadd.f32 %v4945_v46, %v4944_v3 }
0x10a7   :  { %v4955_v19 = vpack.c.bf16 %v4946_v50, %v4946_v50 }
0x10a9   :  { %5431 = vmatmul.msk.bf16.vlgmr.msrb.gmra.mxu0 %vm3840_vm0, %v4955_v19 }
0x1126   :  { %v4993_v62 = vpop.f32.mrf.mxu0 }
0x1127   :  { %v4994_v58 = vadd.f32 %v4993_v62, %v4956_v55 }
0x1129   :  { %4997 = vst [vmem:[#allocation5] sm:$0x3] %v4994_v58 }
0x112a   :  { %5008 = dma.vmem_to_hbm [thread:$0]  %s5004_s13, 32, %s5006_s2, [#allocation4]  }
0x112e   :  { %v4995_v21 = vpop.f32.mrf.mxu0 }
0x112f   :  { %5691 = dma.done.wait [#allocation4], 32  }
0x1130   :  { %5692 = vsyncadd [#allocation4], 4294967264 }
0x1131   :  { %5013 = vsyncpa [#allocation3], 1 }
0x1132   :  { %5014 = vsyncpa [#allocation4], 1 }

</bundles_post_ra>
